<compile_context>
chip_gen: v7x
topology: tpu7x:2x2x1
jax: 0.10.0
libtpu: 0.0.40
codegen_flags: <defaults>
</compile_context>

<pallas_src>
import jax
import jax.numpy as jnp
from jax import lax
from jax.experimental import pallas as pl

# ----------------------------- model dimensions -----------------------------
BATCH = 4
MAX_NB_SEQ = 8            # N trees per state
SEQ_FEAT = 16             # per-tree input feature size (flattened sequence enc.)
EMB = 128                 # transformer embedding size (SEQ_EMB.OUTPUT_SIZE)
HIDDEN = 128              # head MLP hidden size
NUM_HEADS = 4
HEAD_DIM = EMB // NUM_HEADS
FFN = 256                 # transformer feed-forward size
NUM_LAYERS = 2
S_PAD = 16                # per-sample token stride (sublane aligned)
TOKENS = BATCH * S_PAD    # 64 rows in the flattened token slab
SUMMARY_ROW = MAX_NB_SEQ  # per-block layout: rows 0..7 trees, row 8 summary, 9..15 pad

# ---- lane offsets inside the packed [128, W128_COLS] weight slab -----------
_o = 0
OFF_EMB_W2 = _o; _o += EMB
_OFF_WQKV0 = _o; _o += 3 * EMB
_OFF_WO0 = _o; _o += EMB
_OFF_FW10 = _o; _o += FFN
_OFF_WQKV1 = _o; _o += 3 * EMB
_OFF_WO1 = _o; _o += EMB
_OFF_FW11 = _o; _o += FFN
OFF_HEAD = _o; _o += 6 * EMB
W128_COLS = _o                                            # 2432
OFF_WQKV = (_OFF_WQKV0, _OFF_WQKV1)
OFF_WO = (_OFF_WO0, _OFF_WO1)
OFF_FW1 = (_OFF_FW10, _OFF_FW11)

# ---- row indices inside the packed [P_ROWS, P_COLS] small-param table ------
P_COLS = 3 * EMB          # 384 (widest small operand: qkv bias)
R_EMB_B1 = 0
R_SUMMARY = 1
R_BQKV = (2, 3)
R_BO = (4, 5)
R_FB1 = (6, 7)
R_FB2 = (8, 9)
R_LN = (10, 14)           # 4 rows per layer: ln1_w, ln1_b, ln2_w, ln2_b
R_HB1 = (18, 19)          # part1 / part2 logits-head hidden bias
R_FLOW_B1 = (20, 21)      # part1 / part2 flow-head hidden bias
R_W2_LOGITS = (22, 23)    # part1 / part2 logits-head W2 (packed as rows)
R_W2_FLOW = (24, 25)      # part1 / part2 flow-head W2 (packed as rows)
R_SCALARS = 26            # lanes 0..3: [hb2_p1, hb2_p2, flow_b2_p1, flow_b2_p2]
P_ROWS = 32


# --------------------------------- kernel -----------------------------------
def _layer_norm(x, w, b, eps=1e-5):
    mu = jnp.mean(x, axis=-1, keepdims=True)
    var = jnp.mean(jnp.square(x - mu), axis=-1, keepdims=True)
    return (x - mu) * lax.rsqrt(var + eps) * w + b


def _fused_forward_kernel(x_ref, add_ref, flag_ref, bias_ref,
                          embw1_ref, w128_ref, fw2_ref, psm_ref, out_ref):
    f32 = jnp.float32
    B, N, S, E, T = BATCH, MAX_NB_SEQ, S_PAD, EMB, TOKENS
    psm = psm_ref[...]                                               # [32, 384]

    # ---------------- seq_emb MLP: Linear -> ReLU -> Linear ------------------
    h0 = jnp.dot(x_ref[...], embw1_ref[...], preferred_element_type=f32) \
        + psm[R_EMB_B1:R_EMB_B1 + 1, :E]
    # add_ref already carries emb_b2 + tree-type embedding per row
    emb = jnp.dot(jnp.maximum(h0, 0.0),
                  w128_ref[:, OFF_EMB_W2:OFF_EMB_W2 + E],
                  preferred_element_type=f32) + add_ref[...]         # [B*N, E]

    # ---------------- token slab [B,16,E] -> [64,E] (aligned blocks) ---------
    summary = psm[R_SUMMARY:R_SUMMARY + 1, :E].reshape(1, 1, E)
    row_i = lax.broadcasted_iota(jnp.int32, (B, S - N, E), 1)
    tail = jnp.where(row_i == 0, summary, 0.0)                       # [B,8,E]: summary + 7 pad
    x = jnp.concatenate([emb.reshape(B, N, E), tail], axis=1).reshape(T, E)

    # ---------------- shared post-norm transformer encoder -------------------
    bias = bias_ref[...]                                             # [T, T] additive mask
    scale = 1.0 / (HEAD_DIM ** 0.5)
    for l in range(NUM_LAYERS):
        qkv = jnp.dot(x, w128_ref[:, OFF_WQKV[l]:OFF_WQKV[l] + 3 * E],
                      preferred_element_type=f32) \
            + psm[R_BQKV[l]:R_BQKV[l] + 1, :3 * E]                   # [T, 3E]
        heads = []
        for h in range(NUM_HEADS):
            c = h * HEAD_DIM
            q = qkv[:, c:c + HEAD_DIM]
            k = qkv[:, E + c:E + c + HEAD_DIM]
            v = qkv[:, 2 * E + c:2 * E + c + HEAD_DIM]
            s = lax.dot_general(q, k, (((1,), (1,)), ((), ())),
                                preferred_element_type=f32) * scale + bias
            s = s - jnp.max(s, axis=-1, keepdims=True)
            p = jnp.exp(s)
            p = p / jnp.sum(p, axis=-1, keepdims=True)               # exact softmax
            heads.append(jnp.dot(p, v, preferred_element_type=f32))  # [T, Dh]
        o = jnp.concatenate(heads, axis=1)                           # [T, E]
        attn = jnp.dot(o, w128_ref[:, OFF_WO[l]:OFF_WO[l] + E],
                       preferred_element_type=f32) + psm[R_BO[l]:R_BO[l] + 1, :E]
        r = R_LN[l]
        x = _layer_norm(x + attn, psm[r:r + 1, :E], psm[r + 1:r + 2, :E])
        ff = jnp.maximum(jnp.dot(x, w128_ref[:, OFF_FW1[l]:OFF_FW1[l] + FFN],
                                 preferred_element_type=f32)
                         + psm[R_FB1[l]:R_FB1[l] + 1, :FFN], 0.0)
        ff = jnp.dot(ff, fw2_ref[l * FFN:(l + 1) * FFN, :],
                     preferred_element_type=f32) + psm[R_FB2[l]:R_FB2[l] + 1, :E]
        x = _layer_norm(x + ff, psm[r + 2:r + 3, :E], psm[r + 3:r + 4, :E])

    # ---------------- fused heads: one [64,128]x[128,768] matmul -------------
    big = jnp.dot(x, w128_ref[:, OFF_HEAD:OFF_HEAD + 6 * E],
                  preferred_element_type=f32)                        # [T, 6E]
    big3 = big.reshape(B, S, 6 * E)
    sum_row = big3[:, SUMMARY_ROW:SUMMARY_ROW + 1, :]                # [B,1,6E] summary token
    q1 = sum_row[:, :, E:2 * E]                                      # part1: summary half
    q2 = big3[:, 0:1, 2 * E:3 * E]                                   # part2: candidate half

    h1 = jnp.maximum(big3[:, :, 0:E] + q1
                     + psm[R_HB1[0]:R_HB1[0] + 1, :E].reshape(1, 1, E), 0.0)
    h2 = jnp.maximum(big3[:, :, 3 * E:4 * E] + q2
                     + psm[R_HB1[1]:R_HB1[1] + 1, :E].reshape(1, 1, E), 0.0)
    red1 = jnp.sum(h1 * psm[R_W2_LOGITS[0]:R_W2_LOGITS[0] + 1, :E].reshape(1, 1, E),
                   axis=-1)                                          # [B, S]
    red2 = jnp.sum(h2 * psm[R_W2_LOGITS[1]:R_W2_LOGITS[1] + 1, :E].reshape(1, 1, E),
                   axis=-1)                                          # [B, S]

    sc = psm[R_SCALARS:R_SCALARS + 1, 0:4]                           # [1, 4]
    flag = flag_ref[...]                                             # [B, 1], 1.0 = intermediate
    l1 = red1[:, 0:N] + sc[:, 0:1]                                   # part1 logits (trees 0..7)
    l2 = red2[:, 1:N] + sc[:, 1:2]                                   # part2 logits (trees 1..7)
    l2p = jnp.concatenate([l2, jnp.zeros((B, 1), f32)], axis=1)      # exact 0 at slot N-1
    logits = flag * l2p + (1.0 - flag) * l1                          # [B, N]

    # ---------------- flow heads on the encoded summary token ----------------
    hf1 = jnp.maximum(sum_row[:, 0, 4 * E:5 * E]
                      + psm[R_FLOW_B1[0]:R_FLOW_B1[0] + 1, :E], 0.0)
    hf2 = jnp.maximum(sum_row[:, 0, 5 * E:6 * E]
                      + psm[R_FLOW_B1[1]:R_FLOW_B1[1] + 1, :E], 0.0)
    f1 = jnp.sum(hf1 * psm[R_W2_FLOW[0]:R_W2_FLOW[0] + 1, :E],
                 axis=-1, keepdims=True) + sc[:, 2:3]
    f2 = jnp.sum(hf2 * psm[R_W2_FLOW[1]:R_W2_FLOW[1] + 1, :E],
                 axis=-1, keepdims=True) + sc[:, 3:4]
    flow = flag * f2 + (1.0 - flag) * f1                             # [B, 1]

    # ---------------- single lane-dense output slab ---------------------------
    out_ref[...] = jnp.concatenate(
        [logits, flow, jnp.zeros((B, S - N - 1), f32)], axis=1)      # [B, 16]


# ----------------------------- parameter init -------------------------------
def _trunc_normal(key, shape, std):
    return std * jax.random.truncated_normal(key, -2.0, 2.0, shape, jnp.float32)


def _dense(key, din, dout):
    kw, kb = jax.random.split(key)
    bound = din ** -0.5
    w = jax.random.uniform(kw, (din, dout), jnp.float32, -bound, bound)
    b = jax.random.uniform(kb, (1, dout), jnp.float32, -bound, bound)
    return w, b


def init_params(key):
    keys = jax.random.split(key, 9)
    e_w1, e_b1 = _dense(keys[0], SEQ_FEAT, HIDDEN)
    e_w2, e_b2 = _dense(keys[1], HIDDEN, EMB)
    summary = _trunc_normal(keys[2], (1, EMB), 0.1)
    tte = _trunc_normal(keys[3], (2, EMB), 0.1)

    layers = []
    for k in jax.random.split(keys[4], NUM_LAYERS):
        ks = jax.random.split(k, 6)
        wq, bq = _dense(ks[0], EMB, EMB)
        wk, bk = _dense(ks[1], EMB, EMB)
        wv, bv = _dense(ks[2], EMB, EMB)
        wo, bo = _dense(ks[3], EMB, EMB)
        w1, b1 = _dense(ks[4], EMB, FFN)
        w2, b2 = _dense(ks[5], FFN, EMB)
        layers.append(dict(wqkv=jnp.concatenate([wq, wk, wv], axis=1),
                           bqkv=jnp.concatenate([bq, bk, bv], axis=1),
                           wo=wo, bo=bo, fw1=w1, fb1=b1, fw2=w2, fb2=b2))

    def head(k, din):
        ka, kb = jax.random.split(k)
        w1, b1 = _dense(ka, din, HIDDEN)
        w2, b2 = _dense(kb, HIDDEN, 1)
        return w1, b1, w2, b2

    h1w1, h1b1, h1w2, h1b2 = head(keys[5], 2 * EMB)   # part1 logits: [trees | summary]
    h2w1, h2b1, h2w2, h2b2 = head(keys[6], 2 * EMB)   # part2 logits: [candidate | trees]
    f1w1, f1b1, f1w2, f1b2 = head(keys[7], EMB)       # part1 flow
    f2w1, f2b1, f2w2, f2b2 = head(keys[8], EMB)       # part2 flow

    # fused heads W1: [P1 tree | P1 summary | P2 candidate | P2 tree | flow1 | flow2]
    head_w = jnp.concatenate([h1w1[:EMB], h1w1[EMB:], h2w1[:EMB], h2w1[EMB:],
                              f1w1, f2w1], axis=1)                       # [E, 6E]

    # one lane-packed [128, 2432] weight slab (single DMA)
    w128 = jnp.concatenate(
        [e_w2,
         layers[0]['wqkv'], layers[0]['wo'], layers[0]['fw1'],
         layers[1]['wqkv'], layers[1]['wo'], layers[1]['fw1'],
         head_w], axis=1)
    assert w128.shape == (EMB, W128_COLS)
    fw2p = jnp.concatenate([layers[0]['fw2'], layers[1]['fw2']], axis=0)  # [512, 128]

    ones = jnp.ones((1, EMB), jnp.float32)
    zeros = jnp.zeros((1, EMB), jnp.float32)

    def row(v):
        v = jnp.reshape(v, (1, -1)).astype(jnp.float32)
        return jnp.pad(v, ((0, 0), (0, P_COLS - v.shape[1])))

    rows = [
        row(e_b1),                                                   # 0
        row(summary),                                                # 1
        row(layers[0]['bqkv']), row(layers[1]['bqkv']),              # 2, 3
        row(layers[0]['bo']), row(layers[1]['bo']),                  # 4, 5
        row(layers[0]['fb1']), row(layers[1]['fb1']),                # 6, 7
        row(layers[0]['fb2']), row(layers[1]['fb2']),                # 8, 9
        row(ones), row(zeros), row(ones), row(zeros),                # 10-13 LN layer0
        row(ones), row(zeros), row(ones), row(zeros),                # 14-17 LN layer1
        row(h1b1), row(h2b1),                                        # 18, 19
        row(f1b1), row(f2b1),                                        # 20, 21
        row(h1w2.T), row(h2w2.T),                                    # 22, 23
        row(f1w2.T), row(f2w2.T),                                    # 24, 25
        row(jnp.concatenate([h1b2, h2b2, f1b2, f2b2], axis=1)),      # 26 scalar pack
    ]
    p_small = jnp.concatenate(
        rows + [jnp.zeros((P_ROWS - len(rows), P_COLS), jnp.float32)], axis=0)

    return {'emb_w1': e_w1, 'w128': w128, 'fw2p': fw2p, 'p_small': p_small,
            'emb_b2': e_b2, 'tte': tte}


# --------------------------------- forward ----------------------------------
def phylo_forward(params, batch_input, batch_intermediate_flag, batch_nb_seq):
    B, N, F = batch_input.shape
    flag = batch_intermediate_flag
    flag_f = flag.astype(jnp.float32)[:, None]                       # [B, 1]

    # tree-type embedding addend (seq_emb output bias folded in), precomputed
    base = (params['emb_b2'] + params['tte'][0:1]).reshape(1, 1, EMB)
    alt = (params['emb_b2'] + params['tte'][1:2]).reshape(1, 1, EMB)
    first = (flag[:, None] & (jnp.arange(N) == 0)[None, :])[:, :, None]
    add_in = jnp.broadcast_to(jnp.where(first, alt, base), (B, N, EMB)).reshape(B * N, EMB)

    # block-diagonal + key-pad additive attention bias over the padded token slab
    col = jnp.arange(TOKENS)
    col_s = col // S_PAD
    col_p = col % S_PAD
    key_valid = (col_p == SUMMARY_ROW) | ((col_p < N) & (col_p < batch_nb_seq[col_s]))
    same = col_s[:, None] == col_s[None, :]
    bias = jnp.where(same & key_valid[None, :], 0.0, -1e9).astype(jnp.float32)

    out = pl.pallas_call(
        _fused_forward_kernel,
        out_shape=jax.ShapeDtypeStruct((B, S_PAD), jnp.float32),
    )(batch_input.reshape(B * N, F).astype(jnp.float32), add_in, flag_f, bias,
      params['emb_w1'], params['w128'], params['fw2p'], params['p_small'])

    logits = out[:, :N]
    log_flow = out[:, N]
    pad_mask = jnp.arange(N)[None, :] >= batch_nb_seq[:, None]
    mask_out = pad_mask | (flag[:, None] &
                           (jnp.arange(N)[None, :] == (batch_nb_seq - 1)[:, None]))
    return {'logits': logits, 'log_flow': log_flow, 'mask': mask_out}


# TODO(synk): condition_on_scale=True (scale-MLP head token) and the
# non-shared-encoder config branches are not exercised by this instance.

# ---------------------------------- main -------------------------------------
if __name__ == "__main__":
    key = jax.random.PRNGKey(0)
    kp, kin = jax.random.split(key)
    params = init_params(kp)

    batch_input = jax.random.normal(kin, (BATCH, MAX_NB_SEQ, SEQ_FEAT), jnp.float32)
    batch_intermediate_flag = jnp.array([True, False, True, False])
    batch_nb_seq = jnp.array([8, 5, 3, 8], dtype=jnp.int32)

    fwd = jax.jit(phylo_forward)
    out = fwd(params, batch_input, batch_intermediate_flag, batch_nb_seq)
    out = jax.tree_util.tree_map(jax.block_until_ready, out)

    assert out['logits'].shape == (BATCH, MAX_NB_SEQ)
    assert out['log_flow'].shape == (BATCH,)
    assert out['mask'].shape == (BATCH, MAX_NB_SEQ)
    assert bool(jnp.all(jnp.isfinite(out['logits']))) and bool(jnp.all(jnp.isfinite(out['log_flow'])))
    print("KERNEL_OK")
</pallas_src>

<mosaic_0001>
module attributes {stable_mosaic.version = 11 : i64} {
  func.func @_fused_forward_kernel(%arg0: memref<32x16xf32, #tpu.memory_space<vmem>>, %arg1: memref<32x128xf32, #tpu.memory_space<vmem>>, %arg2: memref<4x1xf32, #tpu.memory_space<vmem>>, %arg3: memref<64x64xf32, #tpu.memory_space<vmem>>, %arg4: memref<16x128xf32, #tpu.memory_space<vmem>>, %arg5: memref<128x2432xf32, #tpu.memory_space<vmem>>, %arg6: memref<512x128xf32, #tpu.memory_space<vmem>>, %arg7: memref<32x384xf32, #tpu.memory_space<vmem>>, %arg8: memref<4x16xf32, #tpu.memory_space<vmem>>) attributes {dimension_semantics = [], scalar_prefetch = 0 : i64, scratch_operands = 0 : i64, tpu.core_type = #tpu.core_type<tc>} {
    %c0 = arith.constant 0 : index
    %c0_0 = arith.constant 0 : index
    %0 = vector.load %arg7[%c0, %c0_0] : memref<32x384xf32, #tpu.memory_space<vmem>>, vector<32x384xf32>
    %c0_1 = arith.constant 0 : index
    %c0_2 = arith.constant 0 : index
    %1 = vector.load %arg0[%c0_1, %c0_2] : memref<32x16xf32, #tpu.memory_space<vmem>>, vector<32x16xf32>
    %c0_3 = arith.constant 0 : index
    %c0_4 = arith.constant 0 : index
    %2 = vector.load %arg4[%c0_3, %c0_4] : memref<16x128xf32, #tpu.memory_space<vmem>>, vector<16x128xf32>
    %cst = arith.constant dense<0.000000e+00> : vector<32x128xf32>
    %3 = tpu.matmul %1, %2, %cst {dimension_numbers = #tpu.dot_dimension_numbers<[1], [0], [0], [1], [0, 0, 1, 1], [], []>} : vector<32x16xf32>, vector<16x128xf32>, vector<32x128xf32> -> vector<32x128xf32>
    %4 = vector.extract_strided_slice %0 {offsets = [0, 0], sizes = [1, 128], strides = [1, 1]} : vector<32x384xf32> to vector<1x128xf32>
    %5 = vector.broadcast %4 : vector<1x128xf32> to vector<32x128xf32>
    %6 = arith.addf %3, %5 : vector<32x128xf32>
    %cst_5 = arith.constant 0.000000e+00 : f32
    %7 = vector.broadcast %cst_5 : f32 to vector<32x128xf32>
    %8 = arith.maximumf %6, %7 : vector<32x128xf32>
    %c0_6 = arith.constant 0 : index
    %c0_7 = arith.constant 0 : index
    %9 = vector.load %arg5[%c0_6, %c0_7] : memref<128x2432xf32, #tpu.memory_space<vmem>>, vector<128x128xf32>
    %cst_8 = arith.constant dense<0.000000e+00> : vector<32x128xf32>
    %10 = tpu.matmul %8, %9, %cst_8 {dimension_numbers = #tpu.dot_dimension_numbers<[1], [0], [0], [1], [0, 0, 1, 1], [], []>} : vector<32x128xf32>, vector<128x128xf32>, vector<32x128xf32> -> vector<32x128xf32>
    %c0_9 = arith.constant 0 : index
    %c0_10 = arith.constant 0 : index
    %11 = vector.load %arg1[%c0_9, %c0_10] : memref<32x128xf32, #tpu.memory_space<vmem>>, vector<32x128xf32>
    %12 = arith.addf %10, %11 : vector<32x128xf32>
    %13 = vector.extract_strided_slice %0 {offsets = [1, 0], sizes = [1, 128], strides = [1, 1]} : vector<32x384xf32> to vector<1x128xf32>
    %14 = vector.shape_cast %13 : vector<1x128xf32> to vector<1x1x128xf32>
    %15 = tpu.iota {dimensions = array<i32: 1>} : vector<4x8x128xi32>
    %c0_i32 = arith.constant 0 : i32
    %16 = vector.broadcast %c0_i32 : i32 to vector<4x8x128xi32>
    %17 = arith.cmpi eq, %15, %16 : vector<4x8x128xi32>
    %cst_11 = arith.constant 0.000000e+00 : f32
    %18 = vector.shape_cast %14 : vector<1x1x128xf32> to vector<1x1x128xf32>
    %19 = vector.broadcast %18 : vector<1x1x128xf32> to vector<4x8x128xf32>
    %20 = vector.broadcast %cst_11 : f32 to vector<4x8x128xf32>
    %21 = arith.select %17, %19, %20 : vector<4x8x128xi1>, vector<4x8x128xf32>
    %22 = vector.shape_cast %12 : vector<32x128xf32> to vector<4x8x128xf32>
    %23 = tpu.concatenate %22, %21 in 1 : vector<4x8x128xf32>, vector<4x8x128xf32> -> vector<4x16x128xf32>
    %24 = vector.shape_cast %23 : vector<4x16x128xf32> to vector<64x128xf32>
    %c0_12 = arith.constant 0 : index
    %c0_13 = arith.constant 0 : index
    %25 = vector.load %arg3[%c0_12, %c0_13] : memref<64x64xf32, #tpu.memory_space<vmem>>, vector<64x64xf32>
    %c0_14 = arith.constant 0 : index
    %c128 = arith.constant 128 : index
    %26 = vector.load %arg5[%c0_14, %c128] : memref<128x2432xf32, #tpu.memory_space<vmem>>, vector<128x384xf32>
    %cst_15 = arith.constant dense<0.000000e+00> : vector<64x384xf32>
    %27 = tpu.matmul %24, %26, %cst_15 {dimension_numbers = #tpu.dot_dimension_numbers<[1], [0], [0], [1], [0, 0, 1, 1], [], []>} : vector<64x128xf32>, vector<128x384xf32>, vector<64x384xf32> -> vector<64x384xf32>
    %28 = vector.extract_strided_slice %0 {offsets = [2, 0], sizes = [1, 384], strides = [1, 1]} : vector<32x384xf32> to vector<1x384xf32>
    %29 = vector.broadcast %28 : vector<1x384xf32> to vector<64x384xf32>
    %30 = arith.addf %27, %29 : vector<64x384xf32>
    %31 = vector.extract_strided_slice %30 {offsets = [0, 0], sizes = [64, 32], strides = [1, 1]} : vector<64x384xf32> to vector<64x32xf32>
    %32 = vector.extract_strided_slice %30 {offsets = [0, 128], sizes = [64, 32], strides = [1, 1]} : vector<64x384xf32> to vector<64x32xf32>
    %33 = vector.extract_strided_slice %30 {offsets = [0, 256], sizes = [64, 32], strides = [1, 1]} : vector<64x384xf32> to vector<64x32xf32>
    %cst_16 = arith.constant dense<0.000000e+00> : vector<64x64xf32>
    %34 = tpu.matmul %31, %32, %cst_16 {dimension_numbers = #tpu.dot_dimension_numbers<[1], [1], [0], [0], [0, 0, 1, 0], [], []>} : vector<64x32xf32>, vector<64x32xf32>, vector<64x64xf32> -> vector<64x64xf32>
    %cst_17 = arith.constant 0.176776692 : f32
    %35 = vector.broadcast %cst_17 : f32 to vector<64x64xf32>
    %36 = arith.mulf %34, %35 : vector<64x64xf32>
    %37 = arith.addf %36, %25 : vector<64x64xf32>
    %cst_18 = arith.constant dense<0xFF800000> : vector<64xf32>
    %38 = vector.multi_reduction <maximumf>, %37, %cst_18 [1] : vector<64x64xf32> to vector<64xf32>
    %39 = vector.shape_cast %38 : vector<64xf32> to vector<64x1xf32>
    %40 = vector.broadcast %39 : vector<64x1xf32> to vector<64x64xf32>
    %41 = arith.subf %37, %40 : vector<64x64xf32>
    %42 = math.exp %41 : vector<64x64xf32>
    %cst_19 = arith.constant dense<0.000000e+00> : vector<64xf32>
    %43 = vector.multi_reduction <add>, %42, %cst_19 [1] : vector<64x64xf32> to vector<64xf32>
    %44 = vector.shape_cast %43 : vector<64xf32> to vector<64x1xf32>
    %45 = vector.broadcast %44 : vector<64x1xf32> to vector<64x64xf32>
    %46 = arith.divf %42, %45 : vector<64x64xf32>
    %cst_20 = arith.constant dense<0.000000e+00> : vector<64x32xf32>
    %47 = tpu.matmul %46, %33, %cst_20 {dimension_numbers = #tpu.dot_dimension_numbers<[1], [0], [0], [1], [0, 0, 1, 1], [], []>} : vector<64x64xf32>, vector<64x32xf32>, vector<64x32xf32> -> vector<64x32xf32>
    %48 = vector.extract_strided_slice %30 {offsets = [0, 32], sizes = [64, 32], strides = [1, 1]} : vector<64x384xf32> to vector<64x32xf32>
    %49 = vector.extract_strided_slice %30 {offsets = [0, 160], sizes = [64, 32], strides = [1, 1]} : vector<64x384xf32> to vector<64x32xf32>
    %50 = vector.extract_strided_slice %30 {offsets = [0, 288], sizes = [64, 32], strides = [1, 1]} : vector<64x384xf32> to vector<64x32xf32>
    %cst_21 = arith.constant dense<0.000000e+00> : vector<64x64xf32>
    %51 = tpu.matmul %48, %49, %cst_21 {dimension_numbers = #tpu.dot_dimension_numbers<[1], [1], [0], [0], [0, 0, 1, 0], [], []>} : vector<64x32xf32>, vector<64x32xf32>, vector<64x64xf32> -> vector<64x64xf32>
    %cst_22 = arith.constant 0.176776692 : f32
    %52 = vector.broadcast %cst_22 : f32 to vector<64x64xf32>
    %53 = arith.mulf %51, %52 : vector<64x64xf32>
    %54 = arith.addf %53, %25 : vector<64x64xf32>
    %cst_23 = arith.constant dense<0xFF800000> : vector<64xf32>
    %55 = vector.multi_reduction <maximumf>, %54, %cst_23 [1] : vector<64x64xf32> to vector<64xf32>
    %56 = vector.shape_cast %55 : vector<64xf32> to vector<64x1xf32>
    %57 = vector.broadcast %56 : vector<64x1xf32> to vector<64x64xf32>
    %58 = arith.subf %54, %57 : vector<64x64xf32>
    %59 = math.exp %58 : vector<64x64xf32>
    %cst_24 = arith.constant dense<0.000000e+00> : vector<64xf32>
    %60 = vector.multi_reduction <add>, %59, %cst_24 [1] : vector<64x64xf32> to vector<64xf32>
    %61 = vector.shape_cast %60 : vector<64xf32> to vector<64x1xf32>
    %62 = vector.broadcast %61 : vector<64x1xf32> to vector<64x64xf32>
    %63 = arith.divf %59, %62 : vector<64x64xf32>
    %cst_25 = arith.constant dense<0.000000e+00> : vector<64x32xf32>
    %64 = tpu.matmul %63, %50, %cst_25 {dimension_numbers = #tpu.dot_dimension_numbers<[1], [0], [0], [1], [0, 0, 1, 1], [], []>} : vector<64x64xf32>, vector<64x32xf32>, vector<64x32xf32> -> vector<64x32xf32>
    %65 = vector.extract_strided_slice %30 {offsets = [0, 64], sizes = [64, 32], strides = [1, 1]} : vector<64x384xf32> to vector<64x32xf32>
    %66 = vector.extract_strided_slice %30 {offsets = [0, 192], sizes = [64, 32], strides = [1, 1]} : vector<64x384xf32> to vector<64x32xf32>
    %67 = vector.extract_strided_slice %30 {offsets = [0, 320], sizes = [64, 32], strides = [1, 1]} : vector<64x384xf32> to vector<64x32xf32>
    %cst_26 = arith.constant dense<0.000000e+00> : vector<64x64xf32>
    %68 = tpu.matmul %65, %66, %cst_26 {dimension_numbers = #tpu.dot_dimension_numbers<[1], [1], [0], [0], [0, 0, 1, 0], [], []>} : vector<64x32xf32>, vector<64x32xf32>, vector<64x64xf32> -> vector<64x64xf32>
    %cst_27 = arith.constant 0.176776692 : f32
    %69 = vector.broadcast %cst_27 : f32 to vector<64x64xf32>
    %70 = arith.mulf %68, %69 : vector<64x64xf32>
    %71 = arith.addf %70, %25 : vector<64x64xf32>
    %cst_28 = arith.constant dense<0xFF800000> : vector<64xf32>
    %72 = vector.multi_reduction <maximumf>, %71, %cst_28 [1] : vector<64x64xf32> to vector<64xf32>
    %73 = vector.shape_cast %72 : vector<64xf32> to vector<64x1xf32>
    %74 = vector.broadcast %73 : vector<64x1xf32> to vector<64x64xf32>
    %75 = arith.subf %71, %74 : vector<64x64xf32>
    %76 = math.exp %75 : vector<64x64xf32>
    %cst_29 = arith.constant dense<0.000000e+00> : vector<64xf32>
    %77 = vector.multi_reduction <add>, %76, %cst_29 [1] : vector<64x64xf32> to vector<64xf32>
    %78 = vector.shape_cast %77 : vector<64xf32> to vector<64x1xf32>
    %79 = vector.broadcast %78 : vector<64x1xf32> to vector<64x64xf32>
    %80 = arith.divf %76, %79 : vector<64x64xf32>
    %cst_30 = arith.constant dense<0.000000e+00> : vector<64x32xf32>
    %81 = tpu.matmul %80, %67, %cst_30 {dimension_numbers = #tpu.dot_dimension_numbers<[1], [0], [0], [1], [0, 0, 1, 1], [], []>} : vector<64x64xf32>, vector<64x32xf32>, vector<64x32xf32> -> vector<64x32xf32>
    %82 = vector.extract_strided_slice %30 {offsets = [0, 96], sizes = [64, 32], strides = [1, 1]} : vector<64x384xf32> to vector<64x32xf32>
    %83 = vector.extract_strided_slice %30 {offsets = [0, 224], sizes = [64, 32], strides = [1, 1]} : vector<64x384xf32> to vector<64x32xf32>
    %84 = vector.extract_strided_slice %30 {offsets = [0, 352], sizes = [64, 32], strides = [1, 1]} : vector<64x384xf32> to vector<64x32xf32>
    %cst_31 = arith.constant dense<0.000000e+00> : vector<64x64xf32>
    %85 = tpu.matmul %82, %83, %cst_31 {dimension_numbers = #tpu.dot_dimension_numbers<[1], [1], [0], [0], [0, 0, 1, 0], [], []>} : vector<64x32xf32>, vector<64x32xf32>, vector<64x64xf32> -> vector<64x64xf32>
    %cst_32 = arith.constant 0.176776692 : f32
    %86 = vector.broadcast %cst_32 : f32 to vector<64x64xf32>
    %87 = arith.mulf %85, %86 : vector<64x64xf32>
    %88 = arith.addf %87, %25 : vector<64x64xf32>
    %cst_33 = arith.constant dense<0xFF800000> : vector<64xf32>
    %89 = vector.multi_reduction <maximumf>, %88, %cst_33 [1] : vector<64x64xf32> to vector<64xf32>
    %90 = vector.shape_cast %89 : vector<64xf32> to vector<64x1xf32>
    %91 = vector.broadcast %90 : vector<64x1xf32> to vector<64x64xf32>
    %92 = arith.subf %88, %91 : vector<64x64xf32>
    %93 = math.exp %92 : vector<64x64xf32>
    %cst_34 = arith.constant dense<0.000000e+00> : vector<64xf32>
    %94 = vector.multi_reduction <add>, %93, %cst_34 [1] : vector<64x64xf32> to vector<64xf32>
    %95 = vector.shape_cast %94 : vector<64xf32> to vector<64x1xf32>
    %96 = vector.broadcast %95 : vector<64x1xf32> to vector<64x64xf32>
    %97 = arith.divf %93, %96 : vector<64x64xf32>
    %cst_35 = arith.constant dense<0.000000e+00> : vector<64x32xf32>
    %98 = tpu.matmul %97, %84, %cst_35 {dimension_numbers = #tpu.dot_dimension_numbers<[1], [0], [0], [1], [0, 0, 1, 1], [], []>} : vector<64x64xf32>, vector<64x32xf32>, vector<64x32xf32> -> vector<64x32xf32>
    %99 = tpu.concatenate %47, %64, %81, %98 in 1 : vector<64x32xf32>, vector<64x32xf32>, vector<64x32xf32>, vector<64x32xf32> -> vector<64x128xf32>
    %c0_36 = arith.constant 0 : index
    %c512 = arith.constant 512 : index
    %100 = vector.load %arg5[%c0_36, %c512] : memref<128x2432xf32, #tpu.memory_space<vmem>>, vector<128x128xf32>
    %cst_37 = arith.constant dense<0.000000e+00> : vector<64x128xf32>
    %101 = tpu.matmul %99, %100, %cst_37 {dimension_numbers = #tpu.dot_dimension_numbers<[1], [0], [0], [1], [0, 0, 1, 1], [], []>} : vector<64x128xf32>, vector<128x128xf32>, vector<64x128xf32> -> vector<64x128xf32>
    %102 = vector.extract_strided_slice %0 {offsets = [4, 0], sizes = [1, 128], strides = [1, 1]} : vector<32x384xf32> to vector<1x128xf32>
    %103 = vector.broadcast %102 : vector<1x128xf32> to vector<64x128xf32>
    %104 = arith.addf %101, %103 : vector<64x128xf32>
    %105 = arith.addf %24, %104 : vector<64x128xf32>
    %106 = vector.extract_strided_slice %0 {offsets = [10, 0], sizes = [1, 128], strides = [1, 1]} : vector<32x384xf32> to vector<1x128xf32>
    %107 = vector.extract_strided_slice %0 {offsets = [11, 0], sizes = [1, 128], strides = [1, 1]} : vector<32x384xf32> to vector<1x128xf32>
    %cst_38 = arith.constant dense<0.000000e+00> : vector<64xf32>
    %108 = vector.multi_reduction <add>, %105, %cst_38 [1] : vector<64x128xf32> to vector<64xf32>
    %109 = vector.shape_cast %108 : vector<64xf32> to vector<64x1xf32>
    %cst_39 = arith.constant 1.280000e+02 : f32
    %110 = vector.broadcast %cst_39 : f32 to vector<64x1xf32>
    %111 = arith.divf %109, %110 : vector<64x1xf32>
    %112 = vector.broadcast %111 : vector<64x1xf32> to vector<64x128xf32>
    %113 = arith.subf %105, %112 : vector<64x128xf32>
    %114 = arith.mulf %113, %113 : vector<64x128xf32>
    %cst_40 = arith.constant dense<0.000000e+00> : vector<64xf32>
    %115 = vector.multi_reduction <add>, %114, %cst_40 [1] : vector<64x128xf32> to vector<64xf32>
    %116 = vector.shape_cast %115 : vector<64xf32> to vector<64x1xf32>
    %cst_41 = arith.constant 1.280000e+02 : f32
    %117 = vector.broadcast %cst_41 : f32 to vector<64x1xf32>
    %118 = arith.divf %116, %117 : vector<64x1xf32>
    %119 = vector.broadcast %111 : vector<64x1xf32> to vector<64x128xf32>
    %120 = arith.subf %105, %119 : vector<64x128xf32>
    %cst_42 = arith.constant 9.99999974E-6 : f32
    %121 = vector.broadcast %cst_42 : f32 to vector<64x1xf32>
    %122 = arith.addf %118, %121 : vector<64x1xf32>
    %123 = math.rsqrt %122 : vector<64x1xf32>
    %124 = vector.broadcast %123 : vector<64x1xf32> to vector<64x128xf32>
    %125 = arith.mulf %120, %124 : vector<64x128xf32>
    %126 = vector.broadcast %106 : vector<1x128xf32> to vector<64x128xf32>
    %127 = arith.mulf %125, %126 : vector<64x128xf32>
    %128 = vector.broadcast %107 : vector<1x128xf32> to vector<64x128xf32>
    %129 = arith.addf %127, %128 : vector<64x128xf32>
    %c0_43 = arith.constant 0 : index
    %c640 = arith.constant 640 : index
    %130 = vector.load %arg5[%c0_43, %c640] : memref<128x2432xf32, #tpu.memory_space<vmem>>, vector<128x256xf32>
    %cst_44 = arith.constant dense<0.000000e+00> : vector<64x256xf32>
    %131 = tpu.matmul %129, %130, %cst_44 {dimension_numbers = #tpu.dot_dimension_numbers<[1], [0], [0], [1], [0, 0, 1, 1], [], []>} : vector<64x128xf32>, vector<128x256xf32>, vector<64x256xf32> -> vector<64x256xf32>
    %132 = vector.extract_strided_slice %0 {offsets = [6, 0], sizes = [1, 256], strides = [1, 1]} : vector<32x384xf32> to vector<1x256xf32>
    %133 = vector.broadcast %132 : vector<1x256xf32> to vector<64x256xf32>
    %134 = arith.addf %131, %133 : vector<64x256xf32>
    %cst_45 = arith.constant 0.000000e+00 : f32
    %135 = vector.broadcast %cst_45 : f32 to vector<64x256xf32>
    %136 = arith.maximumf %134, %135 : vector<64x256xf32>
    %c0_46 = arith.constant 0 : index
    %c0_47 = arith.constant 0 : index
    %137 = vector.load %arg6[%c0_46, %c0_47] : memref<512x128xf32, #tpu.memory_space<vmem>>, vector<256x128xf32>
    %cst_48 = arith.constant dense<0.000000e+00> : vector<64x128xf32>
    %138 = tpu.matmul %136, %137, %cst_48 {dimension_numbers = #tpu.dot_dimension_numbers<[1], [0], [0], [1], [0, 0, 1, 1], [], []>} : vector<64x256xf32>, vector<256x128xf32>, vector<64x128xf32> -> vector<64x128xf32>
    %139 = vector.extract_strided_slice %0 {offsets = [8, 0], sizes = [1, 128], strides = [1, 1]} : vector<32x384xf32> to vector<1x128xf32>
    %140 = vector.broadcast %139 : vector<1x128xf32> to vector<64x128xf32>
    %141 = arith.addf %138, %140 : vector<64x128xf32>
    %142 = arith.addf %129, %141 : vector<64x128xf32>
    %143 = vector.extract_strided_slice %0 {offsets = [12, 0], sizes = [1, 128], strides = [1, 1]} : vector<32x384xf32> to vector<1x128xf32>
    %144 = vector.extract_strided_slice %0 {offsets = [13, 0], sizes = [1, 128], strides = [1, 1]} : vector<32x384xf32> to vector<1x128xf32>
    %cst_49 = arith.constant dense<0.000000e+00> : vector<64xf32>
    %145 = vector.multi_reduction <add>, %142, %cst_49 [1] : vector<64x128xf32> to vector<64xf32>
    %146 = vector.shape_cast %145 : vector<64xf32> to vector<64x1xf32>
    %cst_50 = arith.constant 1.280000e+02 : f32
    %147 = vector.broadcast %cst_50 : f32 to vector<64x1xf32>
    %148 = arith.divf %146, %147 : vector<64x1xf32>
    %149 = vector.broadcast %148 : vector<64x1xf32> to vector<64x128xf32>
    %150 = arith.subf %142, %149 : vector<64x128xf32>
    %151 = arith.mulf %150, %150 : vector<64x128xf32>
    %cst_51 = arith.constant dense<0.000000e+00> : vector<64xf32>
    %152 = vector.multi_reduction <add>, %151, %cst_51 [1] : vector<64x128xf32> to vector<64xf32>
    %153 = vector.shape_cast %152 : vector<64xf32> to vector<64x1xf32>
    %cst_52 = arith.constant 1.280000e+02 : f32
    %154 = vector.broadcast %cst_52 : f32 to vector<64x1xf32>
    %155 = arith.divf %153, %154 : vector<64x1xf32>
    %156 = vector.broadcast %148 : vector<64x1xf32> to vector<64x128xf32>
    %157 = arith.subf %142, %156 : vector<64x128xf32>
    %cst_53 = arith.constant 9.99999974E-6 : f32
    %158 = vector.broadcast %cst_53 : f32 to vector<64x1xf32>
    %159 = arith.addf %155, %158 : vector<64x1xf32>
    %160 = math.rsqrt %159 : vector<64x1xf32>
    %161 = vector.broadcast %160 : vector<64x1xf32> to vector<64x128xf32>
    %162 = arith.mulf %157, %161 : vector<64x128xf32>
    %163 = vector.broadcast %143 : vector<1x128xf32> to vector<64x128xf32>
    %164 = arith.mulf %162, %163 : vector<64x128xf32>
    %165 = vector.broadcast %144 : vector<1x128xf32> to vector<64x128xf32>
    %166 = arith.addf %164, %165 : vector<64x128xf32>
    %c0_54 = arith.constant 0 : index
    %c896 = arith.constant 896 : index
    %167 = vector.load %arg5[%c0_54, %c896] : memref<128x2432xf32, #tpu.memory_space<vmem>>, vector<128x384xf32>
    %cst_55 = arith.constant dense<0.000000e+00> : vector<64x384xf32>
    %168 = tpu.matmul %166, %167, %cst_55 {dimension_numbers = #tpu.dot_dimension_numbers<[1], [0], [0], [1], [0, 0, 1, 1], [], []>} : vector<64x128xf32>, vector<128x384xf32>, vector<64x384xf32> -> vector<64x384xf32>
    %169 = vector.extract_strided_slice %0 {offsets = [3, 0], sizes = [1, 384], strides = [1, 1]} : vector<32x384xf32> to vector<1x384xf32>
    %170 = vector.broadcast %169 : vector<1x384xf32> to vector<64x384xf32>
    %171 = arith.addf %168, %170 : vector<64x384xf32>
    %172 = vector.extract_strided_slice %171 {offsets = [0, 0], sizes = [64, 32], strides = [1, 1]} : vector<64x384xf32> to vector<64x32xf32>
    %173 = vector.extract_strided_slice %171 {offsets = [0, 128], sizes = [64, 32], strides = [1, 1]} : vector<64x384xf32> to vector<64x32xf32>
    %174 = vector.extract_strided_slice %171 {offsets = [0, 256], sizes = [64, 32], strides = [1, 1]} : vector<64x384xf32> to vector<64x32xf32>
    %cst_56 = arith.constant dense<0.000000e+00> : vector<64x64xf32>
    %175 = tpu.matmul %172, %173, %cst_56 {dimension_numbers = #tpu.dot_dimension_numbers<[1], [1], [0], [0], [0, 0, 1, 0], [], []>} : vector<64x32xf32>, vector<64x32xf32>, vector<64x64xf32> -> vector<64x64xf32>
    %cst_57 = arith.constant 0.176776692 : f32
    %176 = vector.broadcast %cst_57 : f32 to vector<64x64xf32>
    %177 = arith.mulf %175, %176 : vector<64x64xf32>
    %178 = arith.addf %177, %25 : vector<64x64xf32>
    %cst_58 = arith.constant dense<0xFF800000> : vector<64xf32>
    %179 = vector.multi_reduction <maximumf>, %178, %cst_58 [1] : vector<64x64xf32> to vector<64xf32>
    %180 = vector.shape_cast %179 : vector<64xf32> to vector<64x1xf32>
    %181 = vector.broadcast %180 : vector<64x1xf32> to vector<64x64xf32>
    %182 = arith.subf %178, %181 : vector<64x64xf32>
    %183 = math.exp %182 : vector<64x64xf32>
    %cst_59 = arith.constant dense<0.000000e+00> : vector<64xf32>
    %184 = vector.multi_reduction <add>, %183, %cst_59 [1] : vector<64x64xf32> to vector<64xf32>
    %185 = vector.shape_cast %184 : vector<64xf32> to vector<64x1xf32>
    %186 = vector.broadcast %185 : vector<64x1xf32> to vector<64x64xf32>
    %187 = arith.divf %183, %186 : vector<64x64xf32>
    %cst_60 = arith.constant dense<0.000000e+00> : vector<64x32xf32>
    %188 = tpu.matmul %187, %174, %cst_60 {dimension_numbers = #tpu.dot_dimension_numbers<[1], [0], [0], [1], [0, 0, 1, 1], [], []>} : vector<64x64xf32>, vector<64x32xf32>, vector<64x32xf32> -> vector<64x32xf32>
    %189 = vector.extract_strided_slice %171 {offsets = [0, 32], sizes = [64, 32], strides = [1, 1]} : vector<64x384xf32> to vector<64x32xf32>
    %190 = vector.extract_strided_slice %171 {offsets = [0, 160], sizes = [64, 32], strides = [1, 1]} : vector<64x384xf32> to vector<64x32xf32>
    %191 = vector.extract_strided_slice %171 {offsets = [0, 288], sizes = [64, 32], strides = [1, 1]} : vector<64x384xf32> to vector<64x32xf32>
    %cst_61 = arith.constant dense<0.000000e+00> : vector<64x64xf32>
    %192 = tpu.matmul %189, %190, %cst_61 {dimension_numbers = #tpu.dot_dimension_numbers<[1], [1], [0], [0], [0, 0, 1, 0], [], []>} : vector<64x32xf32>, vector<64x32xf32>, vector<64x64xf32> -> vector<64x64xf32>
    %cst_62 = arith.constant 0.176776692 : f32
    %193 = vector.broadcast %cst_62 : f32 to vector<64x64xf32>
    %194 = arith.mulf %192, %193 : vector<64x64xf32>
    %195 = arith.addf %194, %25 : vector<64x64xf32>
    %cst_63 = arith.constant dense<0xFF800000> : vector<64xf32>
    %196 = vector.multi_reduction <maximumf>, %195, %cst_63 [1] : vector<64x64xf32> to vector<64xf32>
    %197 = vector.shape_cast %196 : vector<64xf32> to vector<64x1xf32>
    %198 = vector.broadcast %197 : vector<64x1xf32> to vector<64x64xf32>
    %199 = arith.subf %195, %198 : vector<64x64xf32>
    %200 = math.exp %199 : vector<64x64xf32>
    %cst_64 = arith.constant dense<0.000000e+00> : vector<64xf32>
    %201 = vector.multi_reduction <add>, %200, %cst_64 [1] : vector<64x64xf32> to vector<64xf32>
    %202 = vector.shape_cast %201 : vector<64xf32> to vector<64x1xf32>
    %203 = vector.broadcast %202 : vector<64x1xf32> to vector<64x64xf32>
    %204 = arith.divf %200, %203 : vector<64x64xf32>
    %cst_65 = arith.constant dense<0.000000e+00> : vector<64x32xf32>
    %205 = tpu.matmul %204, %191, %cst_65 {dimension_numbers = #tpu.dot_dimension_numbers<[1], [0], [0], [1], [0, 0, 1, 1], [], []>} : vector<64x64xf32>, vector<64x32xf32>, vector<64x32xf32> -> vector<64x32xf32>
    %206 = vector.extract_strided_slice %171 {offsets = [0, 64], sizes = [64, 32], strides = [1, 1]} : vector<64x384xf32> to vector<64x32xf32>
    %207 = vector.extract_strided_slice %171 {offsets = [0, 192], sizes = [64, 32], strides = [1, 1]} : vector<64x384xf32> to vector<64x32xf32>
    %208 = vector.extract_strided_slice %171 {offsets = [0, 320], sizes = [64, 32], strides = [1, 1]} : vector<64x384xf32> to vector<64x32xf32>
    %cst_66 = arith.constant dense<0.000000e+00> : vector<64x64xf32>
    %209 = tpu.matmul %206, %207, %cst_66 {dimension_numbers = #tpu.dot_dimension_numbers<[1], [1], [0], [0], [0, 0, 1, 0], [], []>} : vector<64x32xf32>, vector<64x32xf32>, vector<64x64xf32> -> vector<64x64xf32>
    %cst_67 = arith.constant 0.176776692 : f32
    %210 = vector.broadcast %cst_67 : f32 to vector<64x64xf32>
    %211 = arith.mulf %209, %210 : vector<64x64xf32>
    %212 = arith.addf %211, %25 : vector<64x64xf32>
    %cst_68 = arith.constant dense<0xFF800000> : vector<64xf32>
    %213 = vector.multi_reduction <maximumf>, %212, %cst_68 [1] : vector<64x64xf32> to vector<64xf32>
    %214 = vector.shape_cast %213 : vector<64xf32> to vector<64x1xf32>
    %215 = vector.broadcast %214 : vector<64x1xf32> to vector<64x64xf32>
    %216 = arith.subf %212, %215 : vector<64x64xf32>
    %217 = math.exp %216 : vector<64x64xf32>
    %cst_69 = arith.constant dense<0.000000e+00> : vector<64xf32>
    %218 = vector.multi_reduction <add>, %217, %cst_69 [1] : vector<64x64xf32> to vector<64xf32>
    %219 = vector.shape_cast %218 : vector<64xf32> to vector<64x1xf32>
    %220 = vector.broadcast %219 : vector<64x1xf32> to vector<64x64xf32>
    %221 = arith.divf %217, %220 : vector<64x64xf32>
    %cst_70 = arith.constant dense<0.000000e+00> : vector<64x32xf32>
    %222 = tpu.matmul %221, %208, %cst_70 {dimension_numbers = #tpu.dot_dimension_numbers<[1], [0], [0], [1], [0, 0, 1, 1], [], []>} : vector<64x64xf32>, vector<64x32xf32>, vector<64x32xf32> -> vector<64x32xf32>
    %223 = vector.extract_strided_slice %171 {offsets = [0, 96], sizes = [64, 32], strides = [1, 1]} : vector<64x384xf32> to vector<64x32xf32>
    %224 = vector.extract_strided_slice %171 {offsets = [0, 224], sizes = [64, 32], strides = [1, 1]} : vector<64x384xf32> to vector<64x32xf32>
    %225 = vector.extract_strided_slice %171 {offsets = [0, 352], sizes = [64, 32], strides = [1, 1]} : vector<64x384xf32> to vector<64x32xf32>
    %cst_71 = arith.constant dense<0.000000e+00> : vector<64x64xf32>
    %226 = tpu.matmul %223, %224, %cst_71 {dimension_numbers = #tpu.dot_dimension_numbers<[1], [1], [0], [0], [0, 0, 1, 0], [], []>} : vector<64x32xf32>, vector<64x32xf32>, vector<64x64xf32> -> vector<64x64xf32>
    %cst_72 = arith.constant 0.176776692 : f32
    %227 = vector.broadcast %cst_72 : f32 to vector<64x64xf32>
    %228 = arith.mulf %226, %227 : vector<64x64xf32>
    %229 = arith.addf %228, %25 : vector<64x64xf32>
    %cst_73 = arith.constant dense<0xFF800000> : vector<64xf32>
    %230 = vector.multi_reduction <maximumf>, %229, %cst_73 [1] : vector<64x64xf32> to vector<64xf32>
    %231 = vector.shape_cast %230 : vector<64xf32> to vector<64x1xf32>
    %232 = vector.broadcast %231 : vector<64x1xf32> to vector<64x64xf32>
    %233 = arith.subf %229, %232 : vector<64x64xf32>
    %234 = math.exp %233 : vector<64x64xf32>
    %cst_74 = arith.constant dense<0.000000e+00> : vector<64xf32>
    %235 = vector.multi_reduction <add>, %234, %cst_74 [1] : vector<64x64xf32> to vector<64xf32>
    %236 = vector.shape_cast %235 : vector<64xf32> to vector<64x1xf32>
    %237 = vector.broadcast %236 : vector<64x1xf32> to vector<64x64xf32>
    %238 = arith.divf %234, %237 : vector<64x64xf32>
    %cst_75 = arith.constant dense<0.000000e+00> : vector<64x32xf32>
    %239 = tpu.matmul %238, %225, %cst_75 {dimension_numbers = #tpu.dot_dimension_numbers<[1], [0], [0], [1], [0, 0, 1, 1], [], []>} : vector<64x64xf32>, vector<64x32xf32>, vector<64x32xf32> -> vector<64x32xf32>
    %240 = tpu.concatenate %188, %205, %222, %239 in 1 : vector<64x32xf32>, vector<64x32xf32>, vector<64x32xf32>, vector<64x32xf32> -> vector<64x128xf32>
    %c0_76 = arith.constant 0 : index
    %c1280 = arith.constant 1280 : index
    %241 = vector.load %arg5[%c0_76, %c1280] : memref<128x2432xf32, #tpu.memory_space<vmem>>, vector<128x128xf32>
    %cst_77 = arith.constant dense<0.000000e+00> : vector<64x128xf32>
    %242 = tpu.matmul %240, %241, %cst_77 {dimension_numbers = #tpu.dot_dimension_numbers<[1], [0], [0], [1], [0, 0, 1, 1], [], []>} : vector<64x128xf32>, vector<128x128xf32>, vector<64x128xf32> -> vector<64x128xf32>
    %243 = vector.extract_strided_slice %0 {offsets = [5, 0], sizes = [1, 128], strides = [1, 1]} : vector<32x384xf32> to vector<1x128xf32>
    %244 = vector.broadcast %243 : vector<1x128xf32> to vector<64x128xf32>
    %245 = arith.addf %242, %244 : vector<64x128xf32>
    %246 = arith.addf %166, %245 : vector<64x128xf32>
    %247 = vector.extract_strided_slice %0 {offsets = [14, 0], sizes = [1, 128], strides = [1, 1]} : vector<32x384xf32> to vector<1x128xf32>
    %248 = vector.extract_strided_slice %0 {offsets = [15, 0], sizes = [1, 128], strides = [1, 1]} : vector<32x384xf32> to vector<1x128xf32>
    %cst_78 = arith.constant dense<0.000000e+00> : vector<64xf32>
    %249 = vector.multi_reduction <add>, %246, %cst_78 [1] : vector<64x128xf32> to vector<64xf32>
    %250 = vector.shape_cast %249 : vector<64xf32> to vector<64x1xf32>
    %cst_79 = arith.constant 1.280000e+02 : f32
    %251 = vector.broadcast %cst_79 : f32 to vector<64x1xf32>
    %252 = arith.divf %250, %251 : vector<64x1xf32>
    %253 = vector.broadcast %252 : vector<64x1xf32> to vector<64x128xf32>
    %254 = arith.subf %246, %253 : vector<64x128xf32>
    %255 = arith.mulf %254, %254 : vector<64x128xf32>
    %cst_80 = arith.constant dense<0.000000e+00> : vector<64xf32>
    %256 = vector.multi_reduction <add>, %255, %cst_80 [1] : vector<64x128xf32> to vector<64xf32>
    %257 = vector.shape_cast %256 : vector<64xf32> to vector<64x1xf32>
    %cst_81 = arith.constant 1.280000e+02 : f32
    %258 = vector.broadcast %cst_81 : f32 to vector<64x1xf32>
    %259 = arith.divf %257, %258 : vector<64x1xf32>
    %260 = vector.broadcast %252 : vector<64x1xf32> to vector<64x128xf32>
    %261 = arith.subf %246, %260 : vector<64x128xf32>
    %cst_82 = arith.constant 9.99999974E-6 : f32
    %262 = vector.broadcast %cst_82 : f32 to vector<64x1xf32>
    %263 = arith.addf %259, %262 : vector<64x1xf32>
    %264 = math.rsqrt %263 : vector<64x1xf32>
    %265 = vector.broadcast %264 : vector<64x1xf32> to vector<64x128xf32>
    %266 = arith.mulf %261, %265 : vector<64x128xf32>
    %267 = vector.broadcast %247 : vector<1x128xf32> to vector<64x128xf32>
    %268 = arith.mulf %266, %267 : vector<64x128xf32>
    %269 = vector.broadcast %248 : vector<1x128xf32> to vector<64x128xf32>
    %270 = arith.addf %268, %269 : vector<64x128xf32>
    %c0_83 = arith.constant 0 : index
    %c1408 = arith.constant 1408 : index
    %271 = vector.load %arg5[%c0_83, %c1408] : memref<128x2432xf32, #tpu.memory_space<vmem>>, vector<128x256xf32>
    %cst_84 = arith.constant dense<0.000000e+00> : vector<64x256xf32>
    %272 = tpu.matmul %270, %271, %cst_84 {dimension_numbers = #tpu.dot_dimension_numbers<[1], [0], [0], [1], [0, 0, 1, 1], [], []>} : vector<64x128xf32>, vector<128x256xf32>, vector<64x256xf32> -> vector<64x256xf32>
    %273 = vector.extract_strided_slice %0 {offsets = [7, 0], sizes = [1, 256], strides = [1, 1]} : vector<32x384xf32> to vector<1x256xf32>
    %274 = vector.broadcast %273 : vector<1x256xf32> to vector<64x256xf32>
    %275 = arith.addf %272, %274 : vector<64x256xf32>
    %cst_85 = arith.constant 0.000000e+00 : f32
    %276 = vector.broadcast %cst_85 : f32 to vector<64x256xf32>
    %277 = arith.maximumf %275, %276 : vector<64x256xf32>
    %c256 = arith.constant 256 : index
    %c0_86 = arith.constant 0 : index
    %278 = vector.load %arg6[%c256, %c0_86] : memref<512x128xf32, #tpu.memory_space<vmem>>, vector<256x128xf32>
    %cst_87 = arith.constant dense<0.000000e+00> : vector<64x128xf32>
    %279 = tpu.matmul %277, %278, %cst_87 {dimension_numbers = #tpu.dot_dimension_numbers<[1], [0], [0], [1], [0, 0, 1, 1], [], []>} : vector<64x256xf32>, vector<256x128xf32>, vector<64x128xf32> -> vector<64x128xf32>
    %280 = vector.extract_strided_slice %0 {offsets = [9, 0], sizes = [1, 128], strides = [1, 1]} : vector<32x384xf32> to vector<1x128xf32>
    %281 = vector.broadcast %280 : vector<1x128xf32> to vector<64x128xf32>
    %282 = arith.addf %279, %281 : vector<64x128xf32>
    %283 = arith.addf %270, %282 : vector<64x128xf32>
    %284 = vector.extract_strided_slice %0 {offsets = [16, 0], sizes = [1, 128], strides = [1, 1]} : vector<32x384xf32> to vector<1x128xf32>
    %285 = vector.extract_strided_slice %0 {offsets = [17, 0], sizes = [1, 128], strides = [1, 1]} : vector<32x384xf32> to vector<1x128xf32>
    %cst_88 = arith.constant dense<0.000000e+00> : vector<64xf32>
    %286 = vector.multi_reduction <add>, %283, %cst_88 [1] : vector<64x128xf32> to vector<64xf32>
    %287 = vector.shape_cast %286 : vector<64xf32> to vector<64x1xf32>
    %cst_89 = arith.constant 1.280000e+02 : f32
    %288 = vector.broadcast %cst_89 : f32 to vector<64x1xf32>
    %289 = arith.divf %287, %288 : vector<64x1xf32>
    %290 = vector.broadcast %289 : vector<64x1xf32> to vector<64x128xf32>
    %291 = arith.subf %283, %290 : vector<64x128xf32>
    %292 = arith.mulf %291, %291 : vector<64x128xf32>
    %cst_90 = arith.constant dense<0.000000e+00> : vector<64xf32>
    %293 = vector.multi_reduction <add>, %292, %cst_90 [1] : vector<64x128xf32> to vector<64xf32>
    %294 = vector.shape_cast %293 : vector<64xf32> to vector<64x1xf32>
    %cst_91 = arith.constant 1.280000e+02 : f32
    %295 = vector.broadcast %cst_91 : f32 to vector<64x1xf32>
    %296 = arith.divf %294, %295 : vector<64x1xf32>
    %297 = vector.broadcast %289 : vector<64x1xf32> to vector<64x128xf32>
    %298 = arith.subf %283, %297 : vector<64x128xf32>
    %cst_92 = arith.constant 9.99999974E-6 : f32
    %299 = vector.broadcast %cst_92 : f32 to vector<64x1xf32>
    %300 = arith.addf %296, %299 : vector<64x1xf32>
    %301 = math.rsqrt %300 : vector<64x1xf32>
    %302 = vector.broadcast %301 : vector<64x1xf32> to vector<64x128xf32>
    %303 = arith.mulf %298, %302 : vector<64x128xf32>
    %304 = vector.broadcast %284 : vector<1x128xf32> to vector<64x128xf32>
    %305 = arith.mulf %303, %304 : vector<64x128xf32>
    %306 = vector.broadcast %285 : vector<1x128xf32> to vector<64x128xf32>
    %307 = arith.addf %305, %306 : vector<64x128xf32>
    %c0_93 = arith.constant 0 : index
    %c1664 = arith.constant 1664 : index
    %308 = vector.load %arg5[%c0_93, %c1664] : memref<128x2432xf32, #tpu.memory_space<vmem>>, vector<128x768xf32>
    %cst_94 = arith.constant dense<0.000000e+00> : vector<64x768xf32>
    %309 = tpu.matmul %307, %308, %cst_94 {dimension_numbers = #tpu.dot_dimension_numbers<[1], [0], [0], [1], [0, 0, 1, 1], [], []>} : vector<64x128xf32>, vector<128x768xf32>, vector<64x768xf32> -> vector<64x768xf32>
    %310 = vector.shape_cast %309 : vector<64x768xf32> to vector<4x16x768xf32>
    %311 = vector.extract_strided_slice %310 {offsets = [0, 8, 0], sizes = [4, 1, 768], strides = [1, 1, 1]} : vector<4x16x768xf32> to vector<4x1x768xf32>
    %312 = vector.extract_strided_slice %311 {offsets = [0, 0, 128], sizes = [4, 1, 128], strides = [1, 1, 1]} : vector<4x1x768xf32> to vector<4x1x128xf32>
    %313 = vector.extract_strided_slice %310 {offsets = [0, 0, 256], sizes = [4, 1, 128], strides = [1, 1, 1]} : vector<4x16x768xf32> to vector<4x1x128xf32>
    %314 = vector.extract_strided_slice %310 {offsets = [0, 0, 0], sizes = [4, 16, 128], strides = [1, 1, 1]} : vector<4x16x768xf32> to vector<4x16x128xf32>
    %315 = vector.broadcast %312 : vector<4x1x128xf32> to vector<4x16x128xf32>
    %316 = arith.addf %314, %315 : vector<4x16x128xf32>
    %317 = vector.extract_strided_slice %0 {offsets = [18, 0], sizes = [1, 128], strides = [1, 1]} : vector<32x384xf32> to vector<1x128xf32>
    %318 = vector.shape_cast %317 : vector<1x128xf32> to vector<1x1x128xf32>
    %319 = vector.broadcast %318 : vector<1x1x128xf32> to vector<4x16x128xf32>
    %320 = arith.addf %316, %319 : vector<4x16x128xf32>
    %cst_95 = arith.constant 0.000000e+00 : f32
    %321 = vector.broadcast %cst_95 : f32 to vector<4x16x128xf32>
    %322 = arith.maximumf %320, %321 : vector<4x16x128xf32>
    %323 = vector.extract_strided_slice %310 {offsets = [0, 0, 384], sizes = [4, 16, 128], strides = [1, 1, 1]} : vector<4x16x768xf32> to vector<4x16x128xf32>
    %324 = vector.broadcast %313 : vector<4x1x128xf32> to vector<4x16x128xf32>
    %325 = arith.addf %323, %324 : vector<4x16x128xf32>
    %326 = vector.extract_strided_slice %0 {offsets = [19, 0], sizes = [1, 128], strides = [1, 1]} : vector<32x384xf32> to vector<1x128xf32>
    %327 = vector.shape_cast %326 : vector<1x128xf32> to vector<1x1x128xf32>
    %328 = vector.broadcast %327 : vector<1x1x128xf32> to vector<4x16x128xf32>
    %329 = arith.addf %325, %328 : vector<4x16x128xf32>
    %cst_96 = arith.constant 0.000000e+00 : f32
    %330 = vector.broadcast %cst_96 : f32 to vector<4x16x128xf32>
    %331 = arith.maximumf %329, %330 : vector<4x16x128xf32>
    %332 = vector.extract_strided_slice %0 {offsets = [22, 0], sizes = [1, 128], strides = [1, 1]} : vector<32x384xf32> to vector<1x128xf32>
    %333 = vector.shape_cast %332 : vector<1x128xf32> to vector<1x1x128xf32>
    %334 = vector.broadcast %333 : vector<1x1x128xf32> to vector<4x16x128xf32>
    %335 = arith.mulf %322, %334 : vector<4x16x128xf32>
    %cst_97 = arith.constant dense<0.000000e+00> : vector<4x16xf32>
    %336 = vector.multi_reduction <add>, %335, %cst_97 [2] : vector<4x16x128xf32> to vector<4x16xf32>
    %337 = vector.extract_strided_slice %0 {offsets = [23, 0], sizes = [1, 128], strides = [1, 1]} : vector<32x384xf32> to vector<1x128xf32>
    %338 = vector.shape_cast %337 : vector<1x128xf32> to vector<1x1x128xf32>
    %339 = vector.broadcast %338 : vector<1x1x128xf32> to vector<4x16x128xf32>
    %340 = arith.mulf %331, %339 : vector<4x16x128xf32>
    %cst_98 = arith.constant dense<0.000000e+00> : vector<4x16xf32>
    %341 = vector.multi_reduction <add>, %340, %cst_98 [2] : vector<4x16x128xf32> to vector<4x16xf32>
    %342 = vector.extract_strided_slice %0 {offsets = [26, 0], sizes = [1, 4], strides = [1, 1]} : vector<32x384xf32> to vector<1x4xf32>
    %c0_99 = arith.constant 0 : index
    %c0_100 = arith.constant 0 : index
    %343 = vector.load %arg2[%c0_99, %c0_100] : memref<4x1xf32, #tpu.memory_space<vmem>>, vector<4x1xf32>
    %344 = vector.extract_strided_slice %336 {offsets = [0, 0], sizes = [4, 8], strides = [1, 1]} : vector<4x16xf32> to vector<4x8xf32>
    %345 = vector.extract_strided_slice %342 {offsets = [0, 0], sizes = [1, 1], strides = [1, 1]} : vector<1x4xf32> to vector<1x1xf32>
    %346 = vector.broadcast %345 : vector<1x1xf32> to vector<4x8xf32>
    %347 = arith.addf %344, %346 : vector<4x8xf32>
    %348 = vector.extract_strided_slice %341 {offsets = [0, 1], sizes = [4, 7], strides = [1, 1]} : vector<4x16xf32> to vector<4x7xf32>
    %349 = vector.extract_strided_slice %342 {offsets = [0, 1], sizes = [1, 1], strides = [1, 1]} : vector<1x4xf32> to vector<1x1xf32>
    %350 = vector.broadcast %349 : vector<1x1xf32> to vector<4x7xf32>
    %351 = arith.addf %348, %350 : vector<4x7xf32>
    %cst_101 = arith.constant 0.000000e+00 : f32
    %352 = vector.broadcast %cst_101 : f32 to vector<4x1xf32>
    %353 = tpu.concatenate %351, %352 in 1 : vector<4x7xf32>, vector<4x1xf32> -> vector<4x8xf32>
    %354 = vector.broadcast %343 : vector<4x1xf32> to vector<4x8xf32>
    %355 = arith.mulf %354, %353 : vector<4x8xf32>
    %cst_102 = arith.constant 1.000000e+00 : f32
    %356 = vector.broadcast %cst_102 : f32 to vector<4x1xf32>
    %357 = arith.subf %356, %343 : vector<4x1xf32>
    %358 = vector.broadcast %357 : vector<4x1xf32> to vector<4x8xf32>
    %359 = arith.mulf %358, %347 : vector<4x8xf32>
    %360 = arith.addf %355, %359 : vector<4x8xf32>
    %361 = vector.extract_strided_slice %311 {offsets = [0, 0, 512], sizes = [4, 1, 128], strides = [1, 1, 1]} : vector<4x1x768xf32> to vector<4x1x128xf32>
    %362 = vector.shape_cast %361 : vector<4x1x128xf32> to vector<4x128xf32>
    %363 = vector.extract_strided_slice %0 {offsets = [20, 0], sizes = [1, 128], strides = [1, 1]} : vector<32x384xf32> to vector<1x128xf32>
    %364 = vector.broadcast %363 : vector<1x128xf32> to vector<4x128xf32>
    %365 = arith.addf %362, %364 : vector<4x128xf32>
    %cst_103 = arith.constant 0.000000e+00 : f32
    %366 = vector.broadcast %cst_103 : f32 to vector<4x128xf32>
    %367 = arith.maximumf %365, %366 : vector<4x128xf32>
    %368 = vector.extract_strided_slice %311 {offsets = [0, 0, 640], sizes = [4, 1, 128], strides = [1, 1, 1]} : vector<4x1x768xf32> to vector<4x1x128xf32>
    %369 = vector.shape_cast %368 : vector<4x1x128xf32> to vector<4x128xf32>
    %370 = vector.extract_strided_slice %0 {offsets = [21, 0], sizes = [1, 128], strides = [1, 1]} : vector<32x384xf32> to vector<1x128xf32>
    %371 = vector.broadcast %370 : vector<1x128xf32> to vector<4x128xf32>
    %372 = arith.addf %369, %371 : vector<4x128xf32>
    %cst_104 = arith.constant 0.000000e+00 : f32
    %373 = vector.broadcast %cst_104 : f32 to vector<4x128xf32>
    %374 = arith.maximumf %372, %373 : vector<4x128xf32>
    %375 = vector.extract_strided_slice %0 {offsets = [24, 0], sizes = [1, 128], strides = [1, 1]} : vector<32x384xf32> to vector<1x128xf32>
    %376 = vector.broadcast %375 : vector<1x128xf32> to vector<4x128xf32>
    %377 = arith.mulf %367, %376 : vector<4x128xf32>
    %cst_105 = arith.constant dense<0.000000e+00> : vector<4xf32>
    %378 = vector.multi_reduction <add>, %377, %cst_105 [1] : vector<4x128xf32> to vector<4xf32>
    %379 = vector.shape_cast %378 : vector<4xf32> to vector<4x1xf32>
    %380 = vector.extract_strided_slice %342 {offsets = [0, 2], sizes = [1, 1], strides = [1, 1]} : vector<1x4xf32> to vector<1x1xf32>
    %381 = vector.broadcast %380 : vector<1x1xf32> to vector<4x1xf32>
    %382 = arith.addf %379, %381 : vector<4x1xf32>
    %383 = vector.extract_strided_slice %0 {offsets = [25, 0], sizes = [1, 128], strides = [1, 1]} : vector<32x384xf32> to vector<1x128xf32>
    %384 = vector.broadcast %383 : vector<1x128xf32> to vector<4x128xf32>
    %385 = arith.mulf %374, %384 : vector<4x128xf32>
    %cst_106 = arith.constant dense<0.000000e+00> : vector<4xf32>
    %386 = vector.multi_reduction <add>, %385, %cst_106 [1] : vector<4x128xf32> to vector<4xf32>
    %387 = vector.shape_cast %386 : vector<4xf32> to vector<4x1xf32>
    %388 = vector.extract_strided_slice %342 {offsets = [0, 3], sizes = [1, 1], strides = [1, 1]} : vector<1x4xf32> to vector<1x1xf32>
    %389 = vector.broadcast %388 : vector<1x1xf32> to vector<4x1xf32>
    %390 = arith.addf %387, %389 : vector<4x1xf32>
    %391 = arith.mulf %343, %390 : vector<4x1xf32>
    %cst_107 = arith.constant 1.000000e+00 : f32
    %392 = vector.broadcast %cst_107 : f32 to vector<4x1xf32>
    %393 = arith.subf %392, %343 : vector<4x1xf32>
    %394 = arith.mulf %393, %382 : vector<4x1xf32>
    %395 = arith.addf %391, %394 : vector<4x1xf32>
    %cst_108 = arith.constant 0.000000e+00 : f32
    %396 = vector.broadcast %cst_108 : f32 to vector<4x7xf32>
    %397 = tpu.concatenate %360, %395, %396 in 1 : vector<4x8xf32>, vector<4x1xf32>, vector<4x7xf32> -> vector<4x16xf32>
    %c0_109 = arith.constant 0 : index
    %c0_110 = arith.constant 0 : index
    %398 = vector.load %arg8[%c0_109, %c0_110] : memref<4x16xf32, #tpu.memory_space<vmem>>, vector<4x16xf32>
    tpu.vector_store %arg8[%c0_109, %c0_110], %397 {strides = array<i32>} : memref<4x16xf32, #tpu.memory_space<vmem>>, vector<4x16xf32>,
    return
  }
}

</mosaic_0001>

<bundles_post_ra>
// kernel: phylo_forward.1
= control target key start
LH: loop header
LB: loop body
LE: loop exit
PB: predicated region body
PF: predicated region fallthrough
CT: control target
= control target key end

     0   :  { %13 = vsyncpa [#allocation3], 0  ;;  %s11915_s0 = inlined_call_operand.hbm [shape: f32[32,16], index: 0, kind: input, shape index: {}]   ;;  %s11916_s1 = inlined_call_operand.vmem [shape: f32[32,128], index: 1, kind: input, shape index: {}]   ;;  %s11917_s2 = inlined_call_operand.vmem [shape: f32[4,1], index: 2, kind: input, shape index: {}]   ;;  %s11918_s3 = inlined_call_operand.vmem [shape: f32[64,64], index: 3, kind: input, shape index: {}]   ;;  %s11919_s4 = inlined_call_operand.hbm [shape: f32[16,128], index: 4, kind: input, shape index: {}]   ;;  %s11920_s5 = inlined_call_operand.hbm [shape: f32[128,2432], index: 5, kind: input, shape index: {}]   ;;  %s11921_s6 = inlined_call_operand.hbm [shape: f32[512,128], index: 6, kind: input, shape index: {}]   ;;  %s11922_s7 = inlined_call_operand.hbm [shape: f32[32,384], index: 7, kind: input, shape index: {}]   ;;  %s11923_s8 = inlined_call_operand.vmem [shape: f32[4,16], index: 8, kind: output, shape index: {}]  }
   0x1   :  { %14 = vsyncpa [#allocation5], 0 }
   0x2   :  { %15 = vsyncpa [#allocation8], 0  ;;  %s9523_s27 = smov [#allocation4]   ;;  %s9524_s29 = smov [#allocation7]  }
   0x3   :  { %s39_s28 = sshll.u32 %s9523_s27, 4  ;;  %s63_s30 = sshll.u32 %s9524_s29, 4  ;;  %s40_s28 = int_to_ptr.vmem [resolvable:$true] %s39_s28  ;;  %s9587_s30 = int_to_ptr.vmem [resolvable:$true] %s63_s30 }
   0x4   :  { %s9407_s11 = scalar_lea.hbm %s11919_s4, 256 }
   0x5   :  { %p9408_p0 = scmp.ne.s32.totalorder %s11919_s4, %s9407_s11  ;;  %p9411_p1 = scmp.lt.u32.totalorder %s9407_s11, %s11919_s4 }
   0x7   :  { %p9413_p2 = pnand %p9411_p1, %p9408_p0 }
   0x9   :  { %9416 = shalt.err (!%p9413_p2)
}
   0xa   :  { %s9417_s16 = scalar_lea.vmem %s40_s28, 256  ;;  %p9422_p4 = scmp.lt.s32.totalorder %s40_s28, %s40_s28 }
   0xb   :  { %p9418_p3 = scmp.ne.s32.totalorder %s40_s28, %s9417_s16  ;;  %p9423_p5 = scmp.lt.s32.totalorder %s9417_s16, %s9417_s16 }
   0xd   :  { %p9424_p6 = por %p9423_p5, %p9422_p4 }
   0xf   :  { %p9425_p7 = pnand %p9424_p6, %p9418_p3 }
  0x11   :  { %9428 = shalt.err (!%p9425_p7)
}
  0x12   :  { %s9525_s17 = smov 128   ;;  %s9526_s18 = smov 8  }
  0x13   :  { %45 = dma.hbm_to_vmem [thread:$0]  %s11919_s4, 256, %s40_s28, [#allocation5], %s9525_s17, %s9525_s17, %s9526_s18  }
  0x14   :  { %s9429_s23 = scalar_lea.hbm %s11921_s6, 8192 }
  0x15   :  { %p9430_p8 = scmp.ne.s32.totalorder %s11921_s6, %s9429_s23  ;;  %p9433_p9 = scmp.lt.u32.totalorder %s9429_s23, %s11921_s6 }
  0x17   :  { %p9435_p10 = pnand %p9433_p9, %p9430_p8 }
  0x19   :  { %9438 = shalt.err (!%p9435_p10)
}
  0x1a   :  { %s9439_s29 = scalar_lea.vmem %s9587_s30, 8192  ;;  %p9444_p12 = scmp.lt.s32.totalorder %s9587_s30, %s9587_s30 }
  0x1b   :  { %p9440_p11 = scmp.ne.s32.totalorder %s9587_s30, %s9439_s29  ;;  %p9445_p13 = scmp.lt.s32.totalorder %s9439_s29, %s9439_s29 }
  0x1d   :  { %p9446_p0 = por %p9445_p13, %p9444_p12 }
  0x1f   :  { %p9447_p1 = pnand %p9446_p0, %p9440_p11 }
  0x21   :  { %9450 = shalt.err (!%p9447_p1)
}
  0x22   :  { %69 = dma.hbm_to_vmem [thread:$0]  %s11921_s6, 8192, %s9587_s30, [#allocation8], %s9525_s17, %s9525_s17, %s9526_s18  }
  0x23   :  { %s9527_s9 = smov [#allocation2]   ;;  %s9528_s11 = smov [#allocation6]  }
  0x24   :  { %s21_s10 = sshll.u32 %s9527_s9, 4  ;;  %s51_s12 = sshll.u32 %s9528_s11, 4  ;;  %s22_s10 = int_to_ptr.vmem [resolvable:$true] %s21_s10  ;;  %s9624_s12 = int_to_ptr.vmem [resolvable:$true] %s51_s12 }
  0x25   :  { %s9451_s15 = scalar_lea.hbm %s11915_s0, 512 }
  0x26   :  { %p9452_p2 = scmp.ne.s32.totalorder %s11915_s0, %s9451_s15  ;;  %p9455_p3 = scmp.lt.u32.totalorder %s9451_s15, %s11915_s0 }
  0x28   :  { %p9457_p4 = pnand %p9455_p3, %p9452_p2 }
  0x2a   :  { %9460 = shalt.err (!%p9457_p4)
}
  0x2b   :  { %s9461_s6 = scalar_lea.vmem %s22_s10, 512  ;;  %p9466_p6 = scmp.lt.s32.totalorder %s22_s10, %s22_s10 }
  0x2c   :  { %p9462_p5 = scmp.ne.s32.totalorder %s22_s10, %s9461_s6  ;;  %p9467_p7 = scmp.lt.s32.totalorder %s9461_s6, %s9461_s6 }
  0x2e   :  { %p9468_p8 = por %p9467_p7, %p9466_p6 }
  0x30   :  { %p9469_p9 = pnand %p9468_p8, %p9462_p5 }
  0x32   :  { %9472 = shalt.err (!%p9469_p9)
}
  0x33   :  { %27 = dma.hbm_to_vmem [thread:$0]  %s11915_s0, 512, %s22_s10, [#allocation3], %s9525_s17, %s9525_s17, %s9526_s18  }
  0x34   :  { %s9473_s25 = scalar_lea.hbm %s11920_s5, 38912 }
  0x35   :  { %p9474_p10 = scmp.ne.s32.totalorder %s11920_s5, %s9473_s25  ;;  %p9477_p11 = scmp.lt.u32.totalorder %s9473_s25, %s11920_s5 }
  0x37   :  { %p9479_p12 = pnand %p9477_p11, %p9474_p10 }
  0x39   :  { %9482 = shalt.err (!%p9479_p12)
}
  0x3a   :  { %s9483_s28 = scalar_lea.vmem %s9624_s12, 38912  ;;  %p9488_p0 = scmp.lt.s32.totalorder %s9624_s12, %s9624_s12 }
  0x3b   :  { %p9484_p13 = scmp.ne.s32.totalorder %s9624_s12, %s9483_s28  ;;  %p9489_p1 = scmp.lt.s32.totalorder %s9483_s28, %s9483_s28 }
  0x3d   :  { %p9490_p2 = por %p9489_p1, %p9488_p0 }
  0x3f   :  { %p9491_p3 = pnand %p9490_p2, %p9484_p13 }
  0x41   :  { %9494 = shalt.err (!%p9491_p3)
}
  0x42   :  { %s9529_s0 = smov 2432   ;;  %s9530_s17 = smov 152  }
  0x43   :  { %57 = dma.hbm_to_vmem [thread:$0]  %s11920_s5, 38912, %s9624_s12, [#allocation5], %s9529_s0, %s9529_s0, %s9530_s17  }
  0x44   :  { %s9531_s11 = smov [#allocation9]   ;;  %s9495_s16 = scalar_lea.hbm %s11922_s7, 1536 }
  0x45   :  { %s75_s13 = sshll.u32 %s9531_s11, 4  ;;  %p9496_p4 = scmp.ne.s32.totalorder %s11922_s7, %s9495_s16  ;;  %s76_s13 = int_to_ptr.vmem [resolvable:$true] %s75_s13 }
  0x46   :  { %p9499_p5 = scmp.lt.u32.totalorder %s9495_s16, %s11922_s7 }
  0x48   :  { %p9501_p6 = pnand %p9499_p5, %p9496_p4 }
  0x4a   :  { %9504 = shalt.err (!%p9501_p6)
}
  0x4b   :  { %s9505_s30 = scalar_lea.vmem %s76_s13, 1536  ;;  %p9510_p8 = scmp.lt.s32.totalorder %s76_s13, %s76_s13 }
  0x4c   :  { %p9506_p7 = scmp.ne.s32.totalorder %s76_s13, %s9505_s30  ;;  %p9511_p9 = scmp.lt.s32.totalorder %s9505_s30, %s9505_s30 }
  0x4e   :  { %p9512_p10 = por %p9511_p9, %p9510_p8 }
  0x50   :  { %p9513_p11 = pnand %p9512_p10, %p9506_p7 }
  0x52   :  { %9516 = shalt.err (!%p9513_p11)
}
  0x53   :  { %s9532_s5 = smov 384   ;;  %s9533_s12 = smov 24  }
  0x54   :  { %81 = dma.hbm_to_vmem [thread:$0]  %s11922_s7, 1536, %s76_s13, [#allocation8], %s9532_s5, %s9532_s5, %s9533_s12  }
  0x55   :  { %9517 = dma.done.wait [#allocation3], 512  }
  0x56   :  { %9518 = vsyncadd [#allocation3], 4294966784 }
  0x57   :  { %9519 = dma.done.wait [#allocation5], 39168  }
  0x58   :  { %9520 = vsyncadd [#allocation5], 4294928128 }
  0x59   :  { %9521 = dma.done.wait [#allocation8], 9728  }
  0x5a   :  { %9522 = vsyncadd [#allocation8], 4294957568  ;;  %vm113_vm0 = vcmask 130048   ;;  %v107_v0 = vld [vmem:[#allocation4] sm:$0xff]  ;;  %v108_v1 = vld [vmem:[#allocation4 + $0x8] sm:$0xff]  ;;  %vm614_vm2 = vcmask 261120  }
  0x5b   :  { %v103_v2 = vld [vmem:[#allocation2] sm:$0xff]  ;;  %v7899_v3 = vpack.c.bf16 %v108_v1, %v107_v0  ;;  %v215_v4 = vld [vmem:[#allocation6] sm:$0xff]  ;;  %v216_v5 = vld [vmem:[#allocation6 + $0x98] sm:$0xff]  ;;  %vm784_vm4 = vcmask 523264   ;;  %s9536_s22 = smov 64   ;;  %s9537_s23 = smov 32  }
  0x5c   :  { %7231 = vmatprep.mubr.msk.f32.mxu0 %vm113_vm0, %v103_v2  ;;  %v217_v6 = vld [vmem:[#allocation6 + $0x130] sm:$0xff]  ;;  %v7903_v7 = vpack.c.bf16 %v216_v5, %v215_v4  ;;  %v218_v8 = vld [vmem:[#allocation6 + $0x1c8] sm:$0xff]  ;;  %v104_v9 = vld [vmem:[#allocation2 + $0x8] sm:$0xff]  ;;  %vm2400_vm5 = vcmask 785408   ;;  %vm6423_vm6 = vcmask 1041409   ;;  %vm6379_vm7 = vcmask 1042434  }
  0x5d   :  { %7900 = vmatprep.subr.bf16.mxu0 %v7899_v3  ;;  %v7907_v10 = vpack.c.bf16 %v218_v8, %v217_v6  ;;  %v219_v11 = vld [vmem:[#allocation6 + $0x260] sm:$0xff]  ;;  %v220_v12 = vld [vmem:[#allocation6 + $0x2f8] sm:$0xff]  ;;  %v106_v15 = vld [vmem:[#allocation2 + $0x18] sm:$0xff]  ;;  %vm6381_vm8 = vcmask 1043459   ;;  %vm6473_vm9 = vcmask 1043456   ;;  %vm6383_vm10 = vcmask 1044484  }
  0x5e   :  { %7902 = vmatpush3.bf16.msra.mxu0 %v7899_v3  ;;  %v105_v13 = vld [vmem:[#allocation2 + $0x10] sm:$0xff]  ;;  %7904 = vmatprep.subr.bf16.mxu1 %v7903_v7  ;;  %v7911_v14 = vpack.c.bf16 %v220_v12, %v219_v11  ;;  %v221_v16 = vld [vmem:[#allocation6 + $0x390] sm:$0xff]  ;;  %v222_v17 = vld [vmem:[#allocation6 + $0x428] sm:$0xff]  ;;  %v11924_v12 = vlaneseq  ;;  %vm6386_vm11 = vcmask 56320   ;;  %vm6520_vm12 = vcmask 64512  }
  0x5f   :  { %7906 = vmatpush3.bf16.msra.mxu1 %v7903_v7  ;;  %v7915_v18 = vpack.c.bf16 %v222_v17, %v221_v16  ;;  %v223_v19 = vld [vmem:[#allocation6 + $0x4c0] sm:$0xff]  ;;  %v224_v20 = vld [vmem:[#allocation6 + $0x558] sm:$0xff]  ;;  %v225_v22 = vld [vmem:[#allocation6 + $0x5f0] sm:$0xff]  ;;  %vm6522_vm13 = vcmask 72704   ;;  %vm6524_vm14 = vcmask 125952  }
  0x60   :  { %7908 = vmatprep.subr.bf16.mxu1 %v7907_v10  ;;  %v7919_v21 = vpack.c.bf16 %v224_v20, %v223_v19  ;;  %v226_v23 = vld [vmem:[#allocation6 + $0x688] sm:$0xff]  ;;  %v227_v25 = vld [vmem:[#allocation6 + $0x720] sm:$0xff]  ;;  %v228_v26 = vld [vmem:[#allocation6 + $0x7b8] sm:$0xff] }
  0x61   :  { %7232 = vmatmul.mubr.msk.f32.vlgmr.msra.gmra.mrb[0].mxu0 %vm113_vm0, %v104_v9  ;;  %v7923_v24 = vpack.c.bf16 %v226_v23, %v225_v22  ;;  %v7927_v27 = vpack.c.bf16 %v228_v26, %v227_v25  ;;  %v229_v28 = vld [vmem:[#allocation6 + $0x850] sm:$0xff]  ;;  %v230_v29 = vld [vmem:[#allocation6 + $0x8e8] sm:$0xff]  ;;  %v339_v35 = vld [vmem:[#allocation6 + $0xa0] sm:$0xff] }
  0x62   :  { %7234 = vmatprep.mubr.msk.f32.mxu0 %vm113_vm0, %v105_v13  ;;  %v7931_v30 = vpack.c.bf16 %v230_v29, %v229_v28  ;;  %v337_v31 = vld [vmem:[#allocation6 + $0x10] sm:$0xff]  ;;  %v340_v32 = vld [vmem:[#allocation6 + $0xa8] sm:$0xff]  ;;  %v338_v36 = vld [vmem:[#allocation6 + $0x18] sm:$0xff]  ;;  %v9678_v13 = vshrl.u32 %v11924_v12, 7 }
  0x63   :  { %7910 = vmatpush3.bf16.msra.mxu1 %v7907_v10  ;;  %v336_v33 = vld [vmem:[#allocation6 + $0x8] sm:$0xff]  ;;  %v7935_v34 = vpack.c.bf16 %v340_v32, %v337_v31  ;;  %v341_v37 = vld [vmem:[#allocation6 + $0xb0] sm:$0xff]  ;;  %v343_v40 = vld [vmem:[#allocation6 + $0x140] sm:$0xff] }
  0x64   :  { %7912 = vmatprep.subr.bf16.mxu1 %v7911_v14  ;;  %v7937_v38 = vpack.c.bf16 %v339_v35, %v336_v33  ;;  %v9674_v39 = vpack.c.bf16 %v341_v37, %v338_v36  ;;  %v346_v41 = vld [vmem:[#allocation6 + $0x1d8] sm:$0xff]  ;;  %v345_v44 = vld [vmem:[#allocation6 + $0x1d0] sm:$0xff]  ;;  %v352_v47 = vld [vmem:[#allocation6 + $0x308] sm:$0xff]  ;;  %11945 = vst [vmem:[#allocation13_spill] sm:$0xff] %v9678_v13  ;;  %vm322_vm1 = vcmp.eq.s32.totalorder %v9678_v13, 0 }
  0x65   :  { %7235 = vmatmul.mubr.msk.f32.gmra.mrb[2].mxu0 %vm113_vm0, %v106_v15  ;;  %v342_v42 = vld [vmem:[#allocation6 + $0x138] sm:$0xff]  ;;  %7936 = vmatprep.subr.bf16.mxu0 %v7935_v34  ;;  %v7939_v43 = vpack.c.bf16 %v346_v41, %v343_v40  ;;  %v349_v46 = vld [vmem:[#allocation6 + $0x270] sm:$0xff]  ;;  %v348_v49 = vld [vmem:[#allocation6 + $0x268] sm:$0xff] }
  0x66   :  { %7938 = vmatpush1.bf16.msra.mxu0 %v7937_v38  ;;  %v7941_v45 = vpack.c.bf16 %v345_v44, %v342_v42  ;;  %v7943_v48 = vpack.c.bf16 %v352_v47, %v349_v46  ;;  %v351_v50 = vld [vmem:[#allocation6 + $0x300] sm:$0xff]  ;;  %v358_v52 = vld [vmem:[#allocation6 + $0x438] sm:$0xff]  ;;  %v357_v56 = vld [vmem:[#allocation6 + $0x430] sm:$0xff] }
  0x67   :  { %7914 = vmatpush3.bf16.msra.mxu1 %v7911_v14  ;;  %7940 = vmatprep.subr.bf16.mxu0 %v7939_v43  ;;  %v355_v51 = vld [vmem:[#allocation6 + $0x3a0] sm:$0xff]  ;;  %v7945_v53 = vpack.c.bf16 %v351_v50, %v348_v49  ;;  %v354_v55 = vld [vmem:[#allocation6 + $0x398] sm:$0xff]  ;;  %v361_v57 = vld [vmem:[#allocation6 + $0x4d0] sm:$0xff]  ;;  %v9681_v14 = vsub.s32 0, %v9678_v13 }
  0x68   :  { %7916 = vmatprep.subr.bf16.mxu1 %v7915_v18  ;;  %v7947_v54 = vpack.c.bf16 %v358_v52, %v355_v51  ;;  %v364_v58 = vld [vmem:[#allocation6 + $0x568] sm:$0xff]  ;;  %v7949_v59 = vpack.c.bf16 %v357_v56, %v354_v55  ;;  %v363_v62 = vld [vmem:[#allocation6 + $0x560] sm:$0xff]  ;;  %v370_v0 = vld [vmem:[#allocation6 + $0x698] sm:$0xff]  ;;  %v11925_v56 = vmov 0.0  }
  0x69   :  { %v7951_v60 = vpack.c.bf16 %v364_v58, %v361_v57  ;;  %v360_v61 = vld [vmem:[#allocation6 + $0x4c8] sm:$0xff]  ;;  %v367_v63 = vld [vmem:[#allocation6 + $0x600] sm:$0xff]  ;;  %v366_v3 = vld [vmem:[#allocation6 + $0x5f8] sm:$0xff]  ;;  %11946 = vst [vmem:[#allocation14_spill] sm:$0xff] %v9681_v14  ;;  %460 = vmatprep.mubr.f32.mxu0 %v11925_v56  ;;  %v9690_v57 = vsub.s32 1, %v9678_v13 }
  0x6a   :  { %7942 = vmatpush1.bf16.msra.mxu0 %v7941_v45  ;;  %v7953_v1 = vpack.c.bf16 %v363_v62, %v360_v61  ;;  %v7955_v2 = vpack.c.bf16 %v370_v0, %v367_v63  ;;  %v369_v4 = vld [vmem:[#allocation6 + $0x690] sm:$0xff]  ;;  %v376_v6 = vld [vmem:[#allocation6 + $0x7c8] sm:$0xff]  ;;  %v375_v10 = vld [vmem:[#allocation6 + $0x7c0] sm:$0xff] }
  0x6b   :  { %7918 = vmatpush3.bf16.msra.mxu1 %v7915_v18  ;;  %7944 = vmatprep.subr.bf16.mxu0 %v7943_v48  ;;  %v373_v5 = vld [vmem:[#allocation6 + $0x730] sm:$0xff]  ;;  %v7957_v7 = vpack.c.bf16 %v369_v4, %v366_v3  ;;  %v372_v9 = vld [vmem:[#allocation6 + $0x728] sm:$0xff]  ;;  %v9683_v15 = vld [vmem:[#allocation9] sm:$0xff]  ;;  %11947 = vst [vmem:[#allocation15_spill] sm:$0xff] %v9690_v57 }
  0x6c   :  { %7920 = vmatprep.subr.bf16.mxu1 %v7919_v21  ;;  %v7959_v8 = vpack.c.bf16 %v376_v6, %v373_v5  ;;  %v7961_v11 = vpack.c.bf16 %v375_v10, %v372_v9  ;;  %v112_v16 = vrot.slane %v9683_v15, %v9681_v14  ;;  %v347_v22 = vld [vmem:[#allocation6 + $0x1e0] sm:$0xff]  ;;  %v353_v31 = vld [vmem:[#allocation6 + $0x310] sm:$0xff]  ;;  %v356_v35 = vld [vmem:[#allocation6 + $0x3a8] sm:$0xff]  ;;  %v9700_v62 = vrot.slane %v9683_v15, %v9690_v57 }
  0x6d   :  { %v359_v36 = vld [vmem:[#allocation6 + $0x440] sm:$0xff]  ;;  %v362_v38 = vld [vmem:[#allocation6 + $0x4d8] sm:$0xff]  ;;  %v365_v40 = vld [vmem:[#allocation6 + $0x570] sm:$0xff] }
  0x6e   :  { %7946 = vmatpush1.bf16.msra.mxu0 %v7945_v53  ;;  %v7979_v37 = vpack.c.bf16 %v359_v36, %v356_v35  ;;  %v7983_v41 = vpack.c.bf16 %v365_v40, %v362_v38  ;;  %v368_v42 = vld [vmem:[#allocation6 + $0x608] sm:$0xff]  ;;  %v371_v43 = vld [vmem:[#allocation6 + $0x6a0] sm:$0xff]  ;;  %v377_v45 = vld [vmem:[#allocation6 + $0x7d0] sm:$0xff] }
  0x6f   :  { %7922 = vmatpush3.bf16.msra.mxu1 %v7919_v21  ;;  %7948 = vmatprep.subr.bf16.mxu0 %v7947_v54  ;;  %v344_v21 = vld [vmem:[#allocation6 + $0x148] sm:$0xff]  ;;  %v7987_v44 = vpack.c.bf16 %v371_v43, %v368_v42  ;;  %v379_v47 = vld [vmem:[#allocation6 + $0x860] sm:$0xff]  ;;  %v382_v48 = vld [vmem:[#allocation6 + $0x8f8] sm:$0xff] }
  0x70   :  { %7924 = vmatprep.subr.bf16.mxu1 %v7923_v24  ;;  %v7971_v28 = vpack.c.bf16 %v347_v22, %v344_v21  ;;  %v7963_v49 = vpack.c.bf16 %v382_v48, %v379_v47  ;;  %v378_v50 = vld [vmem:[#allocation6 + $0x858] sm:$0xff]  ;;  %v381_v51 = vld [vmem:[#allocation6 + $0x8f0] sm:$0xff]  ;;  %v380_v52 = vld [vmem:[#allocation6 + $0x868] sm:$0xff] }
  0x71   :  { %v7965_v53 = vpack.c.bf16 %v381_v51, %v378_v50  ;;  %v383_v54 = vld [vmem:[#allocation6 + $0x900] sm:$0xff]  ;;  %v231_v58 = vld [vmem:[%s11916_s1] sm:$0xff]  ;;  %v234_v5 = vld [vmem:[%s11916_s1 + $0x18] sm:$0xff] }
  0x72   :  { %7950 = vmatpush1.bf16.msra.mxu0 %v7949_v59  ;;  %v7995_v55 = vpack.c.bf16 %v383_v54, %v380_v52  ;;  %v233_v0 = vld [vmem:[%s11916_s1 + $0x10] sm:$0xff]  ;;  %v98_v9 = vld [vmem:[#allocation9 + $0x8] sm:$0xff]  ;;  %vm9771_vm3 = vmpackc.low %vm614_vm2, %vm614_vm2 }
  0x73   :  { %7926 = vmatpush3.bf16.msra.mxu1 %v7923_v24  ;;  %7952 = vmatprep.subr.bf16.mxu0 %v7951_v60  ;;  %v232_v60 = vld [vmem:[%s11916_s1 + $0x8] sm:$0xff]  ;;  %s9535_s1 = smov 96   ;;  %v99_v54 = vld [vmem:[#allocation9 + $0x10] sm:$0xff] }
  0x74   :  { %7928 = vmatprep.subr.bf16.mxu1 %v7927_v27 }
  0x76   :  { %7954 = vmatpush1.bf16.msra.mxu0 %v7953_v1 }
  0x77   :  { %7930 = vmatpush3.bf16.msra.mxu1 %v7927_v27  ;;  %7956 = vmatprep.subr.bf16.mxu0 %v7955_v2 }
  0x78   :  { %7932 = vmatprep.subr.bf16.mxu1 %v7931_v30 }
  0x7a   :  { %7958 = vmatpush1.bf16.msra.mxu0 %v7957_v7  ;;  %v9757_v7 = vsub.s32 2, %v9678_v13 }
  0x7b   :  { %7934 = vmatpush3.bf16.msra.mxu1 %v7931_v30  ;;  %7960 = vmatprep.subr.bf16.mxu0 %v7959_v8  ;;  %v350_v30 = vld [vmem:[#allocation6 + $0x278] sm:$0xff] }
  0x7c   :  { %7968 = vmatprep.subr.bf16.mxu1 %v9674_v39  ;;  %v7975_v34 = vpack.c.bf16 %v353_v31, %v350_v30  ;;  %11949 = vst [vmem:[#allocation17_spill] sm:$0xff] %v9757_v7  ;;  %v9761_v8 = vrot.slane %v9683_v15, %v9757_v7 }
  0x7e   :  { %7962 = vmatpush1.bf16.msra.mxu0 %v7961_v11 }
  0x7f   :  { %7964 = vmatprep.subr.bf16.mxu0 %v7963_v49 }
  0x82   :  { %7966 = vmatpush1.bf16.msra.mxu0 %v7965_v53 }
 0x134   :  { %v7233_v17 = vpop.f32.mrb[0].mxu0 }
 0x135   :  { %v198_v18 = vadd.f32 %v7233_v17, %v112_v16  ;;  %v192_v19 = vpop.f32.mrb[1].mxu0  ;;  %v391_v17 = vrot.slane %v98_v9, %v9757_v7 }
 0x136   :  { %v193_v20 = vadd.f32 %v192_v19, %v112_v16 }
 0x137   :  { %v212_v25 = vmax.f32 %v198_v18, 0.0 }
 0x138   :  { %v211_v23 = vmax.f32 %v193_v20, 0.0  ;;  %v7236_v24 = vpop.f32.mrb[2].mxu0 }
 0x139   :  { %v208_v26 = vadd.f32 %v7236_v24, %v112_v16  ;;  %v202_v27 = vpop.f32.mrb[3].mxu0 }
 0x13a   :  { %7269 = vmatprep.mubr.f32.mxu1 %v211_v23  ;;  %v203_v29 = vadd.f32 %v202_v27, %v112_v16 }
 0x13b   :  { %7270 = vmatmul.mubr.f32.vlgmr.msra.gmra.mrb[0].mxu1 %v212_v25  ;;  %v214_v32 = vmax.f32 %v208_v26, 0.0 }
 0x13c   :  { %v213_v33 = vmax.f32 %v203_v29, 0.0  ;;  %7970 = vmatpush3.bf16.msra.mxu1 %v9674_v39  ;;  %v374_v39 = vld [vmem:[#allocation6 + $0x738] sm:$0xff] }
 0x13d   :  { %7972 = vmatprep.subr.bf16.mxu1 %v7971_v28  ;;  %v7991_v46 = vpack.c.bf16 %v377_v45, %v374_v39 }
 0x13e   :  { %7272 = vmatprep.mubr.f32.mxu1 %v213_v33 }
 0x13f   :  { %7273 = vmatmul.mubr.f32.gmra.mrb[2].mxu1 %v214_v32 }
 0x140   :  { %7974 = vmatpush3.bf16.msra.mxu1 %v7971_v28 }
 0x141   :  { %7976 = vmatprep.subr.bf16.mxu1 %v7975_v34 }
 0x144   :  { %7978 = vmatpush3.bf16.msra.mxu1 %v7975_v34 }
 0x145   :  { %7980 = vmatprep.subr.bf16.mxu1 %v7979_v37 }
 0x148   :  { %7982 = vmatpush3.bf16.msra.mxu1 %v7979_v37 }
 0x149   :  { %7984 = vmatprep.subr.bf16.mxu1 %v7983_v41 }
 0x14c   :  { %7986 = vmatpush3.bf16.msra.mxu1 %v7983_v41 }
 0x14d   :  { %7988 = vmatprep.subr.bf16.mxu1 %v7987_v44 }
 0x150   :  { %7990 = vmatpush3.bf16.msra.mxu1 %v7987_v44 }
 0x151   :  { %7992 = vmatprep.subr.bf16.mxu1 %v7991_v46 }
 0x154   :  { %7994 = vmatpush3.bf16.msra.mxu1 %v7991_v46 }
 0x155   :  { %7996 = vmatprep.subr.bf16.mxu1 %v7995_v55 }
 0x158   :  { %7998 = vmatpush3.bf16.msra.mxu1 %v7995_v55 }
 0x20e   :  { %v7271_v59 = vpop.f32.mrb[0].mxu1 }
 0x20f   :  { %v301_v61 = vpop.f32.mrb[1].mxu1  ;;  %v9708_v1 = vadd.f32 %v7271_v59, %v232_v60 }
 0x210   :  { %v9702_v63 = vadd.f32 %v301_v61, %v231_v58  ;;  %v9846_v58 = vrot.slane %v99_v54, %v9757_v7 }
 0x212   :  { %461 = vmatmul.mubr.f32.vlgmr.msra.gmra.mrb[4].mxu0 %v9702_v63  ;;  %7307 = vmatprep.mubr.f32.mxu1 %v9702_v63  ;;  %v7274_v2 = vpop.f32.mrb[2].mxu1 }
 0x213   :  { %7308 = vmatmul.mubr.msk.f32.vlgmr.msra.gmra.mrb[4].mxu1 %vm322_vm1, %v9700_v62  ;;  %466 = vmatprep.mubr.f32.mxu0 %v11925_v56  ;;  %v311_v3 = vpop.f32.mrb[3].mxu1  ;;  %v9729_v6 = vadd.f32 %v7274_v2, %v234_v5 }
 0x214   :  { %7310 = vmatprep.mubr.f32.mxu1 %v9708_v1  ;;  %v9717_v4 = vadd.f32 %v311_v3, %v233_v0 }
 0x215   :  { %11948 = vst [vmem:[#allocation16_spill] sm:$0xff] %v9729_v6 }
 0x216   :  { %6537 = vmatmul.mubr.msk.f32.gmra.mrb[6].mxu0 %vm322_vm1, %v9700_v62 }
 0x217   :  { %472 = vmatprep.mubr.f32.mxu0 %v11925_v56  ;;  %7311 = vmatmul.mubr.msk.f32.gmra.mrb[6].mxu1 %vm322_vm1, %v9700_v62 }
 0x218   :  { %7313 = vmatprep.mubr.f32.mxu1 %v9717_v4 }
 0x21a   :  { %473 = vmatmul.mubr.f32.gmra.mrb[8].mxu0 %v9708_v1 }
 0x21b   :  { %478 = vmatprep.mubr.f32.mxu0 %v11925_v56  ;;  %7314 = vmatmul.mubr.msk.f32.gmra.mrb[8].mxu1 %vm322_vm1, %v9700_v62 }
 0x21c   :  { %7316 = vmatprep.mubr.f32.mxu1 %v9729_v6 }
 0x21e   :  { %6538 = vmatmul.mubr.msk.f32.gmra.mrb[10].mxu0 %vm322_vm1, %v9700_v62 }
 0x21f   :  { %484 = vmatprep.mubr.f32.mxu0 %v11925_v56  ;;  %7317 = vmatmul.mubr.msk.f32.gmra.mrb[10].mxu1 %vm322_vm1, %v9700_v62 }
 0x222   :  { %485 = vmatmul.mubr.f32.gmra.mrb[12].mxu0 %v9717_v4 }
 0x223   :  { %490 = vmatprep.mubr.f32.mxu0 %v11925_v56 }
 0x226   :  { %6539 = vmatmul.mubr.msk.f32.gmra.mrb[14].mxu0 %vm322_vm1, %v9700_v62 }
 0x227   :  { %496 = vmatprep.mubr.f32.mxu0 %v11925_v56 }
 0x22a   :  { %497 = vmatmul.mubr.f32.gmra.mrb[16].mxu0 %v9729_v6 }
 0x22b   :  { %502 = vmatprep.mubr.f32.mxu0 %v11925_v56 }
 0x22e   :  { %6540 = vmatmul.mubr.msk.f32.gmra.mrb[18].mxu0 %vm322_vm1, %v9700_v62 }
 0x2e5   :  { %v462_v10 = vpop.f32.mrb[4].mxu0 }
 0x2e6   :  { %v9764_v11 = vadd.f32 %v462_v10, %v9761_v8  ;;  %v464_v16 = vpop.f32.mrb[5].mxu0  ;;  %v7309_v55 = vpop.f32.mrb[4].mxu1 }
 0x2e7   :  { %v465_v20 = vadd.f32 %v464_v16, %v391_v17  ;;  %v575_v59 = vpop.f32.mrb[5].mxu1  ;;  %v581_v61 = vadd.f32 %v7309_v55, %v9846_v58  ;;  %v9910_v55 = vld [vmem:[%s11918_s3 + $0x18] sm:$0xff] }
 0x2e8   :  { %7335 = vmatprep.mubr.msk.f32.mxu0 %vm614_vm2, %v9764_v11  ;;  %v576_v0 = vadd.f32 %v575_v59, %v9846_v58 }
 0x2e9   :  { %v468_v18 = vpop.f32.mrb[6].mxu0 }
 0x2ea   :  { %v470_v19 = vpop.f32.mrb[7].mxu0  ;;  %v9825_v51 = vadd.f32 %v468_v18, %v9761_v8  ;;  %v9859_v2 = vpack.i.bf16 %v581_v61, %v576_v0 }
 0x2eb   :  { %v471_v21 = vadd.f32 %v470_v19, %v391_v17 }
 0x2ed   :  { %v474_v22 = vpop.f32.mrb[8].mxu0  ;;  %v9775_v23 = vpack.i.bf16 %v471_v21, %v465_v20  ;;  %v7999_v24 = vpack.c.bf16 %v471_v21, %v465_v20 }
 0x2ee   :  { %v476_v25 = vpop.f32.mrb[9].mxu0  ;;  %v9796_v42 = vadd.f32 %v474_v22, %v9761_v8 }
 0x2ef   :  { %8695 = vrot.lane.b32.xlu0 %v9775_v23, %s9535_s1  ;;  %8001 = vmatprep.subr.msk.bf16.mxu0 %vm9771_vm3, %v7999_v24  ;;  %v477_v28 = vadd.f32 %v476_v25, %v391_v17 }
 0x2f0   :  { %8004 = vmatpush3.bf16.xpose.msk.msra.mxu0 %vm9771_vm3, %v7999_v24 }
 0x2f1   :  { %v480_v26 = vpop.f32.mrb[10].mxu0 }
 0x2f2   :  { %v482_v27 = vpop.f32.mrb[11].mxu0  ;;  %v9830_v52 = vadd.f32 %v480_v26, %v9761_v8  ;;  %v8023_v26 = vpack.c.bf16 %v581_v61, %v576_v0 }
 0x2f3   :  { %v483_v29 = vadd.f32 %v482_v27, %v391_v17 }
 0x2f4   :  { %8024 = vmatprep.subr.bf16.mxu1 %v8023_v26 }
 0x2f5   :  { %v486_v30 = vpop.f32.mrb[12].mxu0  ;;  %v9783_v31 = vpack.i.bf16 %v483_v29, %v477_v28  ;;  %v8005_v32 = vpack.c.bf16 %v483_v29, %v477_v28  ;;  %8026 = vmatpush3.bf16.msra.mxu1 %v8023_v26 }
 0x2f6   :  { %v488_v33 = vpop.f32.mrb[13].mxu0  ;;  %v9807_v39 = vadd.f32 %v486_v30, %v9761_v8 }
 0x2f7   :  { %8700 = vrot.lane.b32.xlu0 %v9783_v31, %s9535_s1  ;;  %8007 = vmatprep.subr.msk.bf16.mxu0 %vm9771_vm3, %v8005_v32  ;;  %v489_v36 = vadd.f32 %v488_v33, %v391_v17 }
 0x2f8   :  { %8010 = vmatpush3.bf16.xpose.msk.msra.mxu0 %vm9771_vm3, %v8005_v32 }
 0x2f9   :  { %v492_v34 = vpop.f32.mrb[14].mxu0 }
 0x2fa   :  { %v494_v35 = vpop.f32.mrb[15].mxu0  ;;  %v9839_v53 = vadd.f32 %v492_v34, %v9761_v8 }
 0x2fb   :  { %v495_v37 = vadd.f32 %v494_v35, %v391_v17  ;;  %1002 = vrot.lane.b32.xlu0 %v9764_v11, %s9535_s1 }
 0x2fd   :  { %v498_v38 = vpop.f32.mrb[16].mxu0  ;;  %v9793_v40 = vpack.i.bf16 %v495_v37, %v489_v36  ;;  %v8011_v41 = vpack.c.bf16 %v495_v37, %v489_v36 }
 0x2fe   :  { %v500_v43 = vpop.f32.mrb[17].mxu0  ;;  %v9814_v50 = vadd.f32 %v498_v38, %v9761_v8 }
 0x2ff   :  { %8705 = vrot.lane.b32.xlu1 %v9793_v40, %s9535_s1  ;;  %8013 = vmatprep.subr.msk.bf16.mxu0 %vm9771_vm3, %v8011_v41  ;;  %v501_v46 = vadd.f32 %v500_v43, %v391_v17 }
 0x300   :  { %1006 = vrot.lane.b32.xlu0 %v9796_v42, %s9535_s1  ;;  %8016 = vmatpush3.bf16.xpose.msk.msra.mxu0 %vm9771_vm3, %v8011_v41  ;;  %v9894_v41 = vld [vmem:[%s11918_s3 + $0x8] sm:$0xff] }
 0x301   :  { %v504_v44 = vpop.f32.mrb[18].mxu0 }
 0x302   :  { %v506_v45 = vpop.f32.mrb[19].mxu0  ;;  %v9851_v60 = vadd.f32 %v504_v44, %v9761_v8 }
 0x303   :  { %v507_v47 = vadd.f32 %v506_v45, %v391_v17  ;;  %v9899_v45 = vld [vmem:[%s11918_s3] sm:$0xff] }
 0x304   :  { %1010 = vrot.lane.b32.xlu0 %v9807_v39, %s9535_s1 }
 0x305   :  { %v9811_v48 = vpack.i.bf16 %v507_v47, %v501_v46  ;;  %v8017_v49 = vpack.c.bf16 %v507_v47, %v501_v46 }
 0x307   :  { %8710 = vrot.lane.b32.xlu1 %v9811_v48, %s9535_s1  ;;  %8019 = vmatprep.subr.msk.bf16.mxu0 %vm9771_vm3, %v8017_v49 }
 0x308   :  { %1014 = vrot.lane.b32.xlu0 %v9814_v50, %s9535_s1  ;;  %8022 = vmatpush3.bf16.xpose.msk.msra.mxu0 %vm9771_vm3, %v8017_v49 }
 0x30b   :  { %1004 = vrot.lane.b32.xlu1 %v9825_v51, %s9535_s1 }
 0x30f   :  { %1008 = vrot.lane.b32.xlu1 %v9830_v52, %s9535_s1  ;;  %7336 = vmatmul.mubr.msk.f32.vlgmr.msra.gmra.mrb[20].mxu0 %vm614_vm2, %v9825_v51 }
 0x310   :  { %7338 = vmatprep.mubr.msk.f32.mxu0 %vm614_vm2, %v9796_v42 }
 0x313   :  { %1012 = vrot.lane.b32.xlu1 %v9839_v53, %s9535_s1  ;;  %7339 = vmatmul.mubr.msk.f32.gmra.mrb[22].mxu0 %vm614_vm2, %v9830_v52 }
 0x314   :  { %7341 = vmatprep.mubr.msk.f32.mxu0 %vm614_vm2, %v9807_v39 }
 0x317   :  { %1016 = vrot.lane.b32.xlu1 %v9851_v60, %s9535_s1  ;;  %7342 = vmatmul.mubr.msk.f32.gmra.mrb[24].mxu0 %vm614_vm2, %v9839_v53 }
 0x318   :  { %7344 = vmatprep.mubr.msk.f32.mxu0 %vm614_vm2, %v9814_v50 }
 0x31b   :  { %7345 = vmatmul.mubr.msk.f32.gmra.mrb[26].mxu0 %vm614_vm2, %v9851_v60  ;;  %8715 = vrot.lane.b32.xlu1 %v9859_v2, %s9535_s1 }
 0x361   :  { %v8696_v3 = vpop.permute.xlu0 %8695 }
 0x362   :  { %v8698_v5 = vunpack.i.h.bf16 %v8696_v3  ;;  %v8697_v8 = vunpack.i.l.bf16 %v8696_v3 }
 0x364   :  { %v8039_v9 = vpack.c.bf16 %v8698_v5, %v8697_v8 }
 0x366   :  { %8041 = vmatprep.subr.msk.bf16.mxu0 %vm9771_vm3, %v8039_v9 }
 0x367   :  { %8044 = vmatpush3.bf16.xpose.msk.msra.mxu0 %vm9771_vm3, %v8039_v9  ;;  %v9922_v9 = vld [vmem:[%s11918_s3 + $0x10] sm:$0xff] }
 0x369   :  { %v8701_v10 = vpop.permute.xlu0 %8700 }
 0x36a   :  { %v8703_v16 = vunpack.i.h.bf16 %v8701_v10  ;;  %v8702_v17 = vunpack.i.l.bf16 %v8701_v10 }
 0x36c   :  { %v8045_v18 = vpack.c.bf16 %v8703_v16, %v8702_v17 }
 0x36d   :  { %v1003_v19 = vpop.permute.xlu0 %1002 }
 0x36e   :  { %8047 = vmatprep.subr.msk.bf16.mxu0 %vm9771_vm3, %v8045_v18  ;;  %7391 = vmatprep.mubr.msk.f32.mxu0 %vm614_vm2, %v1003_v19  ;;  %v9929_v19 = vld [vmem:[%s11918_s3 + $0x20] sm:$0xff] }
 0x36f   :  { %8050 = vmatpush3.bf16.xpose.msk.msra.mxu0 %vm9771_vm3, %v8045_v18 }
 0x371   :  { %v8706_v20 = vpop.permute.xlu1 %8705 }
 0x372   :  { %v8708_v21 = vunpack.i.h.bf16 %v8706_v20  ;;  %v8707_v22 = vunpack.i.l.bf16 %v8706_v20  ;;  %v1007_v32 = vpop.permute.xlu0 %1006  ;;  %v7312_v20 = vpop.f32.mrb[6].mxu1 }
 0x373   :  { %v585_v26 = vpop.f32.mrb[7].mxu1 }
 0x374   :  { %v8051_v24 = vpack.c.bf16 %v8708_v21, %v8707_v22 }
 0x376   :  { %8053 = vmatprep.subr.msk.bf16.mxu0 %vm9771_vm3, %v8051_v24  ;;  %v1011_v34 = vpop.permute.xlu0 %1010 }
 0x377   :  { %8056 = vmatpush3.bf16.xpose.msk.msra.mxu0 %vm9771_vm3, %v8051_v24  ;;  %v9937_v24 = vld [vmem:[%s11918_s3 + $0x28] sm:$0xff] }
 0x379   :  { %v8711_v25 = vpop.permute.xlu1 %8710 }
 0x37a   :  { %v8713_v27 = vunpack.i.h.bf16 %v8711_v25  ;;  %v8712_v28 = vunpack.i.l.bf16 %v8711_v25  ;;  %v1015_v36 = vpop.permute.xlu0 %1014  ;;  %v591_v25 = vadd.f32 %v7312_v20, %v9846_v58 }
 0x37c   :  { %v8057_v29 = vpack.c.bf16 %v8713_v27, %v8712_v28  ;;  %v586_v27 = vadd.f32 %v585_v26, %v9846_v58  ;;  %v7315_v28 = vpop.f32.mrb[8].mxu1 }
 0x37d   :  { %v1005_v30 = vpop.permute.xlu1 %1004 }
 0x37e   :  { %8059 = vmatprep.subr.msk.bf16.mxu0 %vm9771_vm3, %v8057_v29 }
 0x37f   :  { %8062 = vmatpush3.bf16.xpose.msk.msra.mxu0 %vm9771_vm3, %v8057_v29 }
 0x381   :  { %v1009_v33 = vpop.permute.xlu1 %1008 }
 0x385   :  { %v1013_v35 = vpop.permute.xlu1 %1012 }
 0x386   :  { %7392 = vmatmul.mubr.msk.f32.vlgmr.msra.gmra.mrb[28].mxu0 %vm614_vm2, %v1005_v30 }
 0x387   :  { %7394 = vmatprep.mubr.msk.f32.mxu0 %vm614_vm2, %v1007_v32  ;;  %v595_v32 = vpop.f32.mrb[9].mxu1 }
 0x389   :  { %v1017_v37 = vpop.permute.xlu1 %1016 }
 0x38a   :  { %7395 = vmatmul.mubr.msk.f32.gmra.mrb[30].mxu0 %vm614_vm2, %v1009_v33 }
 0x38b   :  { %7397 = vmatprep.mubr.msk.f32.mxu0 %vm614_vm2, %v1011_v34 }
 0x38e   :  { %7398 = vmatmul.mubr.msk.f32.gmra.mrb[32].mxu0 %vm614_vm2, %v1013_v35  ;;  %v9950_v35 = vld [vmem:[%s11918_s3 + $0x30] sm:$0xff] }
 0x38f   :  { %7400 = vmatprep.mubr.msk.f32.mxu0 %vm614_vm2, %v1015_v36  ;;  %v8027_v36 = vpack.c.bf16 %v591_v25, %v586_v27 }
 0x391   :  { %8028 = vmatprep.subr.bf16.mxu1 %v8027_v36 }
 0x392   :  { %7401 = vmatmul.mubr.msk.f32.gmra.mrb[34].mxu0 %vm614_vm2, %v1017_v37  ;;  %v7318_v37 = vpop.f32.mrb[10].mxu1  ;;  %8030 = vmatpush3.bf16.msra.mxu1 %v8027_v36 }
 0x393   :  { %v605_v20 = vpop.f32.mrb[11].mxu1 }
 0x3e2   :  { %v7337_v38 = vpop.f32.mrb[20].mxu0 }
 0x3e3   :  { %v769_v43 = vmul.f32 0.17677669, %v7337_v38  ;;  %v729_v44 = vpop.f32.mrb[21].mxu0 }
 0x3e4   :  { %v768_v46 = vmul.f32 0.17677669, %v729_v44 }
 0x3e5   :  { %v9902_v47 = vadd.f32 %v769_v43, %v9894_v41 }
 0x3e6   :  { %v7340_v49 = vpop.f32.mrb[22].mxu0  ;;  %v9905_v54 = vadd.f32 %v768_v46, %v9899_v45 }
 0x3e7   :  { %v771_v59 = vmul.f32 0.17677669, %v7340_v49  ;;  %v739_v61 = vpop.f32.mrb[23].mxu0  ;;  %v788_v0 = vsel %vm784_vm4, %v9902_v47, -inf  ;;  %v9959_v49 = vld [vmem:[%s11918_s3 + $0x38] sm:$0xff] }
 0x3e8   :  { %v770_v3 = vmul.f32 0.17677669, %v739_v61  ;;  %789 = vmax.xlane.f32.xlu1 %v788_v0  ;;  %v785_v5 = vsel %vm784_vm4, %v9905_v54, -inf  ;;  %v601_v61 = vadd.f32 %v7315_v28, %v9846_v58  ;;  %v596_v0 = vadd.f32 %v595_v32, %v9846_v58 }
 0x3e9   :  { %786 = vmax.xlane.f32.xlu0 %v785_v5  ;;  %v9917_v8 = vadd.f32 %v771_v59, %v9910_v55  ;;  %v9968_v5 = vpack.i.bf16 %v591_v25, %v586_v27  ;;  %v606_v25 = vadd.f32 %v605_v20, %v9846_v58 }
 0x3ea   :  { %v7343_v10 = vpop.f32.mrb[24].mxu0  ;;  %v9932_v22 = vadd.f32 %v770_v3, %v9922_v9 }
 0x3eb   :  { %v773_v16 = vmul.f32 0.17677669, %v7343_v10  ;;  %v749_v17 = vpop.f32.mrb[25].mxu0  ;;  %v794_v18 = vsel %vm784_vm4, %v9917_v8, -inf }
 0x3ec   :  { %v772_v21 = vmul.f32 0.17677669, %v749_v17  ;;  %v791_v44 = vsel %vm784_vm4, %v9932_v22, -inf  ;;  %v611_v17 = vadd.f32 %v7318_v37, %v9846_v58 }
 0x3ed   :  { %795 = vmax.xlane.f32.xlu0 %v794_v18  ;;  %v9945_v34 = vadd.f32 %v773_v16, %v9937_v24  ;;  %v8031_v18 = vpack.c.bf16 %v601_v61, %v596_v0 }
 0x3ee   :  { %v7346_v29 = vpop.f32.mrb[26].mxu0  ;;  %v9942_v30 = vadd.f32 %v772_v21, %v9929_v19  ;;  %v9976_v21 = vpack.i.bf16 %v601_v61, %v596_v0  ;;  %v8035_v27 = vpack.c.bf16 %v611_v17, %v606_v25  ;;  %v9981_v28 = vpack.i.bf16 %v611_v17, %v606_v25 }
 0x3ef   :  { %v759_v33 = vpop.f32.mrb[27].mxu0  ;;  %v775_v38 = vmul.f32 0.17677669, %v7346_v29  ;;  %v800_v3 = vsel %vm784_vm4, %v9945_v34, -inf  ;;  %8032 = vmatprep.subr.bf16.mxu1 %v8031_v18  ;;  %v8716_v29 = vpop.permute.xlu1 %8715 }
 0x3f0   :  { %v774_v43 = vmul.f32 0.17677669, %v759_v33  ;;  %v797_v46 = vsel %vm784_vm4, %v9942_v30, -inf  ;;  %8034 = vmatpush3.bf16.msra.mxu1 %v8031_v18  ;;  %v8718_v32 = vunpack.i.h.bf16 %v8716_v29  ;;  %v8717_v33 = vunpack.i.l.bf16 %v8716_v29 }
 0x3f1   :  { %792 = vmax.xlane.f32.xlu0 %v791_v44  ;;  %798 = vmax.xlane.f32.xlu1 %v797_v46  ;;  %v9973_v16 = vadd.f32 %v775_v38, %v9959_v49 }
 0x3f2   :  { %v9962_v59 = vadd.f32 %v774_v43, %v9950_v35  ;;  %8036 = vmatprep.subr.bf16.mxu1 %v8035_v27  ;;  %v9983_v36 = vpack.c.bf16 %v8718_v32, %v8717_v33 }
 0x3f3   :  { %v806_v26 = vsel %vm784_vm4, %v9973_v16, -inf }
 0x3f4   :  { %v803_v10 = vsel %vm784_vm4, %v9962_v59, -inf  ;;  %8038 = vmatpush3.bf16.msra.mxu1 %v8035_v27 }
 0x3f5   :  { %801 = vmax.xlane.f32.xlu0 %v800_v3  ;;  %804 = vmax.xlane.f32.xlu1 %v803_v10 }
 0x3f6   :  { %8064 = vmatprep.subr.bf16.mxu1 %v9983_v36 }
 0x3f9   :  { %807 = vmax.xlane.f32.xlu0 %v806_v26 }
 0x459   :  { %v7393_v37 = vpop.f32.mrb[28].mxu0 }
 0x45a   :  { %v1172_v38 = vmul.f32 0.17677669, %v7393_v37  ;;  %v1132_v43 = vpop.f32.mrb[29].mxu0 }
 0x45b   :  { %v1171_v44 = vmul.f32 0.17677669, %v1132_v43 }
 0x45c   :  { %v9987_v58 = vadd.f32 %v1172_v38, %v9894_v41 }
 0x45d   :  { %v7396_v46 = vpop.f32.mrb[30].mxu0  ;;  %v9990_v61 = vadd.f32 %v1171_v44, %v9899_v45 }
 0x45e   :  { %v1174_v0 = vmul.f32 0.17677669, %v7396_v46  ;;  %v1142_v3 = vpop.f32.mrb[31].mxu0  ;;  %v1190_v10 = vsel %vm784_vm4, %v9987_v58, -inf }
 0x45f   :  { %v1173_v17 = vmul.f32 0.17677669, %v1142_v3  ;;  %1191 = vmax.xlane.f32.xlu0 %v1190_v10  ;;  %v1187_v18 = vsel %vm784_vm4, %v9990_v61, -inf }
 0x460   :  { %1188 = vmax.xlane.f32.xlu1 %v1187_v18  ;;  %v9997_v20 = vadd.f32 %v1174_v0, %v9910_v55 }
 0x461   :  { %v7399_v26 = vpop.f32.mrb[32].mxu0  ;;  %v10000_v25 = vadd.f32 %v1173_v17, %v9922_v9 }
 0x462   :  { %v1176_v27 = vmul.f32 0.17677669, %v7399_v26  ;;  %v1152_v29 = vpop.f32.mrb[33].mxu0  ;;  %v1196_v32 = vsel %vm784_vm4, %v9997_v20, -inf }
 0x463   :  { %v1175_v33 = vmul.f32 0.17677669, %v1152_v29  ;;  %1197 = vmax.xlane.f32.xlu0 %v1196_v32  ;;  %v1193_v37 = vsel %vm784_vm4, %v10000_v25, -inf }
 0x464   :  { %1194 = vmax.xlane.f32.xlu1 %v1193_v37  ;;  %v10007_v38 = vadd.f32 %v1176_v27, %v9937_v24 }
 0x465   :  { %v7402_v43 = vpop.f32.mrb[34].mxu0  ;;  %v10010_v44 = vadd.f32 %v1175_v33, %v9929_v19 }
 0x466   :  { %v1178_v46 = vmul.f32 0.17677669, %v7402_v43  ;;  %v1162_v0 = vpop.f32.mrb[35].mxu0  ;;  %v1202_v3 = vsel %vm784_vm4, %v10007_v38, -inf }
 0x467   :  { %1203 = vmax.xlane.f32.xlu0 %v1202_v3  ;;  %v1199_v10 = vsel %vm784_vm4, %v10010_v44, -inf }
 0x468   :  { %1200 = vmax.xlane.f32.xlu1 %v1199_v10  ;;  %v10017_v17 = vadd.f32 %v1178_v46, %v9959_v49 }
 0x46a   :  { %v1208_v18 = vsel %vm784_vm4, %v10017_v17, -inf }
 0x46b   :  { %1209 = vmax.xlane.f32.xlu0 %v1208_v18 }
 0x475   :  { %v790_v29 = vpop.xlane.xlu1 %789 }
 0x476   :  { %v787_v26 = vpop.xlane.xlu0 %786  ;;  %v810_v33 = vsub.f32 %v9902_v47, %v790_v29 }
 0x477   :  { %v809_v3 = vsub.f32 %v9905_v54, %v787_v26 }
 0x478   :  { %v819_v43 = vmul.f32 1.442695, %v810_v33 }
 0x479   :  { %8725 = vrot.lane.b32.xlu1 %v9976_v21, %s9535_s1  ;;  %v817_v56 = vmul.f32 1.442695, %v809_v3 }
 0x47a   :  { %v796_v27 = vpop.xlane.xlu0 %795  ;;  %9056 = vpow2.f32 %v819_v43 }
 0x47b   :  { %v812_v46 = vsub.f32 %v9917_v8, %v796_v27  ;;  %v1177_v8 = vmul.f32 0.17677669, %v1162_v0 }
 0x47d   :  { %8730 = vrot.lane.b32.xlu1 %v9981_v28, %s9535_s1  ;;  %v823_v10 = vmul.f32 1.442695, %v812_v46 }
 0x47e   :  { %v793_v32 = vpop.xlane.xlu0 %792  ;;  %v799_v18 = vpop.xlane.xlu1 %798 }
 0x47f   :  { %v811_v57 = vsub.f32 %v9932_v22, %v793_v32  ;;  %9058 = vpow2.f32 %v823_v10  ;;  %v813_v29 = vsub.f32 %v9942_v30, %v799_v18  ;;  %v10038_v22 = vadd.f32 %v1177_v8, %v9950_v35 }
 0x480   :  { %9060 = vpow2.f32 %v817_v56 }
 0x481   :  { %8720 = vrot.lane.b32.xlu0 %v9968_v5, %s9535_s1  ;;  %v821_v47 = vmul.f32 1.442695, %v811_v57  ;;  %v825_v26 = vmul.f32 1.442695, %v813_v29  ;;  %v1205_v57 = vsel %vm784_vm4, %v10038_v22, -inf }
 0x482   :  { %v802_v37 = vpop.xlane.xlu0 %801  ;;  %v805_v27 = vpop.xlane.xlu1 %804 }
 0x483   :  { %v814_v12 = vsub.f32 %v9945_v34, %v802_v37  ;;  %v815_v34 = vsub.f32 %v9962_v59, %v805_v27 }
 0x484   :  { %v10035_v33 = vpop.eup %9056 }
 0x485   :  { %v827_v7 = vmul.f32 1.442695, %v814_v12  ;;  %v829_v12 = vmul.f32 1.442695, %v815_v34 }
 0x486   :  { %v808_v14 = vpop.xlane.xlu0 %807 }
 0x487   :  { %v816_v6 = vsub.f32 %v9973_v16, %v808_v14  ;;  %9062 = vpow2.f32 %v827_v7  ;;  %v836_v14 = vsel %vm784_vm4, %v10035_v33, 0.0 }
 0x488   :  { %9064 = vpow2.f32 %v821_v47 }
 0x489   :  { %v831_v54 = vmul.f32 1.442695, %v816_v6  ;;  %v10042_v56 = vpop.eup %9058 }
 0x48a   :  { %v10046_v6 = vpop.eup %9060  ;;  %v842_v7 = vsel %vm784_vm4, %v10042_v56, 0.0 }
 0x48b   :  { %9066 = vpow2.f32 %v831_v54  ;;  %v833_v59 = vsel %vm784_vm4, %v10046_v6, 0.0 }
 0x48c   :  { %9068 = vpow2.f32 %v825_v26 }
 0x48d   :  { %9070 = vpow2.f32 %v829_v12 }
 0x491   :  { %v10050_v30 = vpop.eup %9062 }
 0x492   :  { %v10054_v16 = vpop.eup %9064  ;;  %v848_v0 = vsel %vm784_vm4, %v10050_v30, 0.0 }
 0x493   :  { %v839_v37 = vsel %vm784_vm4, %v10054_v16, 0.0 }
 0x495   :  { %v10058_v32 = vpop.eup %9066 }
 0x496   :  { %v10062_v43 = vpop.eup %9068  ;;  %v854_v46 = vsel %vm784_vm4, %v10058_v32, 0.0 }
 0x497   :  { %v845_v3 = vsel %vm784_vm4, %v10062_v43, 0.0  ;;  %v10068_v10 = vpop.eup %9070 }
 0x498   :  { %v851_v18 = vsel %vm784_vm4, %v10068_v10, 0.0 }
 0x4a0   :  { %837 = vadd.xlane.f32.xlu0 %v836_v14 }
 0x4a1   :  { %1206 = vmax.xlane.f32.xlu1 %v1205_v57 }
 0x4a4   :  { %843 = vadd.xlane.f32.xlu0 %v842_v7 }
 0x4a5   :  { %834 = vadd.xlane.f32.xlu1 %v833_v59 }
 0x4a8   :  { %849 = vadd.xlane.f32.xlu0 %v848_v0 }
 0x4a9   :  { %840 = vadd.xlane.f32.xlu1 %v839_v37 }
 0x4ac   :  { %855 = vadd.xlane.f32.xlu0 %v854_v46 }
 0x4ad   :  { %846 = vadd.xlane.f32.xlu1 %v845_v3 }
 0x4b1   :  { %852 = vadd.xlane.f32.xlu1 %v851_v18 }
 0x4ec   :  { %v1192_v47 = vpop.xlane.xlu0 %1191 }
 0x4ed   :  { %v1212_v29 = vsub.f32 %v9987_v58, %v1192_v47  ;;  %v1189_v8 = vpop.xlane.xlu1 %1188 }
 0x4ee   :  { %v1211_v27 = vsub.f32 %v9990_v61, %v1189_v8 }
 0x4ef   :  { %v1221_v54 = vmul.f32 1.442695, %v1212_v29 }
 0x4f0   :  { %v1219_v26 = vmul.f32 1.442695, %v1211_v27  ;;  %v1198_v34 = vpop.xlane.xlu0 %1197 }
 0x4f1   :  { %9072 = vpow2.f32 %v1221_v54  ;;  %v1195_v12 = vpop.xlane.xlu1 %1194 }
 0x4f2   :  { %9074 = vpow2.f32 %v1219_v26  ;;  %v1213_v14 = vsub.f32 %v10000_v25, %v1195_v12 }
 0x4f4   :  { %v1223_v57 = vmul.f32 1.442695, %v1213_v14  ;;  %v1204_v7 = vpop.xlane.xlu0 %1203 }
 0x4f5   :  { %v1216_v59 = vsub.f32 %v10007_v38, %v1204_v7  ;;  %v1201_v0 = vpop.xlane.xlu1 %1200 }
 0x4f6   :  { %9076 = vpow2.f32 %v1223_v57  ;;  %v1215_v37 = vsub.f32 %v10010_v44, %v1201_v0  ;;  %v1214_v57 = vsub.f32 %v9997_v20, %v1198_v34 }
 0x4f7   :  { %v1229_v58 = vmul.f32 1.442695, %v1216_v59 }
 0x4f8   :  { %v1227_v46 = vmul.f32 1.442695, %v1215_v37  ;;  %v1210_v3 = vpop.xlane.xlu0 %1209  ;;  %v1225_v7 = vmul.f32 1.442695, %v1214_v57 }
 0x4f9   :  { %9078 = vpow2.f32 %v1229_v58  ;;  %v1218_v61 = vsub.f32 %v10017_v17, %v1210_v3  ;;  %v8726_v59 = vpop.permute.xlu1 %8725 }
 0x4fa   :  { %9080 = vpow2.f32 %v1227_v46 }
 0x4fb   :  { %v10078_v18 = vpop.eup %9072  ;;  %v1233_v25 = vmul.f32 1.442695, %v1218_v61 }
 0x4fc   :  { %v10080_v47 = vpop.eup %9074  ;;  %v1238_v29 = vsel %vm784_vm4, %v10078_v18, 0.0  ;;  %v8721_v0 = vpop.permute.xlu0 %8720 }
 0x4fd   :  { %1239 = vadd.xlane.f32.xlu0 %v1238_v29  ;;  %v1235_v38 = vsel %vm784_vm4, %v10080_v47, 0.0  ;;  %9082 = vpow2.f32 %v1233_v25  ;;  %v8731_v37 = vpop.permute.xlu1 %8730 }
 0x4fe   :  { %1236 = vadd.xlane.f32.xlu1 %v1235_v38  ;;  %9084 = vpow2.f32 %v1225_v7  ;;  %v8723_v7 = vunpack.i.h.bf16 %v8721_v0 }
 0x500   :  { %v10086_v44 = vpop.eup %9076 }
 0x501   :  { %v1241_v17 = vsel %vm784_vm4, %v10086_v44, 0.0 }
 0x502   :  { %1242 = vadd.xlane.f32.xlu0 %v1241_v17 }
 0x503   :  { %v10090_v8 = vpop.eup %9078 }
 0x504   :  { %v1250_v27 = vsel %vm784_vm4, %v10090_v8, 0.0  ;;  %v10094_v54 = vpop.eup %9080 }
 0x505   :  { %v1247_v26 = vsel %vm784_vm4, %v10094_v54, 0.0 }
 0x506   :  { %1251 = vadd.xlane.f32.xlu0 %v1250_v27 }
 0x507   :  { %v10098_v12 = vpop.eup %9082 }
 0x508   :  { %v1256_v14 = vsel %vm784_vm4, %v10098_v12, 0.0  ;;  %v10105_v3 = vpop.eup %9084 }
 0x509   :  { %v1244_v17 = vsel %vm784_vm4, %v10105_v3, 0.0 }
 0x50a   :  { %1248 = vadd.xlane.f32.xlu0 %v1247_v26 }
 0x50e   :  { %1257 = vadd.xlane.f32.xlu0 %v1256_v14 }
 0x50f   :  { %8735 = vrot.lane.b32.xlu1 %v9775_v23, %s9536_s22 }
 0x52d   :  { %v838_v58 = vpop.xlane.xlu0 %837 }
 0x52e   :  { %v1207_v46 = vpop.xlane.xlu1 %1206  ;;  %9086 = vrcp.f32 %v838_v58  ;;  %v8722_v58 = vunpack.i.l.bf16 %v8721_v0 }
 0x52f   :  { %v1217_v61 = vsub.f32 %v10038_v22, %v1207_v46 }
 0x530   :  { %v8067_v0 = vpack.c.bf16 %v8723_v7, %v8722_v58 }
 0x531   :  { %v1231_v25 = vmul.f32 1.442695, %v1217_v61  ;;  %v844_v29 = vpop.xlane.xlu0 %843 }
 0x532   :  { %v835_v38 = vpop.xlane.xlu1 %834 }
 0x533   :  { %9088 = vpow2.f32 %v1231_v25  ;;  %1245 = vadd.xlane.f32.xlu1 %v1244_v17 }
 0x534   :  { %9090 = vrcp.f32 %v835_v38 }
 0x535   :  { %v850_v20 = vpop.xlane.xlu0 %849  ;;  %9092 = vrcp.f32 %v844_v29 }
 0x536   :  { %v841_v34 = vpop.xlane.xlu1 %840 }
 0x537   :  { %9094 = vrcp.f32 %v841_v34  ;;  %v8727_v34 = vunpack.i.l.bf16 %v8726_v59 }
 0x538   :  { %9096 = vrcp.f32 %v850_v20  ;;  %v9087_v14 = vpop.eup %9086  ;;  %v8728_v20 = vunpack.i.h.bf16 %v8726_v59 }
 0x539   :  { %v856_v26 = vpop.xlane.xlu0 %855  ;;  %v860_v38 = vmul.f32 %v9087_v14, %v10035_v33  ;;  %v8733_v14 = vunpack.i.h.bf16 %v8731_v37 }
 0x53a   :  { %v847_v27 = vpop.xlane.xlu1 %846  ;;  %v8071_v59 = vpack.c.bf16 %v8728_v20, %v8727_v34 }
 0x53b   :  { %9098 = vrcp.f32 %v847_v27 }
 0x53c   :  { %9100 = vrcp.f32 %v856_v26 }
 0x53d   :  { %v10110_v22 = vpop.eup %9088 }
 0x53e   :  { %v9091_v57 = vpop.eup %9090  ;;  %v853_v46 = vpop.xlane.xlu1 %852  ;;  %v1253_v61 = vsel %vm784_vm4, %v10110_v22, 0.0 }
 0x53f   :  { %9102 = vrcp.f32 %v853_v46  ;;  %1254 = vadd.xlane.f32.xlu0 %v1253_v61  ;;  %v858_v25 = vmul.f32 %v9091_v57, %v10046_v6  ;;  %v9093_v29 = vpop.eup %9092  ;;  %v8732_v57 = vunpack.i.l.bf16 %v8731_v37 }
 0x540   :  { %v864_v6 = vmul.f32 %v9093_v29, %v10042_v56 }
 0x541   :  { %v9095_v17 = vpop.eup %9094  ;;  %7363 = vmatprep.mubr.msk.f32.mxu1 %vm784_vm4, %v858_v25  ;;  %v8075_v56 = vpack.c.bf16 %v8733_v14, %v8732_v57 }
 0x542   :  { %7364 = vmatmul.mubr.msk.f32.vlgmr.msra.gmra.mrb[12].mxu1 %vm784_vm4, %v860_v38  ;;  %v862_v27 = vmul.f32 %v9095_v17, %v10054_v16  ;;  %v9097_v26 = vpop.eup %9096 }
 0x543   :  { %8066 = vmatpush3.bf16.msra.mxu1 %v9983_v36  ;;  %v868_v36 = vmul.f32 %v9097_v26, %v10050_v30 }
 0x544   :  { %8068 = vmatprep.subr.bf16.mxu1 %v8067_v0  ;;  %8745 = vrot.lane.b32.xlu1 %v9793_v40, %s9536_s22 }
 0x545   :  { %v9099_v33 = vpop.eup %9098  ;;  %7366 = vmatprep.mubr.msk.f32.mxu1 %vm784_vm4, %v862_v27 }
 0x546   :  { %7367 = vmatmul.mubr.msk.f32.gmra.mrb[14].mxu1 %vm784_vm4, %v864_v6  ;;  %v866_v7 = vmul.f32 %v9099_v33, %v10062_v43  ;;  %v9101_v16 = vpop.eup %9100 }
 0x547   :  { %8070 = vmatpush3.bf16.msra.mxu1 %v8067_v0  ;;  %v872_v43 = vmul.f32 %v9101_v16, %v10058_v32 }
 0x548   :  { %8072 = vmatprep.subr.bf16.mxu1 %v8071_v59  ;;  %8750 = vrot.lane.b32.xlu1 %v9811_v48, %s9536_s22 }
 0x549   :  { %v9103_v58 = vpop.eup %9102  ;;  %7369 = vmatprep.mubr.msk.f32.mxu1 %vm784_vm4, %v866_v7 }
 0x54a   :  { %7370 = vmatmul.mubr.msk.f32.gmra.mrb[16].mxu1 %vm784_vm4, %v868_v36  ;;  %v870_v37 = vmul.f32 %v9103_v58, %v10068_v10 }
 0x54b   :  { %8074 = vmatpush3.bf16.msra.mxu1 %v8071_v59 }
 0x54c   :  { %8076 = vmatprep.subr.bf16.mxu1 %v8075_v56  ;;  %1436 = vrot.lane.b32.xlu1 %v9764_v11, %s9536_s22 }
 0x54d   :  { %7372 = vmatprep.mubr.msk.f32.mxu1 %vm784_vm4, %v870_v37 }
 0x54e   :  { %7373 = vmatmul.mubr.msk.f32.gmra.mrb[18].mxu1 %vm784_vm4, %v872_v43 }
 0x54f   :  { %8078 = vmatpush3.bf16.msra.mxu1 %v8075_v56 }
 0x550   :  { %1438 = vrot.lane.b32.xlu1 %v9825_v51, %s9536_s22 }
 0x554   :  { %1442 = vrot.lane.b32.xlu1 %v9830_v52, %s9536_s22 }
 0x555   :  { %8740 = vrot.lane.b32.xlu0 %v9783_v31, %s9536_s22 }
 0x558   :  { %1446 = vrot.lane.b32.xlu1 %v9839_v53, %s9536_s22 }
 0x559   :  { %1440 = vrot.lane.b32.xlu0 %v9796_v42, %s9536_s22 }
 0x55c   :  { %1450 = vrot.lane.b32.xlu1 %v9851_v60, %s9536_s22 }
 0x55d   :  { %1444 = vrot.lane.b32.xlu0 %v9807_v39, %s9536_s22 }
 0x561   :  { %1448 = vrot.lane.b32.xlu0 %v9814_v50, %s9536_s22 }
 0x58a   :  { %v1240_v30 = vpop.xlane.xlu0 %1239 }
 0x58b   :  { %9104 = vrcp.f32 %v1240_v30  ;;  %v1237_v32 = vpop.xlane.xlu1 %1236 }
 0x58c   :  { %9106 = vrcp.f32 %v1237_v32 }
 0x58f   :  { %v1243_v10 = vpop.xlane.xlu0 %1242  ;;  %v8736_v46 = vpop.permute.xlu1 %8735 }
 0x590   :  { %9108 = vrcp.f32 %v1243_v10  ;;  %v8738_v61 = vunpack.i.h.bf16 %v8736_v46  ;;  %v8737_v25 = vunpack.i.l.bf16 %v8736_v46 }
 0x592   :  { %v8079_v29 = vpack.c.bf16 %v8738_v61, %v8737_v25 }
 0x593   :  { %v1252_v26 = vpop.xlane.xlu0 %1251 }
 0x594   :  { %8081 = vmatprep.subr.msk.bf16.mxu1 %vm9771_vm3, %v8079_v29 }
 0x595   :  { %v9105_v38 = vpop.eup %9104 }
 0x596   :  { %v9107_v17 = vpop.eup %9106  ;;  %v1262_v34 = vmul.f32 %v9105_v38, %v10078_v18 }
 0x597   :  { %v1260_v20 = vmul.f32 %v9107_v17, %v10080_v47  ;;  %v1249_v6 = vpop.xlane.xlu0 %1248 }
 0x598   :  { %9110 = vrcp.f32 %v1249_v6 }
 0x599   :  { %7419 = vmatprep.mubr.msk.f32.mxu1 %vm784_vm4, %v1260_v20 }
 0x59a   :  { %v9109_v0 = vpop.eup %9108  ;;  %7420 = vmatmul.mubr.msk.f32.vlgmr.msra.gmra.mrb[20].mxu1 %vm784_vm4, %v1262_v34 }
 0x59b   :  { %8084 = vmatpush3.bf16.xpose.msk.msra.mxu1 %vm9771_vm3, %v8079_v29  ;;  %v1264_v27 = vmul.f32 %v9109_v0, %v10086_v44  ;;  %v1258_v47 = vpop.xlane.xlu0 %1257 }
 0x59d   :  { %7422 = vmatprep.mubr.msk.f32.mxu1 %vm784_vm4, %v1264_v27 }
 0x5a2   :  { %v9111_v18 = vpop.eup %9110 }
 0x5a3   :  { %v1268_v16 = vmul.f32 %v9111_v18, %v10094_v54 }
 0x5c0   :  { %v1246_v33 = vpop.xlane.xlu1 %1245 }
 0x5c1   :  { %9112 = vrcp.f32 %v1246_v33 }
 0x5c2   :  { %9114 = vrcp.f32 %v1252_v26 }
 0x5c3   :  { %9116 = vrcp.f32 %v1258_v47 }
 0x5c4   :  { %v8746_v44 = vpop.permute.xlu1 %8745 }
 0x5c5   :  { %v8748_v56 = vunpack.i.h.bf16 %v8746_v44  ;;  %v8747_v37 = vunpack.i.l.bf16 %v8746_v44 }
 0x5c8   :  { %v8751_v10 = vpop.permute.xlu1 %8750 }
 0x5c9   :  { %v8753_v61 = vunpack.i.h.bf16 %v8751_v10  ;;  %v8752_v25 = vunpack.i.l.bf16 %v8751_v10 }
 0x5cb   :  { %v9113_v14 = vpop.eup %9112  ;;  %v8097_v17 = vpack.c.bf16 %v8753_v61, %v8752_v25 }
 0x5cc   :  { %v1255_v57 = vpop.xlane.xlu0 %1254  ;;  %v1266_v59 = vmul.f32 %v9113_v14, %v10105_v3  ;;  %v9115_v7 = vpop.eup %9114  ;;  %v8091_v3 = vpack.c.bf16 %v8748_v56, %v8747_v37 }
 0x5cd   :  { %9118 = vrcp.f32 %v1255_v57  ;;  %v1270_v58 = vmul.f32 %v9115_v7, %v10090_v8  ;;  %v9117_v54 = vpop.eup %9116  ;;  %v1437_v38 = vpop.permute.xlu1 %1436 }
 0x5ce   :  { %7423 = vmatmul.mubr.msk.f32.gmra.mrb[22].mxu1 %vm784_vm4, %v1266_v59  ;;  %v1274_v29 = vmul.f32 %v9117_v54, %v10098_v12 }
 0x5cf   :  { %7425 = vmatprep.mubr.msk.f32.mxu1 %vm784_vm4, %v1268_v16 }
 0x5d0   :  { %v8741_v36 = vpop.permute.xlu0 %8740 }
 0x5d1   :  { %v8743_v43 = vunpack.i.h.bf16 %v8741_v36  ;;  %v8742_v30 = vunpack.i.l.bf16 %v8741_v36  ;;  %v1439_v20 = vpop.permute.xlu1 %1438 }
 0x5d2   :  { %7426 = vmatmul.mubr.msk.f32.gmra.mrb[24].mxu1 %vm784_vm4, %v1270_v58 }
 0x5d3   :  { %v8085_v32 = vpack.c.bf16 %v8743_v43, %v8742_v30 }
 0x5d5   :  { %8087 = vmatprep.subr.msk.bf16.mxu1 %vm9771_vm3, %v8085_v32  ;;  %v1443_v12 = vpop.permute.xlu1 %1442 }
 0x5d6   :  { %8090 = vmatpush3.bf16.xpose.msk.msra.mxu1 %vm9771_vm3, %v8085_v32 }
 0x5d7   :  { %v9119_v46 = vpop.eup %9118  ;;  %8093 = vmatprep.subr.msk.bf16.mxu1 %vm9771_vm3, %v8091_v3 }
 0x5d8   :  { %v1272_v8 = vmul.f32 %v9119_v46, %v10110_v22  ;;  %v1441_v22 = vpop.permute.xlu0 %1440 }
 0x5d9   :  { %v1447_v0 = vpop.permute.xlu1 %1446 }
 0x5da   :  { %7428 = vmatprep.mubr.msk.f32.mxu1 %vm784_vm4, %v1272_v8 }
 0x5db   :  { %7429 = vmatmul.mubr.msk.f32.gmra.mrb[26].mxu1 %vm784_vm4, %v1274_v29 }
 0x5dc   :  { %7447 = vmatprep.mubr.msk.f32.mxu1 %vm614_vm2, %v1437_v38  ;;  %v1445_v34 = vpop.permute.xlu0 %1444 }
 0x5dd   :  { %v1451_v26 = vpop.permute.xlu1 %1450 }
 0x5de   :  { %8096 = vmatpush3.bf16.xpose.msk.msra.mxu1 %vm9771_vm3, %v8091_v3 }
 0x5df   :  { %8099 = vmatprep.subr.msk.bf16.mxu1 %vm9771_vm3, %v8097_v17 }
 0x5e0   :  { %v1449_v27 = vpop.permute.xlu0 %1448 }
 0x5e6   :  { %8102 = vmatpush3.bf16.xpose.msk.msra.mxu1 %vm9771_vm3, %v8097_v17 }
 0x5ed   :  { %7448 = vmatmul.mubr.msk.f32.vlgmr.msra.gmra.mrb[28].mxu1 %vm614_vm2, %v1439_v20 }
 0x5ee   :  { %7450 = vmatprep.mubr.msk.f32.mxu1 %vm614_vm2, %v1441_v22 }
 0x5f1   :  { %7451 = vmatmul.mubr.msk.f32.gmra.mrb[30].mxu1 %vm614_vm2, %v1443_v12 }
 0x5f2   :  { %7453 = vmatprep.mubr.msk.f32.mxu1 %vm614_vm2, %v1445_v34 }
 0x5f5   :  { %7454 = vmatmul.mubr.msk.f32.gmra.mrb[32].mxu1 %vm614_vm2, %v1447_v0 }
 0x5f6   :  { %7456 = vmatprep.mubr.msk.f32.mxu1 %vm614_vm2, %v1449_v27 }
 0x5f9   :  { %7457 = vmatmul.mubr.msk.f32.gmra.mrb[34].mxu1 %vm614_vm2, %v1451_v26 }
 0x615   :  { %v10193_v6 = vpop.f32.mrb[12].mxu1 }
 0x616   :  { %v10195_v33 = vpop.f32.mrb[13].mxu1 }
 0x619   :  { %v10197_v47 = vpop.f32.mrb[14].mxu1 }
 0x61a   :  { %v10199_v18 = vpop.f32.mrb[15].mxu1 }
 0x61d   :  { %v10201_v14 = vpop.f32.mrb[16].mxu1 }
 0x61e   :  { %v10203_v57 = vpop.f32.mrb[17].mxu1 }
 0x621   :  { %v10205_v59 = vpop.f32.mrb[18].mxu1 }
 0x622   :  { %v10207_v7 = vpop.f32.mrb[19].mxu1 }
 0x66d   :  { %v10209_v16 = vpop.f32.mrb[20].mxu1 }
 0x66e   :  { %v10211_v44 = vpop.f32.mrb[21].mxu1 }
 0x66f   :  { %v8814_v36 = vpack.i.bf16 %v10209_v16, %v10211_v44 }
 0x6a1   :  { %v10215_v58 = vpop.f32.mrb[22].mxu1 }
 0x6a2   :  { %v10217_v56 = vpop.f32.mrb[23].mxu1 }
 0x6a5   :  { %v10221_v43 = vpop.f32.mrb[24].mxu1 }
 0x6a6   :  { %v10223_v30 = vpop.f32.mrb[25].mxu1 }
 0x6a7   :  { %v8844_v32 = vpack.i.bf16 %v10221_v43, %v10223_v30 }
 0x6ae   :  { %v10227_v3 = vpop.f32.mrb[26].mxu1 }
 0x6af   :  { %v10229_v10 = vpop.f32.mrb[27].mxu1 }
 0x6c0   :  { %v7449_v46 = vpop.f32.mrb[28].mxu1 }
 0x6c1   :  { %v1606_v8 = vmul.f32 0.17677669, %v7449_v46  ;;  %v1566_v61 = vpop.f32.mrb[29].mxu1 }
 0x6c2   :  { %v1605_v25 = vmul.f32 0.17677669, %v1566_v61 }
 0x6c3   :  { %v1614_v29 = vadd.f32 %v1606_v8, %v9894_v41 }
 0x6c4   :  { %v7452_v38 = vpop.f32.mrb[30].mxu1  ;;  %v1613_v17 = vadd.f32 %v1605_v25, %v9899_v45 }
 0x6c5   :  { %v1608_v20 = vmul.f32 0.17677669, %v7452_v38  ;;  %v1576_v22 = vpop.f32.mrb[31].mxu1  ;;  %v1624_v12 = vsel %vm784_vm4, %v1614_v29, -inf }
 0x6c6   :  { %v1607_v34 = vmul.f32 0.17677669, %v1576_v22  ;;  %1625 = vmax.xlane.f32.xlu1 %v1624_v12  ;;  %v1621_v0 = vsel %vm784_vm4, %v1613_v17, -inf }
 0x6c7   :  { %1622 = vmax.xlane.f32.xlu0 %v1621_v0  ;;  %v10238_v27 = vadd.f32 %v1608_v20, %v9910_v55 }
 0x6c8   :  { %v7455_v26 = vpop.f32.mrb[32].mxu1  ;;  %v1615_v45 = vadd.f32 %v1607_v34, %v9922_v9 }
 0x6c9   :  { %v1586_v46 = vpop.f32.mrb[33].mxu1  ;;  %v1630_v41 = vsel %vm784_vm4, %v10238_v27, -inf  ;;  %v1610_v8 = vmul.f32 0.17677669, %v7455_v26 }
 0x6ca   :  { %v1627_v22 = vsel %vm784_vm4, %v1615_v45, -inf  ;;  %v1609_v9 = vmul.f32 0.17677669, %v1586_v46 }
 0x6cb   :  { %1631 = vmax.xlane.f32.xlu0 %v1630_v41  ;;  %v1618_v12 = vadd.f32 %v1610_v8, %v9937_v24 }
 0x6cc   :  { %v7458_v61 = vpop.f32.mrb[34].mxu1  ;;  %v1617_v24 = vadd.f32 %v1609_v9, %v9929_v19 }
 0x6cd   :  { %v1596_v25 = vpop.f32.mrb[35].mxu1  ;;  %v1612_v38 = vmul.f32 0.17677669, %v7458_v61  ;;  %v1636_v55 = vsel %vm784_vm4, %v1618_v12, -inf }
 0x6ce   :  { %v1633_v34 = vsel %vm784_vm4, %v1617_v24, -inf }
 0x6cf   :  { %1628 = vmax.xlane.f32.xlu0 %v1627_v22  ;;  %v10247_v20 = vadd.f32 %v1612_v38, %v9959_v49  ;;  %v1611_v49 = vmul.f32 0.17677669, %v1596_v25 }
 0x6d1   :  { %v1642_v0 = vsel %vm784_vm4, %v10247_v20, -inf  ;;  %v10260_v26 = vadd.f32 %v1611_v49, %v9950_v35 }
 0x6d3   :  { %1637 = vmax.xlane.f32.xlu0 %v1636_v55  ;;  %v1639_v41 = vsel %vm784_vm4, %v10260_v26, -inf }
 0x6d7   :  { %8755 = vrot.lane.b32.xlu1 %v9859_v2, %s9536_s22  ;;  %1643 = vmax.xlane.f32.xlu0 %v1642_v0 }
 0x6ed   :  { %8760 = vrot.lane.b32.xlu0 %v9968_v5, %s9536_s22 }
 0x6fb   :  { %1634 = vmax.xlane.f32.xlu1 %v1633_v34 }
 0x70c   :  { %8765 = vrot.lane.b32.xlu1 %v9976_v21, %s9536_s22 }
 0x730   :  { %1640 = vmax.xlane.f32.xlu1 %v1639_v41 }
 0x741   :  { %8770 = vrot.lane.b32.xlu1 %v9981_v28, %s9536_s22 }
 0x753   :  { %v1626_v46 = vpop.xlane.xlu1 %1625 }
 0x754   :  { %v1646_v8 = vsub.f32 %v1614_v29, %v1626_v46  ;;  %v1623_v19 = vpop.xlane.xlu0 %1622 }
 0x755   :  { %v1645_v61 = vsub.f32 %v1613_v17, %v1623_v19 }
 0x756   :  { %v1655_v38 = vmul.f32 1.442695, %v1646_v8 }
 0x757   :  { %v1653_v22 = vmul.f32 1.442695, %v1645_v61  ;;  %v8756_v55 = vpop.permute.xlu1 %8755 }
 0x758   :  { %9120 = vpow2.f32 %v1655_v38  ;;  %v8758_v0 = vunpack.i.h.bf16 %v8756_v55  ;;  %v8757_v25 = vunpack.i.l.bf16 %v8756_v55  ;;  %v1632_v9 = vpop.xlane.xlu0 %1631 }
 0x759   :  { %9122 = vpow2.f32 %v1653_v22 }
 0x75a   :  { %v8103_v35 = vpack.c.bf16 %v8758_v0, %v8757_v25  ;;  %v1648_v25 = vsub.f32 %v10238_v27, %v1632_v9 }
 0x75c   :  { %8104 = vmatprep.subr.bf16.mxu0 %v8103_v35  ;;  %v1629_v34 = vpop.xlane.xlu0 %1628 }
 0x75d   :  { %v1647_v49 = vsub.f32 %v1615_v45, %v1629_v34  ;;  %8106 = vmatpush3.bf16.msra.mxu0 %v8103_v35  ;;  %v1659_v34 = vmul.f32 1.442695, %v1648_v25 }
 0x75f   :  { %v1657_v41 = vmul.f32 1.442695, %v1647_v49 }
 0x760   :  { %v1638_v54 = vpop.xlane.xlu0 %1637 }
 0x761   :  { %9124 = vpow2.f32 %v1657_v41  ;;  %v1650_v37 = vsub.f32 %v1618_v12, %v1638_v54 }
 0x762   :  { %v10266_v29 = vpop.eup %9120 }
 0x763   :  { %v10268_v17 = vpop.eup %9122  ;;  %v1663_v46 = vmul.f32 1.442695, %v1650_v37  ;;  %v1672_v8 = vsel %vm784_vm4, %v10266_v29, 0.0 }
 0x764   :  { %1673 = vadd.xlane.f32.xlu0 %v1672_v8  ;;  %v1644_v19 = vpop.xlane.xlu0 %1643  ;;  %v1669_v61 = vsel %vm784_vm4, %v10268_v17, 0.0 }
 0x765   :  { %9126 = vpow2.f32 %v1663_v46  ;;  %1670 = vadd.xlane.f32.xlu1 %v1669_v61  ;;  %v1652_v35 = vsub.f32 %v10247_v20, %v1644_v19 }
 0x766   :  { %9128 = vpow2.f32 %v1659_v34 }
 0x767   :  { %v1667_v46 = vmul.f32 1.442695, %v1652_v35 }
 0x768   :  { %v8761_v45 = vpop.permute.xlu0 %8760 }
 0x769   :  { %v8763_v38 = vunpack.i.h.bf16 %v8761_v45  ;;  %v8762_v22 = vunpack.i.l.bf16 %v8761_v45 }
 0x76b   :  { %v10274_v55 = vpop.eup %9124  ;;  %v8107_v54 = vpack.c.bf16 %v8763_v38, %v8762_v22 }
 0x76c   :  { %v1675_v12 = vsel %vm784_vm4, %v10274_v55, 0.0 }
 0x76d   :  { %1676 = vadd.xlane.f32.xlu0 %v1675_v12  ;;  %8108 = vmatprep.subr.bf16.mxu0 %v8107_v54 }
 0x76e   :  { %8110 = vmatpush3.bf16.msra.mxu0 %v8107_v54 }
 0x76f   :  { %v10278_v37 = vpop.eup %9126 }
 0x770   :  { %v1684_v0 = vsel %vm784_vm4, %v10278_v37, 0.0  ;;  %v9129_v54 = vpop.eup %9128 }
 0x771   :  { %1685 = vadd.xlane.f32.xlu0 %v1684_v0 }
 0x776   :  { %8775 = vrot.lane.b32.xlu1 %v9775_v23, %s9537_s23 }
 0x788   :  { %v1635_v49 = vpop.xlane.xlu1 %1634 }
 0x789   :  { %v1649_v41 = vsub.f32 %v1617_v24, %v1635_v49  ;;  %v1678_v24 = vsel %vm784_vm4, %v9129_v54, 0.0 }
 0x78b   :  { %v1661_v8 = vmul.f32 1.442695, %v1649_v41 }
 0x78c   :  { %v8766_v61 = vpop.permute.xlu1 %8765 }
 0x78d   :  { %9130 = vpow2.f32 %v1661_v8  ;;  %v8768_v45 = vunpack.i.h.bf16 %v8766_v61  ;;  %v8767_v38 = vunpack.i.l.bf16 %v8766_v61 }
 0x78e   :  { %9132 = vpow2.f32 %v1667_v46 }
 0x78f   :  { %v8111_v22 = vpack.c.bf16 %v8768_v45, %v8767_v38 }
 0x791   :  { %8112 = vmatprep.subr.bf16.mxu0 %v8111_v22 }
 0x792   :  { %8114 = vmatpush3.bf16.msra.mxu0 %v8111_v22 }
 0x797   :  { %v10286_v23 = vpop.eup %9130 }
 0x798   :  { %v1681_v27 = vsel %vm784_vm4, %v10286_v23, 0.0  ;;  %v10290_v20 = vpop.eup %9132 }
 0x799   :  { %1682 = vadd.xlane.f32.xlu0 %v1681_v27  ;;  %v1690_v9 = vsel %vm784_vm4, %v10290_v20, 0.0 }
 0x79a   :  { %1679 = vadd.xlane.f32.xlu1 %v1678_v24 }
 0x79d   :  { %1691 = vadd.xlane.f32.xlu0 %v1690_v9 }
 0x7ab   :  { %8785 = vrot.lane.b32.xlu1 %v9793_v40, %s9537_s23 }
 0x7af   :  { %8790 = vrot.lane.b32.xlu1 %v9811_v48, %s9537_s23 }
 0x7b3   :  { %1862 = vrot.lane.b32.xlu1 %v9764_v11, %s9537_s23 }
 0x7b7   :  { %1864 = vrot.lane.b32.xlu1 %v9825_v51, %s9537_s23 }
 0x7bb   :  { %1868 = vrot.lane.b32.xlu1 %v9830_v52, %s9537_s23 }
 0x7bd   :  { %v1641_v19 = vpop.xlane.xlu1 %1640 }
 0x7be   :  { %v1651_v12 = vsub.f32 %v10260_v26, %v1641_v19 }
 0x7bf   :  { %1872 = vrot.lane.b32.xlu1 %v9839_v53, %s9537_s23 }
 0x7c0   :  { %v1665_v0 = vmul.f32 1.442695, %v1651_v12 }
 0x7c1   :  { %v8771_v40 = vpop.permute.xlu1 %8770 }
 0x7c2   :  { %9134 = vpow2.f32 %v1665_v0  ;;  %v8773_v25 = vunpack.i.h.bf16 %v8771_v40  ;;  %v8772_v48 = vunpack.i.l.bf16 %v8771_v40 }
 0x7c3   :  { %1876 = vrot.lane.b32.xlu1 %v9851_v60, %s9537_s23 }
 0x7c4   :  { %v8115_v11 = vpack.c.bf16 %v8773_v25, %v8772_v48 }
 0x7c6   :  { %8116 = vmatprep.subr.bf16.mxu0 %v8115_v11 }
 0x7c7   :  { %8118 = vmatpush3.bf16.msra.mxu0 %v8115_v11 }
 0x7cc   :  { %v9135_v51 = vpop.eup %9134 }
 0x7cd   :  { %v1687_v52 = vsel %vm784_vm4, %v9135_v51, 0.0 }
 0x7ce   :  { %1688 = vadd.xlane.f32.xlu0 %v1687_v52 }
 0x7e4   :  { %8780 = vrot.lane.b32.xlu0 %v9783_v31, %s9537_s23 }
 0x7e8   :  { %1866 = vrot.lane.b32.xlu0 %v9796_v42, %s9537_s23 }
 0x7ec   :  { %1870 = vrot.lane.b32.xlu0 %v9807_v39, %s9537_s23 }
 0x7f0   :  { %1874 = vrot.lane.b32.xlu0 %v9814_v50, %s9537_s23 }
 0x7f1   :  { %v1674_v53 = vpop.xlane.xlu0 %1673 }
 0x7f2   :  { %9136 = vrcp.f32 %v1674_v53  ;;  %v1671_v60 = vpop.xlane.xlu1 %1670 }
 0x7f3   :  { %9138 = vrcp.f32 %v1671_v60 }
 0x7f6   :  { %v8776_v26 = vpop.permute.xlu1 %8775 }
 0x7f7   :  { %v8778_v35 = vunpack.i.h.bf16 %v8776_v26  ;;  %v8777_v34 = vunpack.i.l.bf16 %v8776_v26 }
 0x7f9   :  { %v8119_v49 = vpack.c.bf16 %v8778_v35, %v8777_v34 }
 0x7fa   :  { %v1677_v41 = vpop.xlane.xlu0 %1676 }
 0x7fb   :  { %9140 = vrcp.f32 %v1677_v41  ;;  %8121 = vmatprep.subr.msk.bf16.mxu0 %vm9771_vm3, %v8119_v49 }
 0x7fc   :  { %v9137_v31 = vpop.eup %9136 }
 0x7fd   :  { %v9139_v42 = vpop.eup %9138  ;;  %v1696_v46 = vmul.f32 %v9137_v31, %v10266_v29 }
 0x7fe   :  { %v1694_v39 = vmul.f32 %v9139_v42, %v10268_v17  ;;  %v1686_v61 = vpop.xlane.xlu0 %1685 }
 0x800   :  { %7475 = vmatprep.mubr.msk.f32.mxu0 %vm784_vm4, %v1694_v39 }
 0x801   :  { %7476 = vmatmul.mubr.msk.f32.vlgmr.msra.gmra.mrb[36].mxu0 %vm784_vm4, %v1696_v46 }
 0x802   :  { %8124 = vmatpush3.bf16.xpose.msk.msra.mxu0 %vm9771_vm3, %v8119_v49 }
 0x805   :  { %v9141_v50 = vpop.eup %9140 }
 0x806   :  { %v1698_v8 = vmul.f32 %v9141_v50, %v10274_v55 }
 0x808   :  { %7478 = vmatprep.mubr.msk.f32.mxu0 %vm784_vm4, %v1698_v8  ;;  %v11952_v8 = vmov 0.0  }
 0x826   :  { %v1683_v45 = vpop.xlane.xlu0 %1682 }
 0x827   :  { %9142 = vrcp.f32 %v1683_v45  ;;  %v1680_v38 = vpop.xlane.xlu1 %1679 }
 0x828   :  { %9144 = vrcp.f32 %v1680_v38 }
 0x829   :  { %9146 = vrcp.f32 %v1686_v61 }
 0x82a   :  { %v1692_v9 = vpop.xlane.xlu0 %1691 }
 0x82b   :  { %9148 = vrcp.f32 %v1692_v9  ;;  %v8786_v12 = vpop.permute.xlu1 %8785 }
 0x82c   :  { %v8788_v40 = vunpack.i.h.bf16 %v8786_v12  ;;  %v8787_v25 = vunpack.i.l.bf16 %v8786_v12 }
 0x82f   :  { %v8791_v52 = vpop.permute.xlu1 %8790 }
 0x830   :  { %v8793_v26 = vunpack.i.h.bf16 %v8791_v52  ;;  %v8792_v35 = vunpack.i.l.bf16 %v8791_v52  ;;  %v9377_v52 = vld [vmem:[%s11918_s3] sm:$0xff] }
 0x831   :  { %v9143_v17 = vpop.eup %9142 }
 0x832   :  { %v9145_v29 = vpop.eup %9144  ;;  %v1702_v24 = vmul.f32 %v9143_v17, %v10286_v23  ;;  %v8131_v23 = vpack.c.bf16 %v8788_v40, %v8787_v25  ;;  %v8137_v41 = vpack.c.bf16 %v8793_v26, %v8792_v35 }
 0x833   :  { %v1700_v22 = vmul.f32 %v9145_v29, %v9129_v54  ;;  %v9147_v27 = vpop.eup %9146  ;;  %v1863_v49 = vpop.permute.xlu1 %1862 }
 0x834   :  { %v1704_v55 = vmul.f32 %v9147_v27, %v10278_v37 }
 0x835   :  { %7479 = vmatmul.mubr.msk.f32.gmra.mrb[38].mxu0 %vm784_vm4, %v1700_v22  ;;  %v9149_v53 = vpop.eup %9148 }
 0x836   :  { %7481 = vmatprep.mubr.msk.f32.mxu0 %vm784_vm4, %v1702_v24  ;;  %v1708_v34 = vmul.f32 %v9149_v53, %v10290_v20 }
 0x837   :  { %v1865_v31 = vpop.permute.xlu1 %1864 }
 0x839   :  { %7482 = vmatmul.mubr.msk.f32.gmra.mrb[40].mxu0 %vm784_vm4, %v1704_v55 }
 0x83b   :  { %v1869_v20 = vpop.permute.xlu1 %1868 }
 0x83f   :  { %v1873_v39 = vpop.permute.xlu1 %1872 }
 0x843   :  { %v1877_v50 = vpop.permute.xlu1 %1876 }
 0x85b   :  { %v1689_v19 = vpop.xlane.xlu0 %1688 }
 0x85c   :  { %9150 = vrcp.f32 %v1689_v19 }
 0x85f   :  { %v8781_v0 = vpop.permute.xlu0 %8780 }
 0x860   :  { %v8783_v54 = vunpack.i.h.bf16 %v8781_v0  ;;  %v8782_v48 = vunpack.i.l.bf16 %v8781_v0 }
 0x862   :  { %v8125_v11 = vpack.c.bf16 %v8783_v54, %v8782_v48  ;;  %v9376_v48 = vld [vmem:[%s11918_s3 + $0x8] sm:$0xff] }
 0x864   :  { %8127 = vmatprep.subr.msk.bf16.mxu0 %vm9771_vm3, %v8125_v11 }
 0x865   :  { %8130 = vmatpush3.bf16.xpose.msk.msra.mxu0 %vm9771_vm3, %v8125_v11 }
 0x866   :  { %v9151_v37 = vpop.eup %9150  ;;  %8133 = vmatprep.subr.msk.bf16.mxu0 %vm9771_vm3, %v8131_v23 }
 0x867   :  { %v1706_v60 = vmul.f32 %v9151_v37, %v9135_v51  ;;  %v1867_v51 = vpop.permute.xlu0 %1866 }
 0x869   :  { %7484 = vmatprep.mubr.msk.f32.mxu0 %vm784_vm4, %v1706_v60 }
 0x86a   :  { %7485 = vmatmul.mubr.msk.f32.gmra.mrb[42].mxu0 %vm784_vm4, %v1708_v34 }
 0x86b   :  { %7503 = vmatprep.mubr.msk.f32.mxu0 %vm614_vm2, %v1863_v49  ;;  %v1871_v42 = vpop.permute.xlu0 %1870  ;;  %v9378_v49 = vld [vmem:[%s11918_s3 + $0x18] sm:$0xff] }
 0x86d   :  { %8136 = vmatpush3.bf16.xpose.msk.msra.mxu0 %vm9771_vm3, %v8131_v23 }
 0x86e   :  { %8139 = vmatprep.subr.msk.bf16.mxu0 %vm9771_vm3, %v8137_v41 }
 0x86f   :  { %v1875_v46 = vpop.permute.xlu0 %1874 }
 0x875   :  { %8142 = vmatpush3.bf16.xpose.msk.msra.mxu0 %vm9771_vm3, %v8137_v41 }
 0x87c   :  { %7504 = vmatmul.mubr.msk.f32.vlgmr.msra.gmra.mrb[44].mxu0 %vm614_vm2, %v1865_v31 }
 0x87d   :  { %7506 = vmatprep.mubr.msk.f32.mxu0 %vm614_vm2, %v1867_v51 }
 0x880   :  { %7507 = vmatmul.mubr.msk.f32.gmra.mrb[46].mxu0 %vm614_vm2, %v1869_v20 }
 0x881   :  { %7509 = vmatprep.mubr.msk.f32.mxu0 %vm614_vm2, %v1871_v42  ;;  %v9379_v42 = vld [vmem:[%s11918_s3 + $0x10] sm:$0xff] }
 0x884   :  { %7510 = vmatmul.mubr.msk.f32.gmra.mrb[48].mxu0 %vm614_vm2, %v1873_v39 }
 0x885   :  { %7512 = vmatprep.mubr.msk.f32.mxu0 %vm614_vm2, %v1875_v46 }
 0x888   :  { %7513 = vmatmul.mubr.msk.f32.gmra.mrb[50].mxu0 %vm614_vm2, %v1877_v50 }
 0x889   :  { %2759 = vmatprep.mubr.f32.mxu0 %v11952_v8 }
 0x8d4   :  { %v10358_v61 = vpop.f32.mrb[36].mxu0 }
 0x8d5   :  { %v10360_v45 = vpop.f32.mrb[37].mxu0 }
 0x8d6   :  { %v8819_v38 = vpack.i.bf16 %v10358_v61, %v10360_v45 }
 0x908   :  { %v10364_v17 = vpop.f32.mrb[38].mxu0 }
 0x909   :  { %v10366_v29 = vpop.f32.mrb[39].mxu0 }
 0x90a   :  { %v8834_v22 = vpack.i.bf16 %v10364_v17, %v10366_v29 }
 0x90c   :  { %v10370_v27 = vpop.f32.mrb[40].mxu0 }
 0x90d   :  { %v10372_v24 = vpop.f32.mrb[41].mxu0 }
 0x90e   :  { %v8849_v55 = vpack.i.bf16 %v10370_v27, %v10372_v24 }
 0x93d   :  { %v10376_v9 = vpop.f32.mrb[42].mxu0 }
 0x93e   :  { %v10378_v19 = vpop.f32.mrb[43].mxu0 }
 0x93f   :  { %v8864_v12 = vpack.i.bf16 %v10376_v9, %v10378_v19 }
 0x94f   :  { %v7505_v0 = vpop.f32.mrb[44].mxu0 }
 0x950   :  { %v2032_v40 = vmul.f32 0.17677669, %v7505_v0  ;;  %v1992_v25 = vpop.f32.mrb[45].mxu0 }
 0x951   :  { %v2031_v54 = vmul.f32 0.17677669, %v1992_v25 }
 0x952   :  { %v2040_v11 = vadd.f32 %v9376_v48, %v2032_v40  ;;  %v9380_v40 = vld [vmem:[%s11918_s3 + $0x20] sm:$0xff] }
 0x953   :  { %v7508_v23 = vpop.f32.mrb[46].mxu0  ;;  %v2039_v53 = vadd.f32 %v9377_v52, %v2031_v54 }
 0x954   :  { %v2034_v37 = vmul.f32 0.17677669, %v7508_v23  ;;  %v2002_v60 = vpop.f32.mrb[47].mxu0  ;;  %v2050_v26 = vsel %vm784_vm4, %v2040_v11, -inf  ;;  %v9381_v23 = vld [vmem:[%s11918_s3 + $0x28] sm:$0xff] }
 0x955   :  { %v2033_v35 = vmul.f32 0.17677669, %v2002_v60  ;;  %2051 = vmax.xlane.f32.xlu1 %v2050_v26  ;;  %v2047_v34 = vsel %vm784_vm4, %v2039_v53, -inf }
 0x956   :  { %2048 = vmax.xlane.f32.xlu0 %v2047_v34  ;;  %v2042_v41 = vadd.f32 %v9378_v49, %v2034_v37  ;;  %v9383_v49 = vld [vmem:[%s11918_s3 + $0x38] sm:$0xff] }
 0x957   :  { %v7511_v31 = vpop.f32.mrb[48].mxu0  ;;  %v2041_v39 = vadd.f32 %v9379_v42, %v2033_v35  ;;  %v9382_v35 = vld [vmem:[%s11918_s3 + $0x30] sm:$0xff] }
 0x958   :  { %v2012_v51 = vpop.f32.mrb[49].mxu0  ;;  %v2056_v20 = vsel %vm784_vm4, %v2042_v41, -inf  ;;  %v2036_v46 = vmul.f32 0.17677669, %v7511_v31 }
 0x959   :  { %v2035_v50 = vmul.f32 0.17677669, %v2012_v51  ;;  %v2053_v48 = vsel %vm784_vm4, %v2041_v39, -inf }
 0x95a   :  { %2057 = vmax.xlane.f32.xlu0 %v2056_v20  ;;  %v2044_v52 = vadd.f32 %v9381_v23, %v2036_v46 }
 0x95b   :  { %v7514_v0 = vpop.f32.mrb[50].mxu0  ;;  %v2043_v25 = vadd.f32 %v9380_v40, %v2035_v50 }
 0x95c   :  { %v2022_v54 = vpop.f32.mrb[51].mxu0  ;;  %v2038_v37 = vmul.f32 0.17677669, %v7514_v0  ;;  %v2062_v51 = vsel %vm784_vm4, %v2044_v52, -inf }
 0x95d   :  { %v2037_v60 = vmul.f32 0.17677669, %v2022_v54  ;;  %v2059_v26 = vsel %vm784_vm4, %v2043_v25, -inf }
 0x95e   :  { %2054 = vmax.xlane.f32.xlu0 %v2053_v48  ;;  %2060 = vmax.xlane.f32.xlu1 %v2059_v26  ;;  %v10413_v31 = vadd.f32 %v9383_v49, %v2038_v37 }
 0x95f   :  { %v10408_v34 = vadd.f32 %v9382_v35, %v2037_v60 }
 0x960   :  { %v2068_v42 = vsel %vm784_vm4, %v10413_v31, -inf }
 0x961   :  { %v2065_v20 = vsel %vm784_vm4, %v10408_v34, -inf }
 0x962   :  { %2063 = vmax.xlane.f32.xlu0 %v2062_v51  ;;  %2066 = vmax.xlane.f32.xlu1 %v2065_v20 }
 0x966   :  { %2069 = vmax.xlane.f32.xlu0 %v2068_v42 }
 0x973   :  { %8795 = vrot.lane.b32.xlu1 %v9859_v2, %s9537_s23 }
 0x97c   :  { %8800 = vrot.lane.b32.xlu0 %v9968_v5, %s9537_s23 }
 0x9e2   :  { %v2052_v46 = vpop.xlane.xlu1 %2051 }
 0x9e3   :  { %v2072_v50 = vsub.f32 %v2040_v11, %v2052_v46  ;;  %v2049_v0 = vpop.xlane.xlu0 %2048 }
 0x9e4   :  { %v2071_v40 = vsub.f32 %v2039_v53, %v2049_v0 }
 0x9e5   :  { %v2081_v54 = vmul.f32 1.442695, %v2072_v50 }
 0x9e6   :  { %v2079_v48 = vmul.f32 1.442695, %v2071_v40 }
 0x9e7   :  { %9152 = vpow2.f32 %v2081_v54  ;;  %v2058_v23 = vpop.xlane.xlu0 %2057 }
 0x9e8   :  { %9154 = vpow2.f32 %v2079_v48  ;;  %v2074_v37 = vsub.f32 %v2042_v41, %v2058_v23 }
 0x9ea   :  { %v2085_v60 = vmul.f32 1.442695, %v2074_v37 }
 0x9eb   :  { %v2055_v26 = vpop.xlane.xlu0 %2054  ;;  %v2061_v35 = vpop.xlane.xlu1 %2060 }
 0x9ec   :  { %9156 = vpow2.f32 %v2085_v60  ;;  %v2073_v49 = vsub.f32 %v2041_v39, %v2055_v26  ;;  %v2075_v51 = vsub.f32 %v2043_v25, %v2061_v35 }
 0x9ee   :  { %v2083_v2 = vmul.f32 1.442695, %v2073_v49  ;;  %v2087_v20 = vmul.f32 1.442695, %v2075_v51 }
 0x9ef   :  { %v2064_v42 = vpop.xlane.xlu0 %2063  ;;  %v2067_v5 = vpop.xlane.xlu1 %2066 }
 0x9f0   :  { %9158 = vpow2.f32 %v2083_v2  ;;  %v2076_v11 = vsub.f32 %v2044_v52, %v2064_v42 }
 0x9f1   :  { %v10424_v46 = vpop.eup %9152  ;;  %9160 = vpow2.f32 %v2087_v20 }
 0x9f2   :  { %v9155_v53 = vpop.eup %9154  ;;  %v2089_v50 = vmul.f32 1.442695, %v2076_v11  ;;  %v2098_v41 = vsel %vm784_vm4, %v10424_v46, 0.0 }
 0x9f3   :  { %2099 = vadd.xlane.f32.xlu0 %v2098_v41  ;;  %v2070_v0 = vpop.xlane.xlu0 %2069  ;;  %v8796_v40 = vpop.permute.xlu1 %8795  ;;  %v2095_v39 = vsel %vm784_vm4, %v9155_v53, 0.0 }
 0x9f4   :  { %9162 = vpow2.f32 %v2089_v50  ;;  %v8798_v25 = vunpack.i.h.bf16 %v8796_v40  ;;  %v8797_v54 = vunpack.i.l.bf16 %v8796_v40  ;;  %2096 = vadd.xlane.f32.xlu1 %v2095_v39  ;;  %v2077_v50 = vsub.f32 %v10408_v34, %v2067_v5 }
 0x9f5   :  { %v2078_v41 = vsub.f32 %v10413_v31, %v2070_v0 }
 0x9f6   :  { %v10429_v48 = vpop.eup %9156  ;;  %v8143_v52 = vpack.c.bf16 %v8798_v25, %v8797_v54  ;;  %v2091_v40 = vmul.f32 1.442695, %v2077_v50 }
 0x9f7   :  { %v8801_v23 = vpop.permute.xlu0 %8800  ;;  %v2104_v37 = vsel %vm784_vm4, %v10429_v48, 0.0  ;;  %v2093_v39 = vmul.f32 1.442695, %v2078_v41 }
 0x9f8   :  { %v8803_v60 = vunpack.i.h.bf16 %v8801_v23  ;;  %v8802_v26 = vunpack.i.l.bf16 %v8801_v23  ;;  %2105 = vadd.xlane.f32.xlu0 %v2104_v37  ;;  %8144 = vmatprep.subr.bf16.mxu1 %v8143_v52  ;;  %9164 = vpow2.f32 %v2091_v40 }
 0x9f9   :  { %8146 = vmatpush3.bf16.msra.mxu1 %v8143_v52  ;;  %9166 = vpow2.f32 %v2093_v39 }
 0x9fa   :  { %v9159_v35 = vpop.eup %9158  ;;  %v8147_v49 = vpack.c.bf16 %v8803_v60, %v8802_v26 }
 0x9fb   :  { %v2101_v51 = vsel %vm784_vm4, %v9159_v35, 0.0  ;;  %v10434_v2 = vpop.eup %9160 }
 0x9fc   :  { %2102 = vadd.xlane.f32.xlu1 %v2101_v51  ;;  %8148 = vmatprep.subr.bf16.mxu1 %v8147_v49  ;;  %v2107_v11 = vsel %vm784_vm4, %v10434_v2, 0.0 }
 0x9fd   :  { %8150 = vmatpush3.bf16.msra.mxu1 %v8147_v49 }
 0x9fe   :  { %v10436_v20 = vpop.eup %9162 }
 0x9ff   :  { %v2110_v42 = vsel %vm784_vm4, %v10436_v20, 0.0 }
 0xa00   :  { %2111 = vadd.xlane.f32.xlu0 %v2110_v42  ;;  %2108 = vadd.xlane.f32.xlu1 %v2107_v11 }
 0xa02   :  { %v9165_v25 = vpop.eup %9164 }
 0xa03   :  { %v9167_v54 = vpop.eup %9166  ;;  %v2113_v23 = vsel %vm784_vm4, %v9165_v25, 0.0 }
 0xa04   :  { %v2116_v52 = vsel %vm784_vm4, %v9167_v54, 0.0 }
 0xa11   :  { %8805 = vrot.lane.b32.xlu1 %v9976_v21, %s9537_s23 }
 0xa16   :  { %8810 = vrot.lane.b32.xlu0 %v9981_v28, %s9537_s23 }
 0xa35   :  { %2117 = vadd.xlane.f32.xlu0 %v2116_v52  ;;  %2114 = vadd.xlane.f32.xlu1 %v2113_v23  ;;  %v2411_v52 = vld [vmem:[#allocation6 + $0x150] sm:$0xff] }
 0xa46   :  { %8815 = vrot.lane.b32.xlu1 %v8814_v36, %s9537_s23 }
 0xa4b   :  { %8820 = vrot.lane.b32.xlu0 %v8819_v38, %s9536_s22 }
 0xa4f   :  { %8835 = vrot.lane.b32.xlu0 %v8834_v22, %s9536_s22 }
 0xa53   :  { %8845 = vrot.lane.b32.xlu0 %v8844_v32, %s9537_s23 }
 0xa80   :  { %v2100_v28 = vpop.xlane.xlu0 %2099 }
 0xa81   :  { %v2097_v21 = vpop.xlane.xlu1 %2096 }
 0xa82   :  { %9168 = vrcp.f32 %v2097_v21  ;;  %v2412_v21 = vld [vmem:[#allocation6 + $0x1e8] sm:$0xff] }
 0xa83   :  { %9170 = vrcp.f32 %v2100_v28  ;;  %v2413_v28 = vld [vmem:[#allocation6 + $0x280] sm:$0xff] }
 0xa85   :  { %v2106_v16 = vpop.xlane.xlu0 %2105 }
 0xa89   :  { %v2103_v44 = vpop.xlane.xlu1 %2102 }
 0xa8a   :  { %9172 = vrcp.f32 %v2103_v44 }
 0xa8b   :  { %9174 = vrcp.f32 %v2106_v16  ;;  %v2414_v16 = vld [vmem:[#allocation6 + $0x318] sm:$0xff] }
 0xa8c   :  { %v9169_v36 = vpop.eup %9168  ;;  %v8167_v44 = vpack.c.bf16 %v2414_v16, %v2413_v28 }
 0xa8d   :  { %v2112_v34 = vpop.xlane.xlu0 %2111  ;;  %v2109_v31 = vpop.xlane.xlu1 %2108  ;;  %v2120_v61 = vmul.f32 %v9169_v36, %v9155_v53  ;;  %v2415_v36 = vld [vmem:[#allocation6 + $0x3b0] sm:$0xff] }
 0xa8e   :  { %9176 = vrcp.f32 %v2109_v31  ;;  %v9171_v5 = vpop.eup %9170  ;;  %v2418_v31 = vld [vmem:[#allocation6 + $0x578] sm:$0xff] }
 0xa8f   :  { %7531 = vmatprep.mubr.msk.f32.mxu1 %vm784_vm4, %v2120_v61  ;;  %9178 = vrcp.f32 %v2112_v34  ;;  %v2122_v0 = vmul.f32 %v9171_v5, %v10424_v46  ;;  %v2416_v34 = vld [vmem:[#allocation6 + $0x448] sm:$0xff] }
 0xa91   :  { %v8811_v45 = vpop.permute.xlu0 %8810  ;;  %v8806_v38 = vpop.permute.xlu1 %8805 }
 0xa92   :  { %v8813_v17 = vunpack.i.h.bf16 %v8811_v45  ;;  %v8812_v29 = vunpack.i.l.bf16 %v8811_v45  ;;  %v8808_v22 = vunpack.i.h.bf16 %v8806_v38  ;;  %v8807_v43 = vunpack.i.l.bf16 %v8806_v38  ;;  %v2419_v45 = vld [vmem:[#allocation6 + $0x610] sm:$0xff]  ;;  %v2420_v38 = vld [vmem:[#allocation6 + $0x6a8] sm:$0xff] }
 0xa94   :  { %v8151_v30 = vpack.c.bf16 %v8808_v22, %v8807_v43  ;;  %v8155_v32 = vpack.c.bf16 %v8813_v17, %v8812_v29  ;;  %v9173_v53 = vpop.eup %9172  ;;  %v8179_v17 = vpack.c.bf16 %v2420_v38, %v2419_v45  ;;  %v2421_v29 = vld [vmem:[#allocation6 + $0x740] sm:$0xff]  ;;  %v2422_v22 = vld [vmem:[#allocation6 + $0x7d8] sm:$0xff] }
 0xa95   :  { %v9175_v37 = vpop.eup %9174  ;;  %v2124_v60 = vmul.f32 %v9173_v53, %v9159_v35  ;;  %v8183_v43 = vpack.c.bf16 %v2422_v22, %v2421_v29 }
 0xa96   :  { %8152 = vmatprep.subr.bf16.mxu1 %v8151_v30  ;;  %v2126_v49 = vmul.f32 %v9175_v37, %v10429_v48  ;;  %v2409_v48 = vld [vmem:[#allocation6 + $0x20] sm:$0xff] }
 0xa97   :  { %8154 = vmatpush3.bf16.msra.mxu1 %v8151_v30  ;;  %v2423_v30 = vld [vmem:[#allocation6 + $0x870] sm:$0xff] }
 0xa98   :  { %8156 = vmatprep.subr.bf16.mxu1 %v8155_v32  ;;  %v9177_v26 = vpop.eup %9176 }
 0xa99   :  { %v9179_v51 = vpop.eup %9178  ;;  %v2128_v42 = vmul.f32 %v9177_v26, %v10434_v2  ;;  %v2410_v2 = vld [vmem:[#allocation6 + $0xb8] sm:$0xff] }
 0xa9a   :  { %v2130_v11 = vmul.f32 %v9179_v51, %v10436_v20  ;;  %v8159_v23 = vpack.c.bf16 %v2410_v2, %v2409_v48  ;;  %v8163_v20 = vpack.c.bf16 %v2412_v21, %v2411_v52  ;;  %v11953_v51 = vpack.i.bf16 %v10215_v58, %v10217_v56 }
 0xa9b   :  { %8158 = vmatpush3.bf16.msra.mxu1 %v8155_v32  ;;  %v2424_v32 = vld [vmem:[#allocation6 + $0x908] sm:$0xff]  ;;  %v11954_v58 = vpack.i.bf16 %v10227_v3, %v10229_v10 }
 0xa9c   :  { %8160 = vmatprep.subr.bf16.mxu1 %v8159_v23  ;;  %v8187_v5 = vpack.c.bf16 %v2424_v32, %v2423_v30 }
 0xa9e   :  { %7532 = vmatmul.mubr.msk.f32.vlgmr.msra.gmra.mrb[36].mxu1 %vm784_vm4, %v2122_v0 }
 0xa9f   :  { %7534 = vmatprep.mubr.msk.f32.mxu1 %vm784_vm4, %v2124_v60  ;;  %8162 = vmatpush3.bf16.msra.mxu1 %v8159_v23 }
 0xaa0   :  { %8164 = vmatprep.subr.bf16.mxu1 %v8163_v20 }
 0xaa2   :  { %7535 = vmatmul.mubr.msk.f32.gmra.mrb[38].mxu1 %vm784_vm4, %v2126_v49 }
 0xaa3   :  { %7537 = vmatprep.mubr.msk.f32.mxu1 %vm784_vm4, %v2128_v42  ;;  %8166 = vmatpush3.bf16.msra.mxu1 %v8163_v20 }
 0xaa4   :  { %8168 = vmatprep.subr.bf16.mxu1 %v8167_v44 }
 0xaa6   :  { %7538 = vmatmul.mubr.msk.f32.gmra.mrb[40].mxu1 %vm784_vm4, %v2130_v11 }
 0xaa7   :  { %8170 = vmatpush3.bf16.msra.mxu1 %v8167_v44 }
 0xac2   :  { %v2118_v46 = vpop.xlane.xlu0 %2117  ;;  %v2115_v35 = vpop.xlane.xlu1 %2114 }
 0xac3   :  { %9180 = vrcp.f32 %v2118_v46 }
 0xac4   :  { %9182 = vrcp.f32 %v2115_v35 }
 0xacd   :  { %v9181_v50 = vpop.eup %9180 }
 0xace   :  { %v9183_v41 = vpop.eup %9182  ;;  %v2134_v40 = vmul.f32 %v9181_v50, %v9167_v54  ;;  %v2417_v54 = vld [vmem:[#allocation6 + $0x4e0] sm:$0xff] }
 0xacf   :  { %v2132_v39 = vmul.f32 %v9183_v41, %v9165_v25  ;;  %v8171_v25 = vpack.c.bf16 %v2416_v34, %v2415_v36  ;;  %v8175_v61 = vpack.c.bf16 %v2418_v31, %v2417_v54  ;;  %v8816_v41 = vpop.permute.xlu1 %8815 }
 0xad0   :  { %v8817_v27 = vunpack.i.l.bf16 %v8816_v41 }
 0xad1   :  { %7540 = vmatprep.mubr.msk.f32.mxu1 %vm784_vm4, %v2132_v39  ;;  %8172 = vmatprep.subr.bf16.mxu1 %v8171_v25  ;;  %v8818_v39 = vunpack.i.h.bf16 %v8816_v41 }
 0xad2   :  { %7541 = vmatmul.mubr.msk.f32.gmra.mrb[42].mxu1 %vm784_vm4, %v2134_v40  ;;  %v8821_v40 = vpop.permute.xlu0 %8820  ;;  %v2384_v19 = vsel %vm614_vm2, %v10195_v33, %v8817_v27 }
 0xad3   :  { %8174 = vmatpush3.bf16.msra.mxu1 %v8171_v25  ;;  %v8823_v24 = vunpack.i.h.bf16 %v8821_v40  ;;  %v2385_v9 = vsel %vm614_vm2, %v10193_v6, %v8818_v39 }
 0xad4   :  { %8176 = vmatprep.subr.bf16.mxu1 %v8175_v61 }
 0xad5   :  { %v2393_v52 = vsel %vm784_vm4, %v2385_v9, %v8823_v24  ;;  %v327_v9 = vsel %vm322_vm1, %v9700_v62, 0.0 }
 0xad6   :  { %v8836_v3 = vpop.permute.xlu0 %8835 }
 0xad7   :  { %8178 = vmatpush3.bf16.msra.mxu1 %v8175_v61  ;;  %v8838_v36 = vunpack.i.h.bf16 %v8836_v3  ;;  %v8837_v34 = vunpack.i.l.bf16 %v8836_v3 }
 0xad8   :  { %8180 = vmatprep.subr.bf16.mxu1 %v8179_v17 }
 0xada   :  { %v8846_v16 = vpop.permute.xlu0 %8845 }
 0xadb   :  { %8182 = vmatpush3.bf16.msra.mxu1 %v8179_v17  ;;  %v8848_v61 = vunpack.i.h.bf16 %v8846_v16  ;;  %v8847_v45 = vunpack.i.l.bf16 %v8846_v16 }
 0xadc   :  { %8184 = vmatprep.subr.bf16.mxu1 %v8183_v43 }
 0xadf   :  { %8186 = vmatpush3.bf16.msra.mxu1 %v8183_v43 }
 0xae0   :  { %8188 = vmatprep.subr.bf16.mxu1 %v8187_v5 }
 0xae3   :  { %8190 = vmatpush3.bf16.msra.mxu1 %v8187_v5 }
 0xb71   :  { %v7533_v53 = vpop.f32.mrb[36].mxu1 }
 0xb72   :  { %v2249_v0 = vpop.f32.mrb[37].mxu1 }
 0xb73   :  { %v8824_v37 = vpack.i.bf16 %v7533_v53, %v2249_v0  ;;  %v2388_v53 = vsel %vm614_vm2, %v10203_v57, %v8847_v45  ;;  %v2389_v0 = vsel %vm614_vm2, %v10201_v14, %v8848_v61  ;;  %v11956_v45 = vld [vmem:[#allocation16_spill] sm:$0xff] }
 0xb75   :  { %8825 = vrot.lane.b32.xlu1 %v8824_v37, %s9535_s1  ;;  %v7536_v60 = vpop.f32.mrb[38].mxu1 }
 0xb76   :  { %v2259_v26 = vpop.f32.mrb[39].mxu1 }
 0xb77   :  { %v8839_v49 = vpack.i.bf16 %v7536_v60, %v2259_v26 }
 0xb79   :  { %8830 = vrot.lane.b32.xlu1 %v11953_v51, %s9537_s23  ;;  %v7539_v42 = vpop.f32.mrb[40].mxu1 }
 0xb7a   :  { %v2269_v11 = vpop.f32.mrb[41].mxu1 }
 0xb7b   :  { %v8854_v46 = vpack.i.bf16 %v7539_v42, %v2269_v11 }
 0xb7d   :  { %8840 = vrot.lane.b32.xlu1 %v8839_v49, %s9535_s1  ;;  %8855 = vrot.lane.b32.xlu0 %v8854_v46, %s9535_s1 }
 0xb81   :  { %8850 = vrot.lane.b32.xlu1 %v8849_v55, %s9536_s22  ;;  %8865 = vrot.lane.b32.xlu0 %v8864_v12, %s9536_s22  ;;  %v8822_v55 = vunpack.i.l.bf16 %v8821_v40 }
 0xb83   :  { %v2392_v2 = vsel %vm784_vm4, %v2384_v19, %v8822_v55  ;;  %v10533_v55 = vld [vmem:[#allocation9] sm:$0xff] }
 0xb85   :  { %8860 = vrot.lane.b32.xlu1 %v11954_v58, %s9537_s23 }
 0xba5   :  { %v7542_v56 = vpop.f32.mrb[42].mxu1 }
 0xba6   :  { %v2279_v35 = vpop.f32.mrb[43].mxu1 }
 0xba7   :  { %v8869_v50 = vpack.i.bf16 %v7542_v56, %v2279_v35 }
 0xba9   :  { %8870 = vrot.lane.b32.xlu1 %v8869_v50, %s9535_s1 }
 0xbe7   :  { %v8826_v12 = vpop.permute.xlu1 %8825 }
 0xbe8   :  { %v8828_v10 = vunpack.i.h.bf16 %v8826_v12  ;;  %v8827_v48 = vunpack.i.l.bf16 %v8826_v12 }
 0xbea   :  { %v2401_v23 = vsel %vm2400_vm5, %v2392_v2, %v8827_v48  ;;  %v2402_v21 = vsel %vm2400_vm5, %v2393_v52, %v8828_v10 }
 0xbeb   :  { %v8831_v20 = vpop.permute.xlu1 %8830  ;;  %7575 = vmatprep.mubr.f32.mxu1 %v2401_v23 }
 0xbec   :  { %v8833_v28 = vunpack.i.h.bf16 %v8831_v20  ;;  %v8832_v6 = vunpack.i.l.bf16 %v8831_v20  ;;  %7576 = vmatmul.mubr.f32.vlgmr.msra.gmra.mrb[44].mxu1 %v2402_v21 }
 0xbee   :  { %v2386_v33 = vsel %vm614_vm2, %v10199_v18, %v8832_v6  ;;  %v2387_v44 = vsel %vm614_vm2, %v10197_v47, %v8833_v28 }
 0xbef   :  { %v8841_v25 = vpop.permute.xlu1 %8840  ;;  %v2394_v38 = vsel %vm784_vm4, %v2386_v33, %v8837_v34  ;;  %v2395_v17 = vsel %vm784_vm4, %v2387_v44, %v8838_v36  ;;  %v8856_v29 = vpop.permute.xlu0 %8855 }
 0xbf0   :  { %v8843_v54 = vunpack.i.h.bf16 %v8841_v25  ;;  %v8842_v31 = vunpack.i.l.bf16 %v8841_v25  ;;  %v8858_v32 = vunpack.i.h.bf16 %v8856_v29  ;;  %v8857_v5 = vunpack.i.l.bf16 %v8856_v29 }
 0xbf2   :  { %v2403_v22 = vsel %vm2400_vm5, %v2394_v38, %v8842_v31  ;;  %v2404_v43 = vsel %vm2400_vm5, %v2395_v17, %v8843_v54  ;;  %v2656_v38 = vld [vmem:[#allocation6 + $0x30] sm:$0xff]  ;;  %v2658_v17 = vld [vmem:[#allocation6 + $0xc8] sm:$0xff] }
 0xbf3   :  { %v8851_v18 = vpop.permute.xlu1 %8850  ;;  %7578 = vmatprep.mubr.f32.mxu1 %v2403_v22  ;;  %v8866_v46 = vpop.permute.xlu0 %8865  ;;  %v8191_v29 = vpack.c.bf16 %v2658_v17, %v2656_v38  ;;  %v2657_v22 = vld [vmem:[#allocation6 + $0xc0] sm:$0xff]  ;;  %v2675_v38 = vld [vmem:[#allocation6 + $0x618] sm:$0xff]  ;;  %v2677_v17 = vld [vmem:[#allocation6 + $0x6b0] sm:$0xff] }
 0xbf4   :  { %v8853_v30 = vunpack.i.h.bf16 %v8851_v18  ;;  %v8852_v47 = vunpack.i.l.bf16 %v8851_v18  ;;  %7579 = vmatmul.mubr.f32.gmra.mrb[46].mxu1 %v2404_v43  ;;  %v8868_v58 = vunpack.i.h.bf16 %v8866_v46  ;;  %v8867_v56 = vunpack.i.l.bf16 %v8866_v46  ;;  %v2660_v43 = vld [vmem:[#allocation6 + $0x160] sm:$0xff]  ;;  %v2662_v18 = vld [vmem:[#allocation6 + $0x1f8] sm:$0xff] }
 0xbf5   :  { %8192 = vmatprep.subr.bf16.mxu0 %v8191_v29  ;;  %v2680_v29 = vld [vmem:[#allocation6 + $0x750] sm:$0xff] }
 0xbf6   :  { %v2396_v37 = vsel %vm784_vm4, %v2388_v53, %v8852_v47  ;;  %v2397_v60 = vsel %vm784_vm4, %v2389_v0, %v8853_v30  ;;  %v8195_v47 = vpack.c.bf16 %v2662_v18, %v2660_v43  ;;  %v2664_v53 = vld [vmem:[#allocation6 + $0x290] sm:$0xff]  ;;  %v2666_v0 = vld [vmem:[#allocation6 + $0x328] sm:$0xff] }
 0xbf7   :  { %v2405_v26 = vsel %vm2400_vm5, %v2396_v37, %v8857_v5  ;;  %v2406_v49 = vsel %vm2400_vm5, %v2397_v60, %v8858_v32  ;;  %v8861_v51 = vpop.permute.xlu1 %8860  ;;  %v2659_v32 = vld [vmem:[#allocation6 + $0x158] sm:$0xff]  ;;  %v2661_v5 = vld [vmem:[#allocation6 + $0x1f0] sm:$0xff]  ;;  %v8199_v60 = vpack.c.bf16 %v2666_v0, %v2664_v53  ;;  %v2679_v18 = vld [vmem:[#allocation6 + $0x748] sm:$0xff] }
 0xbf8   :  { %7581 = vmatprep.mubr.f32.mxu1 %v2405_v26  ;;  %v8863_v42 = vunpack.i.h.bf16 %v8861_v51  ;;  %v8862_v11 = vunpack.i.l.bf16 %v8861_v51  ;;  %v8197_v37 = vpack.c.bf16 %v2661_v5, %v2659_v32  ;;  %v2663_v26 = vld [vmem:[#allocation6 + $0x288] sm:$0xff]  ;;  %v2684_v32 = vld [vmem:[#allocation6 + $0x880] sm:$0xff]  ;;  %v2686_v5 = vld [vmem:[#allocation6 + $0x918] sm:$0xff] }
 0xbf9   :  { %7582 = vmatmul.mubr.f32.gmra.mrb[48].mxu1 %v2406_v49  ;;  %v2665_v49 = vld [vmem:[#allocation6 + $0x320] sm:$0xff]  ;;  %v8219_v53 = vpack.c.bf16 %v2686_v5, %v2684_v32  ;;  %v2683_v0 = vld [vmem:[#allocation6 + $0x878] sm:$0xff] }
 0xbfa   :  { %v2390_v57 = vsel %vm614_vm2, %v10207_v7, %v8862_v11  ;;  %v2391_v14 = vsel %vm614_vm2, %v10205_v59, %v8863_v42  ;;  %v10531_v7 = vsub.s32 4, %v9678_v13  ;;  %v8201_v51 = vpack.c.bf16 %v2665_v49, %v2663_v26 }
 0xbfb   :  { %v2398_v40 = vsel %vm784_vm4, %v2390_v57, %v8867_v56  ;;  %v2399_v39 = vsel %vm784_vm4, %v2391_v14, %v8868_v58 }
 0xbfc   :  { %11955 = vst [vmem:[#allocation18_spill] sm:$0xff] %v10531_v7  ;;  %v2428_v59 = vrot.slane %v10533_v55, %v10531_v7 }
 0xc1b   :  { %v8871_v35 = vpop.permute.xlu1 %8870 }
 0xc1c   :  { %v8873_v50 = vunpack.i.h.bf16 %v8871_v35  ;;  %v8872_v41 = vunpack.i.l.bf16 %v8871_v35 }
 0xc1e   :  { %v2407_v27 = vsel %vm2400_vm5, %v2398_v40, %v8872_v41  ;;  %v2408_v24 = vsel %vm2400_vm5, %v2399_v39, %v8873_v50 }
 0xc1f   :  { %7584 = vmatprep.mubr.f32.mxu1 %v2407_v27 }
 0xc20   :  { %7585 = vmatmul.mubr.f32.gmra.mrb[50].mxu1 %v2408_v24 }
 0xcbf   :  { %v7577_v19 = vpop.f32.mrb[44].mxu1 }
 0xcc0   :  { %v2501_v12 = vadd.f32 %v7577_v19, %v2428_v59  ;;  %v2495_v3 = vpop.f32.mrb[45].mxu1 }
 0xcc1   :  { %v2496_v10 = vadd.f32 %v2495_v3, %v2428_v59 }
 0xcc2   :  { %v2535_v48 = vadd.f32 %v2501_v12, %v327_v9 }
 0xcc3   :  { %v2534_v2 = vadd.f32 %v2496_v10, %v9702_v63 }
 0xcc4   :  { %2544 = vadd.xlane.f32.xlu1 %v2535_v48 }
 0xcc5   :  { %2542 = vadd.xlane.f32.xlu0 %v2534_v2 }
 0xcc7   :  { %v7580_v52 = vpop.f32.mrb[46].mxu1 }
 0xcc8   :  { %v2505_v23 = vpop.f32.mrb[47].mxu1  ;;  %v2511_v20 = vadd.f32 %v7580_v52, %v2428_v59 }
 0xcc9   :  { %v2506_v21 = vadd.f32 %v2505_v23, %v2428_v59 }
 0xcca   :  { %v2537_v62 = vadd.f32 %v2511_v20, %v327_v9  ;;  %v2670_v20 = vld [vmem:[#allocation6 + $0x458] sm:$0xff] }
 0xccb   :  { %v2536_v28 = vadd.f32 %v2506_v21, %v9708_v1  ;;  %v2668_v21 = vld [vmem:[#allocation6 + $0x3c0] sm:$0xff] }
 0xccc   :  { %v7583_v6 = vpop.f32.mrb[48].mxu1 }
 0xccd   :  { %v2515_v16 = vpop.f32.mrb[49].mxu1  ;;  %2546 = vadd.xlane.f32.xlu0 %v2536_v28  ;;  %v2521_v44 = vadd.f32 %v7583_v6, %v2428_v59  ;;  %v2667_v6 = vld [vmem:[#allocation6 + $0x3b8] sm:$0xff] }
 0xcce   :  { %v2516_v33 = vadd.f32 %v2515_v16, %v2428_v59  ;;  %v2669_v16 = vld [vmem:[#allocation6 + $0x450] sm:$0xff] }
 0xccf   :  { %v2539_v34 = vadd.f32 %v2521_v44, %v327_v9  ;;  %v2674_v44 = vld [vmem:[#allocation6 + $0x588] sm:$0xff] }
 0xcd0   :  { %v2538_v36 = vadd.f32 %v2516_v33, %v9717_v4  ;;  %v2655_v4 = vld [vmem:[#allocation6 + $0x28] sm:$0xff]  ;;  %v8205_v33 = vpack.c.bf16 %v2669_v16, %v2667_v6  ;;  %v2847_v6 = vld [vmem:[#allocation7 + $0xb8] sm:$0xff] }
 0xcd1   :  { %2548 = vadd.xlane.f32.xlu0 %v2537_v62  ;;  %v8193_v30 = vpack.c.bf16 %v2657_v22, %v2655_v4  ;;  %v8213_v4 = vpack.c.bf16 %v2677_v17, %v2675_v38  ;;  %v2682_v22 = vld [vmem:[#allocation6 + $0x7e8] sm:$0xff]  ;;  %v2851_v38 = vld [vmem:[#allocation7 + $0xd8] sm:$0xff] }
 0xcd2   :  { %2550 = vadd.xlane.f32.xlu1 %v2538_v36  ;;  %v8215_v43 = vpack.c.bf16 %v2682_v22, %v2680_v29  ;;  %v2834_v29 = vld [vmem:[#allocation7 + $0x50] sm:$0xff]  ;;  %v2835_v22 = vld [vmem:[#allocation7 + $0x58] sm:$0xff] }
 0xcd3   :  { %8194 = vmatpush1.bf16.msra.mxu0 %v8193_v30  ;;  %v2681_v30 = vld [vmem:[#allocation6 + $0x7e0] sm:$0xff] }
 0xcd4   :  { %8196 = vmatprep.subr.bf16.mxu0 %v8195_v47  ;;  %v8217_v47 = vpack.c.bf16 %v2681_v30, %v2679_v18  ;;  %v2853_v18 = vld [vmem:[#allocation7 + $0xe8] sm:$0xff]  ;;  %v8245_v30 = vpack.c.bf16 %v2835_v22, %v2834_v29 }
 0xcd5   :  { %2552 = vadd.xlane.f32.xlu0 %v2539_v34 }
 0xcd7   :  { %8198 = vmatpush1.bf16.msra.mxu0 %v8197_v37  ;;  %v2685_v37 = vld [vmem:[#allocation6 + $0x910] sm:$0xff] }
 0xcd8   :  { %8200 = vmatprep.subr.bf16.mxu0 %v8199_v60  ;;  %v8221_v60 = vpack.c.bf16 %v2685_v37, %v2683_v0 }
 0xcdb   :  { %8202 = vmatpush1.bf16.msra.mxu0 %v8201_v51 }
 0xcf3   :  { %v7586_v63 = vpop.f32.mrb[50].mxu1 }
 0xcf4   :  { %v2531_v25 = vadd.f32 %v7586_v63, %v2428_v59  ;;  %v2525_v54 = vpop.f32.mrb[51].mxu1  ;;  %v2671_v63 = vld [vmem:[#allocation6 + $0x4e8] sm:$0xff] }
 0xcf5   :  { %v2526_v31 = vadd.f32 %v2525_v54, %v2428_v59  ;;  %v2676_v54 = vld [vmem:[#allocation6 + $0x620] sm:$0xff] }
 0xcf6   :  { %v10543_v61 = vadd.f32 %v2531_v25, %v327_v9 }
 0xcf7   :  { %v10546_v1 = vadd.f32 %v2526_v31, %v11956_v45  ;;  %v2678_v31 = vld [vmem:[#allocation6 + $0x6b8] sm:$0xff] }
 0xcf8   :  { %2556 = vadd.xlane.f32.xlu0 %v10543_v61  ;;  %v8211_v45 = vpack.c.bf16 %v2678_v31, %v2676_v54  ;;  %v2832_v54 = vld [vmem:[#allocation7 + $0x40] sm:$0xff]  ;;  %v2833_v31 = vld [vmem:[#allocation7 + $0x48] sm:$0xff] }
 0xcf9   :  { %2554 = vadd.xlane.f32.xlu1 %v10546_v1  ;;  %v8241_v17 = vpack.c.bf16 %v2833_v31, %v2832_v54 }
 0xd51   :  { %v2545_v42 = vpop.xlane.xlu1 %2544 }
 0xd52   :  { %v2560_v11 = vmul.f32 0.0078125, %v2545_v42  ;;  %v2543_v46 = vpop.xlane.xlu0 %2542 }
 0xd53   :  { %v2559_v57 = vmul.f32 0.0078125, %v2543_v46 }
 0xd54   :  { %v10550_v14 = vsub.f32 %v2535_v48, %v2560_v11 }
 0xd55   :  { %v10552_v58 = vsub.f32 %v2534_v2, %v2559_v57 }
 0xd56   :  { %v2576_v56 = vmul.f32 %v10550_v14, %v10550_v14 }
 0xd57   :  { %v2575_v35 = vmul.f32 %v10552_v58, %v10552_v58 }
 0xd58   :  { %2585 = vadd.xlane.f32.xlu0 %v2576_v56 }
 0xd59   :  { %2583 = vadd.xlane.f32.xlu1 %v2575_v35  ;;  %v2840_v35 = vld [vmem:[#allocation7 + $0x80] sm:$0xff] }
 0xd5a   :  { %v2547_v50 = vpop.xlane.xlu0 %2546 }
 0xd5b   :  { %v2561_v41 = vmul.f32 0.0078125, %v2547_v50  ;;  %v2841_v50 = vld [vmem:[#allocation7 + $0x88] sm:$0xff] }
 0xd5d   :  { %v10558_v40 = vsub.f32 %v2536_v28, %v2561_v41  ;;  %v8203_v28 = vpack.c.bf16 %v2670_v20, %v2668_v21  ;;  %v2824_v41 = vld [vmem:[#allocation7] sm:$0xff]  ;;  %v2829_v20 = vld [vmem:[#allocation7 + $0x28] sm:$0xff] }
 0xd5e   :  { %v2549_v39 = vpop.xlane.xlu0 %2548  ;;  %v2828_v21 = vld [vmem:[#allocation7 + $0x20] sm:$0xff] }
 0xd5f   :  { %v2562_v27 = vmul.f32 0.0078125, %v2549_v39  ;;  %v2551_v24 = vpop.xlane.xlu1 %2550  ;;  %v2577_v59 = vmul.f32 %v10558_v40, %v10558_v40  ;;  %8204 = vmatprep.subr.bf16.mxu0 %v8203_v28  ;;  %v8223_v39 = vpack.c.bf16 %v2841_v50, %v2840_v35  ;;  %v2846_v28 = vld [vmem:[#allocation7 + $0xb0] sm:$0xff]  ;;  %v8233_v16 = vpack.c.bf16 %v2829_v20, %v2828_v21 }
 0xd60   :  { %v2563_v9 = vmul.f32 0.0078125, %v2551_v24  ;;  %8206 = vmatpush1.bf16.msra.mxu0 %v8205_v33  ;;  %v2842_v24 = vld [vmem:[#allocation7 + $0x90] sm:$0xff]  ;;  %v8235_v33 = vpack.c.bf16 %v2847_v6, %v2846_v28 }
 0xd61   :  { %v10562_v19 = vsub.f32 %v2537_v62, %v2562_v27  ;;  %2587 = vadd.xlane.f32.xlu1 %v2577_v59  ;;  %v2672_v62 = vld [vmem:[#allocation6 + $0x4f0] sm:$0xff]  ;;  %v2825_v27 = vld [vmem:[#allocation7 + $0x8] sm:$0xff]  ;;  %v2843_v59 = vld [vmem:[#allocation7 + $0x98] sm:$0xff]  ;;  %8224 = vmatprep.subr.bf16.mxu1 %v8223_v39 }
 0xd62   :  { %v10564_v12 = vsub.f32 %v2538_v36, %v2563_v9  ;;  %v2553_v3 = vpop.xlane.xlu0 %2552  ;;  %v8207_v36 = vpack.c.bf16 %v2674_v44, %v2672_v62  ;;  %v8227_v9 = vpack.c.bf16 %v2843_v59, %v2842_v24  ;;  %v2830_v62 = vld [vmem:[#allocation7 + $0x30] sm:$0xff]  ;;  %v2831_v44 = vld [vmem:[#allocation7 + $0x38] sm:$0xff] }
 0xd63   :  { %v2564_v10 = vmul.f32 0.0078125, %v2553_v3  ;;  %v2578_v48 = vmul.f32 %v10562_v19, %v10562_v19  ;;  %v2826_v3 = vld [vmem:[#allocation7 + $0x10] sm:$0xff] }
 0xd64   :  { %v2579_v2 = vmul.f32 %v10564_v12, %v10564_v12  ;;  %8208 = vmatprep.subr.bf16.mxu0 %v8207_v36  ;;  %v2848_v36 = vld [vmem:[#allocation7 + $0xc0] sm:$0xff] }
 0xd65   :  { %v10570_v52 = vsub.f32 %v2539_v34, %v2564_v10  ;;  %2589 = vadd.xlane.f32.xlu0 %v2578_v48  ;;  %v2673_v34 = vld [vmem:[#allocation6 + $0x580] sm:$0xff]  ;;  %v2845_v48 = vld [vmem:[#allocation7 + $0xa8] sm:$0xff] }
 0xd66   :  { %2591 = vadd.xlane.f32.xlu1 %v2579_v2  ;;  %v8209_v25 = vpack.c.bf16 %v2673_v34, %v2671_v63  ;;  %v2844_v10 = vld [vmem:[#allocation7 + $0xa0] sm:$0xff]  ;;  %v2849_v63 = vld [vmem:[#allocation7 + $0xc8] sm:$0xff]  ;;  %v8237_v34 = vpack.c.bf16 %v2831_v44, %v2830_v62 }
 0xd67   :  { %v2580_v23 = vmul.f32 %v10570_v52, %v10570_v52 }
 0xd68   :  { %8210 = vmatpush1.bf16.msra.mxu0 %v8209_v25  ;;  %v8239_v25 = vpack.c.bf16 %v2849_v63, %v2848_v36 }
 0xd69   :  { %2593 = vadd.xlane.f32.xlu0 %v2580_v23  ;;  %8212 = vmatprep.subr.bf16.mxu0 %v8211_v45  ;;  %v8231_v23 = vpack.c.bf16 %v2845_v48, %v2844_v10  ;;  %v2850_v45 = vld [vmem:[#allocation7 + $0xd0] sm:$0xff] }
 0xd6c   :  { %8214 = vmatpush1.bf16.msra.mxu0 %v8213_v4  ;;  %v8243_v4 = vpack.c.bf16 %v2851_v38, %v2850_v45 }
 0xd6d   :  { %8216 = vmatprep.subr.bf16.mxu0 %v8215_v43  ;;  %v2852_v43 = vld [vmem:[#allocation7 + $0xe0] sm:$0xff] }
 0xd70   :  { %8218 = vmatpush1.bf16.msra.mxu0 %v8217_v47  ;;  %v8247_v47 = vpack.c.bf16 %v2853_v18, %v2852_v43 }
 0xd71   :  { %8220 = vmatprep.subr.bf16.mxu0 %v8219_v53 }
 0xd74   :  { %8222 = vmatpush1.bf16.msra.mxu0 %v8221_v60 }
 0xd85   :  { %v2557_v26 = vpop.xlane.xlu0 %2556 }
 0xd86   :  { %v2566_v49 = vmul.f32 0.0078125, %v2557_v26  ;;  %v2555_v51 = vpop.xlane.xlu1 %2554 }
 0xd87   :  { %v2565_v42 = vmul.f32 0.0078125, %v2555_v51  ;;  %v10584_v51 = vld [vmem:[#allocation9 + $0x18] sm:$0xff] }
 0xd88   :  { %v10575_v11 = vsub.f32 %v10543_v61, %v2566_v49  ;;  %v8225_v61 = vpack.c.bf16 %v2825_v27, %v2824_v41  ;;  %v11958_v27 = vld [vmem:[#allocation17_spill] sm:$0xff] }
 0xd89   :  { %v10578_v46 = vsub.f32 %v10546_v1, %v2565_v42  ;;  %v2827_v1 = vld [vmem:[#allocation7 + $0x18] sm:$0xff]  ;;  %v2634_v24 = vrot.slane %v10584_v51, %v11958_v27 }
 0xd8a   :  { %v2582_v57 = vmul.f32 %v10575_v11, %v10575_v11  ;;  %8226 = vmatpush3.bf16.msra.mxu1 %v8225_v61  ;;  %v8229_v2 = vpack.c.bf16 %v2827_v1, %v2826_v3 }
 0xd8b   :  { %v2581_v56 = vmul.f32 %v10578_v46, %v10578_v46  ;;  %8228 = vmatprep.subr.bf16.mxu1 %v8227_v9 }
 0xd8c   :  { %2597 = vadd.xlane.f32.xlu0 %v2582_v57 }
 0xd8d   :  { %2595 = vadd.xlane.f32.xlu1 %v2581_v56  ;;  %v10587_v56 = vsub.s32 3, %v9678_v13 }
 0xd8e   :  { %8230 = vmatpush3.bf16.msra.mxu1 %v8229_v2 }
 0xd8f   :  { %8232 = vmatprep.subr.bf16.mxu1 %v8231_v23  ;;  %11957 = vst [vmem:[#allocation16_spill] sm:$0xff] %v10587_v56  ;;  %v2646_v10 = vrot.slane %v10584_v51, %v10587_v56 }
 0xd92   :  { %8234 = vmatpush3.bf16.msra.mxu1 %v8233_v16 }
 0xd93   :  { %8236 = vmatprep.subr.bf16.mxu1 %v8235_v33 }
 0xd96   :  { %8238 = vmatpush3.bf16.msra.mxu1 %v8237_v34 }
 0xd97   :  { %8240 = vmatprep.subr.bf16.mxu1 %v8239_v25 }
 0xd9a   :  { %8242 = vmatpush3.bf16.msra.mxu1 %v8241_v17 }
 0xd9b   :  { %8244 = vmatprep.subr.bf16.mxu1 %v8243_v4 }
 0xd9e   :  { %8246 = vmatpush3.bf16.msra.mxu1 %v8245_v30 }
 0xd9f   :  { %8248 = vmatprep.subr.bf16.mxu1 %v8247_v47 }
 0xde5   :  { %v2586_v32 = vpop.xlane.xlu0 %2585 }
 0xde6   :  { %v2600_v5 = vmul.f32 0.0078125, %v2586_v32  ;;  %v2584_v53 = vpop.xlane.xlu1 %2583 }
 0xde7   :  { %v2599_v0 = vmul.f32 0.0078125, %v2584_v53 }
 0xde8   :  { %v2608_v37 = vadd.f32 1e-05, %v2600_v5 }
 0xde9   :  { %v2607_v60 = vadd.f32 1e-05, %v2599_v0 }
 0xdea   :  { %9184 = vrsqrt.f32 %v2608_v37  ;;  %v2836_v37 = vld [vmem:[#allocation7 + $0x60] sm:$0xff] }
 0xdeb   :  { %9186 = vrsqrt.f32 %v2607_v60  ;;  %v2837_v60 = vld [vmem:[#allocation7 + $0x68] sm:$0xff] }
 0xdee   :  { %v2588_v26 = vpop.xlane.xlu1 %2587 }
 0xdef   :  { %v2601_v49 = vmul.f32 0.0078125, %v2588_v26  ;;  %v8249_v26 = vpack.c.bf16 %v2837_v60, %v2836_v37 }
 0xdf1   :  { %v2609_v42 = vadd.f32 1e-05, %v2601_v49  ;;  %8250 = vmatpush3.bf16.msra.mxu1 %v8249_v26 }
 0xdf2   :  { %v2590_v57 = vpop.xlane.xlu0 %2589 }
 0xdf3   :  { %9188 = vrsqrt.f32 %v2609_v42  ;;  %v2602_v35 = vmul.f32 0.0078125, %v2590_v57  ;;  %v2592_v50 = vpop.xlane.xlu1 %2591  ;;  %v2838_v42 = vld [vmem:[#allocation7 + $0x70] sm:$0xff]  ;;  %v2839_v57 = vld [vmem:[#allocation7 + $0x78] sm:$0xff] }
 0xdf4   :  { %v9185_v41 = vpop.eup %9184  ;;  %v2603_v39 = vmul.f32 0.0078125, %v2592_v50  ;;  %v10634_v50 = vsub.s32 6, %v9678_v13 }
 0xdf5   :  { %v9187_v59 = vpop.eup %9186  ;;  %v2610_v61 = vadd.f32 1e-05, %v2602_v35  ;;  %v2624_v48 = vmul.f32 %v9185_v41, %v10550_v14  ;;  %v8253_v35 = vpack.c.bf16 %v2839_v57, %v2838_v42 }
 0xdf6   :  { %v2623_v9 = vmul.f32 %v9187_v59, %v10552_v58  ;;  %v2611_v3 = vadd.f32 1e-05, %v2603_v39  ;;  %v2594_v1 = vpop.xlane.xlu0 %2593  ;;  %11959 = vst [vmem:[#allocation19_spill] sm:$0xff] %v10634_v50  ;;  %v2690_v41 = vrot.slane %v10533_v55, %v10634_v50  ;;  %v10638_v39 = vld [vmem:[#allocation9 + $0x8] sm:$0xff] }
 0xdf7   :  { %9190 = vrsqrt.f32 %v2610_v61  ;;  %v2604_v2 = vmul.f32 0.0078125, %v2594_v1  ;;  %v2636_v28 = vmul.f32 %v2634_v24, %v2624_v48 }
 0xdf8   :  { %9192 = vrsqrt.f32 %v2611_v3  ;;  %v2635_v23 = vmul.f32 %v2634_v24, %v2623_v9 }
 0xdf9   :  { %v2612_v21 = vadd.f32 1e-05, %v2604_v2  ;;  %v10599_v58 = vadd.f32 %v2646_v10, %v2636_v28 }
 0xdfa   :  { %v10595_v20 = vadd.f32 %v2646_v10, %v2635_v23 }
 0xdfb   :  { %9194 = vrsqrt.f32 %v2612_v21 }
 0xdfc   :  { %2760 = vmatmul.mubr.f32.vlgmr.msra.gmra.mrb[52].mxu0 %v10595_v20 }
 0xdfd   :  { %v9189_v6 = vpop.eup %9188  ;;  %2765 = vmatprep.mubr.f32.mxu0 %v11952_v8 }
 0xdfe   :  { %v2625_v16 = vmul.f32 %v9189_v6, %v10558_v40 }
 0xe00   :  { %2766 = vmatmul.mubr.f32.gmra.mrb[54].mxu0 %v10599_v58  ;;  %v2637_v14 = vmul.f32 %v2634_v24, %v2625_v16 }
 0xe01   :  { %v9191_v33 = vpop.eup %9190  ;;  %2771 = vmatprep.mubr.f32.mxu0 %v11952_v8 }
 0xe02   :  { %v9193_v62 = vpop.eup %9192  ;;  %v10604_v44 = vadd.f32 %v2646_v10, %v2637_v14  ;;  %v2626_v36 = vmul.f32 %v9191_v33, %v10562_v19 }
 0xe03   :  { %v2627_v63 = vmul.f32 %v9193_v62, %v10564_v12 }
 0xe04   :  { %2772 = vmatmul.mubr.f32.gmra.mrb[56].mxu0 %v10604_v44  ;;  %v2638_v34 = vmul.f32 %v2634_v24, %v2626_v36 }
 0xe05   :  { %v9195_v25 = vpop.eup %9194  ;;  %2777 = vmatprep.mubr.f32.mxu0 %v11952_v8  ;;  %v2639_v54 = vmul.f32 %v2634_v24, %v2627_v63 }
 0xe06   :  { %v10610_v40 = vadd.f32 %v2646_v10, %v2638_v34  ;;  %v2628_v31 = vmul.f32 %v9195_v25, %v10570_v52 }
 0xe07   :  { %v10615_v45 = vadd.f32 %v2646_v10, %v2639_v54 }
 0xe08   :  { %2778 = vmatmul.mubr.f32.gmra.mrb[58].mxu0 %v10610_v40  ;;  %v2640_v19 = vmul.f32 %v2634_v24, %v2628_v31 }
 0xe09   :  { %2783 = vmatprep.mubr.f32.mxu0 %v11952_v8 }
 0xe0a   :  { %v10619_v12 = vadd.f32 %v2646_v10, %v2640_v19 }
 0xe0c   :  { %2784 = vmatmul.mubr.f32.gmra.mrb[60].mxu0 %v10615_v45 }
 0xe0d   :  { %2789 = vmatprep.mubr.f32.mxu0 %v11952_v8 }
 0xe10   :  { %2790 = vmatmul.mubr.f32.gmra.mrb[62].mxu0 %v10619_v12 }
 0xe11   :  { %2795 = vmatprep.mubr.f32.mxu0 %v11952_v8 }
 0xe19   :  { %v2598_v38 = vpop.xlane.xlu0 %2597 }
 0xe1a   :  { %v2606_v17 = vmul.f32 0.0078125, %v2598_v38  ;;  %v2596_v52 = vpop.xlane.xlu1 %2595 }
 0xe1b   :  { %v2605_v4 = vmul.f32 0.0078125, %v2596_v52 }
 0xe1c   :  { %v2614_v29 = vadd.f32 1e-05, %v2606_v17 }
 0xe1d   :  { %v2613_v22 = vadd.f32 1e-05, %v2605_v4 }
 0xe1e   :  { %9196 = vrsqrt.f32 %v2614_v29 }
 0xe1f   :  { %9198 = vrsqrt.f32 %v2613_v22 }
 0xe28   :  { %v9197_v43 = vpop.eup %9196 }
 0xe29   :  { %v9199_v18 = vpop.eup %9198  ;;  %v2630_v47 = vmul.f32 %v9197_v43, %v10575_v11  ;;  %v2855_v11 = vld [vmem:[#allocation7 + $0xf8] sm:$0xff] }
 0xe2a   :  { %v2629_v30 = vmul.f32 %v9199_v18, %v10578_v46  ;;  %v2854_v46 = vld [vmem:[#allocation7 + $0xf0] sm:$0xff] }
 0xe2b   :  { %v2642_v53 = vmul.f32 %v2634_v24, %v2630_v47  ;;  %v8251_v49 = vpack.c.bf16 %v2855_v11, %v2854_v46 }
 0xe2c   :  { %v2641_v32 = vmul.f32 %v2634_v24, %v2629_v30  ;;  %v2694_v24 = vrot.slane %v10638_v39, %v10634_v50 }
 0xe2d   :  { %v10629_v0 = vadd.f32 %v2646_v10, %v2642_v53  ;;  %8252 = vmatprep.subr.bf16.mxu1 %v8251_v49 }
 0xe2e   :  { %v10625_v5 = vadd.f32 %v2646_v10, %v2641_v32  ;;  %8254 = vmatpush3.bf16.msra.mxu1 %v8253_v35 }
 0xe30   :  { %2796 = vmatmul.mubr.f32.gmra.mrb[64].mxu0 %v10625_v5 }
 0xe31   :  { %2801 = vmatprep.mubr.f32.mxu0 %v11952_v8 }
 0xe34   :  { %2802 = vmatmul.mubr.f32.gmra.mrb[66].mxu0 %v10629_v0 }
 0xe35   :  { %3209 = vmatprep.mubr.f32.mxu0 %v11952_v8 }
 0xecf   :  { %v2761_v59 = vpop.f32.mrb[52].mxu0 }
 0xed0   :  { %v2762_v61 = vadd.f32 %v2761_v59, %v2690_v41  ;;  %v2763_v9 = vpop.f32.mrb[53].mxu0 }
 0xed1   :  { %v2764_v3 = vadd.f32 %v2763_v9, %v2694_v24 }
 0xed2   :  { %v2808_v48 = vmax.f32 %v2762_v61, 0.0 }
 0xed3   :  { %v2809_v1 = vmax.f32 %v2764_v3, 0.0  ;;  %v2767_v10 = vpop.f32.mrb[54].mxu0 }
 0xed4   :  { %v2768_v2 = vadd.f32 %v2767_v10, %v2690_v41  ;;  %v2769_v23 = vpop.f32.mrb[55].mxu0 }
 0xed5   :  { %v2770_v21 = vadd.f32 %v2769_v23, %v2694_v24  ;;  %2924 = vmatprep.mubr.f32.mxu1 %v2809_v1  ;;  %v11960_v1 = vld [vmem:[#allocation14_spill] sm:$0xff] }
 0xed6   :  { %2925 = vmatmul.mubr.f32.vlgmr.msra.gmra.mrb[52].mxu1 %v2808_v48  ;;  %v2810_v55 = vmax.f32 %v2768_v2, 0.0  ;;  %v2859_v10 = vrot.slane %v10584_v51, %v11960_v1 }
 0xed7   :  { %v2811_v28 = vmax.f32 %v2770_v21, 0.0  ;;  %v2773_v6 = vpop.f32.mrb[56].mxu0 }
 0xed8   :  { %v2774_v16 = vadd.f32 %v2773_v6, %v2690_v41  ;;  %v2775_v14 = vpop.f32.mrb[57].mxu0 }
 0xed9   :  { %v2776_v33 = vadd.f32 %v2775_v14, %v2694_v24  ;;  %2929 = vmatprep.mubr.f32.mxu1 %v2811_v28 }
 0xeda   :  { %2930 = vmatmul.mubr.f32.gmra.mrb[54].mxu1 %v2810_v55  ;;  %v2812_v63 = vmax.f32 %v2774_v16, 0.0 }
 0xedb   :  { %v2813_v62 = vmax.f32 %v2776_v33, 0.0  ;;  %v2779_v36 = vpop.f32.mrb[58].mxu0 }
 0xedc   :  { %v2780_v34 = vadd.f32 %v2779_v36, %v2690_v41  ;;  %v2781_v25 = vpop.f32.mrb[59].mxu0 }
 0xedd   :  { %v2782_v54 = vadd.f32 %v2781_v25, %v2694_v24  ;;  %2934 = vmatprep.mubr.f32.mxu1 %v2813_v62 }
 0xede   :  { %2935 = vmatmul.mubr.f32.gmra.mrb[56].mxu1 %v2812_v63  ;;  %v2814_v38 = vmax.f32 %v2780_v34, 0.0 }
 0xedf   :  { %v2815_v31 = vmax.f32 %v2782_v54, 0.0  ;;  %v2785_v19 = vpop.f32.mrb[60].mxu0 }
 0xee0   :  { %v2786_v17 = vadd.f32 %v2785_v19, %v2690_v41  ;;  %v2787_v52 = vpop.f32.mrb[61].mxu0 }
 0xee1   :  { %v2788_v4 = vadd.f32 %v2787_v52, %v2694_v24  ;;  %2939 = vmatprep.mubr.f32.mxu1 %v2815_v31 }
 0xee2   :  { %2940 = vmatmul.mubr.f32.gmra.mrb[58].mxu1 %v2814_v38  ;;  %v2816_v43 = vmax.f32 %v2786_v17, 0.0 }
 0xee3   :  { %v2817_v29 = vmax.f32 %v2788_v4, 0.0  ;;  %v2791_v22 = vpop.f32.mrb[62].mxu0 }
 0xee4   :  { %v2792_v18 = vadd.f32 %v2791_v22, %v2690_v41  ;;  %v2793_v30 = vpop.f32.mrb[63].mxu0 }
 0xee5   :  { %v2794_v47 = vadd.f32 %v2793_v30, %v2694_v24  ;;  %2944 = vmatprep.mubr.f32.mxu1 %v2817_v29 }
 0xee6   :  { %2945 = vmatmul.mubr.f32.gmra.mrb[60].mxu1 %v2816_v43  ;;  %v2818_v53 = vmax.f32 %v2792_v18, 0.0 }
 0xee7   :  { %v2819_v32 = vmax.f32 %v2794_v47, 0.0 }
 0xee9   :  { %2949 = vmatprep.mubr.f32.mxu1 %v2819_v32 }
 0xeea   :  { %2950 = vmatmul.mubr.f32.gmra.mrb[62].mxu1 %v2818_v53 }
 0xf03   :  { %v2797_v37 = vpop.f32.mrb[64].mxu0 }
 0xf04   :  { %v2798_v60 = vadd.f32 %v2797_v37, %v2690_v41  ;;  %v2799_v26 = vpop.f32.mrb[65].mxu0 }
 0xf05   :  { %v2800_v46 = vadd.f32 %v2799_v26, %v2694_v24  ;;  %v3089_v26 = vld [vmem:[#allocation6 + $0xd8] sm:$0xff] }
 0xf06   :  { %v2820_v42 = vmax.f32 %v2798_v60, 0.0 }
 0xf07   :  { %v2821_v11 = vmax.f32 %v2800_v46, 0.0  ;;  %v2803_v49 = vpop.f32.mrb[66].mxu0  ;;  %v3085_v46 = vld [vmem:[#allocation6 + $0x38] sm:$0xff] }
 0xf08   :  { %v2804_v57 = vadd.f32 %v2803_v49, %v2690_v41  ;;  %v2805_v35 = vpop.f32.mrb[67].mxu0  ;;  %v3088_v49 = vld [vmem:[#allocation6 + $0xd0] sm:$0xff] }
 0xf09   :  { %v2806_v59 = vadd.f32 %v2805_v35, %v2694_v24  ;;  %2954 = vmatprep.mubr.f32.mxu1 %v2821_v11  ;;  %v8257_v35 = vpack.c.bf16 %v3088_v49, %v3085_v46  ;;  %v3106_v46 = vld [vmem:[#allocation6 + $0x460] sm:$0xff] }
 0xf0a   :  { %2955 = vmatmul.mubr.f32.gmra.mrb[64].mxu1 %v2820_v42  ;;  %v2822_v9 = vmax.f32 %v2804_v57, 0.0  ;;  %v3092_v42 = vld [vmem:[#allocation6 + $0x170] sm:$0xff]  ;;  %v3095_v57 = vld [vmem:[#allocation6 + $0x208] sm:$0xff] }
 0xf0b   :  { %v2823_v61 = vmax.f32 %v2806_v59, 0.0  ;;  %v8259_v59 = vpack.c.bf16 %v3095_v57, %v3092_v42  ;;  %v3110_v57 = vld [vmem:[#allocation6 + $0x500] sm:$0xff] }
 0xf0d   :  { %2959 = vmatprep.mubr.f32.mxu1 %v2823_v61  ;;  %v3087_v61 = vld [vmem:[#allocation6 + $0x48] sm:$0xff] }
 0xf0e   :  { %2960 = vmatmul.mubr.f32.gmra.mrb[66].mxu1 %v2822_v9  ;;  %v3091_v9 = vld [vmem:[#allocation6 + $0x168] sm:$0xff] }
 0xfa9   :  { %v6971_v3 = vpop.f32.mrb[52].mxu1 }
 0xfaa   :  { %v6972_v48 = vpop.f32.mrb[53].mxu1 }
 0xfab   :  { %v6973_v2 = vadd.f32 %v6972_v48, %v6971_v3  ;;  %v3098_v48 = vld [vmem:[#allocation6 + $0x2a0] sm:$0xff] }
 0xfad   :  { %v2927_v23 = vadd.f32 %v6973_v2, %v2859_v10  ;;  %v6974_v21 = vpop.f32.mrb[54].mxu1 }
 0xfae   :  { %v6975_v28 = vpop.f32.mrb[55].mxu1 }
 0xfaf   :  { %v6976_v6 = vadd.f32 %v6975_v28, %v6974_v21  ;;  %v10645_v41 = vadd.f32 %v2927_v23, %v10595_v20  ;;  %v3093_v23 = vld [vmem:[#allocation6 + $0x178] sm:$0xff]  ;;  %v3096_v21 = vld [vmem:[#allocation6 + $0x210] sm:$0xff] }
 0xfb1   :  { %v2932_v24 = vadd.f32 %v6976_v6, %v2859_v10  ;;  %2973 = vadd.xlane.f32.xlu1 %v10645_v41  ;;  %v6977_v55 = vpop.f32.mrb[56].mxu1  ;;  %v8291_v6 = vpack.c.bf16 %v3096_v21, %v3093_v23  ;;  %v3114_v21 = vld [vmem:[#allocation6 + $0x5a0] sm:$0xff] }
 0xfb2   :  { %v6978_v16 = vpop.f32.mrb[57].mxu1 }
 0xfb3   :  { %v6979_v14 = vadd.f32 %v6978_v16, %v6977_v55  ;;  %v10649_v33 = vadd.f32 %v2932_v24, %v10599_v58  ;;  %v3097_v24 = vld [vmem:[#allocation6 + $0x298] sm:$0xff]  ;;  %v3100_v55 = vld [vmem:[#allocation6 + $0x330] sm:$0xff] }
 0xfb4   :  { %v8265_v16 = vpack.c.bf16 %v3100_v55, %v3097_v24 }
 0xfb5   :  { %v2937_v62 = vadd.f32 %v6979_v14, %v2859_v10  ;;  %2975 = vadd.xlane.f32.xlu0 %v10649_v33  ;;  %v6980_v36 = vpop.f32.mrb[58].mxu1 }
 0xfb6   :  { %v6981_v63 = vpop.f32.mrb[59].mxu1 }
 0xfb7   :  { %v6982_v34 = vadd.f32 %v6981_v63, %v6980_v36  ;;  %v10653_v25 = vadd.f32 %v2937_v62, %v10604_v44 }
 0xfb9   :  { %v2942_v20 = vadd.f32 %v6982_v34, %v2859_v10  ;;  %2977 = vadd.xlane.f32.xlu1 %v10653_v25  ;;  %v6983_v54 = vpop.f32.mrb[60].mxu1 }
 0xfba   :  { %v6984_v31 = vpop.f32.mrb[61].mxu1 }
 0xfbb   :  { %v6985_v19 = vadd.f32 %v6984_v31, %v6983_v54  ;;  %v10657_v38 = vadd.f32 %v2942_v20, %v10610_v40 }
 0xfbd   :  { %v2947_v58 = vadd.f32 %v6985_v19, %v2859_v10  ;;  %2979 = vadd.xlane.f32.xlu0 %v10657_v38  ;;  %v6986_v17 = vpop.f32.mrb[62].mxu1 }
 0xfbe   :  { %v6987_v52 = vpop.f32.mrb[63].mxu1 }
 0xfbf   :  { %v6988_v4 = vadd.f32 %v6987_v52, %v6986_v17  ;;  %v10661_v29 = vadd.f32 %v2947_v58, %v10615_v45 }
 0xfc1   :  { %v2952_v44 = vadd.f32 %v6988_v4, %v2859_v10  ;;  %2981 = vadd.xlane.f32.xlu1 %v10661_v29 }
 0xfc3   :  { %v10665_v22 = vadd.f32 %v2952_v44, %v10619_v12  ;;  %v3086_v12 = vld [vmem:[#allocation6 + $0x40] sm:$0xff] }
 0xfc4   :  { %v8255_v11 = vpack.c.bf16 %v3089_v26, %v3086_v12  ;;  %v3102_v12 = vld [vmem:[#allocation6 + $0x340] sm:$0xff]  ;;  %v3103_v26 = vld [vmem:[#allocation6 + $0x3c8] sm:$0xff] }
 0xfc5   :  { %2983 = vadd.xlane.f32.xlu0 %v10665_v22 }
 0xfc6   :  { %8256 = vmatprep.subr.bf16.mxu0 %v8255_v11 }
 0xfc7   :  { %8258 = vmatpush1.bf16.msra.mxu0 %v8257_v35  ;;  %v3113_v35 = vld [vmem:[#allocation6 + $0x598] sm:$0xff] }
 0xfc8   :  { %8260 = vmatprep.subr.bf16.mxu0 %v8259_v59  ;;  %v3105_v59 = vld [vmem:[#allocation6 + $0x3d8] sm:$0xff] }
 0xfdd   :  { %v6989_v43 = vpop.f32.mrb[64].mxu1 }
 0xfde   :  { %v6990_v40 = vpop.f32.mrb[65].mxu1 }
 0xfdf   :  { %v6991_v18 = vadd.f32 %v6990_v40, %v6989_v43 }
 0xfe1   :  { %v2957_v30 = vadd.f32 %v6991_v18, %v2859_v10  ;;  %v6992_v47 = vpop.f32.mrb[66].mxu1 }
 0xfe2   :  { %v6993_v32 = vpop.f32.mrb[67].mxu1 }
 0xfe3   :  { %v6994_v53 = vadd.f32 %v6993_v32, %v6992_v47  ;;  %v10669_v37 = vadd.f32 %v2957_v30, %v10625_v5  ;;  %v3090_v5 = vld [vmem:[#allocation6 + $0xe0] sm:$0xff]  ;;  %v3104_v32 = vld [vmem:[#allocation6 + $0x3d0] sm:$0xff] }
 0xfe4   :  { %v8287_v3 = vpack.c.bf16 %v3090_v5, %v3087_v61  ;;  %v8271_v61 = vpack.c.bf16 %v3113_v35, %v3110_v57  ;;  %v3108_v5 = vld [vmem:[#allocation6 + $0x470] sm:$0xff] }
 0xfe5   :  { %v2962_v45 = vadd.f32 %v6994_v53, %v2859_v10  ;;  %2985 = vadd.xlane.f32.xlu1 %v10669_v37  ;;  %v3094_v10 = vld [vmem:[#allocation6 + $0x200] sm:$0xff]  ;;  %v3107_v53 = vld [vmem:[#allocation6 + $0x468] sm:$0xff] }
 0xfe6   :  { %v8261_v2 = vpack.c.bf16 %v3094_v10, %v3091_v9  ;;  %8288 = vmatprep.subr.bf16.mxu1 %v8287_v3  ;;  %v3109_v9 = vld [vmem:[#allocation6 + $0x4f8] sm:$0xff] }
 0xfe7   :  { %v10673_v60 = vadd.f32 %v2962_v45, %v10629_v0  ;;  %v3101_v0 = vld [vmem:[#allocation6 + $0x338] sm:$0xff]  ;;  %8290 = vmatpush3.bf16.msra.mxu1 %v8287_v3  ;;  %v3099_v45 = vld [vmem:[#allocation6 + $0x2a8] sm:$0xff]  ;;  %v3112_v3 = vld [vmem:[#allocation6 + $0x590] sm:$0xff] }
 0xfe8   :  { %v8263_v28 = vpack.c.bf16 %v3101_v0, %v3098_v48  ;;  %8292 = vmatprep.subr.bf16.mxu1 %v8291_v6  ;;  %8262 = vmatpush1.bf16.msra.mxu0 %v8261_v2  ;;  %v8295_v49 = vpack.c.bf16 %v3102_v12, %v3099_v45  ;;  %v8273_v10 = vpack.c.bf16 %v3112_v3, %v3109_v9  ;;  %v3116_v48 = vld [vmem:[#allocation6 + $0x630] sm:$0xff]  ;;  %v3119_v0 = vld [vmem:[#allocation6 + $0x6c8] sm:$0xff] }
 0xfe9   :  { %2987 = vadd.xlane.f32.xlu0 %v10673_v60  ;;  %v3111_v2 = vld [vmem:[#allocation6 + $0x508] sm:$0xff]  ;;  %v8275_v23 = vpack.c.bf16 %v3119_v0, %v3116_v48 }
 0xfea   :  { %8264 = vmatprep.subr.bf16.mxu0 %v8263_v28  ;;  %v3115_v28 = vld [vmem:[#allocation6 + $0x628] sm:$0xff]  ;;  %v8303_v24 = vpack.c.bf16 %v3114_v21, %v3111_v2  ;;  %v10721_v2 = vrot.slane %v10584_v51, %v10531_v7 }
 0xfeb   :  { %8294 = vmatpush3.bf16.msra.mxu1 %v8291_v6  ;;  %v3118_v6 = vld [vmem:[#allocation6 + $0x6c0] sm:$0xff] }
 0xfec   :  { %8266 = vmatpush1.bf16.msra.mxu0 %v8265_v16  ;;  %8296 = vmatprep.subr.bf16.mxu1 %v8295_v49  ;;  %v8277_v55 = vpack.c.bf16 %v3118_v6, %v3115_v28  ;;  %v3122_v16 = vld [vmem:[#allocation6 + $0x760] sm:$0xff] }
 0xfef   :  { %8298 = vmatpush3.bf16.msra.mxu1 %v8295_v49 }
0x103e   :  { %v2974_v14 = vpop.xlane.xlu1 %2973 }
0x103f   :  { %v2989_v62 = vmul.f32 0.0078125, %v2974_v14  ;;  %v3125_v14 = vld [vmem:[#allocation6 + $0x7f8] sm:$0xff] }
0x1041   :  { %v10677_v36 = vsub.f32 %v10645_v41, %v2989_v62  ;;  %v3117_v62 = vld [vmem:[#allocation6 + $0x638] sm:$0xff] }
0x1042   :  { %v2976_v63 = vpop.xlane.xlu0 %2975 }
0x1043   :  { %v2990_v34 = vmul.f32 0.0078125, %v2976_v63  ;;  %v3005_v20 = vmul.f32 %v10677_v36, %v10677_v36  ;;  %v8279_v63 = vpack.c.bf16 %v3125_v14, %v3122_v16 }
0x1045   :  { %v10682_v54 = vsub.f32 %v10649_v33, %v2990_v34  ;;  %3013 = vadd.xlane.f32.xlu1 %v3005_v20  ;;  %v3120_v34 = vld [vmem:[#allocation6 + $0x6d0] sm:$0xff]  ;;  %v3121_v20 = vld [vmem:[#allocation6 + $0x758] sm:$0xff] }
0x1046   :  { %v2978_v31 = vpop.xlane.xlu1 %2977 }
0x1047   :  { %v2991_v19 = vmul.f32 0.0078125, %v2978_v31  ;;  %v3006_v58 = vmul.f32 %v10682_v54, %v10682_v54  ;;  %v3124_v31 = vld [vmem:[#allocation6 + $0x7f0] sm:$0xff] }
0x1049   :  { %v10687_v17 = vsub.f32 %v10653_v25, %v2991_v19  ;;  %3015 = vadd.xlane.f32.xlu0 %v3006_v58  ;;  %v8307_v19 = vpack.c.bf16 %v3120_v34, %v3117_v62  ;;  %v8281_v58 = vpack.c.bf16 %v3124_v31, %v3121_v20 }
0x104a   :  { %v2980_v41 = vpop.xlane.xlu0 %2979 }
0x104b   :  { %v2992_v52 = vmul.f32 0.0078125, %v2980_v41  ;;  %v3007_v4 = vmul.f32 %v10687_v17, %v10687_v17  ;;  %v3128_v41 = vld [vmem:[#allocation6 + $0x890] sm:$0xff] }
0x104d   :  { %v10692_v44 = vsub.f32 %v10657_v38, %v2992_v52  ;;  %3017 = vadd.xlane.f32.xlu1 %v3007_v4  ;;  %v8267_v38 = vpack.c.bf16 %v3107_v53, %v3104_v32  ;;  %v3131_v52 = vld [vmem:[#allocation6 + $0x928] sm:$0xff]  ;;  %v3129_v32 = vld [vmem:[#allocation6 + $0x898] sm:$0xff]  ;;  %v3132_v53 = vld [vmem:[#allocation6 + $0x930] sm:$0xff] }
0x104e   :  { %v2982_v33 = vpop.xlane.xlu1 %2981  ;;  %v3123_v4 = vld [vmem:[#allocation6 + $0x768] sm:$0xff]  ;;  %v8315_v45 = vpack.c.bf16 %v3132_v53, %v3129_v32 }
0x104f   :  { %v2993_v43 = vmul.f32 0.0078125, %v2982_v33  ;;  %v3008_v40 = vmul.f32 %v10692_v44, %v10692_v44  ;;  %8268 = vmatprep.subr.bf16.mxu0 %v8267_v38  ;;  %v8283_v33 = vpack.c.bf16 %v3131_v52, %v3128_v41 }
0x1051   :  { %v10697_v18 = vsub.f32 %v10661_v29, %v2993_v43  ;;  %3019 = vadd.xlane.f32.xlu0 %v3008_v40  ;;  %v8269_v29 = vpack.c.bf16 %v3106_v46, %v3103_v26  ;;  %v3126_v43 = vld [vmem:[#allocation6 + $0x800] sm:$0xff]  ;;  %v3127_v40 = vld [vmem:[#allocation6 + $0x888] sm:$0xff] }
0x1052   :  { %v2984_v25 = vpop.xlane.xlu0 %2983 }
0x1053   :  { %v2994_v30 = vmul.f32 0.0078125, %v2984_v25  ;;  %v3009_v47 = vmul.f32 %v10697_v18, %v10697_v18  ;;  %8270 = vmatpush1.bf16.msra.mxu0 %v8269_v29  ;;  %v3130_v25 = vld [vmem:[#allocation6 + $0x920] sm:$0xff] }
0x1054   :  { %8272 = vmatprep.subr.bf16.mxu0 %v8271_v61 }
0x1055   :  { %v10702_v11 = vsub.f32 %v10665_v22, %v2994_v30  ;;  %3021 = vadd.xlane.f32.xlu1 %v3009_v47  ;;  %v8299_v22 = vpack.c.bf16 %v3108_v5, %v3105_v59  ;;  %v8311_v30 = vpack.c.bf16 %v3126_v43, %v3123_v4  ;;  %v8285_v47 = vpack.c.bf16 %v3130_v25, %v3127_v40 }
0x1057   :  { %v3010_v42 = vmul.f32 %v10702_v11, %v10702_v11  ;;  %8300 = vmatprep.subr.bf16.mxu1 %v8299_v22  ;;  %8274 = vmatpush1.bf16.msra.mxu0 %v8273_v10 }
0x1058   :  { %8302 = vmatpush3.bf16.msra.mxu1 %v8299_v22  ;;  %8276 = vmatprep.subr.bf16.mxu0 %v8275_v23 }
0x1059   :  { %3023 = vadd.xlane.f32.xlu0 %v3010_v42  ;;  %8304 = vmatprep.subr.bf16.mxu1 %v8303_v24 }
0x105b   :  { %8278 = vmatpush1.bf16.msra.mxu0 %v8277_v55 }
0x105c   :  { %8306 = vmatpush3.bf16.msra.mxu1 %v8303_v24  ;;  %8280 = vmatprep.subr.bf16.mxu0 %v8279_v63 }
0x105d   :  { %8308 = vmatprep.subr.bf16.mxu1 %v8307_v19 }
0x105f   :  { %8282 = vmatpush1.bf16.msra.mxu0 %v8281_v58 }
0x1060   :  { %8310 = vmatpush3.bf16.msra.mxu1 %v8307_v19  ;;  %8284 = vmatprep.subr.bf16.mxu0 %v8283_v33 }
0x1061   :  { %8312 = vmatprep.subr.bf16.mxu1 %v8311_v30 }
0x1063   :  { %8286 = vmatpush1.bf16.msra.mxu0 %v8285_v47 }
0x1064   :  { %8314 = vmatpush3.bf16.msra.mxu1 %v8311_v30 }
0x1065   :  { %8316 = vmatprep.subr.bf16.mxu1 %v8315_v45 }
0x1068   :  { %8318 = vmatpush3.bf16.msra.mxu1 %v8315_v45 }
0x1072   :  { %v2986_v38 = vpop.xlane.xlu1 %2985 }
0x1073   :  { %v2995_v12 = vmul.f32 0.0078125, %v2986_v38 }
0x1075   :  { %v10707_v26 = vsub.f32 %v10669_v37, %v2995_v12 }
0x1076   :  { %v2988_v46 = vpop.xlane.xlu0 %2987 }
0x1077   :  { %v2996_v49 = vmul.f32 0.0078125, %v2988_v46  ;;  %v3011_v29 = vmul.f32 %v10707_v26, %v10707_v26 }
0x1079   :  { %v10712_v42 = vsub.f32 %v10673_v60, %v2996_v49  ;;  %3025 = vadd.xlane.f32.xlu1 %v3011_v29  ;;  %v10717_v60 = vsub.s32 5, %v9678_v13 }
0x107b   :  { %v3012_v57 = vmul.f32 %v10712_v42, %v10712_v42  ;;  %v10726_v24 = vrot.slane %v10584_v51, %v10717_v60 }
0x107d   :  { %3027 = vadd.xlane.f32.xlu0 %v3012_v57 }
0x10d2   :  { %v3014_v35 = vpop.xlane.xlu1 %3013 }
0x10d3   :  { %v3029_v59 = vmul.f32 0.0078125, %v3014_v35 }
0x10d5   :  { %v3037_v61 = vadd.f32 1e-05, %v3029_v59 }
0x10d6   :  { %v3016_v5 = vpop.xlane.xlu0 %3015 }
0x10d7   :  { %9200 = vrsqrt.f32 %v3037_v61  ;;  %v3030_v37 = vmul.f32 0.0078125, %v3016_v5 }
0x10d9   :  { %v3038_v9 = vadd.f32 1e-05, %v3030_v37 }
0x10da   :  { %v3018_v3 = vpop.xlane.xlu1 %3017 }
0x10db   :  { %9202 = vrsqrt.f32 %v3038_v9  ;;  %v3031_v22 = vmul.f32 0.0078125, %v3018_v3 }
0x10dd   :  { %v3039_v10 = vadd.f32 1e-05, %v3031_v22 }
0x10de   :  { %v3020_v48 = vpop.xlane.xlu0 %3019 }
0x10df   :  { %9204 = vrsqrt.f32 %v3039_v10  ;;  %v3032_v0 = vmul.f32 0.0078125, %v3020_v48  ;;  %v9387_v48 = vld [vmem:[#allocation9 + $0x10] sm:$0xff] }
0x10e1   :  { %v9201_v23 = vpop.eup %9200  ;;  %v3040_v21 = vadd.f32 1e-05, %v3032_v0  ;;  %v10797_v0 = vrot.slane %v9387_v48, %v10587_v56 }
0x10e2   :  { %v3053_v28 = vmul.f32 %v9201_v23, %v10677_v36  ;;  %v3022_v6 = vpop.xlane.xlu1 %3021 }
0x10e3   :  { %9206 = vrsqrt.f32 %v3040_v21  ;;  %v3033_v55 = vmul.f32 0.0078125, %v3022_v6 }
0x10e4   :  { %v3065_v16 = vmul.f32 %v10721_v2, %v3053_v28 }
0x10e5   :  { %v9203_v14 = vpop.eup %9202  ;;  %v3041_v62 = vadd.f32 1e-05, %v3033_v55 }
0x10e6   :  { %v3024_v63 = vpop.xlane.xlu0 %3023  ;;  %v10730_v34 = vadd.f32 %v10726_v24, %v3065_v16  ;;  %v3054_v20 = vmul.f32 %v9203_v14, %v10682_v54 }
0x10e7   :  { %9208 = vrsqrt.f32 %v3041_v62  ;;  %v3034_v31 = vmul.f32 0.0078125, %v3024_v63 }
0x10e8   :  { %3210 = vmatmul.mubr.f32.vlgmr.msra.gmra.mrb[68].mxu0 %v10730_v34  ;;  %7619 = vmatprep.mubr.f32.mxu1 %v10730_v34  ;;  %v3066_v51 = vmul.f32 %v10721_v2, %v3054_v20 }
0x10e9   :  { %v9205_v36 = vpop.eup %9204  ;;  %v3042_v19 = vadd.f32 1e-05, %v3034_v31  ;;  %3215 = vmatprep.mubr.f32.mxu0 %v11952_v8 }
0x10ea   :  { %v10738_v58 = vadd.f32 %v10726_v24, %v3066_v51  ;;  %v3055_v41 = vmul.f32 %v9205_v36, %v10687_v17 }
0x10eb   :  { %9210 = vrsqrt.f32 %v3042_v19 }
0x10ec   :  { %3216 = vmatmul.mubr.f32.gmra.mrb[70].mxu0 %v10738_v58  ;;  %7620 = vmatmul.mubr.f32.vlgmr.msra.gmra.mrb[68].mxu1 %v10738_v58  ;;  %v3067_v54 = vmul.f32 %v10721_v2, %v3055_v41 }
0x10ed   :  { %v9207_v52 = vpop.eup %9206  ;;  %3221 = vmatprep.mubr.f32.mxu0 %v11952_v8 }
0x10ee   :  { %v10746_v4 = vadd.f32 %v10726_v24, %v3067_v54  ;;  %v3056_v33 = vmul.f32 %v9207_v52, %v10692_v44 }
0x10f0   :  { %3222 = vmatmul.mubr.f32.gmra.mrb[72].mxu0 %v10746_v4  ;;  %7622 = vmatprep.mubr.f32.mxu1 %v10746_v4  ;;  %v3068_v17 = vmul.f32 %v10721_v2, %v3056_v33 }
0x10f1   :  { %v9209_v43 = vpop.eup %9208  ;;  %3227 = vmatprep.mubr.f32.mxu0 %v11952_v8 }
0x10f2   :  { %v10754_v40 = vadd.f32 %v10726_v24, %v3068_v17  ;;  %v3057_v25 = vmul.f32 %v9209_v43, %v10697_v18 }
0x10f4   :  { %11961 = vst [vmem:[#allocation20_spill] sm:$0xff] %v10754_v40  ;;  %3228 = vmatmul.mubr.f32.gmra.mrb[74].mxu0 %v10754_v40  ;;  %7623 = vmatmul.mubr.f32.gmra.mrb[70].mxu1 %v10754_v40  ;;  %v3069_v44 = vmul.f32 %v10721_v2, %v3057_v25 }
0x10f5   :  { %v9211_v30 = vpop.eup %9210  ;;  %3233 = vmatprep.mubr.f32.mxu0 %v11952_v8 }
0x10f6   :  { %v10762_v47 = vadd.f32 %v10726_v24, %v3069_v44  ;;  %v3058_v32 = vmul.f32 %v9211_v30, %v10702_v11 }
0x10f8   :  { %11962 = vst [vmem:[#allocation21_spill] sm:$0xff] %v10762_v47  ;;  %3234 = vmatmul.mubr.f32.gmra.mrb[76].mxu0 %v10762_v47  ;;  %7625 = vmatprep.mubr.f32.mxu1 %v10762_v47  ;;  %v3070_v18 = vmul.f32 %v10721_v2, %v3058_v32 }
0x10f9   :  { %3239 = vmatprep.mubr.f32.mxu0 %v11952_v8 }
0x10fa   :  { %v10770_v53 = vadd.f32 %v10726_v24, %v3070_v18 }
0x10fc   :  { %11963 = vst [vmem:[#allocation22_spill] sm:$0xff] %v10770_v53  ;;  %3240 = vmatmul.mubr.f32.gmra.mrb[78].mxu0 %v10770_v53  ;;  %7626 = vmatmul.mubr.f32.gmra.mrb[72].mxu1 %v10770_v53 }
0x10fd   :  { %3245 = vmatprep.mubr.f32.mxu0 %v11952_v8 }
0x1106   :  { %v3026_v45 = vpop.xlane.xlu1 %3025 }
0x1107   :  { %v3035_v38 = vmul.f32 0.0078125, %v3026_v45 }
0x1109   :  { %v3043_v11 = vadd.f32 1e-05, %v3035_v38 }
0x110a   :  { %v3028_v12 = vpop.xlane.xlu0 %3027 }
0x110b   :  { %9212 = vrsqrt.f32 %v3043_v11  ;;  %v3036_v46 = vmul.f32 0.0078125, %v3028_v12 }
0x110d   :  { %v3044_v49 = vadd.f32 1e-05, %v3036_v46 }
0x110f   :  { %9214 = vrsqrt.f32 %v3044_v49 }
0x1115   :  { %v9213_v29 = vpop.eup %9212 }
0x1116   :  { %v3059_v57 = vmul.f32 %v9213_v29, %v10707_v26  ;;  %v9386_v26 = vld [vmem:[#allocation9] sm:$0xff] }
0x1117   :  { %v10791_v3 = vrot.slane %v9386_v26, %v10587_v56 }
0x1118   :  { %v3071_v35 = vmul.f32 %v10721_v2, %v3059_v57 }
0x1119   :  { %v9215_v59 = vpop.eup %9214 }
0x111a   :  { %v10778_v61 = vadd.f32 %v10726_v24, %v3071_v35  ;;  %v3060_v5 = vmul.f32 %v9215_v59, %v10712_v42 }
0x111c   :  { %11964 = vst [vmem:[#allocation23_spill] sm:$0xff] %v10778_v61  ;;  %3246 = vmatmul.mubr.f32.gmra.mrb[80].mxu0 %v10778_v61  ;;  %7628 = vmatprep.mubr.f32.mxu1 %v10778_v61  ;;  %v3072_v37 = vmul.f32 %v10721_v2, %v3060_v5  ;;  %v10801_v2 = vrot.slane %v10638_v39, %v10587_v56 }
0x111d   :  { %3251 = vmatprep.mubr.f32.mxu0 %v11952_v8 }
0x111e   :  { %v10786_v9 = vadd.f32 %v10726_v24, %v3072_v37 }
0x1120   :  { %11965 = vst [vmem:[#allocation24_spill] sm:$0xff] %v10786_v9  ;;  %3252 = vmatmul.mubr.f32.gmra.mrb[82].mxu0 %v10786_v9  ;;  %7629 = vmatmul.mubr.f32.gmra.mrb[74].mxu1 %v10786_v9 }
0x11bb   :  { %v3211_v42 = vpop.f32.mrb[68].mxu0 }
0x11bc   :  { %v10794_v22 = vadd.f32 %v3211_v42, %v10791_v3  ;;  %v3213_v10 = vpop.f32.mrb[69].mxu0 }
0x11bd   :  { %v3214_v16 = vadd.f32 %v3213_v10, %v10801_v2 }
0x11be   :  { %7647 = vmatprep.mubr.msk.f32.mxu0 %vm614_vm2, %v10794_v22 }
0x11bf   :  { %v3217_v23 = vpop.f32.mrb[70].mxu0  ;;  %v7621_v21 = vpop.f32.mrb[68].mxu1 }
0x11c0   :  { %v10806_v28 = vadd.f32 %v3217_v23, %v10791_v3  ;;  %v3330_v6 = vadd.f32 %v7621_v21, %v10797_v0  ;;  %v3219_v24 = vpop.f32.mrb[71].mxu0  ;;  %v3324_v55 = vpop.f32.mrb[69].mxu1 }
0x11c1   :  { %v3220_v14 = vadd.f32 %v3219_v24, %v10801_v2  ;;  %v3325_v62 = vadd.f32 %v3324_v55, %v10797_v0 }
0x11c3   :  { %v3223_v39 = vpop.f32.mrb[72].mxu0  ;;  %v8343_v63 = vpack.c.bf16 %v3330_v6, %v3325_v62  ;;  %v10812_v20 = vpack.i.bf16 %v3220_v14, %v3214_v16  ;;  %v8319_v31 = vpack.c.bf16 %v3220_v14, %v3214_v16  ;;  %v10814_v51 = vpack.i.bf16 %v3330_v6, %v3325_v62 }
0x11c4   :  { %v3225_v36 = vpop.f32.mrb[73].mxu0  ;;  %v10849_v26 = vadd.f32 %v3223_v39, %v10791_v3 }
0x11c5   :  { %8344 = vmatprep.subr.bf16.mxu1 %v8343_v63  ;;  %8875 = vrot.lane.b32.xlu1 %v10812_v20, %s9535_s1  ;;  %v3226_v43 = vadd.f32 %v3225_v36, %v10801_v2 }
0x11c6   :  { %8321 = vmatprep.subr.msk.bf16.mxu0 %vm9771_vm3, %v8319_v31  ;;  %8346 = vmatpush3.bf16.msra.mxu1 %v8343_v63 }
0x11c7   :  { %8324 = vmatpush3.bf16.xpose.msk.msra.mxu0 %vm9771_vm3, %v8319_v31  ;;  %v3229_v19 = vpop.f32.mrb[74].mxu0  ;;  %v7624_v41 = vpop.f32.mrb[70].mxu1 }
0x11c8   :  { %v10823_v54 = vadd.f32 %v3229_v19, %v10791_v3  ;;  %v3340_v52 = vadd.f32 %v7624_v41, %v10797_v0  ;;  %v3231_v33 = vpop.f32.mrb[75].mxu0  ;;  %v3334_v17 = vpop.f32.mrb[71].mxu1 }
0x11c9   :  { %v3232_v25 = vadd.f32 %v3231_v33, %v10801_v2  ;;  %v3335_v44 = vadd.f32 %v3334_v17, %v10797_v0 }
0x11cb   :  { %v3235_v30 = vpop.f32.mrb[76].mxu0  ;;  %v8347_v32 = vpack.c.bf16 %v3340_v52, %v3335_v44  ;;  %v10829_v18 = vpack.i.bf16 %v3232_v25, %v3226_v43  ;;  %v8325_v45 = vpack.c.bf16 %v3232_v25, %v3226_v43  ;;  %v10831_v38 = vpack.i.bf16 %v3340_v52, %v3335_v44 }
0x11cc   :  { %v3237_v11 = vpop.f32.mrb[77].mxu0  ;;  %v10862_v21 = vadd.f32 %v3235_v30, %v10791_v3 }
0x11cd   :  { %8348 = vmatprep.subr.bf16.mxu1 %v8347_v32  ;;  %8880 = vrot.lane.b32.xlu0 %v10829_v18, %s9535_s1  ;;  %v3238_v59 = vadd.f32 %v3237_v11, %v10801_v2 }
0x11ce   :  { %8327 = vmatprep.subr.msk.bf16.mxu0 %vm9771_vm3, %v8325_v45  ;;  %8350 = vmatpush3.bf16.msra.mxu1 %v8347_v32 }
0x11cf   :  { %8330 = vmatpush3.bf16.xpose.msk.msra.mxu0 %vm9771_vm3, %v8325_v45  ;;  %v3241_v12 = vpop.f32.mrb[78].mxu0  ;;  %v7627_v46 = vpop.f32.mrb[72].mxu1 }
0x11d0   :  { %v10840_v49 = vadd.f32 %v3241_v12, %v10791_v3  ;;  %v3350_v29 = vadd.f32 %v7627_v46, %v10797_v0  ;;  %v3243_v57 = vpop.f32.mrb[79].mxu0  ;;  %v3344_v35 = vpop.f32.mrb[73].mxu1 }
0x11d1   :  { %v3244_v5 = vadd.f32 %v3243_v57, %v10801_v2  ;;  %v3345_v37 = vadd.f32 %v3344_v35, %v10797_v0  ;;  %3749 = vrot.lane.b32.xlu0 %v10794_v22, %s9535_s1 }
0x11d3   :  { %v8351_v42 = vpack.c.bf16 %v3350_v29, %v3345_v37  ;;  %v10851_v10 = vpack.i.bf16 %v3244_v5, %v3238_v59  ;;  %v8331_v48 = vpack.c.bf16 %v3244_v5, %v3238_v59  ;;  %v10853_v23 = vpack.i.bf16 %v3350_v29, %v3345_v37 }
0x11d5   :  { %3753 = vrot.lane.b32.xlu0 %v10849_v26, %s9535_s1  ;;  %8352 = vmatprep.subr.bf16.mxu1 %v8351_v42 }
0x11d6   :  { %8885 = vrot.lane.b32.xlu1 %v10851_v10, %s9535_s1  ;;  %8333 = vmatprep.subr.msk.bf16.mxu0 %vm9771_vm3, %v8331_v48 }
0x11d7   :  { %8336 = vmatpush3.bf16.xpose.msk.msra.mxu0 %vm9771_vm3, %v8331_v48  ;;  %8354 = vmatpush3.bf16.msra.mxu1 %v8351_v42 }
0x11d9   :  { %3757 = vrot.lane.b32.xlu0 %v10862_v21, %s9535_s1 }
0x11ef   :  { %v3247_v6 = vpop.f32.mrb[80].mxu0 }
0x11f0   :  { %v10869_v24 = vadd.f32 %v3247_v6, %v10791_v3  ;;  %v3249_v55 = vpop.f32.mrb[81].mxu0 }
0x11f1   :  { %v3250_v36 = vadd.f32 %v3249_v55, %v10801_v2 }
0x11f2   :  { %3761 = vrot.lane.b32.xlu0 %v10869_v24, %s9535_s1 }
0x11f3   :  { %v3253_v16 = vpop.f32.mrb[82].mxu0  ;;  %v7630_v14 = vpop.f32.mrb[74].mxu1 }
0x11f4   :  { %v10874_v62 = vadd.f32 %v3253_v16, %v10791_v3  ;;  %v3360_v39 = vadd.f32 %v7630_v14, %v10797_v0  ;;  %v3255_v63 = vpop.f32.mrb[83].mxu0  ;;  %v3354_v31 = vpop.f32.mrb[75].mxu1 }
0x11f5   :  { %v3256_v19 = vadd.f32 %v3255_v63, %v10801_v2  ;;  %v3355_v41 = vadd.f32 %v3354_v31, %v10797_v0 }
0x11f7   :  { %v8355_v52 = vpack.c.bf16 %v3360_v39, %v3355_v41  ;;  %v10880_v33 = vpack.i.bf16 %v3256_v19, %v3250_v36  ;;  %v8337_v17 = vpack.c.bf16 %v3256_v19, %v3250_v36  ;;  %v10882_v43 = vpack.i.bf16 %v3360_v39, %v3355_v41 }
0x11f9   :  { %8356 = vmatprep.subr.bf16.mxu1 %v8355_v52  ;;  %8890 = vrot.lane.b32.xlu1 %v10880_v33, %s9535_s1 }
0x11fa   :  { %8339 = vmatprep.subr.msk.bf16.mxu0 %vm9771_vm3, %v8337_v17  ;;  %8358 = vmatpush3.bf16.msra.mxu1 %v8355_v52 }
0x11fb   :  { %8342 = vmatpush3.bf16.xpose.msk.msra.mxu0 %vm9771_vm3, %v8337_v17 }
0x11fd   :  { %3751 = vrot.lane.b32.xlu1 %v10806_v28, %s9535_s1 }
0x1201   :  { %3755 = vrot.lane.b32.xlu1 %v10823_v54, %s9535_s1 }
0x1202   :  { %7648 = vmatmul.mubr.msk.f32.vlgmr.msra.gmra.mrb[84].mxu0 %vm614_vm2, %v10806_v28 }
0x1203   :  { %7650 = vmatprep.mubr.msk.f32.mxu0 %vm614_vm2, %v10849_v26 }
0x1205   :  { %3759 = vrot.lane.b32.xlu1 %v10840_v49, %s9535_s1 }
0x1206   :  { %7651 = vmatmul.mubr.msk.f32.gmra.mrb[86].mxu0 %vm614_vm2, %v10823_v54 }
0x1207   :  { %7653 = vmatprep.mubr.msk.f32.mxu0 %vm614_vm2, %v10862_v21 }
0x1209   :  { %3763 = vrot.lane.b32.xlu1 %v10874_v62, %s9535_s1 }
0x120a   :  { %7654 = vmatmul.mubr.msk.f32.gmra.mrb[88].mxu0 %vm614_vm2, %v10840_v49 }
0x120b   :  { %7656 = vmatprep.mubr.msk.f32.mxu0 %vm614_vm2, %v10869_v24 }
0x120d   :  { %8895 = vrot.lane.b32.xlu1 %v10814_v51, %s9535_s1 }
0x120e   :  { %7657 = vmatmul.mubr.msk.f32.gmra.mrb[90].mxu0 %vm614_vm2, %v10874_v62 }
0x1237   :  { %v8876_v3 = vpop.permute.xlu1 %8875 }
0x1238   :  { %v8878_v0 = vunpack.i.h.bf16 %v8876_v3  ;;  %v8877_v2 = vunpack.i.l.bf16 %v8876_v3 }
0x123a   :  { %v8359_v25 = vpack.c.bf16 %v8878_v0, %v8877_v2  ;;  %v10944_v0 = vld [vmem:[%s11918_s3 + $0x8] sm:$0xff] }
0x123c   :  { %8361 = vmatprep.subr.msk.bf16.mxu0 %vm9771_vm3, %v8359_v25 }
0x123d   :  { %8364 = vmatpush3.bf16.xpose.msk.msra.mxu0 %vm9771_vm3, %v8359_v25  ;;  %v10952_v25 = vld [vmem:[%s11918_s3] sm:$0xff] }
0x123f   :  { %v8881_v44 = vpop.permute.xlu0 %8880 }
0x1240   :  { %v8883_v30 = vunpack.i.h.bf16 %v8881_v44  ;;  %v8882_v32 = vunpack.i.l.bf16 %v8881_v44 }
0x1242   :  { %v8365_v45 = vpack.c.bf16 %v8883_v30, %v8882_v32 }
0x1243   :  { %v3750_v11 = vpop.permute.xlu0 %3749 }
0x1244   :  { %8367 = vmatprep.subr.msk.bf16.mxu0 %vm9771_vm3, %v8365_v45  ;;  %7703 = vmatprep.mubr.msk.f32.mxu0 %vm614_vm2, %v3750_v11 }
0x1245   :  { %8370 = vmatpush3.bf16.xpose.msk.msra.mxu0 %vm9771_vm3, %v8365_v45 }
0x1247   :  { %v3754_v6 = vpop.permute.xlu0 %3753 }
0x1248   :  { %v8886_v12 = vpop.permute.xlu1 %8885 }
0x1249   :  { %v8888_v46 = vunpack.i.h.bf16 %v8886_v12  ;;  %v8887_v29 = vunpack.i.l.bf16 %v8886_v12 }
0x124b   :  { %v8371_v57 = vpack.c.bf16 %v8888_v46, %v8887_v29  ;;  %v3758_v14 = vpop.permute.xlu0 %3757  ;;  %v10964_v29 = vld [vmem:[%s11918_s3 + $0x18] sm:$0xff] }
0x124d   :  { %8373 = vmatprep.subr.msk.bf16.mxu0 %vm9771_vm3, %v8371_v57 }
0x124e   :  { %8376 = vmatpush3.bf16.xpose.msk.msra.mxu0 %vm9771_vm3, %v8371_v57 }
0x1264   :  { %v3762_v63 = vpop.permute.xlu0 %3761 }
0x126b   :  { %v8891_v35 = vpop.permute.xlu1 %8890 }
0x126c   :  { %v8893_v59 = vunpack.i.h.bf16 %v8891_v35  ;;  %v8892_v5 = vunpack.i.l.bf16 %v8891_v35 }
0x126e   :  { %v8377_v37 = vpack.c.bf16 %v8893_v59, %v8892_v5  ;;  %v10972_v59 = vld [vmem:[%s11918_s3 + $0x10] sm:$0xff] }
0x126f   :  { %v3752_v42 = vpop.permute.xlu1 %3751 }
0x1270   :  { %8379 = vmatprep.subr.msk.bf16.mxu0 %vm9771_vm3, %v8377_v37 }
0x1271   :  { %8382 = vmatpush3.bf16.xpose.msk.msra.mxu0 %vm9771_vm3, %v8377_v37 }
0x1273   :  { %v3756_v48 = vpop.permute.xlu1 %3755 }
0x1277   :  { %v3760_v55 = vpop.permute.xlu1 %3759 }
0x1278   :  { %7704 = vmatmul.mubr.msk.f32.vlgmr.msra.gmra.mrb[92].mxu0 %vm614_vm2, %v3752_v42 }
0x1279   :  { %7706 = vmatprep.mubr.msk.f32.mxu0 %vm614_vm2, %v3754_v6 }
0x127b   :  { %v3764_v16 = vpop.permute.xlu1 %3763 }
0x127c   :  { %7707 = vmatmul.mubr.msk.f32.gmra.mrb[94].mxu0 %vm614_vm2, %v3756_v48 }
0x127d   :  { %7709 = vmatprep.mubr.msk.f32.mxu0 %vm614_vm2, %v3758_v14 }
0x127f   :  { %v8896_v39 = vpop.permute.xlu1 %8895 }
0x1280   :  { %v8898_v31 = vunpack.i.h.bf16 %v8896_v39  ;;  %v8897_v36 = vunpack.i.l.bf16 %v8896_v39  ;;  %7710 = vmatmul.mubr.msk.f32.gmra.mrb[96].mxu0 %vm614_vm2, %v3760_v55  ;;  %v10982_v55 = vld [vmem:[%s11918_s3 + $0x20] sm:$0xff] }
0x1281   :  { %7712 = vmatprep.mubr.msk.f32.mxu0 %vm614_vm2, %v3762_v63 }
0x1282   :  { %v10937_v19 = vpack.c.bf16 %v8898_v31, %v8897_v36  ;;  %v10992_v31 = vld [vmem:[%s11918_s3 + $0x28] sm:$0xff] }
0x1284   :  { %7713 = vmatmul.mubr.msk.f32.gmra.mrb[98].mxu0 %vm614_vm2, %v3764_v16  ;;  %8384 = vmatprep.subr.bf16.mxu1 %v10937_v19 }
0x12d5   :  { %v7649_v41 = vpop.f32.mrb[84].mxu0 }
0x12d6   :  { %v3517_v52 = vmul.f32 0.17677669, %v7649_v41  ;;  %v3477_v17 = vpop.f32.mrb[85].mxu0 }
0x12d7   :  { %v3516_v3 = vmul.f32 0.17677669, %v3477_v17 }
0x12d8   :  { %v10947_v2 = vadd.f32 %v10944_v0, %v3517_v52 }
0x12d9   :  { %v10955_v44 = vadd.f32 %v10952_v25, %v3516_v3  ;;  %v7652_v30 = vpop.f32.mrb[86].mxu0  ;;  %v11002_v3 = vld [vmem:[%s11918_s3 + $0x30] sm:$0xff] }
0x12da   :  { %v3519_v32 = vmul.f32 0.17677669, %v7652_v30  ;;  %v3487_v45 = vpop.f32.mrb[87].mxu0  ;;  %v3535_v11 = vsel %vm784_vm4, %v10947_v2, -inf }
0x12db   :  { %v3518_v12 = vmul.f32 0.17677669, %v3487_v45  ;;  %3536 = vmax.xlane.f32.xlu1 %v3535_v11  ;;  %v3532_v46 = vsel %vm784_vm4, %v10955_v44, -inf }
0x12dc   :  { %v10967_v57 = vadd.f32 %v10964_v29, %v3519_v32  ;;  %3533 = vmax.xlane.f32.xlu0 %v3532_v46  ;;  %v11010_v32 = vld [vmem:[%s11918_s3 + $0x38] sm:$0xff] }
0x12dd   :  { %v7655_v35 = vpop.f32.mrb[88].mxu0  ;;  %v10975_v5 = vadd.f32 %v10972_v59, %v3518_v12 }
0x12de   :  { %v3497_v37 = vpop.f32.mrb[89].mxu0  ;;  %v3541_v42 = vsel %vm784_vm4, %v10967_v57, -inf  ;;  %v3521_v48 = vmul.f32 0.17677669, %v7655_v35 }
0x12df   :  { %v3520_v6 = vmul.f32 0.17677669, %v3497_v37  ;;  %v3538_v63 = vsel %vm784_vm4, %v10975_v5, -inf }
0x12e0   :  { %3542 = vmax.xlane.f32.xlu0 %v3541_v42  ;;  %v10995_v36 = vadd.f32 %v10992_v31, %v3521_v48 }
0x12e1   :  { %v10985_v16 = vadd.f32 %v10982_v55, %v3520_v6  ;;  %v7658_v14 = vpop.f32.mrb[90].mxu0 }
0x12e2   :  { %v3507_v39 = vpop.f32.mrb[91].mxu0  ;;  %v3523_v41 = vmul.f32 0.17677669, %v7658_v14  ;;  %v3547_v11 = vsel %vm784_vm4, %v10995_v36, -inf }
0x12e3   :  { %v3522_v52 = vmul.f32 0.17677669, %v3507_v39  ;;  %v3544_v17 = vsel %vm784_vm4, %v10985_v16, -inf }
0x12e4   :  { %3539 = vmax.xlane.f32.xlu0 %v3538_v63  ;;  %3545 = vmax.xlane.f32.xlu1 %v3544_v17  ;;  %v11013_v45 = vadd.f32 %v11010_v32, %v3523_v41 }
0x12e5   :  { %v11005_v30 = vadd.f32 %v11002_v3, %v3522_v52 }
0x12e6   :  { %v3553_v46 = vsel %vm784_vm4, %v11013_v45, -inf }
0x12e7   :  { %v3550_v12 = vsel %vm784_vm4, %v11005_v30, -inf }
0x12e8   :  { %3548 = vmax.xlane.f32.xlu0 %v3547_v11  ;;  %3551 = vmax.xlane.f32.xlu1 %v3550_v12 }
0x12ec   :  { %3554 = vmax.xlane.f32.xlu0 %v3553_v46 }
0x134b   :  { %v7705_v35 = vpop.f32.mrb[92].mxu0 }
0x134c   :  { %v3919_v37 = vmul.f32 0.17677669, %v7705_v35  ;;  %v3879_v42 = vpop.f32.mrb[93].mxu0 }
0x134d   :  { %v3918_v48 = vmul.f32 0.17677669, %v3879_v42 }
0x134e   :  { %v11022_v6 = vadd.f32 %v10944_v0, %v3919_v37 }
0x134f   :  { %v11025_v14 = vadd.f32 %v10952_v25, %v3918_v48  ;;  %v7708_v39 = vpop.f32.mrb[94].mxu0 }
0x1350   :  { %v3921_v63 = vmul.f32 0.17677669, %v7708_v39  ;;  %v3889_v41 = vpop.f32.mrb[95].mxu0  ;;  %v3937_v52 = vsel %vm784_vm4, %v11022_v6, -inf }
0x1351   :  { %v3920_v17 = vmul.f32 0.17677669, %v3889_v41  ;;  %3938 = vmax.xlane.f32.xlu0 %v3937_v52  ;;  %v3934_v11 = vsel %vm784_vm4, %v11025_v14, -inf }
0x1352   :  { %v11032_v12 = vadd.f32 %v10964_v29, %v3921_v63  ;;  %3935 = vmax.xlane.f32.xlu1 %v3934_v11 }
0x1353   :  { %v11035_v46 = vadd.f32 %v10972_v59, %v3920_v17  ;;  %v7711_v35 = vpop.f32.mrb[96].mxu0 }
0x1354   :  { %v3923_v37 = vmul.f32 0.17677669, %v7711_v35  ;;  %v3899_v42 = vpop.f32.mrb[97].mxu0  ;;  %v3943_v48 = vsel %vm784_vm4, %v11032_v12, -inf }
0x1355   :  { %v3922_v39 = vmul.f32 0.17677669, %v3899_v42  ;;  %3944 = vmax.xlane.f32.xlu0 %v3943_v48  ;;  %v3940_v41 = vsel %vm784_vm4, %v11035_v46, -inf }
0x1356   :  { %v11042_v52 = vadd.f32 %v10992_v31, %v3923_v37  ;;  %3941 = vmax.xlane.f32.xlu1 %v3940_v41 }
0x1357   :  { %v11045_v63 = vadd.f32 %v10982_v55, %v3922_v39  ;;  %v7714_v17 = vpop.f32.mrb[98].mxu0 }
0x1358   :  { %v3925_v11 = vmul.f32 0.17677669, %v7714_v17  ;;  %v3909_v56 = vpop.f32.mrb[99].mxu0  ;;  %v3949_v35 = vsel %vm784_vm4, %v11042_v52, -inf }
0x1359   :  { %3950 = vmax.xlane.f32.xlu0 %v3949_v35  ;;  %v3946_v42 = vsel %vm784_vm4, %v11045_v63, -inf }
0x135a   :  { %v11052_v48 = vadd.f32 %v11010_v32, %v3925_v11  ;;  %3947 = vmax.xlane.f32.xlu1 %v3946_v42 }
0x135c   :  { %v3955_v37 = vsel %vm784_vm4, %v11052_v48, -inf }
0x135d   :  { %3956 = vmax.xlane.f32.xlu0 %v3955_v37 }
0x1368   :  { %v3537_v17 = vpop.xlane.xlu1 %3536 }
0x1369   :  { %v3534_v39 = vpop.xlane.xlu0 %3533  ;;  %v3557_v11 = vsub.f32 %v10947_v2, %v3537_v17 }
0x136a   :  { %v3556_v37 = vsub.f32 %v10955_v44, %v3534_v39 }
0x136b   :  { %8905 = vrot.lane.b32.xlu1 %v10853_v23, %s9535_s1  ;;  %v3566_v7 = vmul.f32 1.442695, %v3557_v11 }
0x136c   :  { %v3564_v61 = vmul.f32 1.442695, %v3556_v37 }
0x136d   :  { %v3543_v41 = vpop.xlane.xlu0 %3542  ;;  %9216 = vpow2.f32 %v3566_v7 }
0x136e   :  { %v3559_v27 = vsub.f32 %v10967_v57, %v3543_v41  ;;  %v3924_v57 = vmul.f32 0.17677669, %v3909_v56 }
0x136f   :  { %8910 = vrot.lane.b32.xlu1 %v10882_v43, %s9535_s1 }
0x1370   :  { %v3570_v1 = vmul.f32 1.442695, %v3559_v27 }
0x1371   :  { %v3540_v35 = vpop.xlane.xlu0 %3539  ;;  %v3546_v50 = vpop.xlane.xlu1 %3545 }
0x1372   :  { %v3558_v9 = vsub.f32 %v10975_v5, %v3540_v35  ;;  %9218 = vpow2.f32 %v3570_v1  ;;  %v3560_v2 = vsub.f32 %v10985_v16, %v3546_v50  ;;  %v11073_v5 = vadd.f32 %v11002_v3, %v3924_v57 }
0x1373   :  { %8900 = vrot.lane.b32.xlu0 %v10831_v38, %s9535_s1  ;;  %9220 = vpow2.f32 %v3564_v61 }
0x1374   :  { %v3568_v17 = vmul.f32 1.442695, %v3558_v9  ;;  %v3572_v27 = vmul.f32 1.442695, %v3560_v2  ;;  %v3952_v56 = vsel %vm784_vm4, %v11073_v5, -inf }
0x1375   :  { %v3549_v42 = vpop.xlane.xlu0 %3548  ;;  %v3552_v41 = vpop.xlane.xlu1 %3551 }
0x1376   :  { %v3561_v13 = vsub.f32 %v10995_v36, %v3549_v42  ;;  %v3562_v44 = vsub.f32 %v11005_v30, %v3552_v41 }
0x1377   :  { %v11070_v36 = vpop.eup %9216 }
0x1378   :  { %v3574_v47 = vmul.f32 1.442695, %v3561_v13  ;;  %v3576_v13 = vmul.f32 1.442695, %v3562_v44  ;;  %v3583_v50 = vsel %vm784_vm4, %v11070_v36, 0.0 }
0x1379   :  { %v3555_v53 = vpop.xlane.xlu0 %3554 }
0x137a   :  { %v3563_v40 = vsub.f32 %v11013_v45, %v3555_v53  ;;  %9222 = vpow2.f32 %v3574_v47 }
0x137b   :  { %9224 = vpow2.f32 %v3568_v17 }
0x137c   :  { %v3578_v7 = vmul.f32 1.442695, %v3563_v40  ;;  %v11077_v1 = vpop.eup %9218 }
0x137d   :  { %v11081_v40 = vpop.eup %9220  ;;  %v3589_v47 = vsel %vm784_vm4, %v11077_v1, 0.0 }
0x137e   :  { %9226 = vpow2.f32 %v3578_v7  ;;  %v3580_v61 = vsel %vm784_vm4, %v11081_v40, 0.0 }
0x137f   :  { %9228 = vpow2.f32 %v3572_v27 }
0x1380   :  { %9230 = vpow2.f32 %v3576_v13 }
0x1384   :  { %v11085_v53 = vpop.eup %9222 }
0x1385   :  { %v11089_v9 = vpop.eup %9224  ;;  %v3595_v16 = vsel %vm784_vm4, %v11085_v53, 0.0 }
0x1386   :  { %v3586_v45 = vsel %vm784_vm4, %v11089_v9, 0.0 }
0x1388   :  { %v11093_v30 = vpop.eup %9226 }
0x1389   :  { %v11097_v39 = vpop.eup %9228  ;;  %v3601_v35 = vsel %vm784_vm4, %v11093_v30, 0.0 }
0x138a   :  { %v3592_v11 = vsel %vm784_vm4, %v11097_v39, 0.0  ;;  %v11103_v42 = vpop.eup %9230 }
0x138b   :  { %v3598_v37 = vsel %vm784_vm4, %v11103_v42, 0.0 }
0x1392   :  { %3584 = vadd.xlane.f32.xlu0 %v3583_v50 }
0x1393   :  { %3953 = vmax.xlane.f32.xlu1 %v3952_v56 }
0x1396   :  { %3590 = vadd.xlane.f32.xlu0 %v3589_v47 }
0x1397   :  { %3581 = vadd.xlane.f32.xlu1 %v3580_v61 }
0x139a   :  { %3596 = vadd.xlane.f32.xlu0 %v3595_v16 }
0x139b   :  { %3587 = vadd.xlane.f32.xlu1 %v3586_v45 }
0x139e   :  { %3602 = vadd.xlane.f32.xlu0 %v3601_v35 }
0x139f   :  { %3593 = vadd.xlane.f32.xlu1 %v3592_v11 }
0x13a3   :  { %3599 = vadd.xlane.f32.xlu1 %v3598_v37 }
0x13de   :  { %v3939_v2 = vpop.xlane.xlu0 %3938 }
0x13df   :  { %v3959_v17 = vsub.f32 %v11022_v6, %v3939_v2  ;;  %v3936_v57 = vpop.xlane.xlu1 %3935 }
0x13e0   :  { %v3958_v41 = vsub.f32 %v11025_v14, %v3936_v57 }
0x13e1   :  { %v3968_v7 = vmul.f32 1.442695, %v3959_v17 }
0x13e2   :  { %v3966_v27 = vmul.f32 1.442695, %v3958_v41  ;;  %v3945_v44 = vpop.xlane.xlu0 %3944 }
0x13e3   :  { %9232 = vpow2.f32 %v3968_v7  ;;  %v3942_v13 = vpop.xlane.xlu1 %3941 }
0x13e4   :  { %9234 = vpow2.f32 %v3966_v27  ;;  %v3960_v50 = vsub.f32 %v11035_v46, %v3942_v13 }
0x13e6   :  { %v3970_v56 = vmul.f32 1.442695, %v3960_v50  ;;  %v3951_v47 = vpop.xlane.xlu0 %3950 }
0x13e7   :  { %v3963_v61 = vsub.f32 %v11042_v52, %v3951_v47  ;;  %v3948_v16 = vpop.xlane.xlu1 %3947 }
0x13e8   :  { %9236 = vpow2.f32 %v3970_v56  ;;  %v3962_v45 = vsub.f32 %v11045_v63, %v3948_v16  ;;  %v3961_v56 = vsub.f32 %v11032_v12, %v3945_v44 }
0x13e9   :  { %v3976_v6 = vmul.f32 1.442695, %v3963_v61 }
0x13ea   :  { %v3974_v35 = vmul.f32 1.442695, %v3962_v45  ;;  %v3957_v11 = vpop.xlane.xlu0 %3956  ;;  %v3972_v47 = vmul.f32 1.442695, %v3961_v56 }
0x13eb   :  { %9238 = vpow2.f32 %v3976_v6  ;;  %v3965_v14 = vsub.f32 %v11052_v48, %v3957_v11  ;;  %v8906_v61 = vpop.permute.xlu1 %8905 }
0x13ec   :  { %9240 = vpow2.f32 %v3974_v35 }
0x13ed   :  { %v11113_v37 = vpop.eup %9232  ;;  %v3980_v46 = vmul.f32 1.442695, %v3965_v14 }
0x13ee   :  { %v11115_v2 = vpop.eup %9234  ;;  %v3985_v17 = vsel %vm784_vm4, %v11113_v37, 0.0  ;;  %v8901_v16 = vpop.permute.xlu0 %8900 }
0x13ef   :  { %3986 = vadd.xlane.f32.xlu0 %v3985_v17  ;;  %v3982_v52 = vsel %vm784_vm4, %v11115_v2, 0.0  ;;  %9242 = vpow2.f32 %v3980_v46  ;;  %v8911_v45 = vpop.permute.xlu1 %8910 }
0x13f0   :  { %3983 = vadd.xlane.f32.xlu1 %v3982_v52  ;;  %9244 = vpow2.f32 %v3972_v47  ;;  %v8903_v47 = vunpack.i.h.bf16 %v8901_v16 }
0x13f2   :  { %v11121_v63 = vpop.eup %9236 }
0x13f3   :  { %v3988_v48 = vsel %vm784_vm4, %v11121_v63, 0.0 }
0x13f4   :  { %3989 = vadd.xlane.f32.xlu0 %v3988_v48 }
0x13f5   :  { %v11125_v57 = vpop.eup %9238 }
0x13f6   :  { %v3997_v41 = vsel %vm784_vm4, %v11125_v57, 0.0  ;;  %v11129_v7 = vpop.eup %9240 }
0x13f7   :  { %v3994_v27 = vsel %vm784_vm4, %v11129_v7, 0.0 }
0x13f8   :  { %3998 = vadd.xlane.f32.xlu0 %v3997_v41 }
0x13f9   :  { %v11133_v13 = vpop.eup %9242 }
0x13fa   :  { %v4003_v50 = vsel %vm784_vm4, %v11133_v13, 0.0  ;;  %v11140_v11 = vpop.eup %9244 }
0x13fb   :  { %v3991_v48 = vsel %vm784_vm4, %v11140_v11, 0.0 }
0x13fc   :  { %3995 = vadd.xlane.f32.xlu0 %v3994_v27 }
0x1400   :  { %4004 = vadd.xlane.f32.xlu0 %v4003_v50 }
0x1401   :  { %8915 = vrot.lane.b32.xlu1 %v10812_v20, %s9536_s22 }
0x141f   :  { %v3585_v6 = vpop.xlane.xlu0 %3584 }
0x1420   :  { %v3954_v35 = vpop.xlane.xlu1 %3953  ;;  %9246 = vrcp.f32 %v3585_v6  ;;  %v8902_v6 = vunpack.i.l.bf16 %v8901_v16 }
0x1421   :  { %v3964_v14 = vsub.f32 %v11073_v5, %v3954_v35 }
0x1422   :  { %v8387_v16 = vpack.c.bf16 %v8903_v47, %v8902_v6 }
0x1423   :  { %v3978_v46 = vmul.f32 1.442695, %v3964_v14  ;;  %v3591_v17 = vpop.xlane.xlu0 %3590 }
0x1424   :  { %v3582_v52 = vpop.xlane.xlu1 %3581 }
0x1425   :  { %9248 = vpow2.f32 %v3978_v46  ;;  %3992 = vadd.xlane.f32.xlu1 %v3991_v48 }
0x1426   :  { %9250 = vrcp.f32 %v3582_v52 }
0x1427   :  { %v3597_v12 = vpop.xlane.xlu0 %3596  ;;  %9252 = vrcp.f32 %v3591_v17 }
0x1428   :  { %v3588_v44 = vpop.xlane.xlu1 %3587 }
0x1429   :  { %9254 = vrcp.f32 %v3588_v44  ;;  %v8907_v44 = vunpack.i.l.bf16 %v8906_v61 }
0x142a   :  { %9256 = vrcp.f32 %v3597_v12  ;;  %v9247_v50 = vpop.eup %9246  ;;  %v8908_v12 = vunpack.i.h.bf16 %v8906_v61 }
0x142b   :  { %v3603_v27 = vpop.xlane.xlu0 %3602  ;;  %v3607_v52 = vmul.f32 %v9247_v50, %v11070_v36  ;;  %v8913_v50 = vunpack.i.h.bf16 %v8911_v45 }
0x142c   :  { %v3594_v41 = vpop.xlane.xlu1 %3593  ;;  %v8391_v61 = vpack.c.bf16 %v8908_v12, %v8907_v44 }
0x142d   :  { %9258 = vrcp.f32 %v3594_v41 }
0x142e   :  { %9260 = vrcp.f32 %v3603_v27 }
0x142f   :  { %v11145_v5 = vpop.eup %9248 }
0x1430   :  { %v9251_v56 = vpop.eup %9250  ;;  %v3600_v35 = vpop.xlane.xlu1 %3599  ;;  %v4000_v14 = vsel %vm784_vm4, %v11145_v5, 0.0 }
0x1431   :  { %9262 = vrcp.f32 %v3600_v35  ;;  %4001 = vadd.xlane.f32.xlu0 %v4000_v14  ;;  %v3605_v46 = vmul.f32 %v9251_v56, %v11081_v40  ;;  %v9253_v17 = vpop.eup %9252  ;;  %v8912_v56 = vunpack.i.l.bf16 %v8911_v45 }
0x1432   :  { %v3611_v40 = vmul.f32 %v9253_v17, %v11077_v1 }
0x1433   :  { %v9255_v48 = vpop.eup %9254  ;;  %7675 = vmatprep.mubr.msk.f32.mxu1 %vm784_vm4, %v3605_v46  ;;  %v8395_v1 = vpack.c.bf16 %v8913_v50, %v8912_v56 }
0x1434   :  { %7676 = vmatmul.mubr.msk.f32.vlgmr.msra.gmra.mrb[76].mxu1 %vm784_vm4, %v3607_v52  ;;  %v3609_v41 = vmul.f32 %v9255_v48, %v11089_v9  ;;  %v9257_v27 = vpop.eup %9256 }
0x1435   :  { %8386 = vmatpush3.bf16.msra.mxu1 %v10937_v19  ;;  %v3615_v19 = vmul.f32 %v9257_v27, %v11085_v53 }
0x1436   :  { %8388 = vmatprep.subr.bf16.mxu1 %v8387_v16  ;;  %8925 = vrot.lane.b32.xlu1 %v10851_v10, %s9536_s22 }
0x1437   :  { %v9259_v36 = vpop.eup %9258  ;;  %7678 = vmatprep.mubr.msk.f32.mxu1 %vm784_vm4, %v3609_v41 }
0x1438   :  { %7679 = vmatmul.mubr.msk.f32.gmra.mrb[78].mxu1 %vm784_vm4, %v3611_v40  ;;  %v3613_v47 = vmul.f32 %v9259_v36, %v11097_v39  ;;  %v9261_v9 = vpop.eup %9260 }
0x1439   :  { %8390 = vmatpush3.bf16.msra.mxu1 %v8387_v16  ;;  %v3619_v39 = vmul.f32 %v9261_v9, %v11093_v30 }
0x143a   :  { %8392 = vmatprep.subr.bf16.mxu1 %v8391_v61  ;;  %8930 = vrot.lane.b32.xlu1 %v10880_v33, %s9536_s22 }
0x143b   :  { %v9263_v6 = vpop.eup %9262  ;;  %7681 = vmatprep.mubr.msk.f32.mxu1 %vm784_vm4, %v3613_v47 }
0x143c   :  { %7682 = vmatmul.mubr.msk.f32.gmra.mrb[80].mxu1 %vm784_vm4, %v3615_v19  ;;  %v3617_v45 = vmul.f32 %v9263_v6, %v11103_v42 }
0x143d   :  { %8394 = vmatpush3.bf16.msra.mxu1 %v8391_v61 }
0x143e   :  { %8396 = vmatprep.subr.bf16.mxu1 %v8395_v1  ;;  %4183 = vrot.lane.b32.xlu1 %v10794_v22, %s9536_s22 }
0x143f   :  { %7684 = vmatprep.mubr.msk.f32.mxu1 %vm784_vm4, %v3617_v45 }
0x1440   :  { %7685 = vmatmul.mubr.msk.f32.gmra.mrb[82].mxu1 %vm784_vm4, %v3619_v39 }
0x1441   :  { %8398 = vmatpush3.bf16.msra.mxu1 %v8395_v1 }
0x1442   :  { %4185 = vrot.lane.b32.xlu1 %v10806_v28, %s9536_s22 }
0x1446   :  { %4189 = vrot.lane.b32.xlu1 %v10823_v54, %s9536_s22 }
0x1447   :  { %8920 = vrot.lane.b32.xlu0 %v10829_v18, %s9536_s22 }
0x144a   :  { %4193 = vrot.lane.b32.xlu1 %v10840_v49, %s9536_s22 }
0x144b   :  { %4187 = vrot.lane.b32.xlu0 %v10849_v26, %s9536_s22 }
0x144e   :  { %4197 = vrot.lane.b32.xlu1 %v10874_v62, %s9536_s22 }
0x144f   :  { %4191 = vrot.lane.b32.xlu0 %v10862_v21, %s9536_s22 }
0x1453   :  { %4195 = vrot.lane.b32.xlu0 %v10869_v24, %s9536_s22 }
0x147c   :  { %v3987_v53 = vpop.xlane.xlu0 %3986 }
0x147d   :  { %9264 = vrcp.f32 %v3987_v53  ;;  %v3984_v30 = vpop.xlane.xlu1 %3983 }
0x147e   :  { %9266 = vrcp.f32 %v3984_v30 }
0x1481   :  { %v3990_v42 = vpop.xlane.xlu0 %3989  ;;  %v8916_v35 = vpop.permute.xlu1 %8915 }
0x1482   :  { %9268 = vrcp.f32 %v3990_v42  ;;  %v8918_v14 = vunpack.i.h.bf16 %v8916_v35  ;;  %v8917_v46 = vunpack.i.l.bf16 %v8916_v35 }
0x1484   :  { %v8399_v17 = vpack.c.bf16 %v8918_v14, %v8917_v46 }
0x1485   :  { %v3999_v27 = vpop.xlane.xlu0 %3998 }
0x1486   :  { %8401 = vmatprep.subr.msk.bf16.mxu1 %vm9771_vm3, %v8399_v17 }
0x1487   :  { %v9265_v52 = vpop.eup %9264 }
0x1488   :  { %v9267_v48 = vpop.eup %9266  ;;  %v4009_v44 = vmul.f32 %v9265_v52, %v11113_v37 }
0x1489   :  { %v4007_v12 = vmul.f32 %v9267_v48, %v11115_v2  ;;  %v3996_v40 = vpop.xlane.xlu0 %3995 }
0x148a   :  { %9270 = vrcp.f32 %v3996_v40 }
0x148b   :  { %7731 = vmatprep.mubr.msk.f32.mxu1 %vm784_vm4, %v4007_v12 }
0x148c   :  { %v9269_v16 = vpop.eup %9268  ;;  %7732 = vmatmul.mubr.msk.f32.vlgmr.msra.gmra.mrb[84].mxu1 %vm784_vm4, %v4009_v44 }
0x148d   :  { %8404 = vmatpush3.bf16.xpose.msk.msra.mxu1 %vm9771_vm3, %v8399_v17  ;;  %v4011_v41 = vmul.f32 %v9269_v16, %v11121_v63  ;;  %v4005_v2 = vpop.xlane.xlu0 %4004 }
0x148f   :  { %7734 = vmatprep.mubr.msk.f32.mxu1 %vm784_vm4, %v4011_v41 }
0x1494   :  { %v9271_v37 = vpop.eup %9270 }
0x1495   :  { %v4015_v9 = vmul.f32 %v9271_v37, %v11129_v7 }
0x14b2   :  { %v3993_v36 = vpop.xlane.xlu1 %3992 }
0x14b3   :  { %9272 = vrcp.f32 %v3993_v36 }
0x14b4   :  { %9274 = vrcp.f32 %v3999_v27 }
0x14b5   :  { %9276 = vrcp.f32 %v4005_v2 }
0x14b6   :  { %v8926_v63 = vpop.permute.xlu1 %8925 }
0x14b7   :  { %v8928_v1 = vunpack.i.h.bf16 %v8926_v63  ;;  %v8927_v45 = vunpack.i.l.bf16 %v8926_v63 }
0x14ba   :  { %v8931_v42 = vpop.permute.xlu1 %8930 }
0x14bb   :  { %v8933_v14 = vunpack.i.h.bf16 %v8931_v42  ;;  %v8932_v46 = vunpack.i.l.bf16 %v8931_v42 }
0x14bd   :  { %v9273_v50 = vpop.eup %9272  ;;  %v8417_v48 = vpack.c.bf16 %v8933_v14, %v8932_v46 }
0x14be   :  { %v4002_v56 = vpop.xlane.xlu0 %4001  ;;  %v4013_v61 = vmul.f32 %v9273_v50, %v11140_v11  ;;  %v9275_v47 = vpop.eup %9274  ;;  %v8411_v11 = vpack.c.bf16 %v8928_v1, %v8927_v45 }
0x14bf   :  { %9278 = vrcp.f32 %v4002_v56  ;;  %v4017_v6 = vmul.f32 %v9275_v47, %v11125_v57  ;;  %v9277_v7 = vpop.eup %9276  ;;  %v4184_v52 = vpop.permute.xlu1 %4183 }
0x14c0   :  { %7735 = vmatmul.mubr.msk.f32.gmra.mrb[86].mxu1 %vm784_vm4, %v4013_v61  ;;  %v4021_v17 = vmul.f32 %v9277_v7, %v11133_v13 }
0x14c1   :  { %7737 = vmatprep.mubr.msk.f32.mxu1 %vm784_vm4, %v4015_v9 }
0x14c2   :  { %v8921_v19 = vpop.permute.xlu0 %8920 }
0x14c3   :  { %v8923_v39 = vunpack.i.h.bf16 %v8921_v19  ;;  %v8922_v53 = vunpack.i.l.bf16 %v8921_v19  ;;  %v4186_v12 = vpop.permute.xlu1 %4185 }
0x14c4   :  { %7738 = vmatmul.mubr.msk.f32.gmra.mrb[88].mxu1 %vm784_vm4, %v4017_v6 }
0x14c5   :  { %v8405_v30 = vpack.c.bf16 %v8923_v39, %v8922_v53 }
0x14c7   :  { %8407 = vmatprep.subr.msk.bf16.mxu1 %vm9771_vm3, %v8405_v30  ;;  %v4190_v13 = vpop.permute.xlu1 %4189 }
0x14c8   :  { %8410 = vmatpush3.bf16.xpose.msk.msra.mxu1 %vm9771_vm3, %v8405_v30 }
0x14c9   :  { %v9279_v35 = vpop.eup %9278  ;;  %8413 = vmatprep.subr.msk.bf16.mxu1 %vm9771_vm3, %v8411_v11 }
0x14ca   :  { %v4019_v57 = vmul.f32 %v9279_v35, %v11145_v5  ;;  %v4188_v5 = vpop.permute.xlu0 %4187 }
0x14cb   :  { %v4194_v16 = vpop.permute.xlu1 %4193 }
0x14cc   :  { %7740 = vmatprep.mubr.msk.f32.mxu1 %vm784_vm4, %v4019_v57 }
0x14cd   :  { %7741 = vmatmul.mubr.msk.f32.gmra.mrb[90].mxu1 %vm784_vm4, %v4021_v17 }
0x14ce   :  { %7759 = vmatprep.mubr.msk.f32.mxu1 %vm614_vm2, %v4184_v52  ;;  %v4192_v44 = vpop.permute.xlu0 %4191 }
0x14cf   :  { %v4198_v27 = vpop.permute.xlu1 %4197 }
0x14d0   :  { %8416 = vmatpush3.bf16.xpose.msk.msra.mxu1 %vm9771_vm3, %v8411_v11 }
0x14d1   :  { %8419 = vmatprep.subr.msk.bf16.mxu1 %vm9771_vm3, %v8417_v48 }
0x14d2   :  { %v4196_v41 = vpop.permute.xlu0 %4195 }
0x14d8   :  { %8422 = vmatpush3.bf16.xpose.msk.msra.mxu1 %vm9771_vm3, %v8417_v48 }
0x14df   :  { %7760 = vmatmul.mubr.msk.f32.vlgmr.msra.gmra.mrb[92].mxu1 %vm614_vm2, %v4186_v12 }
0x14e0   :  { %7762 = vmatprep.mubr.msk.f32.mxu1 %vm614_vm2, %v4188_v5 }
0x14e3   :  { %7763 = vmatmul.mubr.msk.f32.gmra.mrb[94].mxu1 %vm614_vm2, %v4190_v13 }
0x14e4   :  { %7765 = vmatprep.mubr.msk.f32.mxu1 %vm614_vm2, %v4192_v44 }
0x14e7   :  { %7766 = vmatmul.mubr.msk.f32.gmra.mrb[96].mxu1 %vm614_vm2, %v4194_v16 }
0x14e8   :  { %7768 = vmatprep.mubr.msk.f32.mxu1 %vm614_vm2, %v4196_v41 }
0x14eb   :  { %7769 = vmatmul.mubr.msk.f32.gmra.mrb[98].mxu1 %vm614_vm2, %v4198_v27 }
0x1507   :  { %v11228_v40 = vpop.f32.mrb[76].mxu1 }
0x1508   :  { %v11230_v36 = vpop.f32.mrb[77].mxu1 }
0x150b   :  { %v11232_v2 = vpop.f32.mrb[78].mxu1 }
0x150c   :  { %v11234_v37 = vpop.f32.mrb[79].mxu1 }
0x150f   :  { %v11236_v50 = vpop.f32.mrb[80].mxu1 }
0x1510   :  { %v11238_v56 = vpop.f32.mrb[81].mxu1 }
0x1513   :  { %v11240_v61 = vpop.f32.mrb[82].mxu1 }
0x1514   :  { %v11242_v47 = vpop.f32.mrb[83].mxu1 }
0x155f   :  { %v11244_v9 = vpop.f32.mrb[84].mxu1 }
0x1560   :  { %v11246_v63 = vpop.f32.mrb[85].mxu1 }
0x1561   :  { %v8994_v19 = vpack.i.bf16 %v11244_v9, %v11246_v63 }
0x1593   :  { %v11250_v6 = vpop.f32.mrb[86].mxu1 }
0x1594   :  { %v11252_v1 = vpop.f32.mrb[87].mxu1 }
0x1597   :  { %v11256_v39 = vpop.f32.mrb[88].mxu1 }
0x1598   :  { %v11258_v53 = vpop.f32.mrb[89].mxu1 }
0x1599   :  { %v9024_v30 = vpack.i.bf16 %v11256_v39, %v11258_v53 }
0x15a0   :  { %v11262_v11 = vpop.f32.mrb[90].mxu1 }
0x15a1   :  { %v11264_v42 = vpop.f32.mrb[91].mxu1 }
0x15b2   :  { %v7761_v35 = vpop.f32.mrb[92].mxu1 }
0x15b3   :  { %v4353_v57 = vmul.f32 0.17677669, %v7761_v35  ;;  %v4313_v14 = vpop.f32.mrb[93].mxu1 }
0x15b4   :  { %v4352_v46 = vmul.f32 0.17677669, %v4313_v14 }
0x15b5   :  { %v4361_v17 = vadd.f32 %v10944_v0, %v4353_v57 }
0x15b6   :  { %v4360_v52 = vadd.f32 %v10952_v25, %v4352_v46  ;;  %v7764_v48 = vpop.f32.mrb[94].mxu1 }
0x15b7   :  { %v4355_v12 = vmul.f32 0.17677669, %v7764_v48  ;;  %v4323_v5 = vpop.f32.mrb[95].mxu1  ;;  %v4371_v13 = vsel %vm784_vm4, %v4361_v17, -inf }
0x15b8   :  { %v4354_v44 = vmul.f32 0.17677669, %v4323_v5  ;;  %4372 = vmax.xlane.f32.xlu1 %v4371_v13  ;;  %v4368_v16 = vsel %vm784_vm4, %v4360_v52, -inf }
0x15b9   :  { %v11273_v41 = vadd.f32 %v10964_v29, %v4355_v12  ;;  %4369 = vmax.xlane.f32.xlu0 %v4368_v16 }
0x15ba   :  { %v7767_v27 = vpop.f32.mrb[96].mxu1  ;;  %v4362_v25 = vadd.f32 %v10972_v59, %v4354_v44 }
0x15bb   :  { %v4333_v35 = vpop.f32.mrb[97].mxu1  ;;  %v4377_v0 = vsel %vm784_vm4, %v11273_v41, -inf  ;;  %v4357_v57 = vmul.f32 0.17677669, %v7767_v27 }
0x15bc   :  { %v4374_v13 = vsel %vm784_vm4, %v4362_v25, -inf  ;;  %v4356_v59 = vmul.f32 0.17677669, %v4333_v35 }
0x15bd   :  { %4378 = vmax.xlane.f32.xlu0 %v4377_v0  ;;  %v4365_v48 = vadd.f32 %v10992_v31, %v4357_v57 }
0x15be   :  { %v7770_v14 = vpop.f32.mrb[98].mxu1  ;;  %v4364_v31 = vadd.f32 %v10982_v55, %v4356_v59 }
0x15bf   :  { %v4343_v46 = vpop.f32.mrb[99].mxu1  ;;  %v4359_v5 = vmul.f32 0.17677669, %v7770_v14  ;;  %v4383_v12 = vsel %vm784_vm4, %v4365_v48, -inf }
0x15c0   :  { %v4380_v44 = vsel %vm784_vm4, %v4364_v31, -inf }
0x15c1   :  { %4375 = vmax.xlane.f32.xlu0 %v4374_v13  ;;  %v11281_v29 = vadd.f32 %v11010_v32, %v4359_v5  ;;  %v4358_v32 = vmul.f32 0.17677669, %v4343_v46 }
0x15c3   :  { %v4389_v16 = vsel %vm784_vm4, %v11281_v29, -inf  ;;  %v11295_v27 = vadd.f32 %v11002_v3, %v4358_v32 }
0x15c5   :  { %4384 = vmax.xlane.f32.xlu0 %v4383_v12  ;;  %v4386_v0 = vsel %vm784_vm4, %v11295_v27, -inf }
0x15c9   :  { %8935 = vrot.lane.b32.xlu1 %v10814_v51, %s9536_s22  ;;  %4390 = vmax.xlane.f32.xlu0 %v4389_v16 }
0x15df   :  { %8940 = vrot.lane.b32.xlu0 %v10831_v38, %s9536_s22 }
0x15ed   :  { %4381 = vmax.xlane.f32.xlu1 %v4380_v44 }
0x15fe   :  { %8945 = vrot.lane.b32.xlu1 %v10853_v23, %s9536_s22 }
0x1622   :  { %4387 = vmax.xlane.f32.xlu1 %v4386_v0 }
0x1633   :  { %8950 = vrot.lane.b32.xlu1 %v10882_v43, %s9536_s22 }
0x1645   :  { %v4373_v35 = vpop.xlane.xlu1 %4372 }
0x1646   :  { %v4393_v57 = vsub.f32 %v4361_v17, %v4373_v35  ;;  %v4370_v55 = vpop.xlane.xlu0 %4369 }
0x1647   :  { %v4392_v14 = vsub.f32 %v4360_v52, %v4370_v55 }
0x1648   :  { %v4402_v5 = vmul.f32 1.442695, %v4393_v57 }
0x1649   :  { %v4400_v13 = vmul.f32 1.442695, %v4392_v14  ;;  %v8936_v12 = vpop.permute.xlu1 %8935 }
0x164a   :  { %9280 = vpow2.f32 %v4402_v5  ;;  %v8938_v16 = vunpack.i.h.bf16 %v8936_v12  ;;  %v8937_v46 = vunpack.i.l.bf16 %v8936_v12  ;;  %v4379_v59 = vpop.xlane.xlu0 %4378 }
0x164b   :  { %9282 = vpow2.f32 %v4400_v13 }
0x164c   :  { %v8423_v3 = vpack.c.bf16 %v8938_v16, %v8937_v46  ;;  %v4395_v46 = vsub.f32 %v11273_v41, %v4379_v59 }
0x164e   :  { %8424 = vmatprep.subr.bf16.mxu0 %v8423_v3  ;;  %v4376_v44 = vpop.xlane.xlu0 %4375 }
0x164f   :  { %v4394_v32 = vsub.f32 %v4362_v25, %v4376_v44  ;;  %8426 = vmatpush3.bf16.msra.mxu0 %v8423_v3  ;;  %v4406_v44 = vmul.f32 1.442695, %v4395_v46 }
0x1651   :  { %v4404_v0 = vmul.f32 1.442695, %v4394_v32 }
0x1652   :  { %v4385_v7 = vpop.xlane.xlu0 %4384 }
0x1653   :  { %9284 = vpow2.f32 %v4404_v0  ;;  %v4397_v45 = vsub.f32 %v4365_v48, %v4385_v7 }
0x1654   :  { %v11301_v17 = vpop.eup %9280 }
0x1655   :  { %v11303_v52 = vpop.eup %9282  ;;  %v4410_v35 = vmul.f32 1.442695, %v4397_v45  ;;  %v4419_v57 = vsel %vm784_vm4, %v11301_v17, 0.0 }
0x1656   :  { %4420 = vadd.xlane.f32.xlu0 %v4419_v57  ;;  %v4391_v55 = vpop.xlane.xlu0 %4390  ;;  %v4416_v14 = vsel %vm784_vm4, %v11303_v52, 0.0 }
0x1657   :  { %9286 = vpow2.f32 %v4410_v35  ;;  %4417 = vadd.xlane.f32.xlu1 %v4416_v14  ;;  %v4399_v3 = vsub.f32 %v11281_v29, %v4391_v55 }
0x1658   :  { %9288 = vpow2.f32 %v4406_v44 }
0x1659   :  { %v4414_v35 = vmul.f32 1.442695, %v4399_v3 }
0x165a   :  { %v8941_v25 = vpop.permute.xlu0 %8940 }
0x165b   :  { %v8943_v5 = vunpack.i.h.bf16 %v8941_v25  ;;  %v8942_v13 = vunpack.i.l.bf16 %v8941_v25 }
0x165d   :  { %v11309_v12 = vpop.eup %9284  ;;  %v8427_v7 = vpack.c.bf16 %v8943_v5, %v8942_v13 }
0x165e   :  { %v4422_v48 = vsel %vm784_vm4, %v11309_v12, 0.0 }
0x165f   :  { %4423 = vadd.xlane.f32.xlu0 %v4422_v48  ;;  %8428 = vmatprep.subr.bf16.mxu0 %v8427_v7 }
0x1660   :  { %8430 = vmatpush3.bf16.msra.mxu0 %v8427_v7 }
0x1661   :  { %v11313_v45 = vpop.eup %9286 }
0x1662   :  { %v4431_v16 = vsel %vm784_vm4, %v11313_v45, 0.0  ;;  %v9289_v7 = vpop.eup %9288 }
0x1663   :  { %4432 = vadd.xlane.f32.xlu0 %v4431_v16 }
0x1668   :  { %8955 = vrot.lane.b32.xlu1 %v10812_v20, %s9537_s23 }
0x167a   :  { %v4382_v32 = vpop.xlane.xlu1 %4381 }
0x167b   :  { %v4396_v0 = vsub.f32 %v4364_v31, %v4382_v32  ;;  %v4425_v31 = vsel %vm784_vm4, %v9289_v7, 0.0 }
0x167d   :  { %v4408_v57 = vmul.f32 1.442695, %v4396_v0 }
0x167e   :  { %v8946_v14 = vpop.permute.xlu1 %8945 }
0x167f   :  { %9290 = vpow2.f32 %v4408_v57  ;;  %v8948_v25 = vunpack.i.h.bf16 %v8946_v14  ;;  %v8947_v5 = vunpack.i.l.bf16 %v8946_v14 }
0x1680   :  { %9292 = vpow2.f32 %v4414_v35 }
0x1681   :  { %v8431_v13 = vpack.c.bf16 %v8948_v25, %v8947_v5 }
0x1683   :  { %8432 = vmatprep.subr.bf16.mxu0 %v8431_v13 }
0x1684   :  { %8434 = vmatpush3.bf16.msra.mxu0 %v8431_v13 }
0x1689   :  { %v11321_v20 = vpop.eup %9290 }
0x168a   :  { %v4428_v41 = vsel %vm784_vm4, %v11321_v20, 0.0  ;;  %v11325_v29 = vpop.eup %9292 }
0x168b   :  { %4429 = vadd.xlane.f32.xlu0 %v4428_v41  ;;  %v4437_v59 = vsel %vm784_vm4, %v11325_v29, 0.0 }
0x168c   :  { %4426 = vadd.xlane.f32.xlu1 %v4425_v31 }
0x168f   :  { %4438 = vadd.xlane.f32.xlu0 %v4437_v59 }
0x169d   :  { %8965 = vrot.lane.b32.xlu1 %v10851_v10, %s9537_s23 }
0x16a1   :  { %8970 = vrot.lane.b32.xlu1 %v10880_v33, %s9537_s23 }
0x16a5   :  { %4609 = vrot.lane.b32.xlu1 %v10794_v22, %s9537_s23 }
0x16a9   :  { %4611 = vrot.lane.b32.xlu1 %v10806_v28, %s9537_s23 }
0x16ad   :  { %4615 = vrot.lane.b32.xlu1 %v10823_v54, %s9537_s23 }
0x16af   :  { %v4388_v55 = vpop.xlane.xlu1 %4387 }
0x16b0   :  { %v4398_v48 = vsub.f32 %v11295_v27, %v4388_v55 }
0x16b1   :  { %4619 = vrot.lane.b32.xlu1 %v10840_v49, %s9537_s23 }
0x16b2   :  { %v4412_v16 = vmul.f32 1.442695, %v4398_v48 }
0x16b3   :  { %v8951_v10 = vpop.permute.xlu1 %8950 }
0x16b4   :  { %9294 = vpow2.f32 %v4412_v16  ;;  %v8953_v46 = vunpack.i.h.bf16 %v8951_v10  ;;  %v8952_v33 = vunpack.i.l.bf16 %v8951_v10 }
0x16b5   :  { %4623 = vrot.lane.b32.xlu1 %v10874_v62, %s9537_s23 }
0x16b6   :  { %v8435_v22 = vpack.c.bf16 %v8953_v46, %v8952_v33 }
0x16b8   :  { %8436 = vmatprep.subr.bf16.mxu0 %v8435_v22 }
0x16b9   :  { %8438 = vmatpush3.bf16.msra.mxu0 %v8435_v22 }
0x16be   :  { %v9295_v28 = vpop.eup %9294 }
0x16bf   :  { %v4434_v54 = vsel %vm784_vm4, %v9295_v28, 0.0 }
0x16c0   :  { %4435 = vadd.xlane.f32.xlu0 %v4434_v54 }
0x16d6   :  { %8960 = vrot.lane.b32.xlu0 %v10829_v18, %s9537_s23 }
0x16da   :  { %4613 = vrot.lane.b32.xlu0 %v10849_v26, %s9537_s23 }
0x16de   :  { %4617 = vrot.lane.b32.xlu0 %v10862_v21, %s9537_s23 }
0x16e2   :  { %4621 = vrot.lane.b32.xlu0 %v10869_v24, %s9537_s23 }
0x16e3   :  { %v4421_v49 = vpop.xlane.xlu0 %4420 }
0x16e4   :  { %9296 = vrcp.f32 %v4421_v49  ;;  %v4418_v62 = vpop.xlane.xlu1 %4417 }
0x16e5   :  { %9298 = vrcp.f32 %v4418_v62 }
0x16e8   :  { %v8956_v27 = vpop.permute.xlu1 %8955 }
0x16e9   :  { %v8958_v3 = vunpack.i.h.bf16 %v8956_v27  ;;  %v8957_v44 = vunpack.i.l.bf16 %v8956_v27 }
0x16eb   :  { %v8439_v32 = vpack.c.bf16 %v8958_v3, %v8957_v44 }
0x16ec   :  { %v4424_v0 = vpop.xlane.xlu0 %4423 }
0x16ed   :  { %9300 = vrcp.f32 %v4424_v0  ;;  %8441 = vmatprep.subr.msk.bf16.mxu0 %vm9771_vm3, %v8439_v32 }
0x16ee   :  { %v9297_v18 = vpop.eup %9296 }
0x16ef   :  { %v9299_v26 = vpop.eup %9298  ;;  %v4443_v35 = vmul.f32 %v9297_v18, %v11301_v17 }
0x16f0   :  { %v4441_v21 = vmul.f32 %v9299_v26, %v11303_v52  ;;  %v4433_v14 = vpop.xlane.xlu0 %4432 }
0x16f2   :  { %7787 = vmatprep.mubr.msk.f32.mxu0 %vm784_vm4, %v4441_v21 }
0x16f3   :  { %7788 = vmatmul.mubr.msk.f32.vlgmr.msra.gmra.mrb[100].mxu0 %vm784_vm4, %v4443_v35 }
0x16f4   :  { %8444 = vmatpush3.bf16.xpose.msk.msra.mxu0 %vm9771_vm3, %v8439_v32 }
0x16f7   :  { %v9301_v24 = vpop.eup %9300 }
0x16f8   :  { %v4445_v57 = vmul.f32 %v9301_v24, %v11309_v12 }
0x16fa   :  { %7790 = vmatprep.mubr.msk.f32.mxu0 %vm784_vm4, %v4445_v57 }
0x1718   :  { %v4430_v25 = vpop.xlane.xlu0 %4429 }
0x1719   :  { %9302 = vrcp.f32 %v4430_v25  ;;  %v4427_v5 = vpop.xlane.xlu1 %4426 }
0x171a   :  { %9304 = vrcp.f32 %v4427_v5 }
0x171b   :  { %9306 = vrcp.f32 %v4433_v14 }
0x171c   :  { %v4439_v59 = vpop.xlane.xlu0 %4438 }
0x171d   :  { %9308 = vrcp.f32 %v4439_v59  ;;  %v8966_v48 = vpop.permute.xlu1 %8965 }
0x171e   :  { %v8968_v10 = vunpack.i.h.bf16 %v8966_v48  ;;  %v8967_v46 = vunpack.i.l.bf16 %v8966_v48 }
0x1721   :  { %v8971_v54 = vpop.permute.xlu1 %8970 }
0x1722   :  { %v8973_v27 = vunpack.i.h.bf16 %v8971_v54  ;;  %v8972_v3 = vunpack.i.l.bf16 %v8971_v54 }
0x1723   :  { %v9303_v52 = vpop.eup %9302 }
0x1724   :  { %v9305_v17 = vpop.eup %9304  ;;  %v4449_v31 = vmul.f32 %v9303_v52, %v11321_v20  ;;  %v8451_v20 = vpack.c.bf16 %v8968_v10, %v8967_v46  ;;  %v8457_v0 = vpack.c.bf16 %v8973_v27, %v8972_v3  ;;  %v9396_v46 = vld [vmem:[%s11918_s3 + $0x8] sm:$0xff]  ;;  %v9398_v3 = vld [vmem:[%s11918_s3 + $0x18] sm:$0xff] }
0x1725   :  { %v4447_v13 = vmul.f32 %v9305_v17, %v9289_v7  ;;  %v9307_v41 = vpop.eup %9306  ;;  %v4610_v32 = vpop.permute.xlu1 %4609 }
0x1726   :  { %v4451_v12 = vmul.f32 %v9307_v41, %v11313_v45 }
0x1727   :  { %7791 = vmatmul.mubr.msk.f32.gmra.mrb[102].mxu0 %vm784_vm4, %v4447_v13  ;;  %v9309_v49 = vpop.eup %9308 }
0x1728   :  { %7793 = vmatprep.mubr.msk.f32.mxu0 %vm784_vm4, %v4449_v31  ;;  %v4455_v44 = vmul.f32 %v9309_v49, %v11325_v29 }
0x1729   :  { %v4612_v18 = vpop.permute.xlu1 %4611 }
0x172b   :  { %7794 = vmatmul.mubr.msk.f32.gmra.mrb[104].mxu0 %vm784_vm4, %v4451_v12 }
0x172d   :  { %v4616_v29 = vpop.permute.xlu1 %4615 }
0x1731   :  { %v4620_v21 = vpop.permute.xlu1 %4619 }
0x1735   :  { %v4624_v24 = vpop.permute.xlu1 %4623 }
0x174d   :  { %v4436_v55 = vpop.xlane.xlu0 %4435 }
0x174e   :  { %9310 = vrcp.f32 %v4436_v55 }
0x1751   :  { %v8961_v16 = vpop.permute.xlu0 %8960 }
0x1752   :  { %v8963_v7 = vunpack.i.h.bf16 %v8961_v16  ;;  %v8962_v33 = vunpack.i.l.bf16 %v8961_v16 }
0x1754   :  { %v8445_v22 = vpack.c.bf16 %v8963_v7, %v8962_v33  ;;  %v9397_v33 = vld [vmem:[%s11918_s3] sm:$0xff] }
0x1756   :  { %8447 = vmatprep.subr.msk.bf16.mxu0 %vm9771_vm3, %v8445_v22 }
0x1757   :  { %8450 = vmatpush3.bf16.xpose.msk.msra.mxu0 %vm9771_vm3, %v8445_v22 }
0x1758   :  { %v9311_v45 = vpop.eup %9310  ;;  %8453 = vmatprep.subr.msk.bf16.mxu0 %vm9771_vm3, %v8451_v20 }
0x1759   :  { %v4453_v62 = vmul.f32 %v9311_v45, %v9295_v28  ;;  %v4614_v28 = vpop.permute.xlu0 %4613 }
0x175b   :  { %7796 = vmatprep.mubr.msk.f32.mxu0 %vm784_vm4, %v4453_v62 }
0x175c   :  { %7797 = vmatmul.mubr.msk.f32.gmra.mrb[106].mxu0 %vm784_vm4, %v4455_v44 }
0x175d   :  { %7815 = vmatprep.mubr.msk.f32.mxu0 %vm614_vm2, %v4610_v32  ;;  %v4618_v26 = vpop.permute.xlu0 %4617 }
0x175f   :  { %8456 = vmatpush3.bf16.xpose.msk.msra.mxu0 %vm9771_vm3, %v8451_v20 }
0x1760   :  { %8459 = vmatprep.subr.msk.bf16.mxu0 %vm9771_vm3, %v8457_v0 }
0x1761   :  { %v4622_v35 = vpop.permute.xlu0 %4621 }
0x1767   :  { %8462 = vmatpush3.bf16.xpose.msk.msra.mxu0 %vm9771_vm3, %v8457_v0  ;;  %v9399_v0 = vld [vmem:[%s11918_s3 + $0x10] sm:$0xff] }
0x176e   :  { %7816 = vmatmul.mubr.msk.f32.vlgmr.msra.gmra.mrb[108].mxu0 %vm614_vm2, %v4612_v18 }
0x176f   :  { %7818 = vmatprep.mubr.msk.f32.mxu0 %vm614_vm2, %v4614_v28 }
0x1772   :  { %7819 = vmatmul.mubr.msk.f32.gmra.mrb[110].mxu0 %vm614_vm2, %v4616_v29 }
0x1773   :  { %7821 = vmatprep.mubr.msk.f32.mxu0 %vm614_vm2, %v4618_v26 }
0x1776   :  { %7822 = vmatmul.mubr.msk.f32.gmra.mrb[112].mxu0 %vm614_vm2, %v4620_v21 }
0x1777   :  { %7824 = vmatprep.mubr.msk.f32.mxu0 %vm614_vm2, %v4622_v35  ;;  %v9400_v35 = vld [vmem:[%s11918_s3 + $0x20] sm:$0xff] }
0x177a   :  { %7825 = vmatmul.mubr.msk.f32.gmra.mrb[114].mxu0 %vm614_vm2, %v4624_v24 }
0x177b   :  { %5504 = vmatprep.mubr.f32.mxu0 %v11952_v8 }
0x17c6   :  { %v11393_v15 = vpop.f32.mrb[100].mxu0 }
0x17c7   :  { %v11395_v57 = vpop.f32.mrb[101].mxu0 }
0x17c8   :  { %v8999_v14 = vpack.i.bf16 %v11393_v15, %v11395_v57 }
0x17fa   :  { %v11399_v25 = vpop.f32.mrb[102].mxu0 }
0x17fb   :  { %v11401_v5 = vpop.f32.mrb[103].mxu0 }
0x17fc   :  { %v9014_v52 = vpack.i.bf16 %v11399_v25, %v11401_v5 }
0x17fe   :  { %v11405_v17 = vpop.f32.mrb[104].mxu0 }
0x17ff   :  { %v11407_v13 = vpop.f32.mrb[105].mxu0 }
0x1800   :  { %v9029_v41 = vpack.i.bf16 %v11405_v17, %v11407_v13 }
0x182f   :  { %v11411_v31 = vpop.f32.mrb[106].mxu0 }
0x1830   :  { %v11413_v12 = vpop.f32.mrb[107].mxu0 }
0x1831   :  { %v9044_v59 = vpack.i.bf16 %v11411_v31, %v11413_v12 }
0x1841   :  { %v7817_v55 = vpop.f32.mrb[108].mxu0 }
0x1842   :  { %v4779_v48 = vmul.f32 0.17677669, %v7817_v55  ;;  %v4739_v16 = vpop.f32.mrb[109].mxu0 }
0x1843   :  { %v4778_v10 = vmul.f32 0.17677669, %v4739_v16 }
0x1844   :  { %v4787_v7 = vadd.f32 %v9396_v46, %v4779_v48 }
0x1845   :  { %v4786_v22 = vadd.f32 %v9397_v33, %v4778_v10  ;;  %v7820_v20 = vpop.f32.mrb[110].mxu0  ;;  %v9401_v10 = vld [vmem:[%s11918_s3 + $0x28] sm:$0xff] }
0x1846   :  { %v4781_v54 = vmul.f32 0.17677669, %v7820_v20  ;;  %v4749_v49 = vpop.f32.mrb[111].mxu0  ;;  %v4797_v45 = vsel %vm784_vm4, %v4787_v7, -inf }
0x1847   :  { %v4780_v62 = vmul.f32 0.17677669, %v4749_v49  ;;  %4798 = vmax.xlane.f32.xlu1 %v4797_v45  ;;  %v4794_v27 = vsel %vm784_vm4, %v4786_v22, -inf  ;;  %v9402_v49 = vld [vmem:[%s11918_s3 + $0x30] sm:$0xff] }
0x1848   :  { %v4789_v44 = vadd.f32 %v9398_v3, %v4781_v54  ;;  %4795 = vmax.xlane.f32.xlu0 %v4794_v27 }
0x1849   :  { %v7823_v32 = vpop.f32.mrb[112].mxu0  ;;  %v4788_v18 = vadd.f32 %v9399_v0, %v4780_v62  ;;  %v9403_v62 = vld [vmem:[%s11918_s3 + $0x38] sm:$0xff]  ;;  %s9538_s3 = smov 127  }
0x184a   :  { %v4759_v28 = vpop.f32.mrb[113].mxu0  ;;  %v4803_v29 = vsel %vm784_vm4, %v4789_v44, -inf  ;;  %v4783_v26 = vmul.f32 0.17677669, %v7823_v32 }
0x184b   :  { %v4782_v21 = vmul.f32 0.17677669, %v4759_v28  ;;  %v4800_v16 = vsel %vm784_vm4, %v4788_v18, -inf }
0x184c   :  { %4804 = vmax.xlane.f32.xlu0 %v4803_v29  ;;  %v4791_v46 = vadd.f32 %v9401_v10, %v4783_v26 }
0x184d   :  { %v4790_v24 = vadd.f32 %v9400_v35, %v4782_v21  ;;  %v7826_v55 = vpop.f32.mrb[114].mxu0 }
0x184e   :  { %v4769_v48 = vpop.f32.mrb[115].mxu0  ;;  %v4785_v33 = vmul.f32 0.17677669, %v7826_v55  ;;  %v4809_v3 = vsel %vm784_vm4, %v4791_v46, -inf }
0x184f   :  { %v4784_v20 = vmul.f32 0.17677669, %v4769_v48  ;;  %v4806_v54 = vsel %vm784_vm4, %v4790_v24, -inf }
0x1850   :  { %4801 = vmax.xlane.f32.xlu0 %v4800_v16  ;;  %4807 = vmax.xlane.f32.xlu1 %v4806_v54  ;;  %v11448_v27 = vadd.f32 %v9403_v62, %v4785_v33 }
0x1851   :  { %v11443_v45 = vadd.f32 %v9402_v49, %v4784_v20 }
0x1852   :  { %v4815_v0 = vsel %vm784_vm4, %v11448_v27, -inf }
0x1853   :  { %v4812_v32 = vsel %vm784_vm4, %v11443_v45, -inf }
0x1854   :  { %4810 = vmax.xlane.f32.xlu0 %v4809_v3  ;;  %4813 = vmax.xlane.f32.xlu1 %v4812_v32 }
0x1858   :  { %4816 = vmax.xlane.f32.xlu0 %v4815_v0 }
0x1865   :  { %8975 = vrot.lane.b32.xlu1 %v10814_v51, %s9537_s23 }
0x186e   :  { %8980 = vrot.lane.b32.xlu0 %v10831_v38, %s9537_s23 }
0x18d4   :  { %v4799_v28 = vpop.xlane.xlu1 %4798 }
0x18d5   :  { %v4819_v29 = vsub.f32 %v4787_v7, %v4799_v28  ;;  %v4796_v26 = vpop.xlane.xlu0 %4795 }
0x18d6   :  { %v4818_v21 = vsub.f32 %v4786_v22, %v4796_v26 }
0x18d7   :  { %v4828_v35 = vmul.f32 1.442695, %v4819_v29 }
0x18d8   :  { %v4826_v55 = vmul.f32 1.442695, %v4818_v21 }
0x18d9   :  { %9312 = vpow2.f32 %v4828_v35  ;;  %v4805_v48 = vpop.xlane.xlu0 %4804 }
0x18da   :  { %9314 = vpow2.f32 %v4826_v55  ;;  %v4821_v16 = vsub.f32 %v4789_v44, %v4805_v48 }
0x18dc   :  { %v4832_v10 = vmul.f32 1.442695, %v4821_v16 }
0x18dd   :  { %v4802_v33 = vpop.xlane.xlu0 %4801  ;;  %v4808_v20 = vpop.xlane.xlu1 %4807 }
0x18de   :  { %9316 = vpow2.f32 %v4832_v10  ;;  %v4820_v54 = vsub.f32 %v4788_v18, %v4802_v33  ;;  %v4822_v49 = vsub.f32 %v4790_v24, %v4808_v20 }
0x18e0   :  { %v4830_v51 = vmul.f32 1.442695, %v4820_v54  ;;  %v4834_v62 = vmul.f32 1.442695, %v4822_v49 }
0x18e1   :  { %v4811_v3 = vpop.xlane.xlu0 %4810  ;;  %v4814_v38 = vpop.xlane.xlu1 %4813 }
0x18e2   :  { %9318 = vpow2.f32 %v4830_v51  ;;  %v4823_v7 = vsub.f32 %v4791_v46, %v4811_v3  ;;  %v4824_v3 = vsub.f32 %v11443_v45, %v4814_v38 }
0x18e3   :  { %v11459_v32 = vpop.eup %9312  ;;  %9320 = vpow2.f32 %v4834_v62 }
0x18e4   :  { %v9315_v22 = vpop.eup %9314  ;;  %v4836_v0 = vmul.f32 1.442695, %v4823_v7  ;;  %v4845_v44 = vsel %vm784_vm4, %v11459_v32, 0.0 }
0x18e5   :  { %4846 = vadd.xlane.f32.xlu0 %v4845_v44  ;;  %v4817_v28 = vpop.xlane.xlu0 %4816  ;;  %v8976_v29 = vpop.permute.xlu1 %8975  ;;  %v4842_v18 = vsel %vm784_vm4, %v9315_v22, 0.0 }
0x18e6   :  { %9322 = vpow2.f32 %v4836_v0  ;;  %v8978_v24 = vunpack.i.h.bf16 %v8976_v29  ;;  %v8977_v26 = vunpack.i.l.bf16 %v8976_v29  ;;  %4843 = vadd.xlane.f32.xlu1 %v4842_v18  ;;  %v4825_v7 = vsub.f32 %v11448_v27, %v4817_v28 }
0x18e7   :  { %v4838_v0 = vmul.f32 1.442695, %v4824_v3 }
0x18e8   :  { %v11464_v21 = vpop.eup %9316  ;;  %v8463_v46 = vpack.c.bf16 %v8978_v24, %v8977_v26  ;;  %v4840_v44 = vmul.f32 1.442695, %v4825_v7 }
0x18e9   :  { %v8981_v35 = vpop.permute.xlu0 %8980  ;;  %v4851_v55 = vsel %vm784_vm4, %v11464_v21, 0.0  ;;  %9324 = vpow2.f32 %v4838_v0  ;;  %v5157_v0 = vld [vmem:[#allocation6 + $0x180] sm:$0xff] }
0x18ea   :  { %v8983_v48 = vunpack.i.h.bf16 %v8981_v35  ;;  %v8982_v16 = vunpack.i.l.bf16 %v8981_v35  ;;  %4852 = vadd.xlane.f32.xlu0 %v4851_v55  ;;  %8464 = vmatprep.subr.bf16.mxu1 %v8463_v46  ;;  %9326 = vpow2.f32 %v4840_v44 }
0x18eb   :  { %8466 = vmatpush3.bf16.msra.mxu1 %v8463_v46 }
0x18ec   :  { %v9319_v10 = vpop.eup %9318  ;;  %v8467_v33 = vpack.c.bf16 %v8983_v48, %v8982_v16 }
0x18ed   :  { %v4848_v20 = vsel %vm784_vm4, %v9319_v10, 0.0  ;;  %v11469_v54 = vpop.eup %9320 }
0x18ee   :  { %4849 = vadd.xlane.f32.xlu1 %v4848_v20  ;;  %8468 = vmatprep.subr.bf16.mxu1 %v8467_v33  ;;  %v4854_v62 = vsel %vm784_vm4, %v11469_v54, 0.0 }
0x18ef   :  { %8470 = vmatpush3.bf16.msra.mxu1 %v8467_v33 }
0x18f0   :  { %v11471_v49 = vpop.eup %9322 }
0x18f1   :  { %v4857_v51 = vsel %vm784_vm4, %v11471_v49, 0.0 }
0x18f2   :  { %4858 = vadd.xlane.f32.xlu0 %v4857_v51  ;;  %4855 = vadd.xlane.f32.xlu1 %v4854_v62 }
0x18f3   :  { %v9325_v29 = vpop.eup %9324 }
0x18f4   :  { %v9327_v18 = vpop.eup %9326  ;;  %v4860_v26 = vsel %vm784_vm4, %v9325_v29, 0.0 }
0x18f5   :  { %v4863_v24 = vsel %vm784_vm4, %v9327_v18, 0.0 }
0x1903   :  { %8985 = vrot.lane.b32.xlu1 %v10853_v23, %s9537_s23 }
0x1908   :  { %8990 = vrot.lane.b32.xlu0 %v10882_v43, %s9537_s23 }
0x1927   :  { %4864 = vadd.xlane.f32.xlu0 %v4863_v24  ;;  %4861 = vadd.xlane.f32.xlu1 %v4860_v26  ;;  %v5158_v24 = vld [vmem:[#allocation6 + $0x218] sm:$0xff]  ;;  %v5159_v26 = vld [vmem:[#allocation6 + $0x2b0] sm:$0xff] }
0x1938   :  { %8995 = vrot.lane.b32.xlu1 %v8994_v19, %s9537_s23 }
0x193d   :  { %9000 = vrot.lane.b32.xlu0 %v8999_v14, %s9536_s22 }
0x1941   :  { %9015 = vrot.lane.b32.xlu0 %v9014_v52, %s9536_s22 }
0x1945   :  { %9025 = vrot.lane.b32.xlu0 %v9024_v30, %s9537_s23 }
0x1972   :  { %v4847_v43 = vpop.xlane.xlu0 %4846 }
0x1973   :  { %v4844_v23 = vpop.xlane.xlu1 %4843 }
0x1974   :  { %9328 = vrcp.f32 %v4844_v23  ;;  %v5160_v23 = vld [vmem:[#allocation6 + $0x348] sm:$0xff] }
0x1975   :  { %9330 = vrcp.f32 %v4847_v43  ;;  %v8487_v43 = vpack.c.bf16 %v5160_v23, %v5159_v26 }
0x1977   :  { %v4853_v9 = vpop.xlane.xlu0 %4852 }
0x197b   :  { %v4850_v63 = vpop.xlane.xlu1 %4849 }
0x197c   :  { %9332 = vrcp.f32 %v4850_v63  ;;  %v5162_v63 = vld [vmem:[#allocation6 + $0x478] sm:$0xff] }
0x197d   :  { %9334 = vrcp.f32 %v4853_v9  ;;  %v5161_v9 = vld [vmem:[#allocation6 + $0x3e0] sm:$0xff] }
0x197e   :  { %v9329_v19 = vpop.eup %9328 }
0x197f   :  { %v4859_v45 = vpop.xlane.xlu0 %4858  ;;  %v4856_v27 = vpop.xlane.xlu1 %4855  ;;  %v4867_v15 = vmul.f32 %v9329_v19, %v9315_v22  ;;  %v5164_v19 = vld [vmem:[#allocation6 + $0x5a8] sm:$0xff] }
0x1980   :  { %9336 = vrcp.f32 %v4856_v27  ;;  %v9331_v38 = vpop.eup %9330  ;;  %v5165_v27 = vld [vmem:[#allocation6 + $0x640] sm:$0xff] }
0x1981   :  { %7843 = vmatprep.mubr.msk.f32.mxu1 %vm784_vm4, %v4867_v15  ;;  %9338 = vrcp.f32 %v4859_v45  ;;  %v4869_v28 = vmul.f32 %v9331_v38, %v11459_v32  ;;  %v5166_v15 = vld [vmem:[#allocation6 + $0x6d8] sm:$0xff] }
0x1983   :  { %v8991_v57 = vpop.permute.xlu0 %8990  ;;  %v8986_v14 = vpop.permute.xlu1 %8985 }
0x1984   :  { %v8993_v25 = vunpack.i.h.bf16 %v8991_v57  ;;  %v8992_v5 = vunpack.i.l.bf16 %v8991_v57  ;;  %v8988_v52 = vunpack.i.h.bf16 %v8986_v14  ;;  %v8987_v39 = vunpack.i.l.bf16 %v8986_v14  ;;  %v5167_v14 = vld [vmem:[#allocation6 + $0x770] sm:$0xff] }
0x1985   :  { %v8499_v57 = vpack.c.bf16 %v5166_v15, %v5165_v27 }
0x1986   :  { %v8471_v53 = vpack.c.bf16 %v8988_v52, %v8987_v39  ;;  %v8475_v30 = vpack.c.bf16 %v8993_v25, %v8992_v5  ;;  %v9333_v22 = vpop.eup %9332  ;;  %v5168_v25 = vld [vmem:[#allocation6 + $0x808] sm:$0xff]  ;;  %v5169_v52 = vld [vmem:[#allocation6 + $0x8a0] sm:$0xff]  ;;  %v5170_v39 = vld [vmem:[#allocation6 + $0x938] sm:$0xff] }
0x1987   :  { %v9335_v46 = vpop.eup %9334  ;;  %v4871_v35 = vmul.f32 %v9333_v22, %v9319_v10  ;;  %v8503_v5 = vpack.c.bf16 %v5168_v25, %v5167_v14 }
0x1988   :  { %8472 = vmatprep.subr.bf16.mxu1 %v8471_v53  ;;  %v4873_v48 = vmul.f32 %v9335_v46, %v11464_v21  ;;  %v5155_v21 = vld [vmem:[#allocation6 + $0x50] sm:$0xff] }
0x1989   :  { %8474 = vmatpush3.bf16.msra.mxu1 %v8471_v53  ;;  %v8507_v53 = vpack.c.bf16 %v5170_v39, %v5169_v52 }
0x198a   :  { %8476 = vmatprep.subr.bf16.mxu1 %v8475_v30  ;;  %v9337_v55 = vpop.eup %9336 }
0x198b   :  { %v9339_v16 = vpop.eup %9338  ;;  %v4875_v33 = vmul.f32 %v9337_v55, %v11469_v54  ;;  %v5156_v54 = vld [vmem:[#allocation6 + $0xe8] sm:$0xff]  ;;  %v11966_v55 = vpack.i.bf16 %v11250_v6, %v11252_v1  ;;  %v11967_v6 = vpack.i.bf16 %v11262_v11, %v11264_v42 }
0x198c   :  { %v4877_v20 = vmul.f32 %v9339_v16, %v11471_v49  ;;  %v8479_v44 = vpack.c.bf16 %v5156_v54, %v5155_v21  ;;  %v8483_v49 = vpack.c.bf16 %v5158_v24, %v5157_v0 }
0x198d   :  { %8478 = vmatpush3.bf16.msra.mxu1 %v8475_v30 }
0x198e   :  { %8480 = vmatprep.subr.bf16.mxu1 %v8479_v44 }
0x1990   :  { %7844 = vmatmul.mubr.msk.f32.vlgmr.msra.gmra.mrb[100].mxu1 %vm784_vm4, %v4869_v28 }
0x1991   :  { %7846 = vmatprep.mubr.msk.f32.mxu1 %vm784_vm4, %v4871_v35  ;;  %8482 = vmatpush3.bf16.msra.mxu1 %v8479_v44 }
0x1992   :  { %8484 = vmatprep.subr.bf16.mxu1 %v8483_v49 }
0x1994   :  { %7847 = vmatmul.mubr.msk.f32.gmra.mrb[102].mxu1 %vm784_vm4, %v4873_v48 }
0x1995   :  { %7849 = vmatprep.mubr.msk.f32.mxu1 %vm784_vm4, %v4875_v33  ;;  %8486 = vmatpush3.bf16.msra.mxu1 %v8483_v49 }
0x1996   :  { %8488 = vmatprep.subr.bf16.mxu1 %v8487_v43 }
0x1998   :  { %7850 = vmatmul.mubr.msk.f32.gmra.mrb[104].mxu1 %vm784_vm4, %v4877_v20 }
0x1999   :  { %8490 = vmatpush3.bf16.msra.mxu1 %v8487_v43 }
0x19b4   :  { %v4865_v32 = vpop.xlane.xlu0 %4864  ;;  %v4862_v10 = vpop.xlane.xlu1 %4861 }
0x19b5   :  { %9340 = vrcp.f32 %v4865_v32 }
0x19b6   :  { %9342 = vrcp.f32 %v4862_v10 }
0x19b8   :  { %v8996_v10 = vpop.permute.xlu1 %8995 }
0x19b9   :  { %v8997_v17 = vunpack.i.l.bf16 %v8996_v10 }
0x19bb   :  { %v5131_v12 = vsel %vm614_vm2, %v11230_v36, %v8997_v17  ;;  %v11565_v17 = vld [vmem:[#allocation9] sm:$0xff] }
0x19bf   :  { %v9341_v51 = vpop.eup %9340 }
0x19c0   :  { %v9343_v62 = vpop.eup %9342  ;;  %v4881_v3 = vmul.f32 %v9341_v51, %v9327_v18  ;;  %v5163_v18 = vld [vmem:[#allocation6 + $0x510] sm:$0xff]  ;;  %v9001_v51 = vpop.permute.xlu0 %9000 }
0x19c1   :  { %v4879_v7 = vmul.f32 %v9343_v62, %v9325_v29  ;;  %v8491_v29 = vpack.c.bf16 %v5162_v63, %v5161_v9  ;;  %v8495_v45 = vpack.c.bf16 %v5164_v19, %v5163_v18  ;;  %v8998_v62 = vunpack.i.h.bf16 %v8996_v10 }
0x19c2   :  { %v9003_v13 = vunpack.i.h.bf16 %v9001_v51 }
0x19c3   :  { %7852 = vmatprep.mubr.msk.f32.mxu1 %vm784_vm4, %v4879_v7  ;;  %8492 = vmatprep.subr.bf16.mxu1 %v8491_v29  ;;  %v5132_v31 = vsel %vm614_vm2, %v11228_v40, %v8998_v62 }
0x19c4   :  { %7853 = vmatmul.mubr.msk.f32.gmra.mrb[106].mxu1 %vm784_vm4, %v4881_v3  ;;  %v9016_v11 = vpop.permute.xlu0 %9015  ;;  %v5140_v21 = vsel %vm784_vm4, %v5132_v31, %v9003_v13 }
0x19c5   :  { %8494 = vmatpush3.bf16.msra.mxu1 %v8491_v29  ;;  %v9018_v23 = vunpack.i.h.bf16 %v9016_v11  ;;  %v9017_v43 = vunpack.i.l.bf16 %v9016_v11 }
0x19c6   :  { %8496 = vmatprep.subr.bf16.mxu1 %v8495_v45 }
0x19c8   :  { %v9026_v40 = vpop.permute.xlu0 %9025 }
0x19c9   :  { %8498 = vmatpush3.bf16.msra.mxu1 %v8495_v45  ;;  %v9028_v18 = vunpack.i.h.bf16 %v9026_v40  ;;  %v9027_v19 = vunpack.i.l.bf16 %v9026_v40 }
0x19ca   :  { %8500 = vmatprep.subr.bf16.mxu1 %v8499_v57 }
0x19cb   :  { %v5135_v39 = vsel %vm614_vm2, %v11238_v56, %v9027_v19 }
0x19cd   :  { %8502 = vmatpush3.bf16.msra.mxu1 %v8499_v57 }
0x19ce   :  { %8504 = vmatprep.subr.bf16.mxu1 %v8503_v5 }
0x19d1   :  { %8506 = vmatpush3.bf16.msra.mxu1 %v8503_v5 }
0x19d2   :  { %8508 = vmatprep.subr.bf16.mxu1 %v8507_v53 }
0x19d5   :  { %8510 = vmatpush3.bf16.msra.mxu1 %v8507_v53  ;;  %v5136_v53 = vsel %vm614_vm2, %v11236_v50, %v9028_v18  ;;  %v11972_v18 = vld [vmem:[#allocation23_spill] sm:$0xff] }
0x1a63   :  { %v7845_v30 = vpop.f32.mrb[100].mxu1 }
0x1a64   :  { %v4996_v38 = vpop.f32.mrb[101].mxu1 }
0x1a65   :  { %v9004_v22 = vpack.i.bf16 %v7845_v30, %v4996_v38 }
0x1a67   :  { %9005 = vrot.lane.b32.xlu1 %v9004_v22, %s9535_s1  ;;  %v7848_v28 = vpop.f32.mrb[102].mxu1 }
0x1a68   :  { %v5006_v46 = vpop.f32.mrb[103].mxu1 }
0x1a69   :  { %v9019_v35 = vpack.i.bf16 %v7848_v28, %v5006_v46 }
0x1a6b   :  { %9010 = vrot.lane.b32.xlu1 %v11966_v55, %s9537_s23  ;;  %v7851_v48 = vpop.f32.mrb[104].mxu1 }
0x1a6c   :  { %v5016_v16 = vpop.f32.mrb[105].mxu1 }
0x1a6d   :  { %v9034_v33 = vpack.i.bf16 %v7851_v48, %v5016_v16 }
0x1a6f   :  { %9020 = vrot.lane.b32.xlu1 %v9019_v35, %s9535_s1  ;;  %9035 = vrot.lane.b32.xlu0 %v9034_v33, %s9535_s1 }
0x1a73   :  { %9030 = vrot.lane.b32.xlu1 %v9029_v41, %s9536_s22  ;;  %9045 = vrot.lane.b32.xlu0 %v9044_v59, %s9536_s22  ;;  %v9002_v41 = vunpack.i.l.bf16 %v9001_v51  ;;  %s9541_s22 = smov 125  }
0x1a75   :  { %v5139_v7 = vsel %vm784_vm4, %v5131_v12, %v9002_v41 }
0x1a77   :  { %9040 = vrot.lane.b32.xlu1 %v11967_v6, %s9537_s23 }
0x1a97   :  { %v7854_v1 = vpop.f32.mrb[106].mxu1 }
0x1a98   :  { %v5026_v20 = vpop.f32.mrb[107].mxu1 }
0x1a99   :  { %v9049_v32 = vpack.i.bf16 %v7854_v1, %v5026_v20 }
0x1a9b   :  { %9050 = vrot.lane.b32.xlu1 %v9049_v32, %s9535_s1  ;;  %s9540_s1 = smov 126  }
0x1ad9   :  { %v9006_v59 = vpop.permute.xlu1 %9005 }
0x1ada   :  { %v9008_v42 = vunpack.i.h.bf16 %v9006_v59  ;;  %v9007_v3 = vunpack.i.l.bf16 %v9006_v59 }
0x1adc   :  { %v5147_v54 = vsel %vm2400_vm5, %v5139_v7, %v9007_v3  ;;  %v5148_v0 = vsel %vm2400_vm5, %v5140_v21, %v9008_v42 }
0x1add   :  { %v9011_v44 = vpop.permute.xlu1 %9010  ;;  %7887 = vmatprep.mubr.f32.mxu1 %v5147_v54 }
0x1ade   :  { %v9013_v24 = vunpack.i.h.bf16 %v9011_v44  ;;  %v9012_v49 = vunpack.i.l.bf16 %v9011_v44  ;;  %7888 = vmatmul.mubr.f32.vlgmr.msra.gmra.mrb[108].mxu1 %v5148_v0 }
0x1ae0   :  { %v5133_v36 = vsel %vm614_vm2, %v11234_v37, %v9012_v49  ;;  %v5134_v26 = vsel %vm614_vm2, %v11232_v2, %v9013_v24  ;;  %v11968_v24 = vld [vmem:[#allocation20_spill] sm:$0xff] }
0x1ae1   :  { %v9021_v9 = vpop.permute.xlu1 %9020  ;;  %v5141_v45 = vsel %vm784_vm4, %v5133_v36, %v9017_v43  ;;  %v5142_v27 = vsel %vm784_vm4, %v5134_v26, %v9018_v23  ;;  %v9036_v15 = vpop.permute.xlu0 %9035  ;;  %v11969_v36 = vld [vmem:[#allocation21_spill] sm:$0xff] }
0x1ae2   :  { %v9023_v63 = vunpack.i.h.bf16 %v9021_v9  ;;  %v9022_v29 = vunpack.i.l.bf16 %v9021_v9  ;;  %v9038_v5 = vunpack.i.h.bf16 %v9036_v15  ;;  %v9037_v52 = vunpack.i.l.bf16 %v9036_v15  ;;  %v5400_v15 = vld [vmem:[#allocation6 + $0x58] sm:$0xff] }
0x1ae4   :  { %v5149_v57 = vsel %vm2400_vm5, %v5141_v45, %v9022_v29  ;;  %v5150_v14 = vsel %vm2400_vm5, %v5142_v27, %v9023_v63  ;;  %v11971_v29 = vld [vmem:[#allocation24_spill] sm:$0xff]  ;;  %v5401_v45 = vld [vmem:[#allocation6 + $0x60] sm:$0xff] }
0x1ae5   :  { %v9031_v37 = vpop.permute.xlu1 %9030  ;;  %7890 = vmatprep.mubr.f32.mxu1 %v5149_v57  ;;  %v9046_v48 = vpop.permute.xlu0 %9045  ;;  %v5403_v27 = vld [vmem:[#allocation6 + $0xf8] sm:$0xff] }
0x1ae6   :  { %v9033_v25 = vunpack.i.h.bf16 %v9031_v37  ;;  %v9032_v2 = vunpack.i.l.bf16 %v9031_v37  ;;  %7891 = vmatmul.mubr.f32.gmra.mrb[110].mxu1 %v5150_v14  ;;  %v9048_v16 = vunpack.i.h.bf16 %v9046_v48  ;;  %v9047_v33 = vunpack.i.l.bf16 %v9046_v48  ;;  %v5402_v14 = vld [vmem:[#allocation6 + $0xf0] sm:$0xff] }
0x1ae7   :  { %v8511_v57 = vpack.c.bf16 %v5403_v27, %v5401_v45  ;;  %v5405_v37 = vld [vmem:[#allocation6 + $0x190] sm:$0xff]  ;;  %v5425_v27 = vld [vmem:[#allocation6 + $0x780] sm:$0xff] }
0x1ae8   :  { %v5143_v30 = vsel %vm784_vm4, %v5135_v39, %v9032_v2  ;;  %v5144_v38 = vsel %vm784_vm4, %v5136_v53, %v9033_v25  ;;  %v5407_v25 = vld [vmem:[#allocation6 + $0x228] sm:$0xff]  ;;  %v8513_v2 = vpack.c.bf16 %v5402_v14, %v5400_v15  ;;  %v5406_v39 = vld [vmem:[#allocation6 + $0x220] sm:$0xff]  ;;  %v5427_v15 = vld [vmem:[#allocation6 + $0x818] sm:$0xff] }
0x1ae9   :  { %v5151_v22 = vsel %vm2400_vm5, %v5143_v30, %v9037_v52  ;;  %v5152_v28 = vsel %vm2400_vm5, %v5144_v38, %v9038_v5  ;;  %v9041_v46 = vpop.permute.xlu1 %9040  ;;  %v8515_v5 = vpack.c.bf16 %v5407_v25, %v5405_v37  ;;  %v5404_v52 = vld [vmem:[#allocation6 + $0x188] sm:$0xff]  ;;  %v5409_v53 = vld [vmem:[#allocation6 + $0x2c0] sm:$0xff]  ;;  %8512 = vmatprep.subr.bf16.mxu0 %v8511_v57  ;;  %v5411_v30 = vld [vmem:[#allocation6 + $0x358] sm:$0xff]  ;;  %v8535_v57 = vpack.c.bf16 %v5427_v15, %v5425_v27 }
0x1aea   :  { %7893 = vmatprep.mubr.f32.mxu1 %v5151_v22  ;;  %v9043_v35 = vunpack.i.h.bf16 %v9041_v46  ;;  %v9042_v55 = vunpack.i.l.bf16 %v9041_v46  ;;  %8514 = vmatpush1.bf16.msra.mxu0 %v8513_v2  ;;  %v8517_v38 = vpack.c.bf16 %v5406_v39, %v5404_v52  ;;  %v8519_v22 = vpack.c.bf16 %v5411_v30, %v5409_v53  ;;  %v5410_v46 = vld [vmem:[#allocation6 + $0x350] sm:$0xff]  ;;  %v5424_v14 = vld [vmem:[#allocation6 + $0x778] sm:$0xff]  ;;  %v5428_v39 = vld [vmem:[#allocation6 + $0x8a8] sm:$0xff] }
0x1aeb   :  { %7894 = vmatmul.mubr.f32.gmra.mrb[112].mxu1 %v5152_v28  ;;  %8516 = vmatprep.subr.bf16.mxu0 %v8515_v5  ;;  %v5408_v28 = vld [vmem:[#allocation6 + $0x2b8] sm:$0xff]  ;;  %v5426_v37 = vld [vmem:[#allocation6 + $0x810] sm:$0xff]  ;;  %v5431_v5 = vld [vmem:[#allocation6 + $0x948] sm:$0xff] }
0x1aec   :  { %v5137_v56 = vsel %vm614_vm2, %v11242_v47, %v9042_v55  ;;  %v5138_v50 = vsel %vm614_vm2, %v11240_v61, %v9043_v35  ;;  %v5174_v61 = vrot.slane %v11565_v17, %v10717_v60  ;;  %v8521_v35 = vpack.c.bf16 %v5410_v46, %v5408_v28  ;;  %v5429_v2 = vld [vmem:[#allocation6 + $0x8b0] sm:$0xff]  ;;  %v5430_v53 = vld [vmem:[#allocation6 + $0x940] sm:$0xff]  ;;  %v5598_v15 = vld [vmem:[#allocation7 + $0x1e8] sm:$0xff] }
0x1aed   :  { %v5145_v32 = vsel %vm784_vm4, %v5137_v56, %v9047_v33  ;;  %v5146_v10 = vsel %vm784_vm4, %v5138_v50, %v9048_v16  ;;  %v8537_v25 = vpack.c.bf16 %v5426_v37, %v5424_v14  ;;  %v8539_v52 = vpack.c.bf16 %v5431_v5, %v5429_v2  ;;  %v5597_v27 = vld [vmem:[#allocation7 + $0x1e0] sm:$0xff] }
0x1aee   :  { %8518 = vmatpush1.bf16.msra.mxu0 %v8517_v38  ;;  %v8541_v30 = vpack.c.bf16 %v5430_v53, %v5428_v39  ;;  %v8567_v14 = vpack.c.bf16 %v5598_v15, %v5597_v27 }
0x1aef   :  { %8520 = vmatprep.subr.bf16.mxu0 %v8519_v22 }
0x1af2   :  { %8522 = vmatpush1.bf16.msra.mxu0 %v8521_v35 }
0x1b0d   :  { %v9051_v6 = vpop.permute.xlu1 %9050 }
0x1b0e   :  { %v9053_v1 = vunpack.i.h.bf16 %v9051_v6  ;;  %v9052_v20 = vunpack.i.l.bf16 %v9051_v6 }
0x1b10   :  { %v5153_v51 = vsel %vm2400_vm5, %v5145_v32, %v9052_v20  ;;  %v5154_v62 = vsel %vm2400_vm5, %v5146_v10, %v9053_v1 }
0x1b11   :  { %7896 = vmatprep.mubr.f32.mxu1 %v5153_v51 }
0x1b12   :  { %7897 = vmatmul.mubr.f32.gmra.mrb[114].mxu1 %v5154_v62 }
0x1bb1   :  { %v7889_v47 = vpop.f32.mrb[108].mxu1 }
0x1bb2   :  { %v5247_v13 = vadd.f32 %v7889_v47, %v5174_v61  ;;  %v5241_v41 = vpop.f32.mrb[109].mxu1 }
0x1bb3   :  { %v5242_v31 = vadd.f32 %v5241_v41, %v5174_v61 }
0x1bb4   :  { %v5281_v12 = vadd.f32 %v5247_v13, %v10738_v58 }
0x1bb5   :  { %v5280_v59 = vadd.f32 %v5242_v31, %v10730_v34  ;;  %v11970_v34 = vld [vmem:[#allocation22_spill] sm:$0xff] }
0x1bb6   :  { %5290 = vadd.xlane.f32.xlu1 %v5281_v12 }
0x1bb7   :  { %5288 = vadd.xlane.f32.xlu0 %v5280_v59 }
0x1bb9   :  { %v7892_v11 = vpop.f32.mrb[110].mxu1 }
0x1bba   :  { %v5251_v42 = vpop.f32.mrb[111].mxu1  ;;  %v5257_v7 = vadd.f32 %v7892_v11, %v5174_v61 }
0x1bbb   :  { %v5252_v3 = vadd.f32 %v5251_v42, %v5174_v61 }
0x1bbc   :  { %v5283_v49 = vadd.f32 %v5257_v7, %v11968_v24  ;;  %v5414_v24 = vld [vmem:[#allocation6 + $0x480] sm:$0xff] }
0x1bbd   :  { %v5282_v21 = vadd.f32 %v5252_v3, %v10746_v4 }
0x1bbe   :  { %v7895_v54 = vpop.f32.mrb[112].mxu1 }
0x1bbf   :  { %v5261_v0 = vpop.f32.mrb[113].mxu1  ;;  %5292 = vadd.xlane.f32.xlu0 %v5282_v21  ;;  %v5267_v40 = vadd.f32 %v7895_v54, %v5174_v61  ;;  %v5415_v54 = vld [vmem:[#allocation6 + $0x488] sm:$0xff] }
0x1bc0   :  { %v5262_v44 = vadd.f32 %v5261_v0, %v5174_v61 }
0x1bc1   :  { %v5285_v58 = vadd.f32 %v5267_v40, %v11970_v34  ;;  %v5417_v40 = vld [vmem:[#allocation6 + $0x520] sm:$0xff]  ;;  %v5416_v34 = vld [vmem:[#allocation6 + $0x518] sm:$0xff] }
0x1bc2   :  { %v5284_v26 = vadd.f32 %v5262_v44, %v11969_v36  ;;  %v5412_v44 = vld [vmem:[#allocation6 + $0x3e8] sm:$0xff]  ;;  %v5419_v36 = vld [vmem:[#allocation6 + $0x5b8] sm:$0xff] }
0x1bc3   :  { %5294 = vadd.xlane.f32.xlu0 %v5283_v49 }
0x1bc4   :  { %5296 = vadd.xlane.f32.xlu1 %v5284_v26 }
0x1bc7   :  { %5298 = vadd.xlane.f32.xlu0 %v5285_v58 }
0x1be5   :  { %v7898_v23 = vpop.f32.mrb[114].mxu1 }
0x1be6   :  { %v5277_v43 = vadd.f32 %v7898_v23, %v5174_v61  ;;  %v5271_v9 = vpop.f32.mrb[115].mxu1 }
0x1be7   :  { %v5272_v63 = vadd.f32 %v5271_v9, %v5174_v61  ;;  %v5423_v9 = vld [vmem:[#allocation6 + $0x6e8] sm:$0xff] }
0x1be8   :  { %v11576_v4 = vadd.f32 %v5277_v43, %v11971_v29  ;;  %v5421_v43 = vld [vmem:[#allocation6 + $0x650] sm:$0xff]  ;;  %v5420_v29 = vld [vmem:[#allocation6 + $0x648] sm:$0xff] }
0x1be9   :  { %v11579_v19 = vadd.f32 %v5272_v63, %v11972_v18  ;;  %v8531_v63 = vpack.c.bf16 %v5423_v9, %v5421_v43  ;;  %v5422_v18 = vld [vmem:[#allocation6 + $0x6e0] sm:$0xff]  ;;  %v5595_v43 = vld [vmem:[#allocation7 + $0x1d0] sm:$0xff]  ;;  %v5596_v9 = vld [vmem:[#allocation7 + $0x1d8] sm:$0xff] }
0x1bea   :  { %5302 = vadd.xlane.f32.xlu0 %v11576_v4  ;;  %v8533_v45 = vpack.c.bf16 %v5422_v18, %v5420_v29  ;;  %v8563_v29 = vpack.c.bf16 %v5596_v9, %v5595_v43  ;;  %v5579_v18 = vld [vmem:[#allocation7 + $0x150] sm:$0xff] }
0x1beb   :  { %5300 = vadd.xlane.f32.xlu1 %v11579_v19 }
0x1c43   :  { %v5291_v55 = vpop.xlane.xlu1 %5290 }
0x1c44   :  { %v5305_v48 = vmul.f32 0.0078125, %v5291_v55  ;;  %v5289_v56 = vpop.xlane.xlu0 %5288 }
0x1c45   :  { %v5304_v50 = vmul.f32 0.0078125, %v5289_v56 }
0x1c46   :  { %v11583_v16 = vsub.f32 %v5281_v12, %v5305_v48 }
0x1c47   :  { %v11585_v33 = vsub.f32 %v5280_v59, %v5304_v50  ;;  %v5585_v50 = vld [vmem:[#allocation7 + $0x180] sm:$0xff] }
0x1c48   :  { %v5321_v6 = vmul.f32 %v11583_v16, %v11583_v16 }
0x1c49   :  { %v5320_v1 = vmul.f32 %v11585_v33, %v11585_v33 }
0x1c4a   :  { %5330 = vadd.xlane.f32.xlu0 %v5321_v6  ;;  %v5586_v6 = vld [vmem:[#allocation7 + $0x188] sm:$0xff] }
0x1c4b   :  { %5328 = vadd.xlane.f32.xlu1 %v5320_v1  ;;  %v5569_v1 = vld [vmem:[#allocation7 + $0x100] sm:$0xff] }
0x1c4c   :  { %v5293_v20 = vpop.xlane.xlu0 %5292 }
0x1c4d   :  { %v5306_v32 = vmul.f32 0.0078125, %v5293_v20  ;;  %v8543_v20 = vpack.c.bf16 %v5586_v6, %v5585_v50 }
0x1c4f   :  { %v11591_v10 = vsub.f32 %v5282_v21, %v5306_v32  ;;  %v5413_v21 = vld [vmem:[#allocation6 + $0x3f0] sm:$0xff]  ;;  %v5570_v32 = vld [vmem:[#allocation7 + $0x108] sm:$0xff]  ;;  %8544 = vmatprep.subr.bf16.mxu1 %v8543_v20 }
0x1c50   :  { %v5295_v51 = vpop.xlane.xlu0 %5294  ;;  %v8523_v0 = vpack.c.bf16 %v5415_v54, %v5413_v21  ;;  %v5591_v21 = vld [vmem:[#allocation7 + $0x1b0] sm:$0xff]  ;;  %v5592_v54 = vld [vmem:[#allocation7 + $0x1b8] sm:$0xff] }
0x1c51   :  { %v5307_v62 = vmul.f32 0.0078125, %v5295_v51  ;;  %v5297_v61 = vpop.xlane.xlu1 %5296  ;;  %v5322_v47 = vmul.f32 %v11591_v10, %v11591_v10  ;;  %v5587_v51 = vld [vmem:[#allocation7 + $0x190] sm:$0xff] }
0x1c52   :  { %v5308_v13 = vmul.f32 0.0078125, %v5297_v61  ;;  %8524 = vmatprep.subr.bf16.mxu0 %v8523_v0  ;;  %v11974_v20 = vld [vmem:[#allocation19_spill] sm:$0xff] }
0x1c53   :  { %v11595_v41 = vsub.f32 %v5283_v49, %v5307_v62  ;;  %5332 = vadd.xlane.f32.xlu1 %v5322_v47  ;;  %v8525_v49 = vpack.c.bf16 %v5414_v24, %v5412_v44  ;;  %v5588_v62 = vld [vmem:[#allocation7 + $0x198] sm:$0xff]  ;;  %v5571_v47 = vld [vmem:[#allocation7 + $0x110] sm:$0xff]  ;;  %v8555_v44 = vpack.c.bf16 %v5592_v54, %v5591_v21 }
0x1c54   :  { %v11597_v31 = vsub.f32 %v5284_v26, %v5308_v13  ;;  %v5299_v12 = vpop.xlane.xlu0 %5298  ;;  %v8527_v26 = vpack.c.bf16 %v5419_v36, %v5417_v40  ;;  %v8547_v61 = vpack.c.bf16 %v5588_v62, %v5587_v51  ;;  %v5589_v13 = vld [vmem:[#allocation7 + $0x1a0] sm:$0xff]  ;;  %v5575_v24 = vld [vmem:[#allocation7 + $0x130] sm:$0xff]  ;;  %v5594_v36 = vld [vmem:[#allocation7 + $0x1c8] sm:$0xff] }
0x1c55   :  { %v5309_v59 = vmul.f32 0.0078125, %v5299_v12  ;;  %v5323_v11 = vmul.f32 %v11595_v41, %v11595_v41  ;;  %8526 = vmatpush1.bf16.msra.mxu0 %v8525_v49  ;;  %v5590_v12 = vld [vmem:[#allocation7 + $0x1a8] sm:$0xff]  ;;  %v5576_v49 = vld [vmem:[#allocation7 + $0x138] sm:$0xff]  ;;  %v5593_v40 = vld [vmem:[#allocation7 + $0x1c0] sm:$0xff] }
0x1c56   :  { %v5324_v42 = vmul.f32 %v11597_v31, %v11597_v31  ;;  %8528 = vmatprep.subr.bf16.mxu0 %v8527_v26  ;;  %v8557_v26 = vpack.c.bf16 %v5576_v49, %v5575_v24 }
0x1c57   :  { %v11603_v3 = vsub.f32 %v5285_v58, %v5309_v59  ;;  %5334 = vadd.xlane.f32.xlu0 %v5323_v11  ;;  %v5418_v58 = vld [vmem:[#allocation6 + $0x5b0] sm:$0xff]  ;;  %v8551_v11 = vpack.c.bf16 %v5590_v12, %v5589_v13 }
0x1c58   :  { %5336 = vadd.xlane.f32.xlu1 %v5324_v42  ;;  %v8529_v23 = vpack.c.bf16 %v5418_v58, %v5416_v34  ;;  %v5573_v42 = vld [vmem:[#allocation7 + $0x120] sm:$0xff]  ;;  %v8559_v34 = vpack.c.bf16 %v5594_v36, %v5593_v40 }
0x1c59   :  { %v5325_v7 = vmul.f32 %v11603_v3, %v11603_v3  ;;  %v5577_v58 = vld [vmem:[#allocation7 + $0x140] sm:$0xff] }
0x1c5a   :  { %8530 = vmatpush1.bf16.msra.mxu0 %v8529_v23  ;;  %v5578_v23 = vld [vmem:[#allocation7 + $0x148] sm:$0xff] }
0x1c5b   :  { %5338 = vadd.xlane.f32.xlu0 %v5325_v7  ;;  %8532 = vmatprep.subr.bf16.mxu0 %v8531_v63  ;;  %v5574_v7 = vld [vmem:[#allocation7 + $0x128] sm:$0xff]  ;;  %v8561_v63 = vpack.c.bf16 %v5578_v23, %v5577_v58 }
0x1c5c   :  { %v8553_v0 = vpack.c.bf16 %v5574_v7, %v5573_v42 }
0x1c5e   :  { %8534 = vmatpush1.bf16.msra.mxu0 %v8533_v45  ;;  %v5580_v45 = vld [vmem:[#allocation7 + $0x158] sm:$0xff] }
0x1c5f   :  { %8536 = vmatprep.subr.bf16.mxu0 %v8535_v57  ;;  %v8565_v57 = vpack.c.bf16 %v5580_v45, %v5579_v18 }
0x1c62   :  { %8538 = vmatpush1.bf16.msra.mxu0 %v8537_v25 }
0x1c63   :  { %8540 = vmatprep.subr.bf16.mxu0 %v8539_v52 }
0x1c66   :  { %8542 = vmatpush1.bf16.msra.mxu0 %v8541_v30 }
0x1c77   :  { %v5303_v38 = vpop.xlane.xlu0 %5302 }
0x1c78   :  { %v5311_v22 = vmul.f32 0.0078125, %v5303_v38  ;;  %v5301_v28 = vpop.xlane.xlu1 %5300 }
0x1c79   :  { %v5310_v46 = vmul.f32 0.0078125, %v5301_v28  ;;  %v11973_v28 = vld [vmem:[#allocation13_spill] sm:$0xff] }
0x1c7a   :  { %v11608_v35 = vsub.f32 %v11576_v4, %v5311_v22  ;;  %v8545_v4 = vpack.c.bf16 %v5570_v32, %v5569_v1  ;;  %v11620_v1 = vld [vmem:[#allocation9 + $0x18] sm:$0xff] }
0x1c7b   :  { %v11611_v55 = vsub.f32 %v11579_v19, %v5310_v46  ;;  %v5572_v19 = vld [vmem:[#allocation7 + $0x118] sm:$0xff]  ;;  %v11618_v46 = vsub.s32 7, %v11973_v28  ;;  %v5379_v32 = vrot.slane %v11620_v1, %v11974_v20 }
0x1c7c   :  { %v5327_v48 = vmul.f32 %v11608_v35, %v11608_v35  ;;  %8546 = vmatpush3.bf16.msra.mxu1 %v8545_v4  ;;  %v8549_v59 = vpack.c.bf16 %v5572_v19, %v5571_v47 }
0x1c7d   :  { %v5326_v56 = vmul.f32 %v11611_v55, %v11611_v55  ;;  %8548 = vmatprep.subr.bf16.mxu1 %v8547_v61  ;;  %v5391_v19 = vrot.slane %v11620_v1, %v11618_v46 }
0x1c7e   :  { %5342 = vadd.xlane.f32.xlu0 %v5327_v48 }
0x1c7f   :  { %5340 = vadd.xlane.f32.xlu1 %v5326_v56 }
0x1c80   :  { %8550 = vmatpush3.bf16.msra.mxu1 %v8549_v59 }
0x1c81   :  { %8552 = vmatprep.subr.bf16.mxu1 %v8551_v11 }
0x1c84   :  { %8554 = vmatpush3.bf16.msra.mxu1 %v8553_v0 }
0x1c85   :  { %8556 = vmatprep.subr.bf16.mxu1 %v8555_v44 }
0x1c88   :  { %8558 = vmatpush3.bf16.msra.mxu1 %v8557_v26 }
0x1c89   :  { %8560 = vmatprep.subr.bf16.mxu1 %v8559_v34 }
0x1c8c   :  { %8562 = vmatpush3.bf16.msra.mxu1 %v8561_v63 }
0x1c8d   :  { %8564 = vmatprep.subr.bf16.mxu1 %v8563_v29 }
0x1c90   :  { %8566 = vmatpush3.bf16.msra.mxu1 %v8565_v57 }
0x1c91   :  { %8568 = vmatprep.subr.bf16.mxu1 %v8567_v14 }
0x1cd7   :  { %v5331_v37 = vpop.xlane.xlu0 %5330 }
0x1cd8   :  { %v5345_v25 = vmul.f32 0.0078125, %v5331_v37  ;;  %v5329_v2 = vpop.xlane.xlu1 %5328 }
0x1cd9   :  { %v5344_v5 = vmul.f32 0.0078125, %v5329_v2 }
0x1cda   :  { %v5353_v52 = vadd.f32 1e-05, %v5345_v25 }
0x1cdb   :  { %v5352_v39 = vadd.f32 1e-05, %v5344_v5  ;;  %v5581_v5 = vld [vmem:[#allocation7 + $0x160] sm:$0xff] }
0x1cdc   :  { %9344 = vrsqrt.f32 %v5353_v52  ;;  %v5582_v52 = vld [vmem:[#allocation7 + $0x168] sm:$0xff] }
0x1cdd   :  { %9346 = vrsqrt.f32 %v5352_v39  ;;  %v8569_v39 = vpack.c.bf16 %v5582_v52, %v5581_v5 }
0x1cdf   :  { %8570 = vmatpush3.bf16.msra.mxu1 %v8569_v39 }
0x1ce0   :  { %v5333_v53 = vpop.xlane.xlu1 %5332 }
0x1ce1   :  { %v5346_v30 = vmul.f32 0.0078125, %v5333_v53 }
0x1ce3   :  { %v5354_v38 = vadd.f32 1e-05, %v5346_v30  ;;  %v5583_v30 = vld [vmem:[#allocation7 + $0x170] sm:$0xff] }
0x1ce4   :  { %v5335_v22 = vpop.xlane.xlu0 %5334 }
0x1ce5   :  { %9348 = vrsqrt.f32 %v5354_v38  ;;  %v5347_v48 = vmul.f32 0.0078125, %v5335_v22  ;;  %v5337_v56 = vpop.xlane.xlu1 %5336  ;;  %v5584_v38 = vld [vmem:[#allocation7 + $0x178] sm:$0xff] }
0x1ce6   :  { %v9345_v50 = vpop.eup %9344  ;;  %v5348_v6 = vmul.f32 0.0078125, %v5337_v56  ;;  %v8573_v22 = vpack.c.bf16 %v5584_v38, %v5583_v30  ;;  %v9406_v56 = vld [vmem:[#allocation9 + $0x8] sm:$0xff] }
0x1ce7   :  { %v9347_v51 = vpop.eup %9346  ;;  %v5355_v62 = vadd.f32 1e-05, %v5347_v48  ;;  %v5369_v13 = vmul.f32 %v9345_v50, %v11583_v16  ;;  %v5435_v48 = vrot.slane %v11565_v17, %v11618_v46  ;;  %v5439_v50 = vrot.slane %v9406_v56, %v11618_v46 }
0x1ce8   :  { %v5368_v4 = vmul.f32 %v9347_v51, %v11585_v33  ;;  %v5356_v61 = vadd.f32 1e-05, %v5348_v6  ;;  %v5339_v47 = vpop.xlane.xlu0 %5338 }
0x1ce9   :  { %9350 = vrsqrt.f32 %v5355_v62  ;;  %v5349_v12 = vmul.f32 0.0078125, %v5339_v47  ;;  %v5381_v7 = vmul.f32 %v5379_v32, %v5369_v13 }
0x1cea   :  { %9352 = vrsqrt.f32 %v5356_v61  ;;  %v5380_v59 = vmul.f32 %v5379_v32, %v5368_v4 }
0x1ceb   :  { %v5357_v11 = vadd.f32 1e-05, %v5349_v12  ;;  %v11632_v33 = vadd.f32 %v5391_v19, %v5381_v7 }
0x1cec   :  { %v11628_v42 = vadd.f32 %v5391_v19, %v5380_v59 }
0x1ced   :  { %9354 = vrsqrt.f32 %v5357_v11 }
0x1cee   :  { %5505 = vmatmul.mubr.f32.vlgmr.msra.gmra.mrb[116].mxu0 %v11628_v42 }
0x1cef   :  { %v9349_v21 = vpop.eup %9348  ;;  %5510 = vmatprep.mubr.f32.mxu0 %v11952_v8 }
0x1cf0   :  { %v5370_v54 = vmul.f32 %v9349_v21, %v11591_v10 }
0x1cf2   :  { %5511 = vmatmul.mubr.f32.gmra.mrb[118].mxu0 %v11632_v33  ;;  %v5382_v16 = vmul.f32 %v5379_v32, %v5370_v54 }
0x1cf3   :  { %v9351_v0 = vpop.eup %9350  ;;  %5516 = vmatprep.mubr.f32.mxu0 %v11952_v8 }
0x1cf4   :  { %v9353_v44 = vpop.eup %9352  ;;  %v11637_v24 = vadd.f32 %v5391_v19, %v5382_v16  ;;  %v5371_v49 = vmul.f32 %v9351_v0, %v11595_v41 }
0x1cf5   :  { %v5372_v40 = vmul.f32 %v9353_v44, %v11597_v31 }
0x1cf6   :  { %5517 = vmatmul.mubr.f32.gmra.mrb[120].mxu0 %v11637_v24  ;;  %v5383_v36 = vmul.f32 %v5379_v32, %v5371_v49 }
0x1cf7   :  { %v9355_v26 = vpop.eup %9354  ;;  %5522 = vmatprep.mubr.f32.mxu0 %v11952_v8  ;;  %v5384_v34 = vmul.f32 %v5379_v32, %v5372_v40 }
0x1cf8   :  { %v11643_v10 = vadd.f32 %v5391_v19, %v5383_v36  ;;  %v5373_v58 = vmul.f32 %v9355_v26, %v11603_v3 }
0x1cf9   :  { %v11648_v23 = vadd.f32 %v5391_v19, %v5384_v34 }
0x1cfa   :  { %5523 = vmatmul.mubr.f32.gmra.mrb[122].mxu0 %v11643_v10  ;;  %v5385_v41 = vmul.f32 %v5379_v32, %v5373_v58 }
0x1cfb   :  { %5528 = vmatprep.mubr.f32.mxu0 %v11952_v8 }
0x1cfc   :  { %v11652_v31 = vadd.f32 %v5391_v19, %v5385_v41 }
0x1cfe   :  { %5529 = vmatmul.mubr.f32.gmra.mrb[124].mxu0 %v11648_v23 }
0x1cff   :  { %5534 = vmatprep.mubr.f32.mxu0 %v11952_v8 }
0x1d02   :  { %5535 = vmatmul.mubr.f32.gmra.mrb[126].mxu0 %v11652_v31 }
0x1d03   :  { %5540 = vmatprep.mubr.f32.mxu0 %v11952_v8 }
0x1d0b   :  { %v5343_v43 = vpop.xlane.xlu0 %5342 }
0x1d0c   :  { %v5351_v9 = vmul.f32 0.0078125, %v5343_v43  ;;  %v5341_v3 = vpop.xlane.xlu1 %5340 }
0x1d0d   :  { %v5350_v63 = vmul.f32 0.0078125, %v5341_v3 }
0x1d0e   :  { %v5359_v29 = vadd.f32 1e-05, %v5351_v9 }
0x1d0f   :  { %v5358_v18 = vadd.f32 1e-05, %v5350_v63 }
0x1d10   :  { %9356 = vrsqrt.f32 %v5359_v29 }
0x1d11   :  { %9358 = vrsqrt.f32 %v5358_v18 }
0x1d1a   :  { %v9357_v45 = vpop.eup %9356 }
0x1d1b   :  { %v9359_v27 = vpop.eup %9358  ;;  %v5375_v57 = vmul.f32 %v9357_v45, %v11608_v35  ;;  %v5600_v35 = vld [vmem:[#allocation7 + $0x1f8] sm:$0xff] }
0x1d1c   :  { %v5374_v15 = vmul.f32 %v9359_v27, %v11611_v55  ;;  %v5599_v55 = vld [vmem:[#allocation7 + $0x1f0] sm:$0xff] }
0x1d1d   :  { %v5387_v25 = vmul.f32 %v5379_v32, %v5375_v57  ;;  %v8571_v53 = vpack.c.bf16 %v5600_v35, %v5599_v55 }
0x1d1e   :  { %v5386_v14 = vmul.f32 %v5379_v32, %v5374_v15 }
0x1d1f   :  { %v11662_v2 = vadd.f32 %v5391_v19, %v5387_v25  ;;  %8572 = vmatprep.subr.bf16.mxu1 %v8571_v53 }
0x1d20   :  { %v11658_v37 = vadd.f32 %v5391_v19, %v5386_v14  ;;  %8574 = vmatpush3.bf16.msra.mxu1 %v8573_v22 }
0x1d22   :  { %5541 = vmatmul.mubr.f32.gmra.mrb[128].mxu0 %v11658_v37 }
0x1d23   :  { %5546 = vmatprep.mubr.f32.mxu0 %v11952_v8 }
0x1d26   :  { %5547 = vmatmul.mubr.f32.gmra.mrb[130].mxu0 %v11662_v2 }
0x1d27   :  { %5990 = vmatprep.mubr.f32.mxu0 %v11952_v8 }
0x1dc1   :  { %v5506_v6 = vpop.f32.mrb[116].mxu0 }
0x1dc2   :  { %v5507_v32 = vadd.f32 %v5506_v6, %v5435_v48  ;;  %v5508_v51 = vpop.f32.mrb[117].mxu0 }
0x1dc3   :  { %v5509_v62 = vadd.f32 %v5508_v51, %v5439_v50 }
0x1dc4   :  { %v5553_v47 = vmax.f32 %v5507_v32, 0.0  ;;  %v11975_v32 = vld [vmem:[#allocation15_spill] sm:$0xff] }
0x1dc5   :  { %v5554_v4 = vmax.f32 %v5509_v62, 0.0  ;;  %v5512_v61 = vpop.f32.mrb[118].mxu0  ;;  %v5604_v51 = vrot.slane %v11620_v1, %v11975_v32 }
0x1dc6   :  { %v5513_v19 = vadd.f32 %v5512_v61, %v5435_v48  ;;  %v5514_v13 = vpop.f32.mrb[119].mxu0 }
0x1dc7   :  { %v5515_v12 = vadd.f32 %v5514_v13, %v5439_v50  ;;  %5669 = vmatprep.mubr.f32.mxu1 %v5554_v4 }
0x1dc8   :  { %5670 = vmatmul.mubr.f32.vlgmr.msra.gmra.mrb[116].mxu1 %v5553_v47  ;;  %v5555_v7 = vmax.f32 %v5513_v19, 0.0 }
0x1dc9   :  { %v5556_v59 = vmax.f32 %v5515_v12, 0.0  ;;  %v5518_v11 = vpop.f32.mrb[120].mxu0 }
0x1dca   :  { %v5519_v21 = vadd.f32 %v5518_v11, %v5435_v48  ;;  %v5520_v17 = vpop.f32.mrb[121].mxu0 }
0x1dcb   :  { %v5521_v54 = vadd.f32 %v5520_v17, %v5439_v50  ;;  %5674 = vmatprep.mubr.f32.mxu1 %v5556_v59 }
0x1dcc   :  { %5675 = vmatmul.mubr.f32.gmra.mrb[118].mxu1 %v5555_v7  ;;  %v5557_v44 = vmax.f32 %v5519_v21, 0.0 }
0x1dcd   :  { %v5558_v16 = vmax.f32 %v5521_v54, 0.0  ;;  %v5524_v0 = vpop.f32.mrb[122].mxu0 }
0x1dce   :  { %v5525_v49 = vadd.f32 %v5524_v0, %v5435_v48  ;;  %v5526_v40 = vpop.f32.mrb[123].mxu0 }
0x1dcf   :  { %v5527_v36 = vadd.f32 %v5526_v40, %v5439_v50  ;;  %5679 = vmatprep.mubr.f32.mxu1 %v5558_v16 }
0x1dd0   :  { %5680 = vmatmul.mubr.f32.gmra.mrb[120].mxu1 %v5557_v44  ;;  %v5559_v58 = vmax.f32 %v5525_v49, 0.0 }
0x1dd1   :  { %v5560_v26 = vmax.f32 %v5527_v36, 0.0  ;;  %v5530_v34 = vpop.f32.mrb[124].mxu0 }
0x1dd2   :  { %v5531_v41 = vadd.f32 %v5530_v34, %v5435_v48  ;;  %v5532_v43 = vpop.f32.mrb[125].mxu0 }
0x1dd3   :  { %v5533_v9 = vadd.f32 %v5532_v43, %v5439_v50  ;;  %5684 = vmatprep.mubr.f32.mxu1 %v5560_v26 }
0x1dd4   :  { %5685 = vmatmul.mubr.f32.gmra.mrb[122].mxu1 %v5559_v58  ;;  %v5561_v29 = vmax.f32 %v5531_v41, 0.0 }
0x1dd5   :  { %v5562_v3 = vmax.f32 %v5533_v9, 0.0  ;;  %v5536_v63 = vpop.f32.mrb[126].mxu0 }
0x1dd6   :  { %v5537_v18 = vadd.f32 %v5536_v63, %v5435_v48  ;;  %v5538_v45 = vpop.f32.mrb[127].mxu0 }
0x1dd7   :  { %v5539_v27 = vadd.f32 %v5538_v45, %v5439_v50  ;;  %5689 = vmatprep.mubr.f32.mxu1 %v5562_v3 }
0x1dd8   :  { %5690 = vmatmul.mubr.f32.gmra.mrb[124].mxu1 %v5561_v29  ;;  %v5563_v57 = vmax.f32 %v5537_v18, 0.0 }
0x1dd9   :  { %v5564_v15 = vmax.f32 %v5539_v27, 0.0 }
0x1ddb   :  { %5694 = vmatprep.mubr.f32.mxu1 %v5564_v15  ;;  %v5837_v15 = vld [vmem:[#allocation6 + $0x108] sm:$0xff] }
0x1ddc   :  { %5695 = vmatmul.mubr.f32.gmra.mrb[126].mxu1 %v5563_v57  ;;  %v5833_v57 = vld [vmem:[#allocation6 + $0x80] sm:$0xff] }
0x1df5   :  { %v5542_v14 = vpop.f32.mrb[128].mxu0 }
0x1df6   :  { %v5543_v25 = vadd.f32 %v5542_v14, %v5435_v48  ;;  %v5544_v5 = vpop.f32.mrb[129].mxu0 }
0x1df7   :  { %v5545_v52 = vadd.f32 %v5544_v5, %v5439_v50  ;;  %v5830_v5 = vld [vmem:[#allocation6 + $0x68] sm:$0xff] }
0x1df8   :  { %v5565_v35 = vmax.f32 %v5543_v25, 0.0  ;;  %v5839_v25 = vld [vmem:[#allocation6 + $0x118] sm:$0xff] }
0x1df9   :  { %v5566_v39 = vmax.f32 %v5545_v52, 0.0  ;;  %v5548_v55 = vpop.f32.mrb[130].mxu0  ;;  %v5836_v52 = vld [vmem:[#allocation6 + $0x100] sm:$0xff] }
0x1dfa   :  { %v5549_v53 = vadd.f32 %v5548_v55, %v5435_v48  ;;  %v5550_v30 = vpop.f32.mrb[131].mxu0  ;;  %v8577_v55 = vpack.c.bf16 %v5836_v52, %v5830_v5  ;;  %v5867_v5 = vld [vmem:[#allocation6 + $0x400] sm:$0xff]  ;;  %v5873_v52 = vld [vmem:[#allocation6 + $0x498] sm:$0xff] }
0x1dfb   :  { %v5551_v38 = vadd.f32 %v5550_v30, %v5439_v50  ;;  %5699 = vmatprep.mubr.f32.mxu1 %v5566_v39  ;;  %v8607_v39 = vpack.c.bf16 %v5839_v25, %v5833_v57 }
0x1dfc   :  { %5700 = vmatmul.mubr.f32.gmra.mrb[128].mxu1 %v5565_v35  ;;  %v5567_v56 = vmax.f32 %v5549_v53, 0.0  ;;  %v5832_v35 = vld [vmem:[#allocation6 + $0x78] sm:$0xff]  ;;  %v5843_v53 = vld [vmem:[#allocation6 + $0x1a0] sm:$0xff] }
0x1dfd   :  { %v5568_v22 = vmax.f32 %v5551_v38, 0.0  ;;  %v5849_v38 = vld [vmem:[#allocation6 + $0x238] sm:$0xff]  ;;  %8608 = vmatprep.subr.bf16.mxu1 %v8607_v39  ;;  %v5869_v39 = vld [vmem:[#allocation6 + $0x410] sm:$0xff] }
0x1dff   :  { %5704 = vmatprep.mubr.f32.mxu1 %v5568_v22  ;;  %v5845_v22 = vld [vmem:[#allocation6 + $0x1b0] sm:$0xff] }
0x1e00   :  { %5705 = vmatmul.mubr.f32.gmra.mrb[130].mxu1 %v5567_v56  ;;  %v8579_v56 = vpack.c.bf16 %v5849_v38, %v5843_v53  ;;  %v5868_v38 = vld [vmem:[#allocation6 + $0x408] sm:$0xff] }
0x1e01   :  { %6095 = vmatprep.mubr.f32.mxu1 %v11952_v8 }
0x1e9b   :  { %v7203_v6 = vpop.f32.mrb[116].mxu1 }
0x1e9c   :  { %v7204_v62 = vpop.f32.mrb[117].mxu1 }
0x1e9d   :  { %v7205_v4 = vadd.f32 %v7204_v62, %v7203_v6  ;;  %v5848_v62 = vld [vmem:[#allocation6 + $0x230] sm:$0xff] }
0x1e9f   :  { %v5672_v61 = vadd.f32 %v7205_v4, %v5604_v51  ;;  %v7206_v47 = vpop.f32.mrb[118].mxu1  ;;  %v5844_v4 = vld [vmem:[#allocation6 + $0x1a8] sm:$0xff] }
0x1ea0   :  { %v7207_v19 = vpop.f32.mrb[119].mxu1 }
0x1ea1   :  { %v7208_v48 = vadd.f32 %v7207_v19, %v7206_v47  ;;  %v11673_v50 = vadd.f32 %v5672_v61, %v11628_v42  ;;  %v5850_v47 = vld [vmem:[#allocation6 + $0x240] sm:$0xff]  ;;  %v5855_v19 = vld [vmem:[#allocation6 + $0x2d0] sm:$0xff] }
0x1ea3   :  { %v5677_v13 = vadd.f32 %v7208_v48, %v5604_v51  ;;  %5718 = vadd.xlane.f32.xlu1 %v11673_v50  ;;  %v7209_v12 = vpop.f32.mrb[120].mxu1  ;;  %v5861_v48 = vld [vmem:[#allocation6 + $0x368] sm:$0xff] }
0x1ea4   :  { %v7210_v59 = vpop.f32.mrb[121].mxu1 }
0x1ea5   :  { %v7211_v11 = vadd.f32 %v7210_v59, %v7209_v12  ;;  %v11677_v7 = vadd.f32 %v5677_v13, %v11632_v33  ;;  %v8613_v13 = vpack.c.bf16 %v5850_v47, %v5844_v4  ;;  %v8583_v12 = vpack.c.bf16 %v5861_v48, %v5855_v19  ;;  %v5857_v59 = vld [vmem:[#allocation6 + $0x2e0] sm:$0xff] }
0x1ea6   :  { %v5884_v47 = vld [vmem:[#allocation6 + $0x5c0] sm:$0xff] }
0x1ea7   :  { %v5682_v21 = vadd.f32 %v7211_v11, %v5604_v51  ;;  %5720 = vadd.xlane.f32.xlu0 %v11677_v7  ;;  %v7212_v1 = vpop.f32.mrb[122].mxu1  ;;  %v5863_v11 = vld [vmem:[#allocation6 + $0x378] sm:$0xff] }
0x1ea8   :  { %v7213_v17 = vpop.f32.mrb[123].mxu1 }
0x1ea9   :  { %v7214_v54 = vadd.f32 %v7213_v17, %v7212_v1  ;;  %v11681_v16 = vadd.f32 %v5682_v21, %v11637_v24  ;;  %v5854_v21 = vld [vmem:[#allocation6 + $0x2c8] sm:$0xff]  ;;  %v8615_v1 = vpack.c.bf16 %v5863_v11, %v5857_v59  ;;  %v5860_v17 = vld [vmem:[#allocation6 + $0x360] sm:$0xff] }
0x1eaa   :  { %v5891_v11 = vld [vmem:[#allocation6 + $0x660] sm:$0xff] }
0x1eab   :  { %v5687_v42 = vadd.f32 %v7214_v54, %v5604_v51  ;;  %5722 = vadd.xlane.f32.xlu1 %v11681_v16  ;;  %v7215_v0 = vpop.f32.mrb[124].mxu1  ;;  %v5856_v54 = vld [vmem:[#allocation6 + $0x2d8] sm:$0xff] }
0x1eac   :  { %v7216_v44 = vpop.f32.mrb[125].mxu1 }
0x1ead   :  { %v7217_v49 = vadd.f32 %v7216_v44, %v7215_v0  ;;  %v11685_v40 = vadd.f32 %v5687_v42, %v11643_v10  ;;  %v5862_v42 = vld [vmem:[#allocation6 + $0x370] sm:$0xff]  ;;  %v8585_v0 = vpack.c.bf16 %v5860_v17, %v5854_v21  ;;  %v5897_v21 = vld [vmem:[#allocation6 + $0x6f8] sm:$0xff] }
0x1eae   :  { %v8617_v44 = vpack.c.bf16 %v5862_v42, %v5856_v54  ;;  %v8595_v17 = vpack.c.bf16 %v5897_v21, %v5891_v11  ;;  %v5899_v54 = vld [vmem:[#allocation6 + $0x708] sm:$0xff]  ;;  %v5890_v42 = vld [vmem:[#allocation6 + $0x658] sm:$0xff] }
0x1eaf   :  { %v5692_v33 = vadd.f32 %v7217_v49, %v5604_v51  ;;  %5724 = vadd.xlane.f32.xlu0 %v11685_v40  ;;  %v7218_v36 = vpop.f32.mrb[126].mxu1 }
0x1eb0   :  { %v7219_v26 = vpop.f32.mrb[127].mxu1 }
0x1eb1   :  { %v7220_v34 = vadd.f32 %v7219_v26, %v7218_v36  ;;  %v11689_v58 = vadd.f32 %v5692_v33, %v11648_v23 }
0x1eb3   :  { %v5697_v24 = vadd.f32 %v7220_v34, %v5604_v51  ;;  %5726 = vadd.xlane.f32.xlu1 %v11689_v58 }
0x1eb5   :  { %v11693_v41 = vadd.f32 %v5697_v24, %v11652_v31  ;;  %v5831_v31 = vld [vmem:[#allocation6 + $0x70] sm:$0xff] }
0x1eb6   :  { %v8575_v14 = vpack.c.bf16 %v5837_v15, %v5831_v31 }
0x1eb7   :  { %5728 = vadd.xlane.f32.xlu0 %v11693_v41 }
0x1eb8   :  { %8576 = vmatprep.subr.bf16.mxu0 %v8575_v14 }
0x1eb9   :  { %8578 = vmatpush1.bf16.msra.mxu0 %v8577_v55  ;;  %v5875_v55 = vld [vmem:[#allocation6 + $0x4a8] sm:$0xff] }
0x1eba   :  { %8580 = vmatprep.subr.bf16.mxu0 %v8579_v56 }
0x1ecf   :  { %v7221_v43 = vpop.f32.mrb[128].mxu1 }
0x1ed0   :  { %v7222_v10 = vpop.f32.mrb[129].mxu1 }
0x1ed1   :  { %v7223_v9 = vadd.f32 %v7222_v10, %v7221_v43 }
0x1ed3   :  { %v5702_v3 = vadd.f32 %v7223_v9, %v5604_v51  ;;  %v7224_v63 = vpop.f32.mrb[130].mxu1 }
0x1ed4   :  { %v7225_v29 = vpop.f32.mrb[131].mxu1 }
0x1ed5   :  { %v7226_v18 = vadd.f32 %v7225_v29, %v7224_v63  ;;  %v11697_v45 = vadd.f32 %v5702_v3, %v11658_v37  ;;  %v5838_v37 = vld [vmem:[#allocation6 + $0x110] sm:$0xff] }
0x1ed6   :  { %v8609_v30 = vpack.c.bf16 %v5838_v37, %v5832_v35  ;;  %v5866_v35 = vld [vmem:[#allocation6 + $0x3f8] sm:$0xff]  ;;  %v5872_v37 = vld [vmem:[#allocation6 + $0x490] sm:$0xff] }
0x1ed7   :  { %v5707_v23 = vadd.f32 %v7226_v18, %v5604_v51  ;;  %5730 = vadd.xlane.f32.xlu1 %v11697_v45  ;;  %v5842_v51 = vld [vmem:[#allocation6 + $0x198] sm:$0xff] }
0x1ed8   :  { %8610 = vmatpush1.bf16.msra.mxu1 %v8609_v30  ;;  %v8581_v61 = vpack.c.bf16 %v5848_v62, %v5842_v51  ;;  %v8619_v30 = vpack.c.bf16 %v5875_v55, %v5869_v39  ;;  %v5885_v51 = vld [vmem:[#allocation6 + $0x5c8] sm:$0xff]  ;;  %v5881_v62 = vld [vmem:[#allocation6 + $0x540] sm:$0xff]  ;;  %v5914_v55 = vld [vmem:[#allocation6 + $0x8b8] sm:$0xff] }
0x1ed9   :  { %v11701_v27 = vadd.f32 %v5707_v23, %v11662_v2  ;;  %v5851_v2 = vld [vmem:[#allocation6 + $0x248] sm:$0xff] }
0x1eda   :  { %v8611_v6 = vpack.c.bf16 %v5851_v2, %v5845_v22  ;;  %8582 = vmatpush1.bf16.msra.mxu0 %v8581_v61  ;;  %v5874_v22 = vld [vmem:[#allocation6 + $0x4a0] sm:$0xff]  ;;  %v5887_v61 = vld [vmem:[#allocation6 + $0x5d8] sm:$0xff] }
0x1edb   :  { %5732 = vadd.xlane.f32.xlu0 %v11701_v27  ;;  %8584 = vmatprep.subr.bf16.mxu0 %v8583_v12  ;;  %v8621_v2 = vpack.c.bf16 %v5874_v22, %v5868_v38  ;;  %v8623_v19 = vpack.c.bf16 %v5887_v61, %v5881_v62  ;;  %v5886_v12 = vld [vmem:[#allocation6 + $0x5d0] sm:$0xff]  ;;  %v5922_v38 = vld [vmem:[#allocation6 + $0x960] sm:$0xff] }
0x1edc   :  { %8612 = vmatprep.subr.bf16.mxu1 %v8611_v6  ;;  %v5879_v6 = vld [vmem:[#allocation6 + $0x530] sm:$0xff] }
0x1edd   :  { %8614 = vmatpush1.bf16.msra.mxu1 %v8613_v13  ;;  %v8591_v4 = vpack.c.bf16 %v5885_v51, %v5879_v6  ;;  %v5880_v13 = vld [vmem:[#allocation6 + $0x538] sm:$0xff] }
0x1ede   :  { %8616 = vmatprep.subr.bf16.mxu1 %v8615_v1  ;;  %8586 = vmatpush1.bf16.msra.mxu0 %v8585_v0  ;;  %v8625_v59 = vpack.c.bf16 %v5886_v12, %v5880_v13  ;;  %v5893_v1 = vld [vmem:[#allocation6 + $0x670] sm:$0xff] }
0x1edf   :  { %v5896_v0 = vld [vmem:[#allocation6 + $0x6f0] sm:$0xff] }
0x1ee1   :  { %8618 = vmatpush1.bf16.msra.mxu1 %v8617_v44  ;;  %v8627_v44 = vpack.c.bf16 %v5899_v54, %v5893_v1  ;;  %v11744_v54 = vld [vmem:[#allocation9 + $0x30] sm:$0xff] }
0x1ee2   :  { %8620 = vmatprep.subr.bf16.mxu1 %v8619_v30 }
0x1ee5   :  { %8622 = vmatpush1.bf16.msra.mxu1 %v8621_v2 }
0x1ee6   :  { %8624 = vmatprep.subr.bf16.mxu1 %v8623_v19  ;;  %v5841_v19 = vld [vmem:[#allocation6 + $0x128] sm:$0xff] }
0x1ee9   :  { %8626 = vmatpush1.bf16.msra.mxu1 %v8625_v59 }
0x1eea   :  { %8628 = vmatprep.subr.bf16.mxu1 %v8627_v44  ;;  %v11976_v44 = vld [vmem:[#allocation14_spill] sm:$0xff] }
0x1f30   :  { %v5719_v49 = vpop.xlane.xlu1 %5718 }
0x1f31   :  { %v5734_v33 = vmul.f32 0.0078125, %v5719_v49  ;;  %v8597_v49 = vpack.c.bf16 %v5896_v0, %v5890_v42 }
0x1f33   :  { %v11705_v36 = vsub.f32 %v11673_v50, %v5734_v33  ;;  %v5892_v33 = vld [vmem:[#allocation6 + $0x668] sm:$0xff] }
0x1f34   :  { %v5721_v26 = vpop.xlane.xlu0 %5720 }
0x1f35   :  { %v5735_v34 = vmul.f32 0.0078125, %v5721_v26  ;;  %v5750_v24 = vmul.f32 %v11705_v36, %v11705_v36  ;;  %v5898_v26 = vld [vmem:[#allocation6 + $0x700] sm:$0xff] }
0x1f37   :  { %v11710_v43 = vsub.f32 %v11677_v7, %v5735_v34  ;;  %5758 = vadd.xlane.f32.xlu1 %v5750_v24  ;;  %v8629_v34 = vpack.c.bf16 %v5898_v26, %v5892_v33  ;;  %v5903_v24 = vld [vmem:[#allocation6 + $0x790] sm:$0xff] }
0x1f38   :  { %v5723_v10 = vpop.xlane.xlu1 %5722 }
0x1f39   :  { %v5736_v9 = vmul.f32 0.0078125, %v5723_v10  ;;  %v5751_v3 = vmul.f32 %v11710_v43, %v11710_v43  ;;  %v5909_v10 = vld [vmem:[#allocation6 + $0x828] sm:$0xff]  ;;  %8630 = vmatpush1.bf16.msra.mxu1 %v8629_v34 }
0x1f3b   :  { %v11715_v63 = vsub.f32 %v11681_v16, %v5736_v9  ;;  %5760 = vadd.xlane.f32.xlu0 %v5751_v3  ;;  %v5905_v9 = vld [vmem:[#allocation6 + $0x7a0] sm:$0xff]  ;;  %v8599_v3 = vpack.c.bf16 %v5909_v10, %v5903_v24  ;;  %v11753_v10 = vrot.slane %v11744_v54, %v11975_v32 }
0x1f3c   :  { %v5725_v50 = vpop.xlane.xlu0 %5724 }
0x1f3d   :  { %v5737_v29 = vmul.f32 0.0078125, %v5725_v50  ;;  %v5752_v18 = vmul.f32 %v11715_v63, %v11715_v63  ;;  %v5911_v50 = vld [vmem:[#allocation6 + $0x838] sm:$0xff] }
0x1f3f   :  { %v11720_v23 = vsub.f32 %v11685_v40, %v5737_v29  ;;  %5762 = vadd.xlane.f32.xlu1 %v5752_v18  ;;  %v8587_v40 = vpack.c.bf16 %v5873_v52, %v5867_v5  ;;  %v5902_v29 = vld [vmem:[#allocation6 + $0x788] sm:$0xff]  ;;  %v5908_v18 = vld [vmem:[#allocation6 + $0x820] sm:$0xff]  ;;  %v5921_v5 = vld [vmem:[#allocation6 + $0x958] sm:$0xff] }
0x1f40   :  { %v5727_v7 = vpop.xlane.xlu1 %5726  ;;  %v5917_v52 = vld [vmem:[#allocation6 + $0x8d0] sm:$0xff] }
0x1f41   :  { %v5738_v31 = vmul.f32 0.0078125, %v5727_v7  ;;  %v5753_v15 = vmul.f32 %v11720_v23, %v11720_v23  ;;  %8588 = vmatprep.subr.bf16.mxu0 %v8587_v40  ;;  %v8631_v7 = vpack.c.bf16 %v5911_v50, %v5905_v9  ;;  %v5923_v40 = vld [vmem:[#allocation6 + $0x968] sm:$0xff]  ;;  %v5840_v50 = vld [vmem:[#allocation6 + $0x120] sm:$0xff] }
0x1f43   :  { %v11725_v57 = vsub.f32 %v11689_v58, %v5738_v31  ;;  %5764 = vadd.xlane.f32.xlu0 %v5753_v15  ;;  %v8589_v58 = vpack.c.bf16 %v5872_v37, %v5866_v35  ;;  %v8601_v31 = vpack.c.bf16 %v5908_v18, %v5902_v29  ;;  %v5904_v15 = vld [vmem:[#allocation6 + $0x798] sm:$0xff]  ;;  %8632 = vmatprep.subr.bf16.mxu1 %v8631_v7  ;;  %v5920_v35 = vld [vmem:[#allocation6 + $0x950] sm:$0xff]  ;;  %v5847_v18 = vld [vmem:[#allocation6 + $0x1c0] sm:$0xff] }
0x1f44   :  { %v5729_v16 = vpop.xlane.xlu0 %5728  ;;  %v8635_v37 = vpack.c.bf16 %v5923_v40, %v5917_v52  ;;  %v8605_v30 = vpack.c.bf16 %v5920_v35, %v5914_v55  ;;  %v5853_v7 = vld [vmem:[#allocation6 + $0x258] sm:$0xff]  ;;  %v5852_v40 = vld [vmem:[#allocation6 + $0x250] sm:$0xff] }
0x1f45   :  { %v5739_v14 = vmul.f32 0.0078125, %v5729_v16  ;;  %v5754_v25 = vmul.f32 %v11725_v57, %v11725_v57  ;;  %8590 = vmatpush1.bf16.msra.mxu0 %v8589_v58  ;;  %v5910_v16 = vld [vmem:[#allocation6 + $0x830] sm:$0xff]  ;;  %v5916_v58 = vld [vmem:[#allocation6 + $0x8c8] sm:$0xff]  ;;  %v8643_v52 = vpack.c.bf16 %v5853_v7, %v5847_v18  ;;  %v5894_v18 = vld [vmem:[#allocation6 + $0x678] sm:$0xff] }
0x1f46   :  { %8592 = vmatprep.subr.bf16.mxu0 %v8591_v4  ;;  %v8637_v22 = vpack.c.bf16 %v5922_v38, %v5916_v58  ;;  %v5859_v35 = vld [vmem:[#allocation6 + $0x2f0] sm:$0xff] }
0x1f47   :  { %v11730_v53 = vsub.f32 %v11693_v41, %v5739_v14  ;;  %5766 = vadd.xlane.f32.xlu1 %v5754_v25  ;;  %v5878_v41 = vld [vmem:[#allocation6 + $0x528] sm:$0xff]  ;;  %v8633_v14 = vpack.c.bf16 %v5910_v16, %v5904_v15  ;;  %v5915_v25 = vld [vmem:[#allocation6 + $0x8c0] sm:$0xff]  ;;  %v5900_v7 = vld [vmem:[#allocation6 + $0x710] sm:$0xff] }
0x1f48   :  { %v8593_v48 = vpack.c.bf16 %v5884_v47, %v5878_v41  ;;  %v8603_v39 = vpack.c.bf16 %v5921_v5, %v5915_v25  ;;  %v5835_v47 = vld [vmem:[#allocation6 + $0x90] sm:$0xff] }
0x1f49   :  { %v5755_v56 = vmul.f32 %v11730_v53, %v11730_v53  ;;  %8634 = vmatpush1.bf16.msra.mxu1 %v8633_v14 }
0x1f4a   :  { %8594 = vmatpush1.bf16.msra.mxu0 %v8593_v48  ;;  %8636 = vmatprep.subr.bf16.mxu1 %v8635_v37  ;;  %v8639_v48 = vpack.c.bf16 %v5841_v19, %v5835_v47  ;;  %v5865_v37 = vld [vmem:[#allocation6 + $0x388] sm:$0xff] }
0x1f4b   :  { %5768 = vadd.xlane.f32.xlu0 %v5755_v56  ;;  %8596 = vmatprep.subr.bf16.mxu0 %v8595_v17 }
0x1f4d   :  { %8638 = vmatpush1.bf16.msra.mxu1 %v8637_v22 }
0x1f4e   :  { %8598 = vmatpush1.bf16.msra.mxu0 %v8597_v49  ;;  %v11748_v49 = vrot.slane %v11744_v54, %v11976_v44 }
0x1f4f   :  { %8600 = vmatprep.subr.bf16.mxu0 %v8599_v3  ;;  %v5834_v3 = vld [vmem:[#allocation6 + $0x88] sm:$0xff] }
0x1f50   :  { %v8641_v25 = vpack.c.bf16 %v5840_v50, %v5834_v3 }
0x1f52   :  { %8602 = vmatpush1.bf16.msra.mxu0 %v8601_v31 }
0x1f53   :  { %8604 = vmatprep.subr.bf16.mxu0 %v8603_v39  ;;  %v5846_v39 = vld [vmem:[#allocation6 + $0x1b8] sm:$0xff] }
0x1f54   :  { %v8645_v22 = vpack.c.bf16 %v5852_v40, %v5846_v39  ;;  %v5919_v39 = vld [vmem:[#allocation6 + $0x8e0] sm:$0xff]  ;;  %v5925_v40 = vld [vmem:[#allocation6 + $0x978] sm:$0xff] }
0x1f56   :  { %8606 = vmatpush1.bf16.msra.mxu0 %v8605_v30 }
0x1f57   :  { %8640 = vmatprep.subr.bf16.mxu0 %v8639_v48 }
0x1f64   :  { %v5731_v2 = vpop.xlane.xlu1 %5730 }
0x1f65   :  { %v5740_v56 = vmul.f32 0.0078125, %v5731_v2  ;;  %v8647_v2 = vpack.c.bf16 %v5865_v37, %v5859_v35  ;;  %v8667_v35 = vpack.c.bf16 %v5925_v40, %v5919_v39  ;;  %v5918_v37 = vld [vmem:[#allocation6 + $0x8d8] sm:$0xff]  ;;  %v11977_v40 = vld [vmem:[#allocation17_spill] sm:$0xff] }
0x1f67   :  { %v11735_v6 = vsub.f32 %v11697_v45, %v5740_v56  ;;  %v5858_v56 = vld [vmem:[#allocation6 + $0x2e8] sm:$0xff] }
0x1f68   :  { %v5733_v51 = vpop.xlane.xlu0 %5732 }
0x1f69   :  { %v5741_v62 = vmul.f32 0.0078125, %v5733_v51  ;;  %v5756_v4 = vmul.f32 %v11735_v6, %v11735_v6  ;;  %v5864_v51 = vld [vmem:[#allocation6 + $0x380] sm:$0xff] }
0x1f6a   :  { %v8649_v48 = vpack.c.bf16 %v5864_v51, %v5858_v56 }
0x1f6b   :  { %v11740_v61 = vsub.f32 %v11701_v27, %v5741_v62  ;;  %5770 = vadd.xlane.f32.xlu1 %v5756_v4  ;;  %v5871_v4 = vld [vmem:[#allocation6 + $0x420] sm:$0xff] }
0x1f6d   :  { %v5757_v41 = vmul.f32 %v11740_v61, %v11740_v61 }
0x1f6f   :  { %5772 = vadd.xlane.f32.xlu0 %v5757_v41  ;;  %v5877_v41 = vld [vmem:[#allocation6 + $0x4b8] sm:$0xff] }
0x1fc4   :  { %v5759_v13 = vpop.xlane.xlu1 %5758 }
0x1fc5   :  { %v5774_v45 = vmul.f32 0.0078125, %v5759_v13  ;;  %v8651_v13 = vpack.c.bf16 %v5877_v41, %v5871_v4 }
0x1fc7   :  { %v5782_v12 = vadd.f32 1e-05, %v5774_v45  ;;  %v5870_v45 = vld [vmem:[#allocation6 + $0x418] sm:$0xff] }
0x1fc8   :  { %v5761_v59 = vpop.xlane.xlu0 %5760 }
0x1fc9   :  { %9360 = vrsqrt.f32 %v5782_v12  ;;  %v5775_v11 = vmul.f32 0.0078125, %v5761_v59  ;;  %v5876_v12 = vld [vmem:[#allocation6 + $0x4b0] sm:$0xff] }
0x1fcb   :  { %v5783_v21 = vadd.f32 1e-05, %v5775_v11  ;;  %v5883_v11 = vld [vmem:[#allocation6 + $0x550] sm:$0xff] }
0x1fcc   :  { %v5763_v1 = vpop.xlane.xlu1 %5762 }
0x1fcd   :  { %9362 = vrsqrt.f32 %v5783_v21  ;;  %v5776_v27 = vmul.f32 0.0078125, %v5763_v1  ;;  %v5889_v21 = vld [vmem:[#allocation6 + $0x5e8] sm:$0xff] }
0x1fcf   :  { %v5784_v17 = vadd.f32 1e-05, %v5776_v27 }
0x1fd0   :  { %v5765_v42 = vpop.xlane.xlu0 %5764 }
0x1fd1   :  { %9364 = vrsqrt.f32 %v5784_v17  ;;  %v5777_v0 = vmul.f32 0.0078125, %v5765_v42  ;;  %v8653_v17 = vpack.c.bf16 %v5876_v12, %v5870_v45  ;;  %v8655_v42 = vpack.c.bf16 %v5889_v21, %v5883_v11 }
0x1fd3   :  { %v9361_v33 = vpop.eup %9360  ;;  %v5785_v26 = vadd.f32 1e-05, %v5777_v0  ;;  %v5882_v0 = vld [vmem:[#allocation6 + $0x548] sm:$0xff] }
0x1fd4   :  { %v5798_v34 = vmul.f32 %v9361_v33, %v11705_v36  ;;  %v5767_v24 = vpop.xlane.xlu1 %5766  ;;  %v5888_v33 = vld [vmem:[#allocation6 + $0x5e0] sm:$0xff] }
0x1fd5   :  { %9366 = vrsqrt.f32 %v5785_v26  ;;  %v5778_v9 = vmul.f32 0.0078125, %v5767_v24  ;;  %v5901_v24 = vld [vmem:[#allocation6 + $0x718] sm:$0xff]  ;;  %v8657_v50 = vpack.c.bf16 %v5888_v33, %v5882_v0 }
0x1fd6   :  { %v5810_v29 = vmul.f32 %v11748_v49, %v5798_v34  ;;  %v5895_v34 = vld [vmem:[#allocation6 + $0x680] sm:$0xff] }
0x1fd7   :  { %v9363_v31 = vpop.eup %9362  ;;  %v5786_v15 = vadd.f32 1e-05, %v5778_v9 }
0x1fd8   :  { %v5769_v16 = vpop.xlane.xlu0 %5768  ;;  %v11757_v14 = vadd.f32 %v11753_v10, %v5810_v29  ;;  %v5799_v36 = vmul.f32 %v9363_v31, %v11710_v43  ;;  %v8659_v29 = vpack.c.bf16 %v5901_v24, %v5895_v34 }
0x1fd9   :  { %9368 = vrsqrt.f32 %v5786_v15  ;;  %v5779_v5 = vmul.f32 0.0078125, %v5769_v16  ;;  %v5907_v15 = vld [vmem:[#allocation6 + $0x7b0] sm:$0xff]  ;;  %v5913_v16 = vld [vmem:[#allocation6 + $0x848] sm:$0xff] }
0x1fda   :  { %5991 = vmatmul.mubr.f32.vlgmr.msra.gmra.mrb[132].mxu0 %v11757_v14  ;;  %6096 = vmatmul.mubr.f32.vlgmr.msra.gmra.mrb[132].mxu1 %v11757_v14  ;;  %v5811_v55 = vmul.f32 %v11748_v49, %v5799_v36  ;;  %v8661_v36 = vpack.c.bf16 %v5900_v7, %v5894_v18 }
0x1fdb   :  { %v9365_v30 = vpop.eup %9364  ;;  %v5787_v58 = vadd.f32 1e-05, %v5779_v5  ;;  %5995 = vmatprep.mubr.f32.mxu0 %v11952_v8  ;;  %6101 = vmatprep.mubr.f32.mxu1 %v11952_v8  ;;  %v5906_v5 = vld [vmem:[#allocation6 + $0x7a8] sm:$0xff] }
0x1fdc   :  { %v11766_v43 = vadd.f32 %v11753_v10, %v5811_v55  ;;  %v5800_v38 = vmul.f32 %v9365_v30, %v11715_v63  ;;  %8642 = vmatpush1.bf16.msra.mxu0 %v8641_v25  ;;  %v8663_v25 = vpack.c.bf16 %v5913_v16, %v5907_v15  ;;  %v5924_v30 = vld [vmem:[#allocation6 + $0x970] sm:$0xff] }
0x1fdd   :  { %9370 = vrsqrt.f32 %v5787_v58  ;;  %8644 = vmatprep.subr.bf16.mxu0 %v8643_v52  ;;  %v5912_v52 = vld [vmem:[#allocation6 + $0x840] sm:$0xff]  ;;  %v8669_v58 = vpack.c.bf16 %v5924_v30, %v5918_v37 }
0x1fde   :  { %5996 = vmatmul.mubr.f32.gmra.mrb[134].mxu0 %v11766_v43  ;;  %6102 = vmatmul.mubr.f32.gmra.mrb[134].mxu1 %v11766_v43  ;;  %v5812_v62 = vmul.f32 %v11748_v49, %v5800_v38  ;;  %v8665_v55 = vpack.c.bf16 %v5912_v52, %v5906_v5 }
0x1fdf   :  { %v9367_v47 = vpop.eup %9366  ;;  %6000 = vmatprep.mubr.f32.mxu0 %v11952_v8  ;;  %6105 = vmatprep.mubr.f32.mxu1 %v11952_v8 }
0x1fe0   :  { %v11775_v63 = vadd.f32 %v11753_v10, %v5812_v62  ;;  %v5801_v19 = vmul.f32 %v9367_v47, %v11720_v23  ;;  %8646 = vmatpush1.bf16.msra.mxu0 %v8645_v22 }
0x1fe1   :  { %8648 = vmatprep.subr.bf16.mxu0 %v8647_v2 }
0x1fe2   :  { %6001 = vmatmul.mubr.f32.gmra.mrb[136].mxu0 %v11775_v63  ;;  %6106 = vmatmul.mubr.f32.gmra.mrb[136].mxu1 %v11775_v63  ;;  %v5813_v59 = vmul.f32 %v11748_v49, %v5801_v19 }
0x1fe3   :  { %v9369_v1 = vpop.eup %9368  ;;  %6005 = vmatprep.mubr.f32.mxu0 %v11952_v8  ;;  %6111 = vmatprep.mubr.f32.mxu1 %v11952_v8 }
0x1fe4   :  { %v11784_v23 = vadd.f32 %v11753_v10, %v5813_v59  ;;  %v5802_v27 = vmul.f32 %v9369_v1, %v11725_v57  ;;  %8650 = vmatpush1.bf16.msra.mxu0 %v8649_v48 }
0x1fe5   :  { %8652 = vmatprep.subr.bf16.mxu0 %v8651_v13 }
0x1fe6   :  { %6006 = vmatmul.mubr.f32.gmra.mrb[138].mxu0 %v11784_v23  ;;  %6112 = vmatmul.mubr.f32.gmra.mrb[138].mxu1 %v11784_v23  ;;  %v5814_v26 = vmul.f32 %v11748_v49, %v5802_v27 }
0x1fe7   :  { %v9371_v9 = vpop.eup %9370  ;;  %6010 = vmatprep.mubr.f32.mxu0 %v11952_v8  ;;  %6115 = vmatprep.mubr.f32.mxu1 %v11952_v8 }
0x1fe8   :  { %v11793_v57 = vadd.f32 %v11753_v10, %v5814_v26  ;;  %v5803_v3 = vmul.f32 %v9371_v9, %v11730_v53  ;;  %8654 = vmatpush1.bf16.msra.mxu0 %v8653_v17 }
0x1fe9   :  { %8656 = vmatprep.subr.bf16.mxu0 %v8655_v42 }
0x1fea   :  { %6011 = vmatmul.mubr.f32.gmra.mrb[140].mxu0 %v11793_v57  ;;  %6116 = vmatmul.mubr.f32.gmra.mrb[140].mxu1 %v11793_v57  ;;  %v5815_v31 = vmul.f32 %v11748_v49, %v5803_v3 }
0x1feb   :  { %6015 = vmatprep.mubr.f32.mxu0 %v11952_v8  ;;  %6121 = vmatprep.mubr.f32.mxu1 %v11952_v8 }
0x1fec   :  { %v5827_v53 = vadd.f32 %v11753_v10, %v5815_v31  ;;  %8658 = vmatpush1.bf16.msra.mxu0 %v8657_v50 }
0x1fed   :  { %8660 = vmatprep.subr.bf16.mxu0 %v8659_v29 }
0x1fee   :  { %6016 = vmatmul.mubr.f32.gmra.mrb[142].mxu0 %v5827_v53  ;;  %6122 = vmatmul.mubr.f32.gmra.mrb[142].mxu1 %v5827_v53 }
0x1fef   :  { %6020 = vmatprep.mubr.f32.mxu0 %v11952_v8  ;;  %6125 = vmatprep.mubr.f32.mxu1 %v11952_v8 }
0x1ff0   :  { %8662 = vmatpush1.bf16.msra.mxu0 %v8661_v36 }
0x1ff1   :  { %8664 = vmatprep.subr.bf16.mxu0 %v8663_v25 }
0x1ff4   :  { %8666 = vmatpush1.bf16.msra.mxu0 %v8665_v55  ;;  %v11848_v55 = vrot.slane %v11744_v54, %v11977_v40 }
0x1ff5   :  { %8668 = vmatprep.subr.bf16.mxu0 %v8667_v35 }
0x1ff8   :  { %v5771_v38 = vpop.xlane.xlu1 %5770  ;;  %8670 = vmatpush1.bf16.msra.mxu0 %v8669_v58  ;;  %v11853_v58 = vrot.slane %v11744_v54, %v11974_v20 }
0x1ff9   :  { %v5780_v22 = vmul.f32 0.0078125, %v5771_v38 }
0x1ffb   :  { %v5788_v2 = vadd.f32 1e-05, %v5780_v22 }
0x1ffc   :  { %v5773_v56 = vpop.xlane.xlu0 %5772 }
0x1ffd   :  { %9372 = vrsqrt.f32 %v5788_v2  ;;  %v5781_v51 = vmul.f32 0.0078125, %v5773_v56 }
0x1fff   :  { %v5789_v62 = vadd.f32 1e-05, %v5781_v51 }
0x2001   :  { %9374 = vrsqrt.f32 %v5789_v62 }
0x2007   :  { %v9373_v4 = vpop.eup %9372 }
0x2008   :  { %v5804_v41 = vmul.f32 %v9373_v4, %v11735_v6  ;;  %v11825_v6 = vld [vmem:[#allocation9 + $0x48] sm:$0xff] }
0x200a   :  { %v5816_v47 = vmul.f32 %v11748_v49, %v5804_v41 }
0x200b   :  { %v9375_v19 = vpop.eup %9374 }
0x200c   :  { %v5828_v48 = vadd.f32 %v11753_v10, %v5816_v47  ;;  %v5805_v13 = vmul.f32 %v9375_v19, %v11740_v61  ;;  %v6339_v61 = vrot.slane %v11825_v6, 2 }
0x200e   :  { %6021 = vmatmul.mubr.f32.gmra.mrb[144].mxu0 %v5828_v48  ;;  %6126 = vmatmul.mubr.f32.gmra.mrb[144].mxu1 %v5828_v48  ;;  %v5817_v45 = vmul.f32 %v11748_v49, %v5805_v13  ;;  %8671 = vpush %v6339_v61 }
0x200f   :  { %6025 = vmatprep.mubr.f32.mxu0 %v11952_v8  ;;  %6131 = vmatprep.mubr.f32.mxu1 %v11952_v8 }
0x2010   :  { %v5829_v12 = vadd.f32 %v11753_v10, %v5817_v45 }
0x2012   :  { %6026 = vmatmul.mubr.f32.gmra.mrb[146].mxu0 %v5829_v12  ;;  %6132 = vmatmul.mubr.f32.gmra.mrb[146].mxu1 %v5829_v12 }
0x2013   :  { %6200 = vmatprep.mubr.f32.mxu0 %v11952_v8 }
0x2016   :  { %6201 = vmatmul.mubr.f32.vlgmr.msra.gmra.mrb[148].mxu0 %v11757_v14 }
0x2017   :  { %6204 = vmatprep.mubr.f32.mxu0 %v11952_v8 }
0x201a   :  { %6205 = vmatmul.mubr.f32.gmra.mrb[150].mxu0 %v11766_v43 }
0x201b   :  { %6210 = vmatprep.mubr.f32.mxu0 %v11952_v8 }
0x201e   :  { %6211 = vmatmul.mubr.f32.gmra.mrb[152].mxu0 %v11775_v63 }
0x201f   :  { %6214 = vmatprep.mubr.f32.mxu0 %v11952_v8 }
0x2022   :  { %6215 = vmatmul.mubr.f32.gmra.mrb[154].mxu0 %v11784_v23 }
0x2023   :  { %6220 = vmatprep.mubr.f32.mxu0 %v11952_v8 }
0x2026   :  { %6221 = vmatmul.mubr.f32.gmra.mrb[156].mxu0 %v11793_v57 }
0x2027   :  { %6224 = vmatprep.mubr.f32.mxu0 %v11952_v8 }
0x202a   :  { %6225 = vmatmul.mubr.f32.gmra.mrb[158].mxu0 %v5827_v53 }
0x202b   :  { %6230 = vmatprep.mubr.f32.mxu0 %v11952_v8 }
0x202e   :  { %6231 = vmatmul.mubr.f32.gmra.mrb[160].mxu0 %v5828_v48 }
0x202f   :  { %6234 = vmatprep.mubr.f32.mxu0 %v11952_v8 }
0x2032   :  { %6235 = vmatmul.mubr.f32.gmra.mrb[162].mxu0 %v5829_v12 }
0x203f   :  { %s8672_s24 = spop %8671 }
0x20ad   :  { %v5992_v49 = vpop.f32.mrb[132].mxu0  ;;  %v6097_v10 = vpop.f32.mrb[132].mxu1 }
0x20ae   :  { %v6276_v14 = vrot.slane %v6097_v10, %v11976_v44  ;;  %v5994_v43 = vpop.f32.mrb[133].mxu0  ;;  %v6099_v63 = vpop.f32.mrb[133].mxu1 }
0x20b0   :  { %v11831_v59 = vadd.f32 %v6276_v14, %v6099_v63 }
0x20b1   :  { %v5997_v11 = vpop.f32.mrb[134].mxu0  ;;  %v6103_v21 = vpop.f32.mrb[134].mxu1 }
0x20b2   :  { %v5998_v1 = vpop.f32.mrb[135].mxu0  ;;  %v6104_v8 = vpop.f32.mrb[135].mxu1  ;;  %v11978_v11 = vld [vmem:[#allocation18_spill] sm:$0xff] }
0x20b3   :  { %v6244_v23 = vrot.slane %v5998_v1, %v11976_v44  ;;  %v6433_v21 = vrot.slane %v11744_v54, %v11978_v11  ;;  %v6445_v1 = vrot.slane %v11744_v54, %v10717_v60 }
0x20b5   :  { %v11834_v27 = vadd.f32 %v6244_v23, %v5992_v49  ;;  %v6002_v17 = vpop.f32.mrb[136].mxu0  ;;  %v6107_v42 = vpop.f32.mrb[136].mxu1 }
0x20b6   :  { %v6280_v0 = vrot.slane %v6107_v42, %v11976_v44  ;;  %v6004_v33 = vpop.f32.mrb[137].mxu0  ;;  %v6109_v26 = vpop.f32.mrb[137].mxu1 }
0x20b8   :  { %v11837_v34 = vadd.f32 %v6280_v0, %v6109_v26 }
0x20b9   :  { %v6007_v24 = vpop.f32.mrb[138].mxu0  ;;  %v6113_v9 = vpop.f32.mrb[138].mxu1 }
0x20ba   :  { %v6008_v57 = vpop.f32.mrb[139].mxu0  ;;  %v6114_v3 = vpop.f32.mrb[139].mxu1 }
0x20bb   :  { %v6248_v50 = vrot.slane %v6008_v57, %v11976_v44  ;;  %v6457_v57 = vrot.slane %v11825_v6, %v11976_v44 }
0x20bd   :  { %v11840_v29 = vadd.f32 %v6248_v50, %v6002_v17  ;;  %v6012_v18 = vpop.f32.mrb[140].mxu0  ;;  %v6117_v7 = vpop.f32.mrb[140].mxu1 }
0x20be   :  { %v6284_v31 = vrot.slane %v6117_v7, %v11976_v44  ;;  %v6014_v15 = vpop.f32.mrb[141].mxu0  ;;  %v6119_v16 = vpop.f32.mrb[141].mxu1 }
0x20c0   :  { %v11843_v53 = vadd.f32 %v6284_v31, %v6119_v16 }
0x20c1   :  { %v6017_v36 = vpop.f32.mrb[142].mxu0  ;;  %v6123_v25 = vpop.f32.mrb[142].mxu1 }
0x20c2   :  { %v6018_v5 = vpop.f32.mrb[143].mxu0  ;;  %v6124_v52 = vpop.f32.mrb[143].mxu1 }
0x20c3   :  { %v6252_v39 = vrot.slane %v6018_v5, %v11976_v44 }
0x20c5   :  { %v6259_v35 = vadd.f32 %v6252_v39, %v6012_v18  ;;  %v6485_v18 = vrot.slane %v11825_v6, %v11975_v32 }
0x20c7   :  { %v6267_v37 = vadd.f32 %v11848_v55, %v6259_v35 }
0x20c9   :  { %v6271_v30 = vmax.f32 %v6267_v37, 0.0 }
0x20cb   :  { %v11856_v38 = vmul.f32 %v11853_v58, %v6271_v30 }
0x20e1   :  { %v6022_v22 = vpop.f32.mrb[144].mxu0  ;;  %v6127_v2 = vpop.f32.mrb[144].mxu1 }
0x20e2   :  { %v6288_v56 = vrot.slane %v6127_v2, %v11976_v44  ;;  %v6024_v51 = vpop.f32.mrb[145].mxu0  ;;  %v6129_v62 = vpop.f32.mrb[145].mxu1 }
0x20e4   :  { %v11859_v4 = vadd.f32 %v6288_v56, %v6129_v62 }
0x20e5   :  { %v6027_v41 = vpop.f32.mrb[146].mxu0  ;;  %v6133_v47 = vpop.f32.mrb[146].mxu1 }
0x20e6   :  { %v6028_v19 = vpop.f32.mrb[147].mxu0  ;;  %v6134_v48 = vpop.f32.mrb[147].mxu1 }
0x20e7   :  { %v6256_v13 = vrot.slane %v6028_v19, %v11976_v44 }
0x20e9   :  { %v6260_v45 = vadd.f32 %v6256_v13, %v6022_v22  ;;  %v6202_v20 = vpop.f32.mrb[148].mxu0 }
0x20ea   :  { %v6203_v12 = vpop.f32.mrb[149].mxu0 }
0x20eb   :  { %v6268_v49 = vadd.f32 %v11848_v55, %v6260_v45 }
0x20ed   :  { %v6272_v10 = vmax.f32 %v6268_v49, 0.0  ;;  %v6206_v14 = vpop.f32.mrb[150].mxu0 }
0x20ee   :  { %v6208_v43 = vpop.f32.mrb[151].mxu0  ;;  %v6434_v17 = vadd.f32 %v6433_v21, %v6206_v14  ;;  %v11979_v14 = vld [vmem:[#allocation16_spill] sm:$0xff] }
0x20ef   :  { %v11864_v63 = vmul.f32 %v11853_v58, %v6272_v10  ;;  %v6446_v42 = vadd.f32 %v6445_v1, %v6208_v43  ;;  %v6296_v43 = vrot.slane %v11744_v54, %v11979_v14 }
0x20f0   :  { %v6438_v9 = vmax.f32 %v6434_v17, 0.0 }
0x20f1   :  { %v6212_v8 = vpop.f32.mrb[152].mxu0  ;;  %v6450_v50 = vmax.f32 %v6446_v42, 0.0 }
0x20f2   :  { %v6213_v23 = vpop.f32.mrb[153].mxu0  ;;  %v6458_v36 = vmul.f32 %v6457_v57, %v6438_v9 }
0x20f3   :  { %v6486_v5 = vmul.f32 %v6485_v18, %v6450_v50  ;;  %v6298_v23 = vadd.f32 %v6296_v43, %v11837_v34  ;;  %v6265_v34 = vadd.f32 %v11848_v55, %v11834_v27 }
0x20f5   :  { %v6216_v0 = vpop.f32.mrb[154].mxu0 }
0x20f6   :  { %v6435_v33 = vadd.f32 %v6433_v21, %v6216_v0  ;;  %v6218_v26 = vpop.f32.mrb[155].mxu0 }
0x20f7   :  { %v6447_v24 = vadd.f32 %v6445_v1, %v6218_v26 }
0x20f8   :  { %v6439_v3 = vmax.f32 %v6435_v33, 0.0  ;;  %v6302_v33 = vmax.f32 %v6298_v23, 0.0 }
0x20f9   :  { %v6451_v7 = vmax.f32 %v6447_v24, 0.0  ;;  %v6222_v31 = vpop.f32.mrb[156].mxu0 }
0x20fa   :  { %v6459_v60 = vmul.f32 %v6457_v57, %v6439_v3  ;;  %v6223_v15 = vpop.f32.mrb[157].mxu0  ;;  %v6297_v31 = vadd.f32 %v6296_v43, %v11831_v59 }
0x20fb   :  { %v6487_v16 = vmul.f32 %v6485_v18, %v6451_v7 }
0x20fc   :  { %v6466_v25 = vrot.slane %v6459_v60, 7  ;;  %v6301_v60 = vmax.f32 %v6297_v31, 0.0 }
0x20fd   :  { %v6494_v52 = vrot.slane %v6487_v16, 7  ;;  %v6226_v39 = vpop.f32.mrb[158].mxu0 }
0x20fe   :  { %v6436_v35 = vadd.f32 %v6433_v21, %v6226_v39  ;;  %v6228_v37 = vpop.f32.mrb[159].mxu0  ;;  %v6467_v44 = vsel %vm6423_vm6, %v6466_v25, %v6458_v36 }
0x20ff   :  { %v6448_v30 = vadd.f32 %v6445_v1, %v6228_v37  ;;  %v6495_v22 = vsel %vm6423_vm6, %v6494_v52, %v6486_v5  ;;  %v9539_v5 = vmov 0  }
0x2100   :  { %v6440_v2 = vmax.f32 %v6436_v35, 0.0  ;;  %9054 = vset.pattern.permute.xlu0 %v9539_v5  ;;  %9055 = vset.pattern.permute.xlu1 %v9539_v5 }
0x2101   :  { %v6452_v32 = vmax.f32 %v6448_v30, 0.0  ;;  %v6232_v56 = vpop.f32.mrb[160].mxu0 }
0x2102   :  { %v6460_v51 = vmul.f32 %v6457_v57, %v6440_v2  ;;  %v6233_v62 = vpop.f32.mrb[161].mxu0 }
0x2103   :  { %v6488_v41 = vmul.f32 %v6485_v18, %v6452_v32 }
0x2104   :  { %v6468_v47 = vrot.slane %v6460_v51, 6 }
0x2105   :  { %v6496_v19 = vrot.slane %v6488_v41, 6  ;;  %v6236_v48 = vpop.f32.mrb[162].mxu0 }
0x2106   :  { %v6437_v13 = vadd.f32 %v6433_v21, %v6236_v48  ;;  %v6238_v45 = vpop.f32.mrb[163].mxu0  ;;  %v6469_v20 = vsel %vm6379_vm7, %v6468_v47, %v6467_v44 }
0x2107   :  { %v6449_v12 = vadd.f32 %v6445_v1, %v6238_v45  ;;  %v6497_v49 = vsel %vm6379_vm7, %v6496_v19, %v6495_v22  ;;  %v6299_v1 = vadd.f32 %v6296_v43, %v11843_v53 }
0x2108   :  { %v6441_v10 = vmax.f32 %v6437_v13, 0.0 }
0x2109   :  { %v6453_v11 = vmax.f32 %v6449_v12, 0.0  ;;  %v6303_v3 = vmax.f32 %v6299_v1, 0.0 }
0x210a   :  { %v6461_v8 = vmul.f32 %v6457_v57, %v6441_v10  ;;  %v6324_v57 = vrot.slane %v11744_v54, %v11618_v46  ;;  %v6300_v46 = vadd.f32 %v6296_v43, %v11859_v4  ;;  %v6266_v54 = vadd.f32 %v11848_v55, %v11840_v29 }
0x210b   :  { %v6489_v17 = vmul.f32 %v6485_v18, %v6453_v11  ;;  %v6269_v18 = vmax.f32 %v6265_v34, 0.0  ;;  %v11980_v55 = vlaneseq }
0x210c   :  { %v6470_v42 = vrot.slane %v6461_v8, 5  ;;  %v6326_v50 = vmul.f32 %v6324_v57, %v6302_v33  ;;  %v6327_v7 = vmul.f32 %v6324_v57, %v6303_v3  ;;  %v6304_v27 = vmax.f32 %v6300_v46, 0.0 }
0x210d   :  { %v6498_v0 = vrot.slane %v6489_v17, 5  ;;  %v6309_v53 = vmul.f32 %v11853_v58, %v6269_v18  ;;  %v6325_v15 = vmul.f32 %v6324_v57, %v6301_v60  ;;  %v6270_v16 = vmax.f32 %v6266_v54, 0.0 }
0x210e   :  { %v6471_v21 = vsel %vm6381_vm8, %v6470_v42, %v6469_v20  ;;  %v6328_v36 = vmul.f32 %v6324_v57, %v6304_v27  ;;  %v6341_v8 = vstv %s8672_s24 }
0x210f   :  { %v6474_v26 = vsel %vm6473_vm9, %v6471_v21, 0.0  ;;  %v6499_v24 = vsel %vm6381_vm8, %v6498_v0, %v6497_v49  ;;  %v6310_v25 = vmul.f32 %v11853_v58, %v6270_v16  ;;  %v6361_v58 = vand.u32 127, %v11980_v55 }
0x2110   :  { %6475 = vadd.xlane.f32.xlu1 %v6474_v26  ;;  %v6501_v9 = vsel %vm6473_vm9, %v6499_v24, 0.0 }
0x2111   :  { %6502 = vadd.xlane.f32.xlu0 %v6501_v9  ;;  %v6409_v42 = vsub.s32 %v6361_v58, %v11973_v28 }
0x2115   :  { %6331 = vadd.xlane.f32.xlu0 %v6326_v50 }
0x2119   :  { %6333 = vadd.xlane.f32.xlu0 %v6327_v7 }
0x211d   :  { %6313 = vadd.xlane.f32.xlu0 %v6309_v53 }
0x2121   :  { %6347 = vrot.lane.b32.xlu1 %v6339_v61, %s9538_s3  ;;  %v6480_v61 = vrot.slane %v11825_v6, %v11977_v40  ;;  %v6337_v6 = vld [vmem:[%s11917_s2] sm:$0xf]  ;;  %v6362_v40 = vadd.s32 1, %v6361_v58 }
0x2122   :  { %v6397_v37 = vsub.f32 1.0, %v6337_v6 }
0x2123   :  { %v6365_v30 = vsub.s32 %v6362_v40, %v11973_v28 }
0x2145   :  { %6329 = vadd.xlane.f32.xlu1 %v6325_v15 }
0x2149   :  { %6335 = vadd.xlane.f32.xlu1 %v6328_v36 }
0x214d   :  { %6315 = vadd.xlane.f32.xlu1 %v6310_v25 }
0x219d   :  { %v6476_v59 = vpop.xlane.xlu1 %6475 }
0x219e   :  { %v6481_v4 = vadd.f32 %v6480_v61, %v6476_v59  ;;  %v6503_v52 = vpop.xlane.xlu0 %6502 }
0x219f   :  { %v6504_v39 = vadd.f32 %v6503_v52, %v6480_v61 }
0x21a0   :  { %6511 = vrot.lane.b32.xlu1 %v6481_v4, %s9540_s1 }
0x21a1   :  { %v6348_v29 = vpop.permute.xlu1 %6347  ;;  %6506 = vrot.lane.b32.xlu0 %v6504_v39, %s9541_s22 }
0x21a2   :  { %8673 = vpush %v6348_v29  ;;  %v6332_v35 = vpop.xlane.xlu0 %6331 }
0x21a6   :  { %v6334_v22 = vpop.xlane.xlu0 %6333 }
0x21aa   :  { %v6314_v12 = vpop.xlane.xlu0 %6313 }
0x21ab   :  { %v6343_v0 = vadd.f32 %v6341_v8, %v6314_v12 }
0x21ad   :  { %v6410_v9 = vrot.slane %v6343_v0, %v6409_v42 }
0x21c0   :  { %6317 = vadd.xlane.f32.xlu0 %v11856_v38 }
0x21c4   :  { %6319 = vadd.xlane.f32.xlu1 %v11864_v63 }
0x21d2   :  { %v6330_v44 = vpop.xlane.xlu1 %6329 }
0x21d3   :  { %s8674_s25 = spop %8673 }
0x21d4   :  { %v6350_v2 = vstv %s8674_s25 }
0x21d5   :  { %v6352_v32 = vadd.f32 %v6350_v2, %v6330_v44  ;;  %v6353_v38 = vadd.f32 %v6350_v2, %v6332_v35  ;;  %v6354_v56 = vadd.f32 %v6350_v2, %v6334_v22  ;;  %6400 = vperm.xlu1 %9055, %v6397_v37  }
0x21d6   :  { %v6336_v63 = vpop.xlane.xlu1 %6335  ;;  %6390 = vperm.xlu0 %9054, %v6337_v6  }
0x21d7   :  { %v6366_v51 = vrot.slane %v6352_v32, %v6365_v30  ;;  %v6370_v62 = vrot.slane %v6353_v38, %v6365_v30  ;;  %v6374_v41 = vrot.slane %v6354_v56, %v6365_v30  ;;  %v6355_v47 = vadd.f32 %v6350_v2, %v6336_v63 }
0x21d9   :  { %v6378_v19 = vrot.slane %v6355_v47, %v6365_v30  ;;  %v6380_v48 = vsel %vm6379_vm7, %v6370_v62, %v6366_v51 }
0x21da   :  { %v6382_v13 = vsel %vm6381_vm8, %v6374_v41, %v6380_v48  ;;  %v6316_v20 = vpop.xlane.xlu1 %6315 }
0x21db   :  { %v6384_v45 = vsel %vm6383_vm10, %v6378_v19, %v6382_v13  ;;  %v6344_v23 = vadd.f32 %v6341_v8, %v6316_v20 }
0x21dc   :  { %v6387_v24 = vsel %vm6386_vm11, %v6384_v45, 0.0 }
0x21dd   :  { %v6414_v33 = vrot.slane %v6344_v23, %v6409_v42  ;;  %v6394_v3 = vrot.slane %v6387_v24, 1 }
0x21df   :  { %v6424_v50 = vsel %vm6423_vm6, %v6414_v33, %v6410_v9 }
0x2212   :  { %v6512_v49 = vpop.permute.xlu1 %6511 }
0x2213   :  { %v6514_v10 = vmul.f32 %v6512_v49, %v6397_v37  ;;  %v6507_v14 = vpop.permute.xlu0 %6506 }
0x2214   :  { %v6509_v43 = vmul.f32 %v6507_v14, %v6337_v6 }
0x2216   :  { %v6515_v11 = vadd.f32 %v6514_v10, %v6509_v43 }
0x2218   :  { %6517 = vrot.lane.b32.xlu1 %v6515_v11, %s9526_s18 }
0x224d   :  { %v6318_v17 = vpop.xlane.xlu0 %6317 }
0x224e   :  { %v6345_v21 = vadd.f32 %v6341_v8, %v6318_v17 }
0x2250   :  { %v6418_v1 = vrot.slane %v6345_v21, %v6409_v42 }
0x2251   :  { %v6320_v26 = vpop.xlane.xlu1 %6319 }
0x2252   :  { %v6346_v57 = vadd.f32 %v6341_v8, %v6320_v26  ;;  %v6425_v53 = vsel %vm6379_vm7, %v6418_v1, %v6424_v50 }
0x2254   :  { %v6422_v34 = vrot.slane %v6346_v57, %v6409_v42 }
0x2255   :  { %v6391_v18 = vpop.permute.xlu0 %6390  ;;  %v6401_v7 = vpop.permute.xlu1 %6400 }
0x2256   :  { %v6396_v31 = vmul.f32 %v6394_v3, %v6391_v18  ;;  %v6426_v28 = vsel %vm6381_vm8, %v6422_v34, %v6425_v53 }
0x2257   :  { %v6428_v60 = vmul.f32 %v6426_v28, %v6401_v7 }
0x2259   :  { %v6429_v46 = vadd.f32 %v6428_v60, %v6396_v31 }
0x228a   :  { %v6518_v54 = vpop.permute.xlu1 %6517 }
0x228b   :  { %v6521_v27 = vsel %vm6520_vm12, %v6429_v46, %v6518_v54 }
0x228c   :  { %v6523_v15 = vsel %vm6522_vm13, %v6521_v27, 0.0 }
0x228d   :  { %6525 = vst.msk [vmem:[%s11923_s8] sm:$0xf] %vm6524_vm14, %v6523_v15 }
0x228e   :  { %6530 = vsyncpa [#allocation3], 1 }
0x228f   :  { %6531 = vsyncpa [#allocation5], 1 }
0x2290   :  { %6532 = vsyncpa [#allocation8], 1 }

</bundles_post_ra>
